<compile_context>
chip_gen: v7x
topology: tpu7x:2x2x1
jax: 0.10.0
libtpu: 0.0.40
codegen_flags: <defaults>
</compile_context>

<pallas_src>
import functools
import math

import jax
import jax.numpy as jnp
from jax.experimental import pallas as pl
from jax.experimental.pallas import tpu as pltpu

# Cache rows touched per in-place KV write (one sublane tile).
KV_BLOCK_ROWS = 8

# Tile-size targets (lane tiles are multiples of 128, T tiles multiples of 8).
# Sized for v7x (64 MiB VMEM, 32 MiB scoped default): each gridded weight input is
# double-buffered, so 512-wide bf16 tiles at dim=4096 keep the footprint well under
# the explicit vmem budget below while staying near the HBM roofline.
# On v6e/v5e (128 MiB VMEM) these can be raised to 1024+ (and vmem_limit_bytes to
# 64-96 MiB) to amortize the ~0.35us per-grid-step overhead further.
QKV_TILE_N_TARGET = 512
WO_TILE_K_TARGET = 512
FFN_TILE_H_TARGET = 512
LMHEAD_TILE_V_TARGET = 512
ATTN_TILE_T_TARGET = 256
VMEM_LIMIT_BYTES = 48 * 1024 * 1024  # explicit scoped-VMEM budget (fits v7x phys)


def _pick_tile(n, target):
    """Largest multiple of 128 that divides n and is <= target (else n itself)."""
    if n <= target:
        return n
    t = (target // 128) * 128
    while t >= 128:
        if n % t == 0:
            return t
        t -= 128
    return n


def _pick_rows_tile(n, target):
    """Largest multiple of 8 that divides n and is <= target (else n itself)."""
    if n <= target:
        return n
    t = (target // 8) * 8
    while t >= 8:
        if n % t == 0:
            return t
        t -= 8
    return n


# ----------------------------- Pallas kernels ------------------------------ #

def _rope_packed(x, cosf, sinf):
    # x: (B, P) f32 with interleaved (real, imag) pairs along the lane axis,
    # P a multiple of 2.  partner[2j] = -x[2j+1], partner[2j+1] = x[2j].
    # Tile boundaries at multiples of 128 never split a pair, and the roll
    # wrap-around values are selected away by the even/odd mask.
    P = x.shape[-1]
    even = (jax.lax.broadcasted_iota(jnp.int32, x.shape, 1) % 2) == 0
    x_next = pltpu.roll(x, P - 1, axis=1)   # element j+1 -> position j
    x_prev = pltpu.roll(x, 1, axis=1)       # element j-1 -> position j
    partner = jnp.where(even, -x_next, x_prev)
    return x * cosf + partner * sinf


def _qkv_norm_rope_kernel(h_ref, g_ref, w_ref, cos_ref, sin_ref, o_ref, *, eps):
    # Fused RMSNorm -> one lane tile of the packed Q|K|V projection -> RoPE.
    # The V columns pass through RoPE untouched because their cos/sin are (1, 0).
    # The RMSNorm is recomputed per tile (tiny VPU/XLU work vs. the weight stream)
    # so the grid axis can stay "parallel" (megacore-safe).
    x = h_ref[...]                                               # (B, dim) f32
    ms = jnp.mean(x * x, axis=-1, keepdims=True)
    xn = (g_ref[...] * (x * jax.lax.rsqrt(ms + eps))).astype(jnp.bfloat16)
    y = jnp.dot(xn, w_ref[...], preferred_element_type=jnp.float32)  # (B, tile_n)
    o_ref[...] = _rope_packed(y, cos_ref[...], sin_ref[...])


def _kv_write_kernel(knew_ref, vnew_ref, kc_ref, vc_ref, kout_ref, vout_ref, *, row):
    # In-place cache update: only one KV_BLOCK_ROWS-row block of the (aliased)
    # cache is read / rewritten; the target row is replaced by the new K/V.
    # TODO(synk): could be fused away entirely with a memory_space=pl.ANY cache ref
    # and a single-row pltpu.make_async_copy from the QKV kernel.
    kblk = kc_ref[...]                                           # (B, Hkv, 8, hd)
    vblk = vc_ref[...]
    ridx = jax.lax.broadcasted_iota(jnp.int32, kblk.shape, dimension=2)
    sel = ridx == row
    kout_ref[...] = jnp.where(sel, knew_ref[...].astype(kblk.dtype)[:, :, None, :], kblk)
    vout_ref[...] = jnp.where(sel, vnew_ref[...].astype(vblk.dtype)[:, :, None, :], vblk)


def _attn_kernel(q_ref, k_ref, v_ref, o_ref, m_sc, l_sc, acc_sc, *, scale, t_total, tb):
    # Flash-style GQA decode attention over the un-repeated, un-sliced KV cache.
    # Grid: (B, n_kv_heads, T_blocks); q/o blocks are (n_rep, hd), k/v (tb, hd).
    t = pl.program_id(2)

    @pl.when(t == 0)
    def _init():
        m_sc[...] = jnp.full_like(m_sc, -1e30)
        l_sc[...] = jnp.zeros_like(l_sc)
        acc_sc[...] = jnp.zeros_like(acc_sc)

    qb = (q_ref[...] * scale).astype(jnp.bfloat16)               # (n_rep, hd)
    s = jax.lax.dot_general(qb, k_ref[...], (((1,), (1,)), ((), ())),
                            preferred_element_type=jnp.float32)  # (n_rep, tb)
    pos = t * tb + jax.lax.broadcasted_iota(jnp.int32, s.shape, 1)
    s = jnp.where(pos < t_total, s, -1e30)                       # mask beyond T

    m_new = jnp.maximum(m_sc[...], jnp.max(s, axis=-1, keepdims=True))
    alpha = jnp.exp(m_sc[...] - m_new)
    p = jnp.exp(s - m_new)
    l_sc[...] = alpha * l_sc[...] + jnp.sum(p, axis=-1, keepdims=True)
    acc_sc[...] = alpha * acc_sc[...] + jnp.dot(p.astype(jnp.bfloat16), v_ref[...],
                                                preferred_element_type=jnp.float32)
    m_sc[...] = m_new

    @pl.when(t == pl.num_programs(2) - 1)
    def _finalize():
        # approx reciprocal: ~1e-3 rel. error in attention probs; fine for inference.
        o_ref[...] = acc_sc[...] * pl.reciprocal(l_sc[...], approx=True)


def _wo_res_norm_kernel(ctx_ref, wot_ref, h_ref, g_ref, h2_ref, xn2_ref, *, eps):
    # Wo projection gridded over its contraction axis; the f32 output h2 is the
    # resident accumulator, initialised with the residual; the last step fuses the
    # FFN RMSNorm.
    k = pl.program_id(0)

    @pl.when(k == 0)
    def _init():
        h2_ref[...] = h_ref[...]

    ctx = ctx_ref[...].astype(jnp.bfloat16)                      # (B, tile_k)
    h2_ref[...] += jnp.dot(ctx, wot_ref[...], preferred_element_type=jnp.float32)

    @pl.when(k == pl.num_programs(0) - 1)
    def _finalize():
        h2 = h2_ref[...]
        ms = jnp.mean(h2 * h2, axis=-1, keepdims=True)
        xn2_ref[...] = (g_ref[...] * (h2 * jax.lax.rsqrt(ms + eps))).astype(jnp.bfloat16)


def _ffn_kernel(x_ref, res_ref, w1t_ref, w3t_ref, w2t_ref, o_ref):
    # SwiGLU FFN tile: contributes one hidden-tile's worth of
    # w2( silu(x@w1t) * (x@w3t) ) into the resident f32 output accumulator,
    # which is initialised with the residual on the first grid step.
    # TODO(synk): on v7x (2 TCs) an outer "parallel" split of the hidden axis into
    # per-core partial sums (combined in the next kernel) would use both cores.
    @pl.when(pl.program_id(0) == 0)
    def _init():
        o_ref[...] = res_ref[...]

    x = x_ref[...]                                               # (B, dim) bf16
    h1 = jnp.dot(x, w1t_ref[...], preferred_element_type=jnp.float32)
    h3 = jnp.dot(x, w3t_ref[...], preferred_element_type=jnp.float32)
    act = (h1 * jax.nn.sigmoid(h1) * h3).astype(jnp.bfloat16)    # silu in f32
    o_ref[...] += jnp.dot(act, w2t_ref[...], preferred_element_type=jnp.float32)


def _rmsnorm_kernel(h_ref, g_ref, o_ref, *, eps):
    # Final RMSNorm, hoisted out of the vocab-tiled lm-head loop.
    x = h_ref[...]
    ms = jnp.mean(x * x, axis=-1, keepdims=True)
    o_ref[...] = (g_ref[...] * (x * jax.lax.rsqrt(ms + eps))).astype(jnp.bfloat16)


def _lmhead_kernel(xn_ref, wt_ref, o_ref):
    # One lane-dense vocab tile of the lm-head (pure matmul; norm already hoisted).
    o_ref[...] = jnp.dot(xn_ref[...], wt_ref[...], preferred_element_type=jnp.float32)


# ----------------------------- kernel wrappers ------------------------------ #

def _qkv_proj(h, gamma, wqkv_t, cos_all, sin_all, eps):
    B, dim = h.shape
    n_tot = wqkv_t.shape[1]
    tile_n = _pick_tile(n_tot, QKV_TILE_N_TARGET)
    grid = (n_tot // tile_n,)
    return pl.pallas_call(
        functools.partial(_qkv_norm_rope_kernel, eps=eps),
        grid=grid,
        in_specs=[
            pl.BlockSpec((B, dim), lambda j: (0, 0)),            # h (f32), resident
            pl.BlockSpec((1, dim), lambda j: (0, 0)),            # attn_norm gamma
            pl.BlockSpec((dim, tile_n), lambda j: (0, j)),       # packed W_qkv^T tile
            pl.BlockSpec((1, tile_n), lambda j: (0, j)),         # cos tile
            pl.BlockSpec((1, tile_n), lambda j: (0, j)),         # sin tile
        ],
        out_specs=pl.BlockSpec((B, tile_n), lambda j: (0, j)),
        out_shape=jax.ShapeDtypeStruct((B, n_tot), jnp.float32),
        compiler_params=pltpu.CompilerParams(
            dimension_semantics=("parallel",),
            vmem_limit_bytes=VMEM_LIMIT_BYTES),
    )(h, gamma, wqkv_t, cos_all, sin_all)


def _kv_cache_write(cache_k, cache_v, k_new, v_new, pos):
    # In-place row write into the bf16 KV caches via input_output_aliases.
    B, n_kv, head_dim = k_new.shape
    blk = pos // KV_BLOCK_ROWS
    row = pos % KV_BLOCK_ROWS
    cblk = pl.BlockSpec((B, n_kv, KV_BLOCK_ROWS, head_dim),
                        lambda i: (0, 0, blk, 0))
    nblk = pl.BlockSpec((B, n_kv, head_dim), lambda i: (0, 0, 0))
    return pl.pallas_call(
        functools.partial(_kv_write_kernel, row=row),
        grid=(1,),
        in_specs=[nblk, nblk, cblk, cblk],
        out_specs=(cblk, cblk),
        out_shape=(jax.ShapeDtypeStruct(cache_k.shape, cache_k.dtype),
                   jax.ShapeDtypeStruct(cache_v.shape, cache_v.dtype)),
        input_output_aliases={2: 0, 3: 1},
    )(k_new, v_new, cache_k, cache_v)


def _attention(q4, cache_k, cache_v, *, t_total, scale):
    # q4: (B, n_kv, n_rep, hd) f32; caches: (maxB, n_kv, max_seq, hd) bf16.
    B, n_kv, n_rep, head_dim = q4.shape
    max_seq = cache_k.shape[2]
    tb = _pick_rows_tile(max_seq, ATTN_TILE_T_TARGET)
    num_tb = -(-t_total // tb)                                   # static ceil-div
    kv_kwargs = {}
    if num_tb >= 3:
        # Deeper KV-stream buffering only pays off once there are enough T blocks.
        kv_kwargs["pipeline_mode"] = pl.Buffered(3)
    q_spec = pl.BlockSpec((None, None, n_rep, head_dim), lambda b, g, t: (b, g, 0, 0))
    k_spec = pl.BlockSpec((None, None, tb, head_dim), lambda b, g, t: (b, g, t, 0),
                          **kv_kwargs)
    v_spec = pl.BlockSpec((None, None, tb, head_dim), lambda b, g, t: (b, g, t, 0),
                          **kv_kwargs)
    o_spec = pl.BlockSpec((None, None, n_rep, head_dim), lambda b, g, t: (b, g, 0, 0))
    return pl.pallas_call(
        functools.partial(_attn_kernel, scale=scale, t_total=t_total, tb=tb),
        grid=(B, n_kv, num_tb),
        in_specs=[q_spec, k_spec, v_spec],
        out_specs=o_spec,
        out_shape=jax.ShapeDtypeStruct((B, n_kv, n_rep, head_dim), jnp.float32),
        scratch_shapes=[pltpu.VMEM((n_rep, 1), jnp.float32),     # running max
                        pltpu.VMEM((n_rep, 1), jnp.float32),     # running denom
                        pltpu.VMEM((n_rep, head_dim), jnp.float32)],  # running acc
        compiler_params=pltpu.CompilerParams(
            dimension_semantics=("parallel", "parallel", "arbitrary"),
            vmem_limit_bytes=VMEM_LIMIT_BYTES),
    )(q4, cache_k, cache_v)


def _wo_residual_ffnnorm(ctx2d, wo_t, h, gamma, eps):
    B, dim = h.shape
    n_q = wo_t.shape[0]
    tile_k = _pick_tile(n_q, WO_TILE_K_TARGET)
    grid = (n_q // tile_k,)
    return pl.pallas_call(
        functools.partial(_wo_res_norm_kernel, eps=eps),
        grid=grid,
        in_specs=[
            pl.BlockSpec((B, tile_k), lambda k: (0, k)),         # ctx tile (f32)
            pl.BlockSpec((tile_k, dim), lambda k: (k, 0)),       # wo^T tile
            pl.BlockSpec((B, dim), lambda k: (0, 0)),            # residual
            pl.BlockSpec((1, dim), lambda k: (0, 0)),            # ffn_norm gamma
        ],
        out_specs=(pl.BlockSpec((B, dim), lambda k: (0, 0)),
                   pl.BlockSpec((B, dim), lambda k: (0, 0))),
        out_shape=(jax.ShapeDtypeStruct((B, dim), jnp.float32),
                   jax.ShapeDtypeStruct((B, dim), jnp.bfloat16)),
        compiler_params=pltpu.CompilerParams(
            dimension_semantics=("arbitrary",),
            vmem_limit_bytes=VMEM_LIMIT_BYTES),
    )(ctx2d, wo_t, h, gamma)


def _feed_forward(xn, res, w1_t, w3_t, w2_t):
    B, dim = res.shape
    hidden = w1_t.shape[1]
    tile_h = _pick_tile(hidden, FFN_TILE_H_TARGET)
    grid = (hidden // tile_h,)
    return pl.pallas_call(
        _ffn_kernel,
        grid=grid,
        in_specs=[
            pl.BlockSpec((B, dim), lambda j: (0, 0)),            # xn (bf16)
            pl.BlockSpec((B, dim), lambda j: (0, 0)),            # residual (f32)
            pl.BlockSpec((dim, tile_h), lambda j: (0, j)),       # w1^T tile
            pl.BlockSpec((dim, tile_h), lambda j: (0, j)),       # w3^T tile
            pl.BlockSpec((tile_h, dim), lambda j: (j, 0)),       # w2^T tile
        ],
        out_specs=pl.BlockSpec((B, dim), lambda j: (0, 0)),
        out_shape=jax.ShapeDtypeStruct((B, dim), jnp.float32),
        compiler_params=pltpu.CompilerParams(
            dimension_semantics=("arbitrary",),
            vmem_limit_bytes=VMEM_LIMIT_BYTES),
    )(xn, res, w1_t, w3_t, w2_t)


def _final_norm(h, gamma, eps):
    B, dim = h.shape
    return pl.pallas_call(
        functools.partial(_rmsnorm_kernel, eps=eps),
        out_shape=jax.ShapeDtypeStruct((B, dim), jnp.bfloat16),
    )(h, gamma)


def _lm_head(xn, out_w_t):
    B, dim = xn.shape
    vocab = out_w_t.shape[1]
    tile_v = _pick_tile(vocab, LMHEAD_TILE_V_TARGET)
    grid = (vocab // tile_v,)
    return pl.pallas_call(
        _lmhead_kernel,
        grid=grid,
        in_specs=[
            pl.BlockSpec((B, dim), lambda j: (0, 0)),
            pl.BlockSpec((dim, tile_v), lambda j: (0, j)),
        ],
        out_specs=pl.BlockSpec((B, tile_v), lambda j: (0, j)),
        out_shape=jax.ShapeDtypeStruct((B, vocab), jnp.float32),
        compiler_params=pltpu.CompilerParams(
            dimension_semantics=("parallel",),
            vmem_limit_bytes=VMEM_LIMIT_BYTES),
    )(xn, out_w_t)


# ------------------------------ model pieces ------------------------------- #

def precompute_theta_pos_frequencies(head_dim, seq_len, theta=10000.0):
    assert head_dim % 2 == 0
    theta_num = jnp.arange(0, head_dim, 2, dtype=jnp.float32)
    inv_freq = 1.0 / (theta ** (theta_num / head_dim))
    m = jnp.arange(seq_len, dtype=jnp.float32)
    freqs = jnp.outer(m, inv_freq)                 # (seq_len, head_dim // 2)
    return jnp.cos(freqs), jnp.sin(freqs)


def make_params(key, cfg):
    dim = cfg["dim"]
    n_heads = cfg["n_heads"]
    n_kv = cfg["n_kv_heads"]
    head_dim = dim // n_heads
    hidden = 4 * dim
    hidden = int(2 * hidden / 3)
    if cfg.get("ffn_dim_multiplier") is not None:
        hidden = int(cfg["ffn_dim_multiplier"] * hidden)
    hidden = cfg["multiple_of"] * ((hidden + cfg["multiple_of"] - 1) // cfg["multiple_of"])

    def rnd(k, shape, scale=0.02, dtype=jnp.bfloat16):
        return (scale * jax.random.normal(k, shape, dtype=jnp.float32)).astype(dtype)

    keys = jax.random.split(key, 2 + 7 * cfg["n_layers"])
    params = {
        "emb": rnd(keys[0], (cfg["vocab_size"], dim), 1.0, jnp.float32),
        # lm-head pre-transposed once to (dim, vocab), bf16
        "out_w_t": rnd(keys[1], (dim, cfg["vocab_size"])),
        "final_norm": jnp.ones((1, dim), jnp.float32),
        "layers": [],
    }
    ki = 2
    for _ in range(cfg["n_layers"]):
        wq_t = rnd(keys[ki + 0], (dim, n_heads * head_dim))
        wk_t = rnd(keys[ki + 1], (dim, n_kv * head_dim))
        wv_t = rnd(keys[ki + 2], (dim, n_kv * head_dim))
        layer = {
            # Q, K and V projections fused into one lane-dense (dim, Nq+2*Nkv) matrix,
            # all pre-transposed to (Din, Dout) bf16.
            "wqkv_t": jnp.concatenate([wq_t, wk_t, wv_t], axis=1),
            "wo_t": rnd(keys[ki + 3], (n_heads * head_dim, dim)),
            "w1_t": rnd(keys[ki + 4], (dim, hidden)),
            "w2_t": rnd(keys[ki + 5], (hidden, dim)),
            "w3_t": rnd(keys[ki + 6], (dim, hidden)),
            "attn_norm": jnp.ones((1, dim), jnp.float32),
            "ffn_norm": jnp.ones((1, dim), jnp.float32),
        }
        params["layers"].append(layer)
        ki += 7
    return params


def make_caches(cfg):
    n_kv = cfg["n_kv_heads"]
    head_dim = cfg["dim"] // cfg["n_heads"]
    assert cfg["max_seq_len"] % KV_BLOCK_ROWS == 0
    shape = (cfg["max_batch_size"], n_kv, cfg["max_seq_len"], head_dim)
    return [{"k": jnp.zeros(shape, jnp.bfloat16),
             "v": jnp.zeros(shape, jnp.bfloat16)}
            for _ in range(cfg["n_layers"])]


def transformer_forward(tokens, caches, params, cos_row, sin_row, *, start_pos, cfg):
    B, S = tokens.shape
    assert S == 1, "Only one token at a time can be processed"
    dim = cfg["dim"]
    n_heads = cfg["n_heads"]
    n_kv = cfg["n_kv_heads"]
    head_dim = dim // n_heads
    n_rep = n_heads // n_kv
    eps = cfg["norm_eps"]
    T = start_pos + 1
    n_q = n_heads * head_dim
    n_kvd = n_kv * head_dim
    # TODO(synk): start_pos is a static python int (as in the PyTorch forward);
    # a traced position would need scalar-prefetch index_maps + pl.ds slices.

    # RoPE tables in the packed interleaved lane layout of the fused QKV output:
    # [q cols | k cols | v cols], with cos=1/sin=0 on the V columns (pass-through).
    cos_pair = jnp.repeat(cos_row, 2)                          # (head_dim,)
    sin_pair = jnp.repeat(sin_row, 2)
    cos_all = jnp.concatenate([jnp.tile(cos_pair, n_heads),
                               jnp.tile(cos_pair, n_kv),
                               jnp.ones((n_kvd,), jnp.float32)])[None, :]
    sin_all = jnp.concatenate([jnp.tile(sin_pair, n_heads),
                               jnp.tile(sin_pair, n_kv),
                               jnp.zeros((n_kvd,), jnp.float32)])[None, :]

    # embedding gather (plain-JAX glue)
    h = jnp.take(params["emb"], tokens[:, 0], axis=0)          # (B, dim) f32

    new_caches = []
    for layer, cache in zip(params["layers"], caches):
        # --- fused RMSNorm + packed QKV projection + RoPE, lane-tiled ---------
        qkv = _qkv_proj(h, layer["attn_norm"], layer["wqkv_t"], cos_all, sin_all, eps)
        q = qkv[:, :n_q]
        k_new = qkv[:, n_q:n_q + n_kvd].reshape(B, n_kv, head_dim)
        v_new = qkv[:, n_q + n_kvd:].reshape(B, n_kv, head_dim)

        # --- in-place KV cache row write (aliased, one 8-row block) -----------
        cache_k, cache_v = _kv_cache_write(cache["k"], cache["v"],
                                           k_new, v_new, start_pos)
        new_caches.append({"k": cache_k, "v": cache_v})

        # --- flash-style GQA attention directly on the cache (no window copy) --
        q4 = q.reshape(B, n_kv, n_rep, head_dim)
        ctx = _attention(q4, cache_k, cache_v,
                         t_total=T, scale=1.0 / math.sqrt(head_dim))
        ctx2d = ctx.reshape(B, n_heads * head_dim)              # contiguous, free

        # --- Wo (K-tiled reduction) + residual + FFN RMSNorm, fused -----------
        h, xn2 = _wo_residual_ffnnorm(ctx2d, layer["wo_t"], h, layer["ffn_norm"], eps)

        # --- SwiGLU FFN, gridded over hidden, residual-initialised accum ------
        h = _feed_forward(xn2, h, layer["w1_t"], layer["w3_t"], layer["w2_t"])

    # --- hoisted final RMSNorm, then vocab-tiled lm-head ----------------------
    xn = _final_norm(h, params["final_norm"], eps)
    logits = _lm_head(xn, params["out_w_t"])
    return logits, new_caches


# ---------------------------------- main ----------------------------------- #

if __name__ == "__main__":
    cfg = dict(
        dim=256,
        n_layers=2,
        n_heads=4,
        n_kv_heads=2,
        vocab_size=1024,
        multiple_of=128,
        ffn_dim_multiplier=None,
        norm_eps=1e-5,
        max_batch_size=2,
        max_seq_len=16,
    )
    key = jax.random.PRNGKey(0)
    pkey, tkey = jax.random.split(key)
    params = make_params(pkey, cfg)
    caches = make_caches(cfg)

    head_dim = cfg["dim"] // cfg["n_heads"]
    cos_tab, sin_tab = precompute_theta_pos_frequencies(head_dim, cfg["max_seq_len"] * 2)

    B = cfg["max_batch_size"]
    tokens = jax.random.randint(tkey, (B, 1), 0, cfg["vocab_size"], dtype=jnp.int32)
    start_pos = 9  # static python int, matching the PyTorch forward signature

    # jit + donated caches so the Pallas input_output_aliases update is truly
    # in-place; updated caches are threaded back out.
    step = jax.jit(
        functools.partial(transformer_forward, start_pos=start_pos, cfg=cfg),
        donate_argnums=(1,),
    )
    logits, caches = step(tokens, caches, params,
                          cos_tab[start_pos], sin_tab[start_pos])
    logits = jax.block_until_ready(logits)

    assert logits.shape == (B, cfg["vocab_size"])
    assert bool(jnp.all(jnp.isfinite(logits)))
    print("KERNEL_OK")
</pallas_src>

<mosaic_0001>
module attributes {stable_mosaic.version = 11 : i64} {
  func.func @_kv_write_kernel(%arg0: i32, %arg1: memref<2x2x64xf32, #tpu.memory_space<vmem>>, %arg2: memref<2x2x64xf32, #tpu.memory_space<vmem>>, %arg3: memref<2x2x8x64xbf16, #tpu.memory_space<vmem>>, %arg4: memref<2x2x8x64xbf16, #tpu.memory_space<vmem>>, %arg5: memref<2x2x8x64xbf16, #tpu.memory_space<vmem>>, %arg6: memref<2x2x8x64xbf16, #tpu.memory_space<vmem>>) attributes {dimension_semantics = [#tpu.dimension_semantics<arbitrary>], iteration_bounds = array<i64: 1>, scalar_prefetch = 0 : i64, scratch_operands = 0 : i64, tpu.core_type = #tpu.core_type<tc>, window_params = [{pipeline_mode = #tpu.pipeline_mode<synchronous>, transform_indices = @transform_0, window_bounds = array<i64: 2, 2, 64>}, {pipeline_mode = #tpu.pipeline_mode<synchronous>, transform_indices = @transform_1, window_bounds = array<i64: 2, 2, 64>}, {transform_indices = @transform_2, window_bounds = array<i64: 2, 2, 8, 64>}, {transform_indices = @transform_3, window_bounds = array<i64: 2, 2, 8, 64>}, {transform_indices = @transform_4, window_bounds = array<i64: 2, 2, 8, 64>}, {transform_indices = @transform_5, window_bounds = array<i64: 2, 2, 8, 64>}]} {
    %c0 = arith.constant 0 : index
    %c0_0 = arith.constant 0 : index
    %c0_1 = arith.constant 0 : index
    %c0_2 = arith.constant 0 : index
    %0 = vector.load %arg3[%c0, %c0_0, %c0_1, %c0_2] : memref<2x2x8x64xbf16, #tpu.memory_space<vmem>>, vector<2x2x8x64xbf16>
    %c0_3 = arith.constant 0 : index
    %c0_4 = arith.constant 0 : index
    %c0_5 = arith.constant 0 : index
    %c0_6 = arith.constant 0 : index
    %1 = vector.load %arg4[%c0_3, %c0_4, %c0_5, %c0_6] : memref<2x2x8x64xbf16, #tpu.memory_space<vmem>>, vector<2x2x8x64xbf16>
    %2 = tpu.iota {dimensions = array<i32: 2>} : vector<2x2x8x64xi32>
    %c1_i32 = arith.constant 1 : i32
    %3 = vector.broadcast %c1_i32 : i32 to vector<2x2x8x64xi32>
    %4 = arith.cmpi eq, %2, %3 : vector<2x2x8x64xi32>
    %c0_7 = arith.constant 0 : index
    %c0_8 = arith.constant 0 : index
    %c0_9 = arith.constant 0 : index
    %5 = vector.load %arg1[%c0_7, %c0_8, %c0_9] : memref<2x2x64xf32, #tpu.memory_space<vmem>>, vector<2x2x64xf32>
    %6 = arith.truncf %5 : vector<2x2x64xf32> to vector<2x2x64xbf16>
    %7 = vector.shape_cast %6 : vector<2x2x64xbf16> to vector<2x2x1x64xbf16>
    %8 = vector.shape_cast %7 : vector<2x2x1x64xbf16> to vector<2x2x1x64xbf16>
    %9 = vector.broadcast %8 : vector<2x2x1x64xbf16> to vector<2x2x8x64xbf16>
    %10 = arith.select %4, %9, %0 : vector<2x2x8x64xi1>, vector<2x2x8x64xbf16>
    %c0_10 = arith.constant 0 : index
    %c0_11 = arith.constant 0 : index
    %c0_12 = arith.constant 0 : index
    %c0_13 = arith.constant 0 : index
    %11 = vector.load %arg5[%c0_10, %c0_11, %c0_12, %c0_13] : memref<2x2x8x64xbf16, #tpu.memory_space<vmem>>, vector<2x2x8x64xbf16>
    tpu.vector_store %arg5[%c0_10, %c0_11, %c0_12, %c0_13], %10 {strides = array<i32>} : memref<2x2x8x64xbf16, #tpu.memory_space<vmem>>, vector<2x2x8x64xbf16>,
    %c0_14 = arith.constant 0 : index
    %c0_15 = arith.constant 0 : index
    %c0_16 = arith.constant 0 : index
    %12 = vector.load %arg2[%c0_14, %c0_15, %c0_16] : memref<2x2x64xf32, #tpu.memory_space<vmem>>, vector<2x2x64xf32>
    %13 = arith.truncf %12 : vector<2x2x64xf32> to vector<2x2x64xbf16>
    %14 = vector.shape_cast %13 : vector<2x2x64xbf16> to vector<2x2x1x64xbf16>
    %15 = vector.shape_cast %14 : vector<2x2x1x64xbf16> to vector<2x2x1x64xbf16>
    %16 = vector.broadcast %15 : vector<2x2x1x64xbf16> to vector<2x2x8x64xbf16>
    %17 = arith.select %4, %16, %1 : vector<2x2x8x64xi1>, vector<2x2x8x64xbf16>
    %c0_17 = arith.constant 0 : index
    %c0_18 = arith.constant 0 : index
    %c0_19 = arith.constant 0 : index
    %c0_20 = arith.constant 0 : index
    %18 = vector.load %arg6[%c0_17, %c0_18, %c0_19, %c0_20] : memref<2x2x8x64xbf16, #tpu.memory_space<vmem>>, vector<2x2x8x64xbf16>
    tpu.vector_store %arg6[%c0_17, %c0_18, %c0_19, %c0_20], %17 {strides = array<i32>} : memref<2x2x8x64xbf16, #tpu.memory_space<vmem>>, vector<2x2x8x64xbf16>,
    return
  }
  func.func @transform_0(%arg0: i32) -> (i32, i32, i32) {
    %c0_i32 = arith.constant 0 : i32
    %c0_i32_0 = arith.constant 0 : i32
    %c0_i32_1 = arith.constant 0 : i32
    %c0_i32_2 = arith.constant 0 : i32
    return %c0_i32, %c0_i32_0, %c0_i32_1 : i32, i32, i32
  }
  func.func @transform_1(%arg0: i32) -> (i32, i32, i32) {
    %c0_i32 = arith.constant 0 : i32
    %c0_i32_0 = arith.constant 0 : i32
    %c0_i32_1 = arith.constant 0 : i32
    %c0_i32_2 = arith.constant 0 : i32
    return %c0_i32, %c0_i32_0, %c0_i32_1 : i32, i32, i32
  }
  func.func @transform_2(%arg0: i32) -> (i32, i32, i32, i32) {
    %c0_i32 = arith.constant 0 : i32
    %c0_i32_0 = arith.constant 0 : i32
    %c1_i32 = arith.constant 1 : i32
    %c0_i32_1 = arith.constant 0 : i32
    %c0_i32_2 = arith.constant 0 : i32
    return %c0_i32, %c0_i32_0, %c1_i32, %c0_i32_1 : i32, i32, i32, i32
  }
  func.func @transform_3(%arg0: i32) -> (i32, i32, i32, i32) {
    %c0_i32 = arith.constant 0 : i32
    %c0_i32_0 = arith.constant 0 : i32
    %c1_i32 = arith.constant 1 : i32
    %c0_i32_1 = arith.constant 0 : i32
    %c0_i32_2 = arith.constant 0 : i32
    return %c0_i32, %c0_i32_0, %c1_i32, %c0_i32_1 : i32, i32, i32, i32
  }
  func.func @transform_4(%arg0: i32) -> (i32, i32, i32, i32) {
    %c0_i32 = arith.constant 0 : i32
    %c0_i32_0 = arith.constant 0 : i32
    %c1_i32 = arith.constant 1 : i32
    %c0_i32_1 = arith.constant 0 : i32
    %c0_i32_2 = arith.constant 0 : i32
    return %c0_i32, %c0_i32_0, %c1_i32, %c0_i32_1 : i32, i32, i32, i32
  }
  func.func @transform_5(%arg0: i32) -> (i32, i32, i32, i32) {
    %c0_i32 = arith.constant 0 : i32
    %c0_i32_0 = arith.constant 0 : i32
    %c1_i32 = arith.constant 1 : i32
    %c0_i32_1 = arith.constant 0 : i32
    %c0_i32_2 = arith.constant 0 : i32
    return %c0_i32, %c0_i32_0, %c1_i32, %c0_i32_1 : i32, i32, i32, i32
  }
}

module attributes {stable_mosaic.version = 11 : i64} {
  func.func @_attn_kernel(%arg0: i32, %arg1: i32, %arg2: i32, %arg3: memref<1x1x2x64xf32, #tpu.memory_space<vmem>>, %arg4: memref<1x1x16x64xbf16, #tpu.memory_space<vmem>>, %arg5: memref<1x1x16x64xbf16, #tpu.memory_space<vmem>>, %arg6: memref<1x1x2x64xf32, #tpu.memory_space<vmem>>, %arg7: memref<2x1xf32, #tpu.memory_space<vmem>>, %arg8: memref<2x1xf32, #tpu.memory_space<vmem>>, %arg9: memref<2x64xf32, #tpu.memory_space<vmem>>) attributes {dimension_semantics = [#tpu.dimension_semantics<parallel>, #tpu.dimension_semantics<parallel>, #tpu.dimension_semantics<arbitrary>], iteration_bounds = array<i64: 2, 2, 1>, scalar_prefetch = 0 : i64, scratch_operands = 3 : i64, tpu.core_type = #tpu.core_type<tc>, window_params = [{transform_indices = @transform_0, window_bounds = array<i64: 1, 1, 2, 64>}, {transform_indices = @transform_1, window_bounds = array<i64: 1, 1, 16, 64>}, {transform_indices = @transform_2, window_bounds = array<i64: 1, 1, 16, 64>}, {transform_indices = @transform_3, window_bounds = array<i64: 1, 1, 2, 64>}]} {
    %c0_i32 = arith.constant 0 : i32
    %0 = arith.cmpi eq, %arg2, %c0_i32 : i32
    %1 = arith.extui %0 : i1 to i32
    %c0_i32_0 = arith.constant 0 : i32
    %2 = arith.cmpi ne, %1, %c0_i32_0 : i32
    scf.if %2 {
      %cst_33 = arith.constant -1.000000e+30 : f32
      %48 = vector.broadcast %cst_33 : f32 to vector<2x1xf32>
      %c0_34 = arith.constant 0 : index
      %c0_35 = arith.constant 0 : index
      %49 = vector.load %arg7[%c0_34, %c0_35] : memref<2x1xf32, #tpu.memory_space<vmem>>, vector<2x1xf32>
      tpu.vector_store %arg7[%c0_34, %c0_35], %48 {strides = array<i32>} : memref<2x1xf32, #tpu.memory_space<vmem>>, vector<2x1xf32>,
      %cst_36 = arith.constant 0.000000e+00 : f32
      %50 = vector.broadcast %cst_36 : f32 to vector<2x1xf32>
      %c0_37 = arith.constant 0 : index
      %c0_38 = arith.constant 0 : index
      %51 = vector.load %arg8[%c0_37, %c0_38] : memref<2x1xf32, #tpu.memory_space<vmem>>, vector<2x1xf32>
      tpu.vector_store %arg8[%c0_37, %c0_38], %50 {strides = array<i32>} : memref<2x1xf32, #tpu.memory_space<vmem>>, vector<2x1xf32>,
      %cst_39 = arith.constant 0.000000e+00 : f32
      %52 = vector.broadcast %cst_39 : f32 to vector<2x64xf32>
      %c0_40 = arith.constant 0 : index
      %c0_41 = arith.constant 0 : index
      %53 = vector.load %arg9[%c0_40, %c0_41] : memref<2x64xf32, #tpu.memory_space<vmem>>, vector<2x64xf32>
      tpu.vector_store %arg9[%c0_40, %c0_41], %52 {strides = array<i32>} : memref<2x64xf32, #tpu.memory_space<vmem>>, vector<2x64xf32>,
    } else {
    }
    %c0 = arith.constant 0 : index
    %c0_1 = arith.constant 0 : index
    %c0_2 = arith.constant 0 : index
    %c0_3 = arith.constant 0 : index
    %3 = vector.load %arg3[%c0, %c0_1, %c0_2, %c0_3] : memref<1x1x2x64xf32, #tpu.memory_space<vmem>>, vector<1x1x2x64xf32>
    %4 = vector.shape_cast %3 : vector<1x1x2x64xf32> to vector<2x64xf32>
    %cst = arith.constant 1.250000e-01 : f32
    %5 = vector.broadcast %cst : f32 to vector<2x64xf32>
    %6 = arith.mulf %4, %5 : vector<2x64xf32>
    %7 = arith.truncf %6 : vector<2x64xf32> to vector<2x64xbf16>
    %c0_4 = arith.constant 0 : index
    %c0_5 = arith.constant 0 : index
    %c0_6 = arith.constant 0 : index
    %c0_7 = arith.constant 0 : index
    %8 = vector.load %arg4[%c0_4, %c0_5, %c0_6, %c0_7] : memref<1x1x16x64xbf16, #tpu.memory_space<vmem>>, vector<1x1x16x64xbf16>
    %9 = vector.shape_cast %8 : vector<1x1x16x64xbf16> to vector<16x64xbf16>
    %cst_8 = arith.constant dense<0.000000e+00> : vector<2x16xf32>
    %10 = tpu.matmul %7, %9, %cst_8 {dimension_numbers = #tpu.dot_dimension_numbers<[1], [1], [0], [0], [0, 0, 1, 0], [], []>} : vector<2x64xbf16>, vector<16x64xbf16>, vector<2x16xf32> -> vector<2x16xf32>
    %c16_i32 = arith.constant 16 : i32
    %11 = arith.muli %arg2, %c16_i32 : i32
    %12 = tpu.iota {dimensions = array<i32: 1>} : vector<2x16xi32>
    %13 = vector.broadcast %11 : i32 to vector<2x16xi32>
    %14 = arith.addi %13, %12 : vector<2x16xi32>
    %c10_i32 = arith.constant 10 : i32
    %15 = vector.broadcast %c10_i32 : i32 to vector<2x16xi32>
    %16 = arith.cmpi slt, %14, %15 : vector<2x16xi32>
    %cst_9 = arith.constant -1.000000e+30 : f32
    %17 = vector.broadcast %cst_9 : f32 to vector<2x16xf32>
    %18 = arith.select %16, %10, %17 : vector<2x16xi1>, vector<2x16xf32>
    %c0_10 = arith.constant 0 : index
    %c0_11 = arith.constant 0 : index
    %19 = vector.load %arg7[%c0_10, %c0_11] : memref<2x1xf32, #tpu.memory_space<vmem>>, vector<2x1xf32>
    %cst_12 = arith.constant dense<0xFF800000> : vector<2xf32>
    %20 = vector.multi_reduction <maximumf>, %18, %cst_12 [1] : vector<2x16xf32> to vector<2xf32>
    %21 = vector.shape_cast %20 : vector<2xf32> to vector<2x1xf32>
    %22 = arith.maximumf %19, %21 : vector<2x1xf32>
    %c0_13 = arith.constant 0 : index
    %c0_14 = arith.constant 0 : index
    %23 = vector.load %arg7[%c0_13, %c0_14] : memref<2x1xf32, #tpu.memory_space<vmem>>, vector<2x1xf32>
    %24 = arith.subf %23, %22 : vector<2x1xf32>
    %25 = math.exp %24 : vector<2x1xf32>
    %26 = vector.broadcast %22 : vector<2x1xf32> to vector<2x16xf32>
    %27 = arith.subf %18, %26 : vector<2x16xf32>
    %28 = math.exp %27 : vector<2x16xf32>
    %c0_15 = arith.constant 0 : index
    %c0_16 = arith.constant 0 : index
    %29 = vector.load %arg8[%c0_15, %c0_16] : memref<2x1xf32, #tpu.memory_space<vmem>>, vector<2x1xf32>
    %30 = arith.mulf %25, %29 : vector<2x1xf32>
    %cst_17 = arith.constant dense<0.000000e+00> : vector<2xf32>
    %31 = vector.multi_reduction <add>, %28, %cst_17 [1] : vector<2x16xf32> to vector<2xf32>
    %32 = vector.shape_cast %31 : vector<2xf32> to vector<2x1xf32>
    %33 = arith.addf %30, %32 : vector<2x1xf32>
    %c0_18 = arith.constant 0 : index
    %c0_19 = arith.constant 0 : index
    %34 = vector.load %arg8[%c0_18, %c0_19] : memref<2x1xf32, #tpu.memory_space<vmem>>, vector<2x1xf32>
    tpu.vector_store %arg8[%c0_18, %c0_19], %33 {strides = array<i32>} : memref<2x1xf32, #tpu.memory_space<vmem>>, vector<2x1xf32>,
    %c0_20 = arith.constant 0 : index
    %c0_21 = arith.constant 0 : index
    %35 = vector.load %arg9[%c0_20, %c0_21] : memref<2x64xf32, #tpu.memory_space<vmem>>, vector<2x64xf32>
    %36 = vector.broadcast %25 : vector<2x1xf32> to vector<2x64xf32>
    %37 = arith.mulf %36, %35 : vector<2x64xf32>
    %38 = arith.truncf %28 : vector<2x16xf32> to vector<2x16xbf16>
    %c0_22 = arith.constant 0 : index
    %c0_23 = arith.constant 0 : index
    %c0_24 = arith.constant 0 : index
    %c0_25 = arith.constant 0 : index
    %39 = vector.load %arg5[%c0_22, %c0_23, %c0_24, %c0_25] : memref<1x1x16x64xbf16, #tpu.memory_space<vmem>>, vector<1x1x16x64xbf16>
    %40 = vector.shape_cast %39 : vector<1x1x16x64xbf16> to vector<16x64xbf16>
    %cst_26 = arith.constant dense<0.000000e+00> : vector<2x64xf32>
    %41 = tpu.matmul %38, %40, %cst_26 {dimension_numbers = #tpu.dot_dimension_numbers<[1], [0], [0], [1], [0, 0, 1, 1], [], []>} : vector<2x16xbf16>, vector<16x64xbf16>, vector<2x64xf32> -> vector<2x64xf32>
    %42 = arith.addf %37, %41 : vector<2x64xf32>
    %c0_27 = arith.constant 0 : index
    %c0_28 = arith.constant 0 : index
    %43 = vector.load %arg9[%c0_27, %c0_28] : memref<2x64xf32, #tpu.memory_space<vmem>>, vector<2x64xf32>
    tpu.vector_store %arg9[%c0_27, %c0_28], %42 {strides = array<i32>} : memref<2x64xf32, #tpu.memory_space<vmem>>, vector<2x64xf32>,
    %c0_29 = arith.constant 0 : index
    %c0_30 = arith.constant 0 : index
    %44 = vector.load %arg7[%c0_29, %c0_30] : memref<2x1xf32, #tpu.memory_space<vmem>>, vector<2x1xf32>
    tpu.vector_store %arg7[%c0_29, %c0_30], %22 {strides = array<i32>} : memref<2x1xf32, #tpu.memory_space<vmem>>, vector<2x1xf32>,
    %c0_i32_31 = arith.constant 0 : i32
    %45 = arith.cmpi eq, %arg2, %c0_i32_31 : i32
    %46 = arith.extui %45 : i1 to i32
    %c0_i32_32 = arith.constant 0 : i32
    %47 = arith.cmpi ne, %46, %c0_i32_32 : i32
    scf.if %47 {
      %c0_33 = arith.constant 0 : index
      %c0_34 = arith.constant 0 : index
      %48 = vector.load %arg9[%c0_33, %c0_34] : memref<2x64xf32, #tpu.memory_space<vmem>>, vector<2x64xf32>
      %c0_35 = arith.constant 0 : index
      %c0_36 = arith.constant 0 : index
      %49 = vector.load %arg8[%c0_35, %c0_36] : memref<2x1xf32, #tpu.memory_space<vmem>>, vector<2x1xf32>
      %50 = tpu.reciprocal %49 {approx = true} : vector<2x1xf32> -> vector<2x1xf32>
      %51 = vector.broadcast %50 : vector<2x1xf32> to vector<2x64xf32>
      %52 = arith.mulf %48, %51 : vector<2x64xf32>
      %c0_37 = arith.constant 0 : index
      %c0_38 = arith.constant 0 : index
      %c0_39 = arith.constant 0 : index
      %c0_40 = arith.constant 0 : index
      %53 = vector.load %arg6[%c0_37, %c0_38, %c0_39, %c0_40] : memref<1x1x2x64xf32, #tpu.memory_space<vmem>>, vector<1x1x2x64xf32>
      %54 = vector.shape_cast %53 : vector<1x1x2x64xf32> to vector<2x64xf32>
      %55 = vector.shape_cast %52 : vector<2x64xf32> to vector<1x1x2x64xf32>
      tpu.vector_store %arg6[%c0_37, %c0_38, %c0_39, %c0_40], %55 {strides = array<i32>} : memref<1x1x2x64xf32, #tpu.memory_space<vmem>>, vector<1x1x2x64xf32>,
    } else {
    }
    return
  }
  func.func @transform_0(%arg0: i32, %arg1: i32, %arg2: i32) -> (i32, i32, i32, i32) {
    %c0_i32 = arith.constant 0 : i32
    %c0_i32_0 = arith.constant 0 : i32
    %c0_i32_1 = arith.constant 0 : i32
    return %arg0, %arg1, %c0_i32, %c0_i32_0 : i32, i32, i32, i32
  }
  func.func @transform_1(%arg0: i32, %arg1: i32, %arg2: i32) -> (i32, i32, i32, i32) {
    %c0_i32 = arith.constant 0 : i32
    %c0_i32_0 = arith.constant 0 : i32
    return %arg0, %arg1, %arg2, %c0_i32 : i32, i32, i32, i32
  }
  func.func @transform_2(%arg0: i32, %arg1: i32, %arg2: i32) -> (i32, i32, i32, i32) {
    %c0_i32 = arith.constant 0 : i32
    %c0_i32_0 = arith.constant 0 : i32
    return %arg0, %arg1, %arg2, %c0_i32 : i32, i32, i32, i32
  }
  func.func @transform_3(%arg0: i32, %arg1: i32, %arg2: i32) -> (i32, i32, i32, i32) {
    %c0_i32 = arith.constant 0 : i32
    %c0_i32_0 = arith.constant 0 : i32
    %c0_i32_1 = arith.constant 0 : i32
    return %arg0, %arg1, %c0_i32, %c0_i32_0 : i32, i32, i32, i32
  }
}

module attributes {stable_mosaic.version = 11 : i64} {
  func.func @_qkv_norm_rope_kernel(%arg0: i32, %arg1: memref<2x256xf32, #tpu.memory_space<vmem>>, %arg2: memref<1x256xf32, #tpu.memory_space<vmem>>, %arg3: memref<256x512xbf16, #tpu.memory_space<vmem>>, %arg4: memref<1x512xf32, #tpu.memory_space<vmem>>, %arg5: memref<1x512xf32, #tpu.memory_space<vmem>>, %arg6: memref<2x512xf32, #tpu.memory_space<vmem>>) attributes {dimension_semantics = [#tpu.dimension_semantics<parallel>], iteration_bounds = array<i64: 1>, scalar_prefetch = 0 : i64, scratch_operands = 0 : i64, tpu.core_type = #tpu.core_type<tc>, window_params = [{pipeline_mode = #tpu.pipeline_mode<synchronous>, transform_indices = @transform_0, window_bounds = array<i64: 2, 256>}, {pipeline_mode = #tpu.pipeline_mode<synchronous>, transform_indices = @transform_1, window_bounds = array<i64: 1, 256>}, {transform_indices = @transform_2, window_bounds = array<i64: 256, 512>}, {transform_indices = @transform_3, window_bounds = array<i64: 1, 512>}, {transform_indices = @transform_4, window_bounds = array<i64: 1, 512>}, {transform_indices = @transform_5, window_bounds = array<i64: 2, 512>}]} {
    %c0 = arith.constant 0 : index
    %c0_0 = arith.constant 0 : index
    %0 = vector.load %arg1[%c0, %c0_0] : memref<2x256xf32, #tpu.memory_space<vmem>>, vector<2x256xf32>
    %1 = arith.mulf %0, %0 : vector<2x256xf32>
    %cst = arith.constant dense<0.000000e+00> : vector<2xf32>
    %2 = vector.multi_reduction <add>, %1, %cst [1] : vector<2x256xf32> to vector<2xf32>
    %3 = vector.shape_cast %2 : vector<2xf32> to vector<2x1xf32>
    %cst_1 = arith.constant 2.560000e+02 : f32
    %4 = vector.broadcast %cst_1 : f32 to vector<2x1xf32>
    %5 = arith.divf %3, %4 : vector<2x1xf32>
    %c0_2 = arith.constant 0 : index
    %c0_3 = arith.constant 0 : index
    %6 = vector.load %arg2[%c0_2, %c0_3] : memref<1x256xf32, #tpu.memory_space<vmem>>, vector<1x256xf32>
    %cst_4 = arith.constant 9.99999974E-6 : f32
    %7 = vector.broadcast %cst_4 : f32 to vector<2x1xf32>
    %8 = arith.addf %5, %7 : vector<2x1xf32>
    %9 = math.rsqrt %8 : vector<2x1xf32>
    %10 = vector.broadcast %9 : vector<2x1xf32> to vector<2x256xf32>
    %11 = arith.mulf %0, %10 : vector<2x256xf32>
    %12 = vector.broadcast %6 : vector<1x256xf32> to vector<2x256xf32>
    %13 = arith.mulf %12, %11 : vector<2x256xf32>
    %14 = arith.truncf %13 : vector<2x256xf32> to vector<2x256xbf16>
    %c0_5 = arith.constant 0 : index
    %c0_6 = arith.constant 0 : index
    %15 = vector.load %arg3[%c0_5, %c0_6] : memref<256x512xbf16, #tpu.memory_space<vmem>>, vector<256x512xbf16>
    %cst_7 = arith.constant dense<0.000000e+00> : vector<2x512xf32>
    %16 = tpu.matmul %14, %15, %cst_7 {dimension_numbers = #tpu.dot_dimension_numbers<[1], [0], [0], [1], [0, 0, 1, 1], [], []>} : vector<2x256xbf16>, vector<256x512xbf16>, vector<2x512xf32> -> vector<2x512xf32>
    %c0_8 = arith.constant 0 : index
    %c0_9 = arith.constant 0 : index
    %17 = vector.load %arg4[%c0_8, %c0_9] : memref<1x512xf32, #tpu.memory_space<vmem>>, vector<1x512xf32>
    %c0_10 = arith.constant 0 : index
    %c0_11 = arith.constant 0 : index
    %18 = vector.load %arg5[%c0_10, %c0_11] : memref<1x512xf32, #tpu.memory_space<vmem>>, vector<1x512xf32>
    %19 = tpu.iota {dimensions = array<i32: 1>} : vector<2x512xi32>
    %c2_i32 = arith.constant 2 : i32
    %c0_i32 = arith.constant 0 : i32
    %20 = arith.cmpi eq, %c2_i32, %c0_i32 : i32
    %c1_i32 = arith.constant 1 : i32
    %21 = arith.select %20, %c1_i32, %c2_i32 : i32
    %22 = vector.broadcast %21 : i32 to vector<2x512xi32>
    %23 = arith.remsi %19, %22 : vector<2x512xi32>
    %c0_i32_12 = arith.constant 0 : i32
    %24 = vector.broadcast %c0_i32_12 : i32 to vector<2x512xi32>
    %25 = arith.cmpi ne, %23, %24 : vector<2x512xi32>
    %c0_i32_13 = arith.constant 0 : i32
    %26 = vector.broadcast %c0_i32_13 : i32 to vector<2x512xi32>
    %27 = arith.cmpi slt, %23, %26 : vector<2x512xi32>
    %c0_i32_14 = arith.constant 0 : i32
    %28 = arith.cmpi slt, %21, %c0_i32_14 : i32
    %29 = vector.broadcast %28 : i1 to vector<2x512xi1>
    %30 = vector.broadcast %29 : vector<2x512xi1> to vector<2x512xi1>
    %31 = arith.xori %27, %30 : vector<2x512xi1>
    %32 = arith.andi %31, %25 : vector<2x512xi1>
    %33 = vector.broadcast %21 : i32 to vector<2x512xi32>
    %34 = arith.addi %23, %33 : vector<2x512xi32>
    %35 = arith.select %32, %34, %23 : vector<2x512xi1>, vector<2x512xi32>
    %c0_i32_15 = arith.constant 0 : i32
    %36 = vector.broadcast %c0_i32_15 : i32 to vector<2x512xi32>
    %37 = arith.cmpi eq, %35, %36 : vector<2x512xi32>
    %c511_i32 = arith.constant 511 : i32
    %38 = tpu.dynamic_rotate %16 by %c511_i32 dim 1 : vector<2x512xf32>, i32 -> vector<2x512xf32>
    %c1_i32_16 = arith.constant 1 : i32
    %39 = tpu.dynamic_rotate %16 by %c1_i32_16 dim 1 : vector<2x512xf32>, i32 -> vector<2x512xf32>
    %cst_17 = arith.constant 0.000000e+00 : f32
    %40 = vector.broadcast %cst_17 : f32 to vector<2x512xf32>
    %41 = arith.subf %40, %38 : vector<2x512xf32>
    %42 = arith.select %37, %41, %39 : vector<2x512xi1>, vector<2x512xf32>
    %43 = vector.broadcast %17 : vector<1x512xf32> to vector<2x512xf32>
    %44 = arith.mulf %16, %43 : vector<2x512xf32>
    %45 = vector.broadcast %18 : vector<1x512xf32> to vector<2x512xf32>
    %46 = arith.mulf %42, %45 : vector<2x512xf32>
    %47 = arith.addf %44, %46 : vector<2x512xf32>
    %c0_18 = arith.constant 0 : index
    %c0_19 = arith.constant 0 : index
    %48 = vector.load %arg6[%c0_18, %c0_19] : memref<2x512xf32, #tpu.memory_space<vmem>>, vector<2x512xf32>
    tpu.vector_store %arg6[%c0_18, %c0_19], %47 {strides = array<i32>} : memref<2x512xf32, #tpu.memory_space<vmem>>, vector<2x512xf32>,
    return
  }
  func.func @transform_0(%arg0: i32) -> (i32, i32) {
    %c0_i32 = arith.constant 0 : i32
    %c0_i32_0 = arith.constant 0 : i32
    %c0_i32_1 = arith.constant 0 : i32
    return %c0_i32, %c0_i32_0 : i32, i32
  }
  func.func @transform_1(%arg0: i32) -> (i32, i32) {
    %c0_i32 = arith.constant 0 : i32
    %c0_i32_0 = arith.constant 0 : i32
    %c0_i32_1 = arith.constant 0 : i32
    return %c0_i32, %c0_i32_0 : i32, i32
  }
  func.func @transform_2(%arg0: i32) -> (i32, i32) {
    %c0_i32 = arith.constant 0 : i32
    %c0_i32_0 = arith.constant 0 : i32
    return %c0_i32, %arg0 : i32, i32
  }
  func.func @transform_3(%arg0: i32) -> (i32, i32) {
    %c0_i32 = arith.constant 0 : i32
    %c0_i32_0 = arith.constant 0 : i32
    return %c0_i32, %arg0 : i32, i32
  }
  func.func @transform_4(%arg0: i32) -> (i32, i32) {
    %c0_i32 = arith.constant 0 : i32
    %c0_i32_0 = arith.constant 0 : i32
    return %c0_i32, %arg0 : i32, i32
  }
  func.func @transform_5(%arg0: i32) -> (i32, i32) {
    %c0_i32 = arith.constant 0 : i32
    %c0_i32_0 = arith.constant 0 : i32
    return %c0_i32, %arg0 : i32, i32
  }
}

module attributes {stable_mosaic.version = 11 : i64} {
  func.func @_wo_res_norm_kernel(%arg0: i32, %arg1: memref<2x256xf32, #tpu.memory_space<vmem>>, %arg2: memref<256x256xbf16, #tpu.memory_space<vmem>>, %arg3: memref<2x256xf32, #tpu.memory_space<vmem>>, %arg4: memref<1x256xf32, #tpu.memory_space<vmem>>, %arg5: memref<2x256xf32, #tpu.memory_space<vmem>>, %arg6: memref<2x256xbf16, #tpu.memory_space<vmem>>) attributes {dimension_semantics = [#tpu.dimension_semantics<arbitrary>], iteration_bounds = array<i64: 1>, scalar_prefetch = 0 : i64, scratch_operands = 0 : i64, tpu.core_type = #tpu.core_type<tc>, window_params = [{transform_indices = @transform_0, window_bounds = array<i64: 2, 256>}, {transform_indices = @transform_1, window_bounds = array<i64: 256, 256>}, {pipeline_mode = #tpu.pipeline_mode<synchronous>, transform_indices = @transform_2, window_bounds = array<i64: 2, 256>}, {pipeline_mode = #tpu.pipeline_mode<synchronous>, transform_indices = @transform_3, window_bounds = array<i64: 1, 256>}, {pipeline_mode = #tpu.pipeline_mode<synchronous>, transform_indices = @transform_4, window_bounds = array<i64: 2, 256>}, {pipeline_mode = #tpu.pipeline_mode<synchronous>, transform_indices = @transform_5, window_bounds = array<i64: 2, 256>}]} {
    %c0_i32 = arith.constant 0 : i32
    %0 = arith.cmpi eq, %arg0, %c0_i32 : i32
    %1 = arith.extui %0 : i1 to i32
    %c0_i32_0 = arith.constant 0 : i32
    %2 = arith.cmpi ne, %1, %c0_i32_0 : i32
    scf.if %2 {
      %c0_10 = arith.constant 0 : index
      %c0_11 = arith.constant 0 : index
      %13 = vector.load %arg3[%c0_10, %c0_11] : memref<2x256xf32, #tpu.memory_space<vmem>>, vector<2x256xf32>
      %c0_12 = arith.constant 0 : index
      %c0_13 = arith.constant 0 : index
      %14 = vector.load %arg5[%c0_12, %c0_13] : memref<2x256xf32, #tpu.memory_space<vmem>>, vector<2x256xf32>
      tpu.vector_store %arg5[%c0_12, %c0_13], %13 {strides = array<i32>} : memref<2x256xf32, #tpu.memory_space<vmem>>, vector<2x256xf32>,
    } else {
    }
    %c0 = arith.constant 0 : index
    %c0_1 = arith.constant 0 : index
    %3 = vector.load %arg1[%c0, %c0_1] : memref<2x256xf32, #tpu.memory_space<vmem>>, vector<2x256xf32>
    %4 = arith.truncf %3 : vector<2x256xf32> to vector<2x256xbf16>
    %c0_2 = arith.constant 0 : index
    %c0_3 = arith.constant 0 : index
    %5 = vector.load %arg5[%c0_2, %c0_3] : memref<2x256xf32, #tpu.memory_space<vmem>>, vector<2x256xf32>
    %c0_4 = arith.constant 0 : index
    %c0_5 = arith.constant 0 : index
    %6 = vector.load %arg2[%c0_4, %c0_5] : memref<256x256xbf16, #tpu.memory_space<vmem>>, vector<256x256xbf16>
    %cst = arith.constant dense<0.000000e+00> : vector<2x256xf32>
    %7 = tpu.matmul %4, %6, %cst {dimension_numbers = #tpu.dot_dimension_numbers<[1], [0], [0], [1], [0, 0, 1, 1], [], []>} : vector<2x256xbf16>, vector<256x256xbf16>, vector<2x256xf32> -> vector<2x256xf32>
    %8 = arith.addf %5, %7 : vector<2x256xf32>
    %c0_6 = arith.constant 0 : index
    %c0_7 = arith.constant 0 : index
    %9 = vector.load %arg5[%c0_6, %c0_7] : memref<2x256xf32, #tpu.memory_space<vmem>>, vector<2x256xf32>
    tpu.vector_store %arg5[%c0_6, %c0_7], %8 {strides = array<i32>} : memref<2x256xf32, #tpu.memory_space<vmem>>, vector<2x256xf32>,
    %c0_i32_8 = arith.constant 0 : i32
    %10 = arith.cmpi eq, %arg0, %c0_i32_8 : i32
    %11 = arith.extui %10 : i1 to i32
    %c0_i32_9 = arith.constant 0 : i32
    %12 = arith.cmpi ne, %11, %c0_i32_9 : i32
    scf.if %12 {
      %c0_10 = arith.constant 0 : index
      %c0_11 = arith.constant 0 : index
      %13 = vector.load %arg5[%c0_10, %c0_11] : memref<2x256xf32, #tpu.memory_space<vmem>>, vector<2x256xf32>
      %14 = arith.mulf %13, %13 : vector<2x256xf32>
      %cst_12 = arith.constant dense<0.000000e+00> : vector<2xf32>
      %15 = vector.multi_reduction <add>, %14, %cst_12 [1] : vector<2x256xf32> to vector<2xf32>
      %16 = vector.shape_cast %15 : vector<2xf32> to vector<2x1xf32>
      %cst_13 = arith.constant 2.560000e+02 : f32
      %17 = vector.broadcast %cst_13 : f32 to vector<2x1xf32>
      %18 = arith.divf %16, %17 : vector<2x1xf32>
      %c0_14 = arith.constant 0 : index
      %c0_15 = arith.constant 0 : index
      %19 = vector.load %arg4[%c0_14, %c0_15] : memref<1x256xf32, #tpu.memory_space<vmem>>, vector<1x256xf32>
      %cst_16 = arith.constant 9.99999974E-6 : f32
      %20 = vector.broadcast %cst_16 : f32 to vector<2x1xf32>
      %21 = arith.addf %18, %20 : vector<2x1xf32>
      %22 = math.rsqrt %21 : vector<2x1xf32>
      %23 = vector.broadcast %22 : vector<2x1xf32> to vector<2x256xf32>
      %24 = arith.mulf %13, %23 : vector<2x256xf32>
      %25 = vector.broadcast %19 : vector<1x256xf32> to vector<2x256xf32>
      %26 = arith.mulf %25, %24 : vector<2x256xf32>
      %27 = arith.truncf %26 : vector<2x256xf32> to vector<2x256xbf16>
      %c0_17 = arith.constant 0 : index
      %c0_18 = arith.constant 0 : index
      %28 = vector.load %arg6[%c0_17, %c0_18] : memref<2x256xbf16, #tpu.memory_space<vmem>>, vector<2x256xbf16>
      tpu.vector_store %arg6[%c0_17, %c0_18], %27 {strides = array<i32>} : memref<2x256xbf16, #tpu.memory_space<vmem>>, vector<2x256xbf16>,
    } else {
    }
    return
  }
  func.func @transform_0(%arg0: i32) -> (i32, i32) {
    %c0_i32 = arith.constant 0 : i32
    %c0_i32_0 = arith.constant 0 : i32
    return %c0_i32, %arg0 : i32, i32
  }
  func.func @transform_1(%arg0: i32) -> (i32, i32) {
    %c0_i32 = arith.constant 0 : i32
    %c0_i32_0 = arith.constant 0 : i32
    return %arg0, %c0_i32 : i32, i32
  }
  func.func @transform_2(%arg0: i32) -> (i32, i32) {
    %c0_i32 = arith.constant 0 : i32
    %c0_i32_0 = arith.constant 0 : i32
    %c0_i32_1 = arith.constant 0 : i32
    return %c0_i32, %c0_i32_0 : i32, i32
  }
  func.func @transform_3(%arg0: i32) -> (i32, i32) {
    %c0_i32 = arith.constant 0 : i32
    %c0_i32_0 = arith.constant 0 : i32
    %c0_i32_1 = arith.constant 0 : i32
    return %c0_i32, %c0_i32_0 : i32, i32
  }
  func.func @transform_4(%arg0: i32) -> (i32, i32) {
    %c0_i32 = arith.constant 0 : i32
    %c0_i32_0 = arith.constant 0 : i32
    %c0_i32_1 = arith.constant 0 : i32
    return %c0_i32, %c0_i32_0 : i32, i32
  }
  func.func @transform_5(%arg0: i32) -> (i32, i32) {
    %c0_i32 = arith.constant 0 : i32
    %c0_i32_0 = arith.constant 0 : i32
    %c0_i32_1 = arith.constant 0 : i32
    return %c0_i32, %c0_i32_0 : i32, i32
  }
}

module attributes {stable_mosaic.version = 11 : i64} {
  func.func @_ffn_kernel(%arg0: i32, %arg1: memref<2x256xbf16, #tpu.memory_space<vmem>>, %arg2: memref<2x256xf32, #tpu.memory_space<vmem>>, %arg3: memref<256x384xbf16, #tpu.memory_space<vmem>>, %arg4: memref<256x384xbf16, #tpu.memory_space<vmem>>, %arg5: memref<384x256xbf16, #tpu.memory_space<vmem>>, %arg6: memref<2x256xf32, #tpu.memory_space<vmem>>) attributes {dimension_semantics = [#tpu.dimension_semantics<arbitrary>], iteration_bounds = array<i64: 2>, scalar_prefetch = 0 : i64, scratch_operands = 0 : i64, tpu.core_type = #tpu.core_type<tc>, window_params = [{pipeline_mode = #tpu.pipeline_mode<synchronous>, transform_indices = @transform_0, window_bounds = array<i64: 2, 256>}, {pipeline_mode = #tpu.pipeline_mode<synchronous>, transform_indices = @transform_1, window_bounds = array<i64: 2, 256>}, {transform_indices = @transform_2, window_bounds = array<i64: 256, 384>}, {transform_indices = @transform_3, window_bounds = array<i64: 256, 384>}, {transform_indices = @transform_4, window_bounds = array<i64: 384, 256>}, {pipeline_mode = #tpu.pipeline_mode<synchronous>, transform_indices = @transform_5, window_bounds = array<i64: 2, 256>}]} {
    %c0_i32 = arith.constant 0 : i32
    %0 = arith.cmpi eq, %arg0, %c0_i32 : i32
    %1 = arith.extui %0 : i1 to i32
    %c0_i32_0 = arith.constant 0 : i32
    %2 = arith.cmpi ne, %1, %c0_i32_0 : i32
    scf.if %2 {
      %c0_15 = arith.constant 0 : index
      %c0_16 = arith.constant 0 : index
      %21 = vector.load %arg2[%c0_15, %c0_16] : memref<2x256xf32, #tpu.memory_space<vmem>>, vector<2x256xf32>
      %c0_17 = arith.constant 0 : index
      %c0_18 = arith.constant 0 : index
      %22 = vector.load %arg6[%c0_17, %c0_18] : memref<2x256xf32, #tpu.memory_space<vmem>>, vector<2x256xf32>
      tpu.vector_store %arg6[%c0_17, %c0_18], %21 {strides = array<i32>} : memref<2x256xf32, #tpu.memory_space<vmem>>, vector<2x256xf32>,
    } else {
    }
    %c0 = arith.constant 0 : index
    %c0_1 = arith.constant 0 : index
    %3 = vector.load %arg1[%c0, %c0_1] : memref<2x256xbf16, #tpu.memory_space<vmem>>, vector<2x256xbf16>
    %c0_2 = arith.constant 0 : index
    %c0_3 = arith.constant 0 : index
    %4 = vector.load %arg3[%c0_2, %c0_3] : memref<256x384xbf16, #tpu.memory_space<vmem>>, vector<256x384xbf16>
    %cst = arith.constant dense<0.000000e+00> : vector<2x384xf32>
    %5 = tpu.matmul %3, %4, %cst {dimension_numbers = #tpu.dot_dimension_numbers<[1], [0], [0], [1], [0, 0, 1, 1], [], []>} : vector<2x256xbf16>, vector<256x384xbf16>, vector<2x384xf32> -> vector<2x384xf32>
    %c0_4 = arith.constant 0 : index
    %c0_5 = arith.constant 0 : index
    %6 = vector.load %arg4[%c0_4, %c0_5] : memref<256x384xbf16, #tpu.memory_space<vmem>>, vector<256x384xbf16>
    %cst_6 = arith.constant dense<0.000000e+00> : vector<2x384xf32>
    %7 = tpu.matmul %3, %6, %cst_6 {dimension_numbers = #tpu.dot_dimension_numbers<[1], [0], [0], [1], [0, 0, 1, 1], [], []>} : vector<2x256xbf16>, vector<256x384xbf16>, vector<2x384xf32> -> vector<2x384xf32>
    %8 = arith.negf %5 : vector<2x384xf32>
    %9 = math.exp %8 : vector<2x384xf32>
    %cst_7 = arith.constant 1.000000e+00 : f32
    %10 = vector.broadcast %cst_7 : f32 to vector<2x384xf32>
    %11 = arith.addf %10, %9 : vector<2x384xf32>
    %12 = arith.divf %10, %11 : vector<2x384xf32>
    %13 = arith.mulf %5, %12 : vector<2x384xf32>
    %14 = arith.mulf %13, %7 : vector<2x384xf32>
    %15 = arith.truncf %14 : vector<2x384xf32> to vector<2x384xbf16>
    %c0_8 = arith.constant 0 : index
    %c0_9 = arith.constant 0 : index
    %16 = vector.load %arg6[%c0_8, %c0_9] : memref<2x256xf32, #tpu.memory_space<vmem>>, vector<2x256xf32>
    %c0_10 = arith.constant 0 : index
    %c0_11 = arith.constant 0 : index
    %17 = vector.load %arg5[%c0_10, %c0_11] : memref<384x256xbf16, #tpu.memory_space<vmem>>, vector<384x256xbf16>
    %cst_12 = arith.constant dense<0.000000e+00> : vector<2x256xf32>
    %18 = tpu.matmul %15, %17, %cst_12 {dimension_numbers = #tpu.dot_dimension_numbers<[1], [0], [0], [1], [0, 0, 1, 1], [], []>} : vector<2x384xbf16>, vector<384x256xbf16>, vector<2x256xf32> -> vector<2x256xf32>
    %19 = arith.addf %16, %18 : vector<2x256xf32>
    %c0_13 = arith.constant 0 : index
    %c0_14 = arith.constant 0 : index
    %20 = vector.load %arg6[%c0_13, %c0_14] : memref<2x256xf32, #tpu.memory_space<vmem>>, vector<2x256xf32>
    tpu.vector_store %arg6[%c0_13, %c0_14], %19 {strides = array<i32>} : memref<2x256xf32, #tpu.memory_space<vmem>>, vector<2x256xf32>,
    return
  }
  func.func @transform_0(%arg0: i32) -> (i32, i32) {
    %c0_i32 = arith.constant 0 : i32
    %c0_i32_0 = arith.constant 0 : i32
    %c0_i32_1 = arith.constant 0 : i32
    return %c0_i32, %c0_i32_0 : i32, i32
  }
  func.func @transform_1(%arg0: i32) -> (i32, i32) {
    %c0_i32 = arith.constant 0 : i32
    %c0_i32_0 = arith.constant 0 : i32
    %c0_i32_1 = arith.constant 0 : i32
    return %c0_i32, %c0_i32_0 : i32, i32
  }
  func.func @transform_2(%arg0: i32) -> (i32, i32) {
    %c0_i32 = arith.constant 0 : i32
    %c0_i32_0 = arith.constant 0 : i32
    return %c0_i32, %arg0 : i32, i32
  }
  func.func @transform_3(%arg0: i32) -> (i32, i32) {
    %c0_i32 = arith.constant 0 : i32
    %c0_i32_0 = arith.constant 0 : i32
    return %c0_i32, %arg0 : i32, i32
  }
  func.func @transform_4(%arg0: i32) -> (i32, i32) {
    %c0_i32 = arith.constant 0 : i32
    %c0_i32_0 = arith.constant 0 : i32
    return %arg0, %c0_i32 : i32, i32
  }
  func.func @transform_5(%arg0: i32) -> (i32, i32) {
    %c0_i32 = arith.constant 0 : i32
    %c0_i32_0 = arith.constant 0 : i32
    %c0_i32_1 = arith.constant 0 : i32
    return %c0_i32, %c0_i32_0 : i32, i32
  }
}

module attributes {stable_mosaic.version = 11 : i64} {
  func.func @_attn_kernel(%arg0: i32, %arg1: i32, %arg2: i32, %arg3: memref<1x1x2x64xf32, #tpu.memory_space<vmem>>, %arg4: memref<1x1x16x64xbf16, #tpu.memory_space<vmem>>, %arg5: memref<1x1x16x64xbf16, #tpu.memory_space<vmem>>, %arg6: memref<1x1x2x64xf32, #tpu.memory_space<vmem>>, %arg7: memref<2x1xf32, #tpu.memory_space<vmem>>, %arg8: memref<2x1xf32, #tpu.memory_space<vmem>>, %arg9: memref<2x64xf32, #tpu.memory_space<vmem>>) attributes {dimension_semantics = [#tpu.dimension_semantics<parallel>, #tpu.dimension_semantics<parallel>, #tpu.dimension_semantics<arbitrary>], iteration_bounds = array<i64: 2, 2, 1>, scalar_prefetch = 0 : i64, scratch_operands = 3 : i64, tpu.core_type = #tpu.core_type<tc>, window_params = [{transform_indices = @transform_0, window_bounds = array<i64: 1, 1, 2, 64>}, {transform_indices = @transform_1, window_bounds = array<i64: 1, 1, 16, 64>}, {transform_indices = @transform_2, window_bounds = array<i64: 1, 1, 16, 64>}, {transform_indices = @transform_3, window_bounds = array<i64: 1, 1, 2, 64>}]} {
    %c0_i32 = arith.constant 0 : i32
    %0 = arith.cmpi eq, %arg2, %c0_i32 : i32
    %1 = arith.extui %0 : i1 to i32
    %c0_i32_0 = arith.constant 0 : i32
    %2 = arith.cmpi ne, %1, %c0_i32_0 : i32
    scf.if %2 {
      %cst_33 = arith.constant -1.000000e+30 : f32
      %48 = vector.broadcast %cst_33 : f32 to vector<2x1xf32>
      %c0_34 = arith.constant 0 : index
      %c0_35 = arith.constant 0 : index
      %49 = vector.load %arg7[%c0_34, %c0_35] : memref<2x1xf32, #tpu.memory_space<vmem>>, vector<2x1xf32>
      tpu.vector_store %arg7[%c0_34, %c0_35], %48 {strides = array<i32>} : memref<2x1xf32, #tpu.memory_space<vmem>>, vector<2x1xf32>,
      %cst_36 = arith.constant 0.000000e+00 : f32
      %50 = vector.broadcast %cst_36 : f32 to vector<2x1xf32>
      %c0_37 = arith.constant 0 : index
      %c0_38 = arith.constant 0 : index
      %51 = vector.load %arg8[%c0_37, %c0_38] : memref<2x1xf32, #tpu.memory_space<vmem>>, vector<2x1xf32>
      tpu.vector_store %arg8[%c0_37, %c0_38], %50 {strides = array<i32>} : memref<2x1xf32, #tpu.memory_space<vmem>>, vector<2x1xf32>,
      %cst_39 = arith.constant 0.000000e+00 : f32
      %52 = vector.broadcast %cst_39 : f32 to vector<2x64xf32>
      %c0_40 = arith.constant 0 : index
      %c0_41 = arith.constant 0 : index
      %53 = vector.load %arg9[%c0_40, %c0_41] : memref<2x64xf32, #tpu.memory_space<vmem>>, vector<2x64xf32>
      tpu.vector_store %arg9[%c0_40, %c0_41], %52 {strides = array<i32>} : memref<2x64xf32, #tpu.memory_space<vmem>>, vector<2x64xf32>,
    } else {
    }
    %c0 = arith.constant 0 : index
    %c0_1 = arith.constant 0 : index
    %c0_2 = arith.constant 0 : index
    %c0_3 = arith.constant 0 : index
    %3 = vector.load %arg3[%c0, %c0_1, %c0_2, %c0_3] : memref<1x1x2x64xf32, #tpu.memory_space<vmem>>, vector<1x1x2x64xf32>
    %4 = vector.shape_cast %3 : vector<1x1x2x64xf32> to vector<2x64xf32>
    %cst = arith.constant 1.250000e-01 : f32
    %5 = vector.broadcast %cst : f32 to vector<2x64xf32>
    %6 = arith.mulf %4, %5 : vector<2x64xf32>
    %7 = arith.truncf %6 : vector<2x64xf32> to vector<2x64xbf16>
    %c0_4 = arith.constant 0 : index
    %c0_5 = arith.constant 0 : index
    %c0_6 = arith.constant 0 : index
    %c0_7 = arith.constant 0 : index
    %8 = vector.load %arg4[%c0_4, %c0_5, %c0_6, %c0_7] : memref<1x1x16x64xbf16, #tpu.memory_space<vmem>>, vector<1x1x16x64xbf16>
    %9 = vector.shape_cast %8 : vector<1x1x16x64xbf16> to vector<16x64xbf16>
    %cst_8 = arith.constant dense<0.000000e+00> : vector<2x16xf32>
    %10 = tpu.matmul %7, %9, %cst_8 {dimension_numbers = #tpu.dot_dimension_numbers<[1], [1], [0], [0], [0, 0, 1, 0], [], []>} : vector<2x64xbf16>, vector<16x64xbf16>, vector<2x16xf32> -> vector<2x16xf32>
    %c16_i32 = arith.constant 16 : i32
    %11 = arith.muli %arg2, %c16_i32 : i32
    %12 = tpu.iota {dimensions = array<i32: 1>} : vector<2x16xi32>
    %13 = vector.broadcast %11 : i32 to vector<2x16xi32>
    %14 = arith.addi %13, %12 : vector<2x16xi32>
    %c10_i32 = arith.constant 10 : i32
    %15 = vector.broadcast %c10_i32 : i32 to vector<2x16xi32>
    %16 = arith.cmpi slt, %14, %15 : vector<2x16xi32>
    %cst_9 = arith.constant -1.000000e+30 : f32
    %17 = vector.broadcast %cst_9 : f32 to vector<2x16xf32>
    %18 = arith.select %16, %10, %17 : vector<2x16xi1>, vector<2x16xf32>
    %c0_10 = arith.constant 0 : index
    %c0_11 = arith.constant 0 : index
    %19 = vector.load %arg7[%c0_10, %c0_11] : memref<2x1xf32, #tpu.memory_space<vmem>>, vector<2x1xf32>
    %cst_12 = arith.constant dense<0xFF800000> : vector<2xf32>
    %20 = vector.multi_reduction <maximumf>, %18, %cst_12 [1] : vector<2x16xf32> to vector<2xf32>
    %21 = vector.shape_cast %20 : vector<2xf32> to vector<2x1xf32>
    %22 = arith.maximumf %19, %21 : vector<2x1xf32>
    %c0_13 = arith.constant 0 : index
    %c0_14 = arith.constant 0 : index
    %23 = vector.load %arg7[%c0_13, %c0_14] : memref<2x1xf32, #tpu.memory_space<vmem>>, vector<2x1xf32>
    %24 = arith.subf %23, %22 : vector<2x1xf32>
    %25 = math.exp %24 : vector<2x1xf32>
    %26 = vector.broadcast %22 : vector<2x1xf32> to vector<2x16xf32>
    %27 = arith.subf %18, %26 : vector<2x16xf32>
    %28 = math.exp %27 : vector<2x16xf32>
    %c0_15 = arith.constant 0 : index
    %c0_16 = arith.constant 0 : index
    %29 = vector.load %arg8[%c0_15, %c0_16] : memref<2x1xf32, #tpu.memory_space<vmem>>, vector<2x1xf32>
    %30 = arith.mulf %25, %29 : vector<2x1xf32>
    %cst_17 = arith.constant dense<0.000000e+00> : vector<2xf32>
    %31 = vector.multi_reduction <add>, %28, %cst_17 [1] : vector<2x16xf32> to vector<2xf32>
    %32 = vector.shape_cast %31 : vector<2xf32> to vector<2x1xf32>
    %33 = arith.addf %30, %32 : vector<2x1xf32>
    %c0_18 = arith.constant 0 : index
    %c0_19 = arith.constant 0 : index
    %34 = vector.load %arg8[%c0_18, %c0_19] : memref<2x1xf32, #tpu.memory_space<vmem>>, vector<2x1xf32>
    tpu.vector_store %arg8[%c0_18, %c0_19], %33 {strides = array<i32>} : memref<2x1xf32, #tpu.memory_space<vmem>>, vector<2x1xf32>,
    %c0_20 = arith.constant 0 : index
    %c0_21 = arith.constant 0 : index
    %35 = vector.load %arg9[%c0_20, %c0_21] : memref<2x64xf32, #tpu.memory_space<vmem>>, vector<2x64xf32>
    %36 = vector.broadcast %25 : vector<2x1xf32> to vector<2x64xf32>
    %37 = arith.mulf %36, %35 : vector<2x64xf32>
    %38 = arith.truncf %28 : vector<2x16xf32> to vector<2x16xbf16>
    %c0_22 = arith.constant 0 : index
    %c0_23 = arith.constant 0 : index
    %c0_24 = arith.constant 0 : index
    %c0_25 = arith.constant 0 : index
    %39 = vector.load %arg5[%c0_22, %c0_23, %c0_24, %c0_25] : memref<1x1x16x64xbf16, #tpu.memory_space<vmem>>, vector<1x1x16x64xbf16>
    %40 = vector.shape_cast %39 : vector<1x1x16x64xbf16> to vector<16x64xbf16>
    %cst_26 = arith.constant dense<0.000000e+00> : vector<2x64xf32>
    %41 = tpu.matmul %38, %40, %cst_26 {dimension_numbers = #tpu.dot_dimension_numbers<[1], [0], [0], [1], [0, 0, 1, 1], [], []>} : vector<2x16xbf16>, vector<16x64xbf16>, vector<2x64xf32> -> vector<2x64xf32>
    %42 = arith.addf %37, %41 : vector<2x64xf32>
    %c0_27 = arith.constant 0 : index
    %c0_28 = arith.constant 0 : index
    %43 = vector.load %arg9[%c0_27, %c0_28] : memref<2x64xf32, #tpu.memory_space<vmem>>, vector<2x64xf32>
    tpu.vector_store %arg9[%c0_27, %c0_28], %42 {strides = array<i32>} : memref<2x64xf32, #tpu.memory_space<vmem>>, vector<2x64xf32>,
    %c0_29 = arith.constant 0 : index
    %c0_30 = arith.constant 0 : index
    %44 = vector.load %arg7[%c0_29, %c0_30] : memref<2x1xf32, #tpu.memory_space<vmem>>, vector<2x1xf32>
    tpu.vector_store %arg7[%c0_29, %c0_30], %22 {strides = array<i32>} : memref<2x1xf32, #tpu.memory_space<vmem>>, vector<2x1xf32>,
    %c0_i32_31 = arith.constant 0 : i32
    %45 = arith.cmpi eq, %arg2, %c0_i32_31 : i32
    %46 = arith.extui %45 : i1 to i32
    %c0_i32_32 = arith.constant 0 : i32
    %47 = arith.cmpi ne, %46, %c0_i32_32 : i32
    scf.if %47 {
      %c0_33 = arith.constant 0 : index
      %c0_34 = arith.constant 0 : index
      %48 = vector.load %arg9[%c0_33, %c0_34] : memref<2x64xf32, #tpu.memory_space<vmem>>, vector<2x64xf32>
      %c0_35 = arith.constant 0 : index
      %c0_36 = arith.constant 0 : index
      %49 = vector.load %arg8[%c0_35, %c0_36] : memref<2x1xf32, #tpu.memory_space<vmem>>, vector<2x1xf32>
      %50 = tpu.reciprocal %49 {approx = true} : vector<2x1xf32> -> vector<2x1xf32>
      %51 = vector.broadcast %50 : vector<2x1xf32> to vector<2x64xf32>
      %52 = arith.mulf %48, %51 : vector<2x64xf32>
      %c0_37 = arith.constant 0 : index
      %c0_38 = arith.constant 0 : index
      %c0_39 = arith.constant 0 : index
      %c0_40 = arith.constant 0 : index
      %53 = vector.load %arg6[%c0_37, %c0_38, %c0_39, %c0_40] : memref<1x1x2x64xf32, #tpu.memory_space<vmem>>, vector<1x1x2x64xf32>
      %54 = vector.shape_cast %53 : vector<1x1x2x64xf32> to vector<2x64xf32>
      %55 = vector.shape_cast %52 : vector<2x64xf32> to vector<1x1x2x64xf32>
      tpu.vector_store %arg6[%c0_37, %c0_38, %c0_39, %c0_40], %55 {strides = array<i32>} : memref<1x1x2x64xf32, #tpu.memory_space<vmem>>, vector<1x1x2x64xf32>,
    } else {
    }
    return
  }
  func.func @transform_0(%arg0: i32, %arg1: i32, %arg2: i32) -> (i32, i32, i32, i32) {
    %c0_i32 = arith.constant 0 : i32
    %c0_i32_0 = arith.constant 0 : i32
    %c0_i32_1 = arith.constant 0 : i32
    return %arg0, %arg1, %c0_i32, %c0_i32_0 : i32, i32, i32, i32
  }
  func.func @transform_1(%arg0: i32, %arg1: i32, %arg2: i32) -> (i32, i32, i32, i32) {
    %c0_i32 = arith.constant 0 : i32
    %c0_i32_0 = arith.constant 0 : i32
    return %arg0, %arg1, %arg2, %c0_i32 : i32, i32, i32, i32
  }
  func.func @transform_2(%arg0: i32, %arg1: i32, %arg2: i32) -> (i32, i32, i32, i32) {
    %c0_i32 = arith.constant 0 : i32
    %c0_i32_0 = arith.constant 0 : i32
    return %arg0, %arg1, %arg2, %c0_i32 : i32, i32, i32, i32
  }
  func.func @transform_3(%arg0: i32, %arg1: i32, %arg2: i32) -> (i32, i32, i32, i32) {
    %c0_i32 = arith.constant 0 : i32
    %c0_i32_0 = arith.constant 0 : i32
    %c0_i32_1 = arith.constant 0 : i32
    return %arg0, %arg1, %c0_i32, %c0_i32_0 : i32, i32, i32, i32
  }
}

module attributes {stable_mosaic.version = 11 : i64} {
  func.func @_kv_write_kernel(%arg0: i32, %arg1: memref<2x2x64xf32, #tpu.memory_space<vmem>>, %arg2: memref<2x2x64xf32, #tpu.memory_space<vmem>>, %arg3: memref<2x2x8x64xbf16, #tpu.memory_space<vmem>>, %arg4: memref<2x2x8x64xbf16, #tpu.memory_space<vmem>>, %arg5: memref<2x2x8x64xbf16, #tpu.memory_space<vmem>>, %arg6: memref<2x2x8x64xbf16, #tpu.memory_space<vmem>>) attributes {dimension_semantics = [#tpu.dimension_semantics<arbitrary>], iteration_bounds = array<i64: 1>, scalar_prefetch = 0 : i64, scratch_operands = 0 : i64, tpu.core_type = #tpu.core_type<tc>, window_params = [{pipeline_mode = #tpu.pipeline_mode<synchronous>, transform_indices = @transform_0, window_bounds = array<i64: 2, 2, 64>}, {pipeline_mode = #tpu.pipeline_mode<synchronous>, transform_indices = @transform_1, window_bounds = array<i64: 2, 2, 64>}, {transform_indices = @transform_2, window_bounds = array<i64: 2, 2, 8, 64>}, {transform_indices = @transform_3, window_bounds = array<i64: 2, 2, 8, 64>}, {transform_indices = @transform_4, window_bounds = array<i64: 2, 2, 8, 64>}, {transform_indices = @transform_5, window_bounds = array<i64: 2, 2, 8, 64>}]} {
    %c0 = arith.constant 0 : index
    %c0_0 = arith.constant 0 : index
    %c0_1 = arith.constant 0 : index
    %c0_2 = arith.constant 0 : index
    %0 = vector.load %arg3[%c0, %c0_0, %c0_1, %c0_2] : memref<2x2x8x64xbf16, #tpu.memory_space<vmem>>, vector<2x2x8x64xbf16>
    %c0_3 = arith.constant 0 : index
    %c0_4 = arith.constant 0 : index
    %c0_5 = arith.constant 0 : index
    %c0_6 = arith.constant 0 : index
    %1 = vector.load %arg4[%c0_3, %c0_4, %c0_5, %c0_6] : memref<2x2x8x64xbf16, #tpu.memory_space<vmem>>, vector<2x2x8x64xbf16>
    %2 = tpu.iota {dimensions = array<i32: 2>} : vector<2x2x8x64xi32>
    %c1_i32 = arith.constant 1 : i32
    %3 = vector.broadcast %c1_i32 : i32 to vector<2x2x8x64xi32>
    %4 = arith.cmpi eq, %2, %3 : vector<2x2x8x64xi32>
    %c0_7 = arith.constant 0 : index
    %c0_8 = arith.constant 0 : index
    %c0_9 = arith.constant 0 : index
    %5 = vector.load %arg1[%c0_7, %c0_8, %c0_9] : memref<2x2x64xf32, #tpu.memory_space<vmem>>, vector<2x2x64xf32>
    %6 = arith.truncf %5 : vector<2x2x64xf32> to vector<2x2x64xbf16>
    %7 = vector.shape_cast %6 : vector<2x2x64xbf16> to vector<2x2x1x64xbf16>
    %8 = vector.shape_cast %7 : vector<2x2x1x64xbf16> to vector<2x2x1x64xbf16>
    %9 = vector.broadcast %8 : vector<2x2x1x64xbf16> to vector<2x2x8x64xbf16>
    %10 = arith.select %4, %9, %0 : vector<2x2x8x64xi1>, vector<2x2x8x64xbf16>
    %c0_10 = arith.constant 0 : index
    %c0_11 = arith.constant 0 : index
    %c0_12 = arith.constant 0 : index
    %c0_13 = arith.constant 0 : index
    %11 = vector.load %arg5[%c0_10, %c0_11, %c0_12, %c0_13] : memref<2x2x8x64xbf16, #tpu.memory_space<vmem>>, vector<2x2x8x64xbf16>
    tpu.vector_store %arg5[%c0_10, %c0_11, %c0_12, %c0_13], %10 {strides = array<i32>} : memref<2x2x8x64xbf16, #tpu.memory_space<vmem>>, vector<2x2x8x64xbf16>,
    %c0_14 = arith.constant 0 : index
    %c0_15 = arith.constant 0 : index
    %c0_16 = arith.constant 0 : index
    %12 = vector.load %arg2[%c0_14, %c0_15, %c0_16] : memref<2x2x64xf32, #tpu.memory_space<vmem>>, vector<2x2x64xf32>
    %13 = arith.truncf %12 : vector<2x2x64xf32> to vector<2x2x64xbf16>
    %14 = vector.shape_cast %13 : vector<2x2x64xbf16> to vector<2x2x1x64xbf16>
    %15 = vector.shape_cast %14 : vector<2x2x1x64xbf16> to vector<2x2x1x64xbf16>
    %16 = vector.broadcast %15 : vector<2x2x1x64xbf16> to vector<2x2x8x64xbf16>
    %17 = arith.select %4, %16, %1 : vector<2x2x8x64xi1>, vector<2x2x8x64xbf16>
    %c0_17 = arith.constant 0 : index
    %c0_18 = arith.constant 0 : index
    %c0_19 = arith.constant 0 : index
    %c0_20 = arith.constant 0 : index
    %18 = vector.load %arg6[%c0_17, %c0_18, %c0_19, %c0_20] : memref<2x2x8x64xbf16, #tpu.memory_space<vmem>>, vector<2x2x8x64xbf16>
    tpu.vector_store %arg6[%c0_17, %c0_18, %c0_19, %c0_20], %17 {strides = array<i32>} : memref<2x2x8x64xbf16, #tpu.memory_space<vmem>>, vector<2x2x8x64xbf16>,
    return
  }
  func.func @transform_0(%arg0: i32) -> (i32, i32, i32) {
    %c0_i32 = arith.constant 0 : i32
    %c0_i32_0 = arith.constant 0 : i32
    %c0_i32_1 = arith.constant 0 : i32
    %c0_i32_2 = arith.constant 0 : i32
    return %c0_i32, %c0_i32_0, %c0_i32_1 : i32, i32, i32
  }
  func.func @transform_1(%arg0: i32) -> (i32, i32, i32) {
    %c0_i32 = arith.constant 0 : i32
    %c0_i32_0 = arith.constant 0 : i32
    %c0_i32_1 = arith.constant 0 : i32
    %c0_i32_2 = arith.constant 0 : i32
    return %c0_i32, %c0_i32_0, %c0_i32_1 : i32, i32, i32
  }
  func.func @transform_2(%arg0: i32) -> (i32, i32, i32, i32) {
    %c0_i32 = arith.constant 0 : i32
    %c0_i32_0 = arith.constant 0 : i32
    %c1_i32 = arith.constant 1 : i32
    %c0_i32_1 = arith.constant 0 : i32
    %c0_i32_2 = arith.constant 0 : i32
    return %c0_i32, %c0_i32_0, %c1_i32, %c0_i32_1 : i32, i32, i32, i32
  }
  func.func @transform_3(%arg0: i32) -> (i32, i32, i32, i32) {
    %c0_i32 = arith.constant 0 : i32
    %c0_i32_0 = arith.constant 0 : i32
    %c1_i32 = arith.constant 1 : i32
    %c0_i32_1 = arith.constant 0 : i32
    %c0_i32_2 = arith.constant 0 : i32
    return %c0_i32, %c0_i32_0, %c1_i32, %c0_i32_1 : i32, i32, i32, i32
  }
  func.func @transform_4(%arg0: i32) -> (i32, i32, i32, i32) {
    %c0_i32 = arith.constant 0 : i32
    %c0_i32_0 = arith.constant 0 : i32
    %c1_i32 = arith.constant 1 : i32
    %c0_i32_1 = arith.constant 0 : i32
    %c0_i32_2 = arith.constant 0 : i32
    return %c0_i32, %c0_i32_0, %c1_i32, %c0_i32_1 : i32, i32, i32, i32
  }
  func.func @transform_5(%arg0: i32) -> (i32, i32, i32, i32) {
    %c0_i32 = arith.constant 0 : i32
    %c0_i32_0 = arith.constant 0 : i32
    %c1_i32 = arith.constant 1 : i32
    %c0_i32_1 = arith.constant 0 : i32
    %c0_i32_2 = arith.constant 0 : i32
    return %c0_i32, %c0_i32_0, %c1_i32, %c0_i32_1 : i32, i32, i32, i32
  }
}

module attributes {stable_mosaic.version = 11 : i64} {
  func.func @_qkv_norm_rope_kernel(%arg0: i32, %arg1: memref<2x256xf32, #tpu.memory_space<vmem>>, %arg2: memref<1x256xf32, #tpu.memory_space<vmem>>, %arg3: memref<256x512xbf16, #tpu.memory_space<vmem>>, %arg4: memref<1x512xf32, #tpu.memory_space<vmem>>, %arg5: memref<1x512xf32, #tpu.memory_space<vmem>>, %arg6: memref<2x512xf32, #tpu.memory_space<vmem>>) attributes {dimension_semantics = [#tpu.dimension_semantics<parallel>], iteration_bounds = array<i64: 1>, scalar_prefetch = 0 : i64, scratch_operands = 0 : i64, tpu.core_type = #tpu.core_type<tc>, window_params = [{pipeline_mode = #tpu.pipeline_mode<synchronous>, transform_indices = @transform_0, window_bounds = array<i64: 2, 256>}, {pipeline_mode = #tpu.pipeline_mode<synchronous>, transform_indices = @transform_1, window_bounds = array<i64: 1, 256>}, {transform_indices = @transform_2, window_bounds = array<i64: 256, 512>}, {transform_indices = @transform_3, window_bounds = array<i64: 1, 512>}, {transform_indices = @transform_4, window_bounds = array<i64: 1, 512>}, {transform_indices = @transform_5, window_bounds = array<i64: 2, 512>}]} {
    %c0 = arith.constant 0 : index
    %c0_0 = arith.constant 0 : index
    %0 = vector.load %arg1[%c0, %c0_0] : memref<2x256xf32, #tpu.memory_space<vmem>>, vector<2x256xf32>
    %1 = arith.mulf %0, %0 : vector<2x256xf32>
    %cst = arith.constant dense<0.000000e+00> : vector<2xf32>
    %2 = vector.multi_reduction <add>, %1, %cst [1] : vector<2x256xf32> to vector<2xf32>
    %3 = vector.shape_cast %2 : vector<2xf32> to vector<2x1xf32>
    %cst_1 = arith.constant 2.560000e+02 : f32
    %4 = vector.broadcast %cst_1 : f32 to vector<2x1xf32>
    %5 = arith.divf %3, %4 : vector<2x1xf32>
    %c0_2 = arith.constant 0 : index
    %c0_3 = arith.constant 0 : index
    %6 = vector.load %arg2[%c0_2, %c0_3] : memref<1x256xf32, #tpu.memory_space<vmem>>, vector<1x256xf32>
    %cst_4 = arith.constant 9.99999974E-6 : f32
    %7 = vector.broadcast %cst_4 : f32 to vector<2x1xf32>
    %8 = arith.addf %5, %7 : vector<2x1xf32>
    %9 = math.rsqrt %8 : vector<2x1xf32>
    %10 = vector.broadcast %9 : vector<2x1xf32> to vector<2x256xf32>
    %11 = arith.mulf %0, %10 : vector<2x256xf32>
    %12 = vector.broadcast %6 : vector<1x256xf32> to vector<2x256xf32>
    %13 = arith.mulf %12, %11 : vector<2x256xf32>
    %14 = arith.truncf %13 : vector<2x256xf32> to vector<2x256xbf16>
    %c0_5 = arith.constant 0 : index
    %c0_6 = arith.constant 0 : index
    %15 = vector.load %arg3[%c0_5, %c0_6] : memref<256x512xbf16, #tpu.memory_space<vmem>>, vector<256x512xbf16>
    %cst_7 = arith.constant dense<0.000000e+00> : vector<2x512xf32>
    %16 = tpu.matmul %14, %15, %cst_7 {dimension_numbers = #tpu.dot_dimension_numbers<[1], [0], [0], [1], [0, 0, 1, 1], [], []>} : vector<2x256xbf16>, vector<256x512xbf16>, vector<2x512xf32> -> vector<2x512xf32>
    %c0_8 = arith.constant 0 : index
    %c0_9 = arith.constant 0 : index
    %17 = vector.load %arg4[%c0_8, %c0_9] : memref<1x512xf32, #tpu.memory_space<vmem>>, vector<1x512xf32>
    %c0_10 = arith.constant 0 : index
    %c0_11 = arith.constant 0 : index
    %18 = vector.load %arg5[%c0_10, %c0_11] : memref<1x512xf32, #tpu.memory_space<vmem>>, vector<1x512xf32>
    %19 = tpu.iota {dimensions = array<i32: 1>} : vector<2x512xi32>
    %c2_i32 = arith.constant 2 : i32
    %c0_i32 = arith.constant 0 : i32
    %20 = arith.cmpi eq, %c2_i32, %c0_i32 : i32
    %c1_i32 = arith.constant 1 : i32
    %21 = arith.select %20, %c1_i32, %c2_i32 : i32
    %22 = vector.broadcast %21 : i32 to vector<2x512xi32>
    %23 = arith.remsi %19, %22 : vector<2x512xi32>
    %c0_i32_12 = arith.constant 0 : i32
    %24 = vector.broadcast %c0_i32_12 : i32 to vector<2x512xi32>
    %25 = arith.cmpi ne, %23, %24 : vector<2x512xi32>
    %c0_i32_13 = arith.constant 0 : i32
    %26 = vector.broadcast %c0_i32_13 : i32 to vector<2x512xi32>
    %27 = arith.cmpi slt, %23, %26 : vector<2x512xi32>
    %c0_i32_14 = arith.constant 0 : i32
    %28 = arith.cmpi slt, %21, %c0_i32_14 : i32
    %29 = vector.broadcast %28 : i1 to vector<2x512xi1>
    %30 = vector.broadcast %29 : vector<2x512xi1> to vector<2x512xi1>
    %31 = arith.xori %27, %30 : vector<2x512xi1>
    %32 = arith.andi %31, %25 : vector<2x512xi1>
    %33 = vector.broadcast %21 : i32 to vector<2x512xi32>
    %34 = arith.addi %23, %33 : vector<2x512xi32>
    %35 = arith.select %32, %34, %23 : vector<2x512xi1>, vector<2x512xi32>
    %c0_i32_15 = arith.constant 0 : i32
    %36 = vector.broadcast %c0_i32_15 : i32 to vector<2x512xi32>
    %37 = arith.cmpi eq, %35, %36 : vector<2x512xi32>
    %c511_i32 = arith.constant 511 : i32
    %38 = tpu.dynamic_rotate %16 by %c511_i32 dim 1 : vector<2x512xf32>, i32 -> vector<2x512xf32>
    %c1_i32_16 = arith.constant 1 : i32
    %39 = tpu.dynamic_rotate %16 by %c1_i32_16 dim 1 : vector<2x512xf32>, i32 -> vector<2x512xf32>
    %cst_17 = arith.constant 0.000000e+00 : f32
    %40 = vector.broadcast %cst_17 : f32 to vector<2x512xf32>
    %41 = arith.subf %40, %38 : vector<2x512xf32>
    %42 = arith.select %37, %41, %39 : vector<2x512xi1>, vector<2x512xf32>
    %43 = vector.broadcast %17 : vector<1x512xf32> to vector<2x512xf32>
    %44 = arith.mulf %16, %43 : vector<2x512xf32>
    %45 = vector.broadcast %18 : vector<1x512xf32> to vector<2x512xf32>
    %46 = arith.mulf %42, %45 : vector<2x512xf32>
    %47 = arith.addf %44, %46 : vector<2x512xf32>
    %c0_18 = arith.constant 0 : index
    %c0_19 = arith.constant 0 : index
    %48 = vector.load %arg6[%c0_18, %c0_19] : memref<2x512xf32, #tpu.memory_space<vmem>>, vector<2x512xf32>
    tpu.vector_store %arg6[%c0_18, %c0_19], %47 {strides = array<i32>} : memref<2x512xf32, #tpu.memory_space<vmem>>, vector<2x512xf32>,
    return
  }
  func.func @transform_0(%arg0: i32) -> (i32, i32) {
    %c0_i32 = arith.constant 0 : i32
    %c0_i32_0 = arith.constant 0 : i32
    %c0_i32_1 = arith.constant 0 : i32
    return %c0_i32, %c0_i32_0 : i32, i32
  }
  func.func @transform_1(%arg0: i32) -> (i32, i32) {
    %c0_i32 = arith.constant 0 : i32
    %c0_i32_0 = arith.constant 0 : i32
    %c0_i32_1 = arith.constant 0 : i32
    return %c0_i32, %c0_i32_0 : i32, i32
  }
  func.func @transform_2(%arg0: i32) -> (i32, i32) {
    %c0_i32 = arith.constant 0 : i32
    %c0_i32_0 = arith.constant 0 : i32
    return %c0_i32, %arg0 : i32, i32
  }
  func.func @transform_3(%arg0: i32) -> (i32, i32) {
    %c0_i32 = arith.constant 0 : i32
    %c0_i32_0 = arith.constant 0 : i32
    return %c0_i32, %arg0 : i32, i32
  }
  func.func @transform_4(%arg0: i32) -> (i32, i32) {
    %c0_i32 = arith.constant 0 : i32
    %c0_i32_0 = arith.constant 0 : i32
    return %c0_i32, %arg0 : i32, i32
  }
  func.func @transform_5(%arg0: i32) -> (i32, i32) {
    %c0_i32 = arith.constant 0 : i32
    %c0_i32_0 = arith.constant 0 : i32
    return %c0_i32, %arg0 : i32, i32
  }
}

module attributes {stable_mosaic.version = 11 : i64} {
  func.func @_rmsnorm_kernel(%arg0: memref<2x256xf32, #tpu.memory_space<vmem>>, %arg1: memref<1x256xf32, #tpu.memory_space<vmem>>, %arg2: memref<2x256xbf16, #tpu.memory_space<vmem>>) attributes {dimension_semantics = [], scalar_prefetch = 0 : i64, scratch_operands = 0 : i64, tpu.core_type = #tpu.core_type<tc>} {
    %c0 = arith.constant 0 : index
    %c0_0 = arith.constant 0 : index
    %0 = vector.load %arg0[%c0, %c0_0] : memref<2x256xf32, #tpu.memory_space<vmem>>, vector<2x256xf32>
    %1 = arith.mulf %0, %0 : vector<2x256xf32>
    %cst = arith.constant dense<0.000000e+00> : vector<2xf32>
    %2 = vector.multi_reduction <add>, %1, %cst [1] : vector<2x256xf32> to vector<2xf32>
    %3 = vector.shape_cast %2 : vector<2xf32> to vector<2x1xf32>
    %cst_1 = arith.constant 2.560000e+02 : f32
    %4 = vector.broadcast %cst_1 : f32 to vector<2x1xf32>
    %5 = arith.divf %3, %4 : vector<2x1xf32>
    %c0_2 = arith.constant 0 : index
    %c0_3 = arith.constant 0 : index
    %6 = vector.load %arg1[%c0_2, %c0_3] : memref<1x256xf32, #tpu.memory_space<vmem>>, vector<1x256xf32>
    %cst_4 = arith.constant 9.99999974E-6 : f32
    %7 = vector.broadcast %cst_4 : f32 to vector<2x1xf32>
    %8 = arith.addf %5, %7 : vector<2x1xf32>
    %9 = math.rsqrt %8 : vector<2x1xf32>
    %10 = vector.broadcast %9 : vector<2x1xf32> to vector<2x256xf32>
    %11 = arith.mulf %0, %10 : vector<2x256xf32>
    %12 = vector.broadcast %6 : vector<1x256xf32> to vector<2x256xf32>
    %13 = arith.mulf %12, %11 : vector<2x256xf32>
    %14 = arith.truncf %13 : vector<2x256xf32> to vector<2x256xbf16>
    %c0_5 = arith.constant 0 : index
    %c0_6 = arith.constant 0 : index
    %15 = vector.load %arg2[%c0_5, %c0_6] : memref<2x256xbf16, #tpu.memory_space<vmem>>, vector<2x256xbf16>
    tpu.vector_store %arg2[%c0_5, %c0_6], %14 {strides = array<i32>} : memref<2x256xbf16, #tpu.memory_space<vmem>>, vector<2x256xbf16>,
    return
  }
}

module attributes {stable_mosaic.version = 11 : i64} {
  func.func @_lmhead_kernel(%arg0: i32, %arg1: memref<2x256xbf16, #tpu.memory_space<vmem>>, %arg2: memref<256x512xbf16, #tpu.memory_space<vmem>>, %arg3: memref<2x512xf32, #tpu.memory_space<vmem>>) attributes {dimension_semantics = [#tpu.dimension_semantics<parallel>], iteration_bounds = array<i64: 2>, scalar_prefetch = 0 : i64, scratch_operands = 0 : i64, tpu.core_type = #tpu.core_type<tc>, window_params = [{pipeline_mode = #tpu.pipeline_mode<synchronous>, transform_indices = @transform_0, window_bounds = array<i64: 2, 256>}, {transform_indices = @transform_1, window_bounds = array<i64: 256, 512>}, {transform_indices = @transform_2, window_bounds = array<i64: 2, 512>}]} {
    %c0 = arith.constant 0 : index
    %c0_0 = arith.constant 0 : index
    %0 = vector.load %arg1[%c0, %c0_0] : memref<2x256xbf16, #tpu.memory_space<vmem>>, vector<2x256xbf16>
    %c0_1 = arith.constant 0 : index
    %c0_2 = arith.constant 0 : index
    %1 = vector.load %arg2[%c0_1, %c0_2] : memref<256x512xbf16, #tpu.memory_space<vmem>>, vector<256x512xbf16>
    %cst = arith.constant dense<0.000000e+00> : vector<2x512xf32>
    %2 = tpu.matmul %0, %1, %cst {dimension_numbers = #tpu.dot_dimension_numbers<[1], [0], [0], [1], [0, 0, 1, 1], [], []>} : vector<2x256xbf16>, vector<256x512xbf16>, vector<2x512xf32> -> vector<2x512xf32>
    %c0_3 = arith.constant 0 : index
    %c0_4 = arith.constant 0 : index
    %3 = vector.load %arg3[%c0_3, %c0_4] : memref<2x512xf32, #tpu.memory_space<vmem>>, vector<2x512xf32>
    tpu.vector_store %arg3[%c0_3, %c0_4], %2 {strides = array<i32>} : memref<2x512xf32, #tpu.memory_space<vmem>>, vector<2x512xf32>,
    return
  }
  func.func @transform_0(%arg0: i32) -> (i32, i32) {
    %c0_i32 = arith.constant 0 : i32
    %c0_i32_0 = arith.constant 0 : i32
    %c0_i32_1 = arith.constant 0 : i32
    return %c0_i32, %c0_i32_0 : i32, i32
  }
  func.func @transform_1(%arg0: i32) -> (i32, i32) {
    %c0_i32 = arith.constant 0 : i32
    %c0_i32_0 = arith.constant 0 : i32
    return %c0_i32, %arg0 : i32, i32
  }
  func.func @transform_2(%arg0: i32) -> (i32, i32) {
    %c0_i32 = arith.constant 0 : i32
    %c0_i32_0 = arith.constant 0 : i32
    return %c0_i32, %arg0 : i32, i32
  }
}

module attributes {stable_mosaic.version = 11 : i64} {
  func.func @_ffn_kernel(%arg0: i32, %arg1: memref<2x256xbf16, #tpu.memory_space<vmem>>, %arg2: memref<2x256xf32, #tpu.memory_space<vmem>>, %arg3: memref<256x384xbf16, #tpu.memory_space<vmem>>, %arg4: memref<256x384xbf16, #tpu.memory_space<vmem>>, %arg5: memref<384x256xbf16, #tpu.memory_space<vmem>>, %arg6: memref<2x256xf32, #tpu.memory_space<vmem>>) attributes {dimension_semantics = [#tpu.dimension_semantics<arbitrary>], iteration_bounds = array<i64: 2>, scalar_prefetch = 0 : i64, scratch_operands = 0 : i64, tpu.core_type = #tpu.core_type<tc>, window_params = [{pipeline_mode = #tpu.pipeline_mode<synchronous>, transform_indices = @transform_0, window_bounds = array<i64: 2, 256>}, {pipeline_mode = #tpu.pipeline_mode<synchronous>, transform_indices = @transform_1, window_bounds = array<i64: 2, 256>}, {transform_indices = @transform_2, window_bounds = array<i64: 256, 384>}, {transform_indices = @transform_3, window_bounds = array<i64: 256, 384>}, {transform_indices = @transform_4, window_bounds = array<i64: 384, 256>}, {pipeline_mode = #tpu.pipeline_mode<synchronous>, transform_indices = @transform_5, window_bounds = array<i64: 2, 256>}]} {
    %c0_i32 = arith.constant 0 : i32
    %0 = arith.cmpi eq, %arg0, %c0_i32 : i32
    %1 = arith.extui %0 : i1 to i32
    %c0_i32_0 = arith.constant 0 : i32
    %2 = arith.cmpi ne, %1, %c0_i32_0 : i32
    scf.if %2 {
      %c0_15 = arith.constant 0 : index
      %c0_16 = arith.constant 0 : index
      %21 = vector.load %arg2[%c0_15, %c0_16] : memref<2x256xf32, #tpu.memory_space<vmem>>, vector<2x256xf32>
      %c0_17 = arith.constant 0 : index
      %c0_18 = arith.constant 0 : index
      %22 = vector.load %arg6[%c0_17, %c0_18] : memref<2x256xf32, #tpu.memory_space<vmem>>, vector<2x256xf32>
      tpu.vector_store %arg6[%c0_17, %c0_18], %21 {strides = array<i32>} : memref<2x256xf32, #tpu.memory_space<vmem>>, vector<2x256xf32>,
    } else {
    }
    %c0 = arith.constant 0 : index
    %c0_1 = arith.constant 0 : index
    %3 = vector.load %arg1[%c0, %c0_1] : memref<2x256xbf16, #tpu.memory_space<vmem>>, vector<2x256xbf16>
    %c0_2 = arith.constant 0 : index
    %c0_3 = arith.constant 0 : index
    %4 = vector.load %arg3[%c0_2, %c0_3] : memref<256x384xbf16, #tpu.memory_space<vmem>>, vector<256x384xbf16>
    %cst = arith.constant dense<0.000000e+00> : vector<2x384xf32>
    %5 = tpu.matmul %3, %4, %cst {dimension_numbers = #tpu.dot_dimension_numbers<[1], [0], [0], [1], [0, 0, 1, 1], [], []>} : vector<2x256xbf16>, vector<256x384xbf16>, vector<2x384xf32> -> vector<2x384xf32>
    %c0_4 = arith.constant 0 : index
    %c0_5 = arith.constant 0 : index
    %6 = vector.load %arg4[%c0_4, %c0_5] : memref<256x384xbf16, #tpu.memory_space<vmem>>, vector<256x384xbf16>
    %cst_6 = arith.constant dense<0.000000e+00> : vector<2x384xf32>
    %7 = tpu.matmul %3, %6, %cst_6 {dimension_numbers = #tpu.dot_dimension_numbers<[1], [0], [0], [1], [0, 0, 1, 1], [], []>} : vector<2x256xbf16>, vector<256x384xbf16>, vector<2x384xf32> -> vector<2x384xf32>
    %8 = arith.negf %5 : vector<2x384xf32>
    %9 = math.exp %8 : vector<2x384xf32>
    %cst_7 = arith.constant 1.000000e+00 : f32
    %10 = vector.broadcast %cst_7 : f32 to vector<2x384xf32>
    %11 = arith.addf %10, %9 : vector<2x384xf32>
    %12 = arith.divf %10, %11 : vector<2x384xf32>
    %13 = arith.mulf %5, %12 : vector<2x384xf32>
    %14 = arith.mulf %13, %7 : vector<2x384xf32>
    %15 = arith.truncf %14 : vector<2x384xf32> to vector<2x384xbf16>
    %c0_8 = arith.constant 0 : index
    %c0_9 = arith.constant 0 : index
    %16 = vector.load %arg6[%c0_8, %c0_9] : memref<2x256xf32, #tpu.memory_space<vmem>>, vector<2x256xf32>
    %c0_10 = arith.constant 0 : index
    %c0_11 = arith.constant 0 : index
    %17 = vector.load %arg5[%c0_10, %c0_11] : memref<384x256xbf16, #tpu.memory_space<vmem>>, vector<384x256xbf16>
    %cst_12 = arith.constant dense<0.000000e+00> : vector<2x256xf32>
    %18 = tpu.matmul %15, %17, %cst_12 {dimension_numbers = #tpu.dot_dimension_numbers<[1], [0], [0], [1], [0, 0, 1, 1], [], []>} : vector<2x384xbf16>, vector<384x256xbf16>, vector<2x256xf32> -> vector<2x256xf32>
    %19 = arith.addf %16, %18 : vector<2x256xf32>
    %c0_13 = arith.constant 0 : index
    %c0_14 = arith.constant 0 : index
    %20 = vector.load %arg6[%c0_13, %c0_14] : memref<2x256xf32, #tpu.memory_space<vmem>>, vector<2x256xf32>
    tpu.vector_store %arg6[%c0_13, %c0_14], %19 {strides = array<i32>} : memref<2x256xf32, #tpu.memory_space<vmem>>, vector<2x256xf32>,
    return
  }
  func.func @transform_0(%arg0: i32) -> (i32, i32) {
    %c0_i32 = arith.constant 0 : i32
    %c0_i32_0 = arith.constant 0 : i32
    %c0_i32_1 = arith.constant 0 : i32
    return %c0_i32, %c0_i32_0 : i32, i32
  }
  func.func @transform_1(%arg0: i32) -> (i32, i32) {
    %c0_i32 = arith.constant 0 : i32
    %c0_i32_0 = arith.constant 0 : i32
    %c0_i32_1 = arith.constant 0 : i32
    return %c0_i32, %c0_i32_0 : i32, i32
  }
  func.func @transform_2(%arg0: i32) -> (i32, i32) {
    %c0_i32 = arith.constant 0 : i32
    %c0_i32_0 = arith.constant 0 : i32
    return %c0_i32, %arg0 : i32, i32
  }
  func.func @transform_3(%arg0: i32) -> (i32, i32) {
    %c0_i32 = arith.constant 0 : i32
    %c0_i32_0 = arith.constant 0 : i32
    return %c0_i32, %arg0 : i32, i32
  }
  func.func @transform_4(%arg0: i32) -> (i32, i32) {
    %c0_i32 = arith.constant 0 : i32
    %c0_i32_0 = arith.constant 0 : i32
    return %arg0, %c0_i32 : i32, i32
  }
  func.func @transform_5(%arg0: i32) -> (i32, i32) {
    %c0_i32 = arith.constant 0 : i32
    %c0_i32_0 = arith.constant 0 : i32
    %c0_i32_1 = arith.constant 0 : i32
    return %c0_i32, %c0_i32_0 : i32, i32
  }
}

</mosaic_0001>

<bundles_post_ra>
// kernel: tile.22
= control target key start
LH: loop header
LB: loop body
LE: loop exit
PB: predicated region body
PF: predicated region fallthrough
CT: control target
= control target key end

     0   :  { %s22_s0 = inlined_call_operand.vmem [shape: f32[64], index: 0, kind: input, shape index: {}]   ;;  %s23_s1 = inlined_call_operand.vmem [shape: f32[2,64], index: 1, kind: output, shape index: {}]  }
   0x1   :  { %v4_v0 = vld [vmem:[%s22_s0] ss:$0 sm:$0xff] }
   0x2   :  { %5 = vst [vmem:[%s23_s1] sm:$0x3] %v4_v0 }

// kernel: tile.18
= control target key start
LH: loop header
LB: loop body
LE: loop exit
PB: predicated region body
PF: predicated region fallthrough
CT: control target
= control target key end

     0   :  { %s22_s0 = inlined_call_operand.vmem [shape: f32[64], index: 0, kind: input, shape index: {}]   ;;  %s23_s1 = inlined_call_operand.vmem [shape: f32[4,64], index: 1, kind: output, shape index: {}]  }
   0x1   :  { %v4_v0 = vld [vmem:[%s22_s0] ss:$0 sm:$0xff] }
   0x2   :  { %5 = vst [vmem:[%s23_s1] sm:$0xf] %v4_v0 }

// kernel: tile.23
= control target key start
LH: loop header
LB: loop body
LE: loop exit
PB: predicated region body
PF: predicated region fallthrough
CT: control target
= control target key end

     0   :  { %vm7_vm0 = vcmask 523264   ;;  %vm13_vm1 = vcmask 1048064   ;;  %s39_s0 = inlined_call_operand.vmem [shape: f32[2,64], index: 0, kind: input, shape index: {}]   ;;  %s40_s1 = inlined_call_operand.vmem [shape: f32[128], index: 1, kind: output, shape index: {}]  }
   0x1   :  { %v4_v0 = vld [vmem:[%s39_s0] sm:$0x3]  ;;  %s22_s0 = smov 64  }
   0x2   :  { %5 = vst [vmem:[#allocation1] sm:$0x3] %v4_v0 }
   0x9   :  { %v10_v1 = vld [vmem:[#allocation1 + $0x1] sm:$0x1]   ;;  %v6_v2 = vld [vmem:[#allocation1] sm:$0x1]  }
   0xa   :  { %11 = vrot.lane.b32.xlu0 %v10_v1, %s22_s0  ;;  %8 = vst.msk [vmem:[#allocation0] sm:$0x1] %vm7_vm0, %v6_v2  }
  0x7c   :  { %v12_v3 = vpop.permute.xlu0 %11  }
  0x7d   :  { %14 = vst.msk [vmem:[#allocation0] sm:$0x1] %vm13_vm1, %v12_v3  }
  0x84   :  { %v18_v4 = vld [vmem:[#allocation0] sm:$0x1] }
  0x85   :  { %20 = vst [vmem:[%s40_s1] sm:$0x1] %v18_v4 }

// kernel: tile.17
= control target key start
LH: loop header
LB: loop body
LE: loop exit
PB: predicated region body
PF: predicated region fallthrough
CT: control target
= control target key end

     0   :  { %s259_s10 = smov 62   ;;  %s260_s11 = smov 58   ;;  %vm3_vm0 = vcmask 15360   ;;  %vm9_vm1 = vcmask 523760   ;;  %vm15_vm2 = vcmask 507360   ;;  %vm21_vm3 = vcmask 490960   ;;  %s399_s0 = inlined_call_operand.vmem [shape: f32[32,2], index: 0, kind: input, shape index: {}]   ;;  %s400_s1 = inlined_call_operand.vmem [shape: f32[64], index: 1, kind: output, shape index: {}]  }
   0x1   :  { %v197_v0 = vld [vmem:[%s399_s0 + $0x1f] sm:$0x1]   ;;  %v199_v1 = vld [vmem:[%s399_s0 + $0x1d] sm:$0x1]   ;;  %v198_v2 = vld [vmem:[%s399_s0 + $0x1e] sm:$0x1]  }
   0x2   :  { %7 = vrot.lane.b32.xlu0 %v197_v0, %s259_s10  ;;  %19 = vrot.lane.b32.xlu1 %v199_v1, %s260_s11  ;;  %v200_v3 = vld [vmem:[%s399_s0 + $0x1c] sm:$0x1]   ;;  %s261_s16 = smov 60   ;;  %s262_s17 = smov 56   ;;  %v201_v4 = vld [vmem:[%s399_s0 + $0x1b] sm:$0x1]  }
   0x3   :  { %v202_v5 = vld [vmem:[%s399_s0 + $0x1a] sm:$0x1]   ;;  %s263_s22 = smov 54   ;;  %s264_s23 = smov 52   ;;  %v203_v6 = vld [vmem:[%s399_s0 + $0x19] sm:$0x1]  }
   0x4   :  { %v204_v7 = vld [vmem:[%s399_s0 + $0x18] sm:$0x1]   ;;  %s265_s28 = smov 50   ;;  %s266_s29 = smov 48   ;;  %v205_v8 = vld [vmem:[%s399_s0 + $0x17] sm:$0x1]  }
   0x5   :  { %v206_v9 = vld [vmem:[%s399_s0 + $0x16] sm:$0x1]   ;;  %v2_v10 = vld [vmem:[%s399_s0] sm:$0x1]   ;;  %s267_s7 = smov 46   ;;  %s268_s8 = smov 44  }
   0x6   :  { %13 = vrot.lane.b32.xlu0 %v198_v2, %s261_s16  ;;  %25 = vrot.lane.b32.xlu1 %v200_v3, %s262_s17  ;;  %4 = vst.msk [vmem:[#allocation0] sm:$0x1] %vm3_vm0, %v2_v10   ;;  %v207_v11 = vld [vmem:[%s399_s0 + $0x15] sm:$0x1]   ;;  %v208_v12 = vld [vmem:[%s399_s0 + $0x14] sm:$0x1]  }
   0x7   :  { %s269_s13 = smov 42   ;;  %s270_s14 = smov 40   ;;  %v209_v13 = vld [vmem:[%s399_s0 + $0x13] sm:$0x1]   ;;  %v210_v14 = vld [vmem:[%s399_s0 + $0x12] sm:$0x1]  }
   0x8   :  { %s271_s19 = smov 38   ;;  %s272_s20 = smov 36   ;;  %v211_v15 = vld [vmem:[%s399_s0 + $0x11] sm:$0x1]   ;;  %v212_v16 = vld [vmem:[%s399_s0 + $0x10] sm:$0x1]  }
   0x9   :  { %s273_s25 = smov 34   ;;  %s274_s26 = smov 32   ;;  %v213_v17 = vld [vmem:[%s399_s0 + $0xf] sm:$0x1]   ;;  %v214_v18 = vld [vmem:[%s399_s0 + $0xe] sm:$0x1]  }
   0xa   :  { %31 = vrot.lane.b32.xlu0 %v201_v4, %s263_s22  ;;  %37 = vrot.lane.b32.xlu1 %v202_v5, %s264_s23  ;;  %s275_s2 = smov 30   ;;  %s276_s3 = smov 28   ;;  %v215_v19 = vld [vmem:[%s399_s0 + $0xd] sm:$0x1]   ;;  %v216_v20 = vld [vmem:[%s399_s0 + $0xc] sm:$0x1]  }
   0xb   :  { %s278_s9 = smov 24   ;;  %v217_v21 = vld [vmem:[%s399_s0 + $0xb] sm:$0x1]   ;;  %v218_v22 = vld [vmem:[%s399_s0 + $0xa] sm:$0x1]   ;;  %s280_s15 = smov 20  }
   0xc   :  { %v219_v23 = vld [vmem:[%s399_s0 + $0x9] sm:$0x1]   ;;  %v220_v24 = vld [vmem:[%s399_s0 + $0x8] sm:$0x1]   ;;  %s282_s21 = smov 16   ;;  %s284_s27 = smov 12  }
   0xd   :  { %v221_v25 = vld [vmem:[%s399_s0 + $0x7] sm:$0x1]   ;;  %v222_v26 = vld [vmem:[%s399_s0 + $0x6] sm:$0x1]   ;;  %v223_v27 = vld [vmem:[%s399_s0 + $0x5] sm:$0x1]  }
   0xe   :  { %43 = vrot.lane.b32.xlu0 %v203_v6, %s265_s28  ;;  %49 = vrot.lane.b32.xlu1 %v204_v7, %s266_s29  ;;  %v224_v28 = vld [vmem:[%s399_s0 + $0x4] sm:$0x1]   ;;  %s286_s4 = smov 8   ;;  %v225_v29 = vld [vmem:[%s399_s0 + $0x3] sm:$0x1]   ;;  %s288_s10 = smov 4  }
   0xf   :  { %v226_v30 = vld [vmem:[%s399_s0 + $0x2] sm:$0x1]   ;;  %v227_v31 = vld [vmem:[%s399_s0 + $0x1] sm:$0x1]   ;;  %s289_s0 = smov 2   ;;  %vm27_vm4 = vcmask 474560  }
  0x10   :  { %vm33_vm5 = vcmask 458160   ;;  %vm39_vm6 = vcmask 441760   ;;  %vm45_vm7 = vcmask 425360   ;;  %vm51_vm8 = vcmask 408960  }
  0x11   :  { %vm57_vm9 = vcmask 392560   ;;  %vm63_vm10 = vcmask 376160   ;;  %vm69_vm11 = vcmask 359760   ;;  %vm75_vm12 = vcmask 343360  }
  0x12   :  { %55 = vrot.lane.b32.xlu0 %v205_v8, %s267_s7  ;;  %61 = vrot.lane.b32.xlu1 %v206_v9, %s268_s8  ;;  %s277_s8 = smov 26   ;;  %vm81_vm13 = vcmask 326960   ;;  %vm87_vm14 = vcmask 310560   ;;  %vm93_vm15 = vcmask 294160   ;;  %vm99_vm0 = vcmask 277760  }
  0x16   :  { %67 = vrot.lane.b32.xlu0 %v207_v11, %s269_s13  ;;  %73 = vrot.lane.b32.xlu1 %v208_v12, %s270_s14  ;;  %s279_s14 = smov 22  }
  0x1a   :  { %79 = vrot.lane.b32.xlu0 %v209_v13, %s271_s19  ;;  %85 = vrot.lane.b32.xlu1 %v210_v14, %s272_s20  ;;  %s281_s20 = smov 18  }
  0x1e   :  { %91 = vrot.lane.b32.xlu0 %v211_v15, %s273_s25  ;;  %97 = vrot.lane.b32.xlu1 %v212_v16, %s274_s26  ;;  %s283_s26 = smov 14  }
  0x22   :  { %103 = vrot.lane.b32.xlu0 %v213_v17, %s275_s2  ;;  %109 = vrot.lane.b32.xlu1 %v214_v18, %s276_s3  ;;  %s285_s3 = smov 10  }
  0x26   :  { %115 = vrot.lane.b32.xlu0 %v215_v19, %s277_s8  ;;  %121 = vrot.lane.b32.xlu1 %v216_v20, %s278_s9  ;;  %s287_s9 = smov 6  }
  0x2a   :  { %127 = vrot.lane.b32.xlu0 %v217_v21, %s279_s14  ;;  %133 = vrot.lane.b32.xlu1 %v218_v22, %s280_s15 }
  0x2e   :  { %139 = vrot.lane.b32.xlu0 %v219_v23, %s281_s20  ;;  %145 = vrot.lane.b32.xlu1 %v220_v24, %s282_s21 }
  0x32   :  { %151 = vrot.lane.b32.xlu0 %v221_v25, %s283_s26  ;;  %157 = vrot.lane.b32.xlu1 %v222_v26, %s284_s27 }
  0x36   :  { %163 = vrot.lane.b32.xlu0 %v223_v27, %s285_s3  ;;  %169 = vrot.lane.b32.xlu1 %v224_v28, %s286_s4 }
  0x3a   :  { %175 = vrot.lane.b32.xlu0 %v225_v29, %s287_s9  ;;  %181 = vrot.lane.b32.xlu1 %v226_v30, %s288_s10 }
  0x3e   :  { %187 = vrot.lane.b32.xlu0 %v227_v31, %s289_s0 }
  0x74   :  { %v8_v32 = vpop.permute.xlu0 %7   ;;  %v20_v33 = vpop.permute.xlu1 %19  }
  0x75   :  { %10 = vst.msk [vmem:[#allocation0] sm:$0x1] %vm9_vm1, %v8_v32   ;;  %vm105_vm1 = vcmask 261360  }
  0x78   :  { %v14_v34 = vpop.permute.xlu0 %13   ;;  %v26_v35 = vpop.permute.xlu1 %25  }
  0x79   :  { %16 = vst.msk [vmem:[#allocation0] sm:$0x1] %vm15_vm2, %v14_v34   ;;  %vm111_vm2 = vcmask 244960  }
  0x7a   :  { %22 = vst.msk [vmem:[#allocation0] sm:$0x1] %vm21_vm3, %v20_v33   ;;  %vm117_vm3 = vcmask 228560  }
  0x7b   :  { %28 = vst.msk [vmem:[#allocation0] sm:$0x1] %vm27_vm4, %v26_v35   ;;  %vm123_vm4 = vcmask 212160  }
  0x7c   :  { %v32_v36 = vpop.permute.xlu0 %31   ;;  %v38_v37 = vpop.permute.xlu1 %37  }
  0x7d   :  { %34 = vst.msk [vmem:[#allocation0] sm:$0x1] %vm33_vm5, %v32_v36   ;;  %vm129_vm5 = vcmask 195760  }
  0x7e   :  { %40 = vst.msk [vmem:[#allocation0] sm:$0x1] %vm39_vm6, %v38_v37   ;;  %vm135_vm6 = vcmask 179360  }
  0x80   :  { %v44_v38 = vpop.permute.xlu0 %43   ;;  %v50_v39 = vpop.permute.xlu1 %49  }
  0x81   :  { %46 = vst.msk [vmem:[#allocation0] sm:$0x1] %vm45_vm7, %v44_v38   ;;  %vm141_vm7 = vcmask 162960  }
  0x82   :  { %52 = vst.msk [vmem:[#allocation0] sm:$0x1] %vm51_vm8, %v50_v39   ;;  %vm147_vm8 = vcmask 146560  }
  0x84   :  { %v56_v40 = vpop.permute.xlu0 %55   ;;  %v62_v41 = vpop.permute.xlu1 %61  }
  0x85   :  { %58 = vst.msk [vmem:[#allocation0] sm:$0x1] %vm57_vm9, %v56_v40   ;;  %vm153_vm9 = vcmask 130160  }
  0x86   :  { %64 = vst.msk [vmem:[#allocation0] sm:$0x1] %vm63_vm10, %v62_v41   ;;  %vm159_vm10 = vcmask 113760  }
  0x88   :  { %v68_v42 = vpop.permute.xlu0 %67   ;;  %v74_v43 = vpop.permute.xlu1 %73  }
  0x89   :  { %70 = vst.msk [vmem:[#allocation0] sm:$0x1] %vm69_vm11, %v68_v42   ;;  %vm165_vm11 = vcmask 97360  }
  0x8a   :  { %76 = vst.msk [vmem:[#allocation0] sm:$0x1] %vm75_vm12, %v74_v43   ;;  %vm171_vm12 = vcmask 80960  }
  0x8c   :  { %v80_v44 = vpop.permute.xlu0 %79   ;;  %v86_v45 = vpop.permute.xlu1 %85  }
  0x8d   :  { %82 = vst.msk [vmem:[#allocation0] sm:$0x1] %vm81_vm13, %v80_v44   ;;  %vm177_vm13 = vcmask 64560  }
  0x8e   :  { %88 = vst.msk [vmem:[#allocation0] sm:$0x1] %vm87_vm14, %v86_v45   ;;  %vm183_vm14 = vcmask 48160  }
  0x90   :  { %v92_v46 = vpop.permute.xlu0 %91   ;;  %v98_v47 = vpop.permute.xlu1 %97  }
  0x91   :  { %94 = vst.msk [vmem:[#allocation0] sm:$0x1] %vm93_vm15, %v92_v46   ;;  %vm189_vm15 = vcmask 31760  }
  0x92   :  { %100 = vst.msk [vmem:[#allocation0] sm:$0x1] %vm99_vm0, %v98_v47  }
  0x94   :  { %v104_v48 = vpop.permute.xlu0 %103   ;;  %v110_v49 = vpop.permute.xlu1 %109  }
  0x95   :  { %106 = vst.msk [vmem:[#allocation0] sm:$0x1] %vm105_vm1, %v104_v48  }
  0x96   :  { %112 = vst.msk [vmem:[#allocation0] sm:$0x1] %vm111_vm2, %v110_v49  }
  0x98   :  { %v116_v50 = vpop.permute.xlu0 %115   ;;  %v122_v51 = vpop.permute.xlu1 %121  }
  0x99   :  { %118 = vst.msk [vmem:[#allocation0] sm:$0x1] %vm117_vm3, %v116_v50  }
  0x9a   :  { %124 = vst.msk [vmem:[#allocation0] sm:$0x1] %vm123_vm4, %v122_v51  }
  0x9c   :  { %v128_v52 = vpop.permute.xlu0 %127   ;;  %v134_v53 = vpop.permute.xlu1 %133  }
  0x9d   :  { %130 = vst.msk [vmem:[#allocation0] sm:$0x1] %vm129_vm5, %v128_v52  }
  0x9e   :  { %136 = vst.msk [vmem:[#allocation0] sm:$0x1] %vm135_vm6, %v134_v53  }
  0xa0   :  { %v140_v54 = vpop.permute.xlu0 %139   ;;  %v146_v55 = vpop.permute.xlu1 %145  }
  0xa1   :  { %142 = vst.msk [vmem:[#allocation0] sm:$0x1] %vm141_vm7, %v140_v54  }
  0xa2   :  { %148 = vst.msk [vmem:[#allocation0] sm:$0x1] %vm147_vm8, %v146_v55  }
  0xa4   :  { %v152_v56 = vpop.permute.xlu0 %151   ;;  %v158_v57 = vpop.permute.xlu1 %157  }
  0xa5   :  { %154 = vst.msk [vmem:[#allocation0] sm:$0x1] %vm153_vm9, %v152_v56  }
  0xa6   :  { %160 = vst.msk [vmem:[#allocation0] sm:$0x1] %vm159_vm10, %v158_v57  }
  0xa8   :  { %v164_v58 = vpop.permute.xlu0 %163   ;;  %v170_v59 = vpop.permute.xlu1 %169  }
  0xa9   :  { %166 = vst.msk [vmem:[#allocation0] sm:$0x1] %vm165_vm11, %v164_v58  }
  0xaa   :  { %172 = vst.msk [vmem:[#allocation0] sm:$0x1] %vm171_vm12, %v170_v59  }
  0xac   :  { %v176_v60 = vpop.permute.xlu0 %175   ;;  %v182_v61 = vpop.permute.xlu1 %181  }
  0xad   :  { %178 = vst.msk [vmem:[#allocation0] sm:$0x1] %vm177_vm13, %v176_v60  }
  0xae   :  { %184 = vst.msk [vmem:[#allocation0] sm:$0x1] %vm183_vm14, %v182_v61  }
  0xb0   :  { %v188_v62 = vpop.permute.xlu0 %187  }
  0xb1   :  { %190 = vst.msk [vmem:[#allocation0] sm:$0x1] %vm189_vm15, %v188_v62  }
  0xb8   :  { %v194_v63 = vld [vmem:[#allocation0] sm:$0x1] }
  0xb9   :  { %196 = vst [vmem:[%s400_s1] sm:$0x1] %v194_v63 }

// kernel: tile.19
= control target key start
LH: loop header
LB: loop body
LE: loop exit
PB: predicated region body
PF: predicated region fallthrough
CT: control target
= control target key end

     0   :  { %s6_s8 = smov 3  ;;  %vm8_vm0 = vcmask 523264   ;;  %s24_s9 = smov 64   ;;  %vm15_vm1 = vcmask 1048064   ;;  %s41_s0 = inlined_call_operand.vmem [shape: f32[4,64], index: 0, kind: input, shape index: {}]   ;;  %s42_s1 = inlined_call_operand.vmem [shape: f32[256], index: 1, kind: output, shape index: {}]  }
   0x1   :  { %v4_v0 = vld [vmem:[%s41_s0] sm:$0xf]  ;;  %s11_s0 = smov 3 }
   0x2   :  { %5 = vst [vmem:[#allocation1] sm:$0xf] %v4_v0 }
   0x9   :  { %v12_v1 = vld [vmem:[#allocation1 + $0x1] ss:$2 sm:%s11_s0]   ;;  %v7_v2 = vld [vmem:[#allocation1] ss:$2 sm:%s6_s8]  }
   0xa   :  { %13 = vrot.lane.b32.xlu0 %v12_v1, %s24_s9  ;;  %9 = vst.msk [vmem:[#allocation0] sm:$0x3] %vm8_vm0, %v7_v2  }
  0x7c   :  { %v14_v3 = vpop.permute.xlu0 %13  }
  0x7d   :  { %16 = vst.msk [vmem:[#allocation0] sm:$0x3] %vm15_vm1, %v14_v3  }
  0x84   :  { %v20_v4 = vld [vmem:[#allocation0] sm:$0x3] }
  0x85   :  { %22 = vst [vmem:[%s42_s1] sm:$0x3] %v20_v4 }

// kernel: transformer_forward.13
= control target key start
LH: loop header
LB: loop body
LE: loop exit
PB: predicated region body
PF: predicated region fallthrough
CT: control target
= control target key end

     0   :  { %11 = vsyncpa [#allocation3], 0  ;;  %s592_s0 = inlined_call_operand.vmem [shape: f32[2,2,64], index: 0, kind: input, shape index: {}]   ;;  %s593_s1 = inlined_call_operand.vmem [shape: f32[2,2,64], index: 1, kind: input, shape index: {}]   ;;  %s594_s2 = inlined_call_operand.hbm [shape: bf16[2,2,16,64], index: 2, kind: input, shape index: {}, may-alias: {2,4}]   ;;  %s595_s3 = inlined_call_operand.hbm [shape: bf16[2,2,16,64], index: 3, kind: input, shape index: {}, may-alias: {3,5}]   ;;  %s596_s4 = inlined_call_operand.hbm [shape: bf16[2,2,16,64], index: 4, kind: output, shape index: {0}, may-alias: {2,4}]   ;;  %s597_s5 = inlined_call_operand.hbm [shape: bf16[2,2,16,64], index: 5, kind: output, shape index: {1}, may-alias: {3,5}]  }
   0x1   :  { %12 = vsyncpa [#allocation6], 0 }
   0x2   :  { %13 = vsyncpa [#allocation4], 0 }
   0x3   :  { %14 = vsyncpa [#allocation9], 0  ;;  %s24_s20 = scalar_lea.hbm %s594_s2, 64  ;;  %s408_s21 = smov [#allocation2]  }
   0x4   :  { %s25_s22 = sshll.u32 %s408_s21, 4  ;;  %s324_s25 = scalar_lea.hbm %s594_s2, 320  ;;  %s26_s22 = int_to_ptr.vmem [resolvable:$true] %s25_s22 }
   0x5   :  { %p301_p0 = scmp.ne.s32.totalorder %s24_s20, %s324_s25  ;;  %s302_s28 = scalar_lea.hbm %s594_s2, 512 }
   0x6   :  { %p303_p1 = scmp.lt.u32.totalorder %s24_s20, %s594_s2  ;;  %p304_p2 = scmp.lt.u32.totalorder %s302_s28, %s324_s25 }
   0x7   :  { %p306_p4 = scmp.lt.u32.totalorder %s324_s25, %s24_s20 }
   0x8   :  { %p305_p3 = por %p304_p2, %p303_p1 }
   0xa   :  { %p307_p5 = por %p306_p4, %p305_p3 }
   0xc   :  { %p308_p6 = pnand %p307_p5, %p301_p0 }
   0xe   :  { %311 = shalt.err (!%p308_p6)
}
   0xf   :  { %s312_s6 = scalar_lea.vmem %s26_s22, 256  ;;  %p317_p8 = scmp.lt.s32.totalorder %s26_s22, %s26_s22 }
  0x10   :  { %p313_p7 = scmp.ne.s32.totalorder %s26_s22, %s312_s6  ;;  %p318_p9 = scmp.lt.s32.totalorder %s312_s6, %s312_s6 }
  0x12   :  { %p319_p10 = por %p318_p9, %p317_p8 }
  0x14   :  { %p320_p11 = pnand %p319_p10, %p313_p7 }
  0x16   :  { %323 = shalt.err (!%p320_p11)
}
  0x17   :  { %s409_s7 = smov 128   ;;  %s410_s8 = smov 64  }
  0x18   :  { %s411_s9 = smov 4   ;;  %s37_s11 = scalar_lea.hbm %s595_s3, 64 }
  0x19   :  { %31 = dma.hbm_to_vmem [thread:$0]  %s24_s20, 256, %s26_s22, [#allocation3], %s409_s7, %s410_s8, %s411_s9  }
  0x1a   :  { %s412_s12 = smov [#allocation5]   ;;  %s349_s16 = scalar_lea.hbm %s595_s3, 320 }
  0x1b   :  { %s38_s13 = sshll.u32 %s412_s12, 4  ;;  %p326_p12 = scmp.ne.s32.totalorder %s37_s11, %s349_s16  ;;  %s39_s13 = int_to_ptr.vmem [resolvable:$true] %s38_s13 }
  0x1c   :  { %s327_s19 = scalar_lea.hbm %s595_s3, 512  ;;  %p328_p13 = scmp.lt.u32.totalorder %s37_s11, %s595_s3 }
  0x1d   :  { %p329_p0 = scmp.lt.u32.totalorder %s327_s19, %s349_s16  ;;  %p331_p2 = scmp.lt.u32.totalorder %s349_s16, %s37_s11 }
  0x1f   :  { %p330_p1 = por %p329_p0, %p328_p13 }
  0x21   :  { %p332_p3 = por %p331_p2, %p330_p1 }
  0x23   :  { %p333_p4 = pnand %p332_p3, %p326_p12 }
  0x25   :  { %336 = shalt.err (!%p333_p4)
}
  0x26   :  { %s337_s20 = scalar_lea.vmem %s39_s13, 256  ;;  %p342_p6 = scmp.lt.s32.totalorder %s39_s13, %s39_s13 }
  0x27   :  { %p338_p5 = scmp.ne.s32.totalorder %s39_s13, %s337_s20  ;;  %p343_p7 = scmp.lt.s32.totalorder %s337_s20, %s337_s20 }
  0x29   :  { %p344_p8 = por %p343_p7, %p342_p6 }
  0x2b   :  { %p345_p9 = pnand %p344_p8, %p338_p5 }
  0x2d   :  { %348 = shalt.err (!%p345_p9)
}
  0x2e   :  { %44 = dma.hbm_to_vmem [thread:$0]  %s37_s11, 256, %s39_s13, [#allocation6], %s409_s7, %s410_s8, %s411_s9  }
  0x2f   :  { %400 = dma.done.wait [#allocation3], 256  }
  0x30   :  { %401 = vsyncadd [#allocation3], 4294967040 }
  0x31   :  { %402 = dma.done.wait [#allocation6], 256  }
  0x32   :  { %403 = vsyncadd [#allocation6], 4294967040  ;;  %v59_v0 = vlaneseq  ;;  %v413_v1 = vmov 1966171168   ;;  %v62_v6 = vld [vmem:[%s592_s0] sm:$0x3] }
  0x33   :  { %v69_v2 = vunpack.c.l.s4 %v413_v1  ;;  %v64_v7 = vpack.c.bf16 %v62_v6, %v62_v6  ;;  %v63_v8 = vld [vmem:[%s592_s0 + $0x2] sm:$0x3]  ;;  %v158_v10 = vld [vmem:[%s593_s1] sm:$0x3]  ;;  %vm153_vm0 = vcmask 519168   ;;  %s414_s0 = smov [#allocation7]  }
  0x34   :  { %v60_v3 = vshrl.u32 %v59_v0, 7  ;;  %v65_v9 = vpack.c.bf16 %v63_v8, %v63_v8  ;;  %v160_v12 = vpack.c.bf16 %v158_v10, %v158_v10  ;;  %v159_v13 = vld [vmem:[%s593_s1 + $0x2] sm:$0x3]  ;;  %v53_v47 = vld [vmem:[#allocation2 + $0x8] sm:$0xf]  ;;  %s258_s1 = sshll.u32 %s414_s0, 4  ;;  %s526_s1 = int_to_ptr.vmem [resolvable:$true] %s258_s1 }
  0x35   :  { %v70_v4 = vunpack.c.0.s8 %v69_v2  ;;  %v161_v15 = vpack.c.bf16 %v159_v13, %v159_v13  ;;  %v51_v39 = vld [vmem:[#allocation2] sm:$0xf]  ;;  %v52_v50 = vld [vmem:[#allocation2 + $0x4] sm:$0xf]  ;;  %v55_v53 = vld [vmem:[#allocation5] sm:$0xf]  ;;  %p355_p11 = scmp.lt.s32.totalorder %s526_s1, %s526_s1 }
  0x36   :  { %v488_v17 = vsub.s32 0, %v60_v3  ;;  %vm61_vm1 = vcmp.eq.s32.totalorder %v60_v3, 1  ;;  %v54_v58 = vld [vmem:[#allocation2 + $0xc] sm:$0xf]  ;;  %v57_v61 = vld [vmem:[#allocation5 + $0x8] sm:$0xf] }
  0x37   :  { %v73_v5 = vsub.s32 %v70_v4, %v60_v3  ;;  %vm496_vm2 = vmpackc.low %vm61_vm1, %vm61_vm1  ;;  %v56_v0 = vld [vmem:[#allocation5 + $0x4] sm:$0xf]  ;;  %s415_s30 = smov [#allocation8]   ;;  %v58_v6 = vld [vmem:[#allocation5 + $0xc] sm:$0xf]  ;;  %s524_s11 = scalar_lea.hbm %s596_s4, 64 }
  0x38   :  { %s271_s6 = sshll.u32 %s415_s30, 4  ;;  %s542_s14 = scalar_lea.hbm %s597_s5, 64  ;;  %s544_s6 = int_to_ptr.vmem [resolvable:$true] %s271_s6 }
  0x39   :  { %v74_v11 = vrot.slane %v64_v7, %v73_v5  ;;  %v88_v14 = vrot.slane %v65_v9, %v73_v5  ;;  %v170_v18 = vrot.slane %v160_v12, %v73_v5  ;;  %v184_v20 = vrot.slane %v161_v15, %v73_v5  ;;  %s350_s15 = scalar_lea.vmem %s526_s1, 256 }
  0x3a   :  { %p351_p10 = scmp.ne.s32.totalorder %s526_s1, %s350_s15  ;;  %p356_p12 = scmp.lt.s32.totalorder %s350_s15, %s350_s15 }
  0x3b   :  { %v81_v16 = vrot.slane %v74_v11, %v73_v5  ;;  %v95_v19 = vrot.slane %v88_v14, %v73_v5  ;;  %v177_v23 = vrot.slane %v170_v18, %v73_v5  ;;  %v191_v26 = vrot.slane %v184_v20, %v73_v5 }
  0x3c   :  { %p357_p13 = por %p356_p12, %p355_p11 }
  0x3d   :  { %v288_v21 = vpack.i.b16 %v81_v16, %v81_v16  ;;  %v97_v22 = vunpack.i.h.s16 %v81_v16  ;;  %v289_v24 = vpack.i.b16 %v95_v19, %v95_v19  ;;  %v99_v25 = vunpack.i.h.s16 %v95_v19 }
  0x3e   :  { %v290_v29 = vpack.i.b16 %v177_v23, %v177_v23  ;;  %v193_v30 = vunpack.i.h.s16 %v177_v23  ;;  %v291_v33 = vpack.i.b16 %v191_v26, %v191_v26  ;;  %v195_v34 = vunpack.i.h.s16 %v191_v26  ;;  %p358_p0 = pnand %p357_p13, %p351_p10 }
  0x3f   :  { %v107_v27 = vrot.slane %v288_v21, %v488_v17  ;;  %v101_v28 = vpack.i.b16 %v97_v22, %v97_v22  ;;  %v115_v31 = vrot.slane %v289_v24, %v488_v17  ;;  %v103_v32 = vpack.i.b16 %v99_v25, %v99_v25 }
  0x40   :  { %v203_v37 = vrot.slane %v290_v29, %v488_v17  ;;  %v197_v38 = vpack.i.b16 %v193_v30, %v193_v30  ;;  %v211_v43 = vrot.slane %v291_v33, %v488_v17  ;;  %v199_v44 = vpack.i.b16 %v195_v34, %v195_v34 }
  0x41   :  { %v121_v35 = vpack.i.b16 %v107_v27, %v107_v27  ;;  %v111_v36 = vrot.slane %v101_v28, %v488_v17  ;;  %v135_v41 = vpack.i.b16 %v115_v31, %v115_v31  ;;  %v119_v42 = vrot.slane %v103_v32, %v488_v17 }
  0x42   :  { %v217_v48 = vpack.i.b16 %v203_v37, %v203_v37  ;;  %v207_v49 = vrot.slane %v197_v38, %v488_v17  ;;  %v231_v54 = vpack.i.b16 %v211_v43, %v211_v43  ;;  %v215_v55 = vrot.slane %v199_v44, %v488_v17 }
  0x43   :  { %v126_v45 = vrot.slane %v121_v35, %v488_v17  ;;  %v128_v46 = vpack.i.b16 %v111_v36, %v111_v36  ;;  %v140_v51 = vrot.slane %v135_v41, %v488_v17  ;;  %v142_v52 = vpack.i.b16 %v119_v42, %v119_v42 }
  0x44   :  { %v222_v59 = vrot.slane %v217_v48, %v488_v17  ;;  %v224_v60 = vpack.i.b16 %v207_v49, %v207_v49  ;;  %v236_v1 = vrot.slane %v231_v54, %v488_v17  ;;  %v238_v2 = vpack.i.b16 %v215_v55, %v215_v55 }
  0x45   :  { %v149_v56 = vsel %vm496_vm2, %v126_v45, %v51_v39  ;;  %v133_v57 = vrot.slane %v128_v46, %v488_v17  ;;  %v151_v62 = vsel %vm496_vm2, %v140_v51, %v53_v47  ;;  %v147_v63 = vrot.slane %v142_v52, %v488_v17 }
  0x46   :  { %154 = vst.msk [vmem:[#allocation7] sm:$0xf] %vm153_vm0, %v149_v56  ;;  %156 = vst.msk [vmem:[#allocation7 + $0x8] sm:$0xf] %vm153_vm0, %v151_v62  ;;  %v244_v4 = vsel %vm496_vm2, %v222_v59, %v55_v53  ;;  %v229_v5 = vrot.slane %v224_v60, %v488_v17  ;;  %v246_v8 = vsel %vm496_vm2, %v236_v1, %v57_v61 }
  0x47   :  { %v150_v3 = vsel %vm496_vm2, %v133_v57, %v52_v50  ;;  %v152_v7 = vsel %vm496_vm2, %v147_v63, %v54_v58  ;;  %248 = vst.msk [vmem:[#allocation8] sm:$0xf] %vm153_vm0, %v244_v4  ;;  %v243_v9 = vrot.slane %v238_v2, %v488_v17  ;;  %250 = vst.msk [vmem:[#allocation8 + $0x8] sm:$0xf] %vm153_vm0, %v246_v8 }
  0x48   :  { %155 = vst.msk [vmem:[#allocation7 + $0x4] sm:$0xf] %vm153_vm0, %v150_v3  ;;  %157 = vst.msk [vmem:[#allocation7 + $0xc] sm:$0xf] %vm153_vm0, %v152_v7  ;;  %v245_v10 = vsel %vm496_vm2, %v229_v5, %v56_v0 }
  0x49   :  { %249 = vst.msk [vmem:[#allocation8 + $0x4] sm:$0xf] %vm153_vm0, %v245_v10  ;;  %v247_v11 = vsel %vm496_vm2, %v243_v9, %v58_v6 }
  0x4a   :  { %361 = shalt.err (!%p358_p0)
}
  0x4b   :  { %s374_s18 = scalar_lea.hbm %s596_s4, 320  ;;  %s364_s23 = scalar_lea.hbm %s596_s4, 512 }
  0x4c   :  { %p363_p1 = scmp.ne.s32.totalorder %s524_s11, %s374_s18  ;;  %p365_p2 = scmp.lt.u32.totalorder %s524_s11, %s596_s4 }
  0x4d   :  { %p366_p3 = scmp.lt.u32.totalorder %s364_s23, %s374_s18  ;;  %p368_p5 = scmp.lt.u32.totalorder %s374_s18, %s524_s11 }
  0x4f   :  { %p367_p4 = por %p366_p3, %p365_p2 }
  0x51   :  { %p369_p6 = por %p368_p5, %p367_p4 }
  0x53   :  { %p370_p7 = pnand %p369_p6, %p363_p1 }
  0x55   :  { %373 = shalt.err (!%p370_p7)
}
  0x56   :  { %264 = dma.vmem_to_hbm [thread:$0]  %s526_s1, 256, %s524_s11, [#allocation4], %s410_s8, %s409_s7, %s411_s9   ;;  %251 = vst.msk [vmem:[#allocation8 + $0xc] sm:$0xf] %vm153_vm0, %v247_v11 }
  0x57   :  { %s375_s22 = scalar_lea.vmem %s544_s6, 256  ;;  %p380_p9 = scmp.lt.s32.totalorder %s544_s6, %s544_s6 }
  0x58   :  { %p376_p8 = scmp.ne.s32.totalorder %s544_s6, %s375_s22  ;;  %p381_p10 = scmp.lt.s32.totalorder %s375_s22, %s375_s22 }
  0x5a   :  { %p382_p11 = por %p381_p10, %p380_p9 }
  0x5c   :  { %p383_p12 = pnand %p382_p11, %p376_p8 }
  0x5e   :  { %386 = shalt.err (!%p383_p12)
}
  0x5f   :  { %s399_s25 = scalar_lea.hbm %s597_s5, 320  ;;  %s389_s28 = scalar_lea.hbm %s597_s5, 512 }
  0x60   :  { %p388_p13 = scmp.ne.s32.totalorder %s542_s14, %s399_s25  ;;  %p390_p0 = scmp.lt.u32.totalorder %s542_s14, %s597_s5 }
  0x61   :  { %p391_p1 = scmp.lt.u32.totalorder %s389_s28, %s399_s25  ;;  %p393_p3 = scmp.lt.u32.totalorder %s399_s25, %s542_s14 }
  0x63   :  { %p392_p2 = por %p391_p1, %p390_p0 }
  0x65   :  { %p394_p4 = por %p393_p3, %p392_p2 }
  0x67   :  { %p395_p5 = pnand %p394_p4, %p388_p13 }
  0x69   :  { %398 = shalt.err (!%p395_p5)
}
  0x6a   :  { %277 = dma.vmem_to_hbm [thread:$0]  %s544_s6, 256, %s542_s14, [#allocation9], %s410_s8, %s409_s7, %s411_s9  }
  0x6b   :  { %404 = dma.done.wait [#allocation4], 256  }
  0x6c   :  { %405 = vsyncadd [#allocation4], 4294967040 }
  0x6d   :  { %406 = dma.done.wait [#allocation9], 256  }
  0x6e   :  { %407 = vsyncadd [#allocation9], 4294967040 }
  0x6f   :  { %284 = vsyncpa [#allocation3], 1 }
  0x70   :  { %285 = vsyncpa [#allocation6], 1 }
  0x71   :  { %286 = vsyncpa [#allocation4], 1 }
  0x72   :  { %287 = vsyncpa [#allocation9], 1 }

// kernel: transformer_forward.15
= control target key start
LH: loop header
LB: loop body
LE: loop exit
PB: predicated region body
PF: predicated region fallthrough
CT: control target
= control target key end

     0   :  { %v464_v37 = vmov 1983009808   ;;  %v279_v39 = vlaneseq  ;;  %vm302_vm0 = vcmask 1041408   ;;  %v465_v61 = vmov 269488144   ;;  %s617_s1 = inlined_call_operand.vmem [shape: bf16[256,256], index: 1, kind: input, shape index: {}]   ;;  %s618_s0 = inlined_call_operand.vmem [shape: f32[2,256], index: 0, kind: input, shape index: {}]   ;;  %s619_s2 = inlined_call_operand.vmem [shape: f32[2,256], index: 2, kind: input, shape index: {}]   ;;  %s620_s4 = inlined_call_operand.vmem [shape: f32[2,256], index: 4, kind: output, shape index: {0}]   ;;  %s621_s3 = inlined_call_operand.vmem [shape: f32[1,256], index: 3, kind: input, shape index: {}]   ;;  %s622_s5 = inlined_call_operand.vmem [shape: bf16[2,256], index: 5, kind: output, shape index: {1}]  }
   0x1   :  { %v414_v0 = vld [vmem:[%s617_s1 + $0x4] ss:$8 sps:$4 sm:$0xff]   ;;  %v416_v1 = vld [vmem:[%s617_s1] ss:$8 sps:$4 sm:$0xff]   ;;  %v417_v2 = vld [vmem:[%s617_s1 + $0x14] ss:$8 sps:$4 sm:$0xff]   ;;  %v277_v38 = vunpack.c.l.s4 %v464_v37  ;;  %v315_v62 = vunpack.c.l.s4 %v465_v61 }
   0x2   :  { %232 = vmatprep.subr.bf16.mxu0 %v414_v0  ;;  %v419_v3 = vld [vmem:[%s617_s1 + $0x10] ss:$8 sps:$4 sm:$0xff]   ;;  %v420_v4 = vld [vmem:[%s617_s1 + $0x24] ss:$8 sps:$4 sm:$0xff]   ;;  %v422_v5 = vld [vmem:[%s617_s1 + $0x20] ss:$8 sps:$4 sm:$0xff]  }
   0x3   :  { %233 = vmatpush1.bf16.msra.mxu0 %v416_v1  ;;  %v423_v6 = vld [vmem:[%s617_s1 + $0x34] ss:$8 sps:$4 sm:$0xff]   ;;  %v425_v7 = vld [vmem:[%s617_s1 + $0x30] ss:$8 sps:$4 sm:$0xff]   ;;  %v426_v8 = vld [vmem:[%s617_s1 + $0x44] ss:$8 sps:$4 sm:$0xff]   ;;  %v278_v40 = vunpack.c.0.s8 %v277_v38  ;;  %v316_v63 = vunpack.c.0.s8 %v315_v62 }
   0x4   :  { %234 = vmatprep.subr.bf16.mxu0 %v417_v2  ;;  %v428_v9 = vld [vmem:[%s617_s1 + $0x40] ss:$8 sps:$4 sm:$0xff]   ;;  %v429_v10 = vld [vmem:[%s617_s1 + $0x54] ss:$8 sps:$4 sm:$0xff]   ;;  %v431_v11 = vld [vmem:[%s617_s1 + $0x50] ss:$8 sps:$4 sm:$0xff]  }
   0x5   :  { %v432_v12 = vld [vmem:[%s617_s1 + $0x64] ss:$8 sps:$4 sm:$0xff]   ;;  %v376_v13 = vld.sshfl [vmem:[%s618_s0] sm:$0x33 pattern:$0x76325410] }
   0x6   :  { %v34_v14 = vcombine.high %v376_v13, %v376_v13  ;;  %v434_v15 = vld [vmem:[%s617_s1 + $0x60] ss:$8 sps:$4 sm:$0xff]   ;;  %v435_v16 = vld [vmem:[%s617_s1 + $0x74] ss:$8 sps:$4 sm:$0xff]   ;;  %v437_v18 = vld [vmem:[%s617_s1 + $0x70] ss:$8 sps:$4 sm:$0xff]   ;;  %v37_v35 = vpack.c.bf16 %v376_v13, %v376_v13 }
   0x7   :  { %235 = vmatpush1.bf16.msra.mxu0 %v419_v3  ;;  %v438_v19 = vld [vmem:[%s617_s1 + $0x84] ss:$8 sps:$4 sm:$0xff]   ;;  %v440_v20 = vld [vmem:[%s617_s1 + $0x80] ss:$8 sps:$4 sm:$0xff]   ;;  %v441_v21 = vld [vmem:[%s617_s1 + $0x94] ss:$8 sps:$4 sm:$0xff]  }
   0x8   :  { %236 = vmatprep.subr.bf16.mxu0 %v420_v4  ;;  %v38_v17 = vpack.c.bf16 %v34_v14, %v34_v14  ;;  %v443_v22 = vld [vmem:[%s617_s1 + $0x90] ss:$8 sps:$4 sm:$0xff]   ;;  %v444_v23 = vld [vmem:[%s617_s1 + $0xa4] ss:$8 sps:$4 sm:$0xff]   ;;  %v446_v24 = vld [vmem:[%s617_s1 + $0xa0] ss:$8 sps:$4 sm:$0xff]  }
   0x9   :  { %v447_v25 = vld [vmem:[%s617_s1 + $0xb4] ss:$8 sps:$4 sm:$0xff]   ;;  %v449_v26 = vld [vmem:[%s617_s1 + $0xb0] ss:$8 sps:$4 sm:$0xff]   ;;  %v450_v27 = vld [vmem:[%s617_s1 + $0xc4] ss:$8 sps:$4 sm:$0xff]  }
   0xa   :  { %264 = vmatprep.mubr.bf16.mxu0 %v38_v17  ;;  %v452_v28 = vld [vmem:[%s617_s1 + $0xc0] ss:$8 sps:$4 sm:$0xff]   ;;  %v453_v29 = vld [vmem:[%s617_s1 + $0xd4] ss:$8 sps:$4 sm:$0xff]   ;;  %v455_v30 = vld [vmem:[%s617_s1 + $0xd0] ss:$8 sps:$4 sm:$0xff]  }
   0xb   :  { %237 = vmatpush1.bf16.msra.mxu0 %v422_v5  ;;  %v456_v31 = vld [vmem:[%s617_s1 + $0xe4] ss:$8 sps:$4 sm:$0xff]   ;;  %v458_v32 = vld [vmem:[%s617_s1 + $0xe0] ss:$8 sps:$4 sm:$0xff]   ;;  %v459_v33 = vld [vmem:[%s617_s1 + $0xf4] ss:$8 sps:$4 sm:$0xff]  }
   0xc   :  { %238 = vmatprep.subr.bf16.mxu0 %v423_v6  ;;  %v461_v34 = vld [vmem:[%s617_s1 + $0xf0] ss:$8 sps:$4 sm:$0xff]   ;;  %v23_v36 = vld [vmem:[%s619_s2] sm:$0xf]  ;;  %v280_v41 = vshrl.u32 %v279_v39, 7 }
   0xd   :  { %24 = vst [vmem:[%s620_s4] sm:$0xf] %v23_v36  ;;  %v466_v5 = vmov 1966171168  }
   0xe   :  { %v281_v43 = vsub.s32 %v278_v40, %v280_v41  ;;  %v319_v0 = vsub.s32 %v316_v63, %v280_v41  ;;  %v326_v3 = vsub.s32 0, %v280_v41  ;;  %v330_v4 = vsub.s32 1, %v280_v41 }
   0xf   :  { %239 = vmatpush1.bf16.msra.mxu0 %v425_v7  ;;  %v353_v6 = vunpack.c.l.s4 %v466_v5  ;;  %v310_v7 = vld [vmem:[%s621_s3] sm:$0x3] }
  0x10   :  { %240 = vmatprep.subr.bf16.mxu0 %v426_v8 }
  0x13   :  { %241 = vmatpush1.bf16.msra.mxu0 %v428_v9  ;;  %v327_v9 = vrot.slane %v310_v7, %v326_v3 }
  0x14   :  { %242 = vmatprep.subr.bf16.mxu0 %v429_v10  ;;  %v39_v47 = vld [vmem:[%s620_s4] sm:$0xf]  ;;  %v331_v10 = vrot.slane %v310_v7, %v330_v4 }
  0x17   :  { %243 = vmatpush1.bf16.msra.mxu0 %v431_v11 }
  0x18   :  { %244 = vmatprep.subr.bf16.mxu0 %v432_v12  ;;  %v354_v12 = vunpack.c.0.s8 %v353_v6 }
  0x1b   :  { %245 = vmatpush1.bf16.msra.mxu0 %v434_v15 }
  0x1c   :  { %246 = vmatprep.subr.bf16.mxu0 %v435_v16  ;;  %v357_v16 = vsub.s32 %v354_v12, %v280_v41 }
  0x1f   :  { %247 = vmatpush1.bf16.msra.mxu0 %v437_v18 }
  0x20   :  { %248 = vmatprep.subr.bf16.mxu0 %v438_v19 }
  0x23   :  { %249 = vmatpush1.bf16.msra.mxu0 %v440_v20 }
  0x24   :  { %250 = vmatprep.subr.bf16.mxu0 %v441_v21 }
  0x27   :  { %251 = vmatpush1.bf16.msra.mxu0 %v443_v22 }
  0x28   :  { %252 = vmatprep.subr.bf16.mxu0 %v444_v23 }
  0x2b   :  { %253 = vmatpush1.bf16.msra.mxu0 %v446_v24 }
  0x2c   :  { %254 = vmatprep.subr.bf16.mxu0 %v447_v25 }
  0x2f   :  { %255 = vmatpush1.bf16.msra.mxu0 %v449_v26 }
  0x30   :  { %256 = vmatprep.subr.bf16.mxu0 %v450_v27 }
  0x33   :  { %257 = vmatpush1.bf16.msra.mxu0 %v452_v28 }
  0x34   :  { %258 = vmatprep.subr.bf16.mxu0 %v453_v29 }
  0x37   :  { %259 = vmatpush1.bf16.msra.mxu0 %v455_v30 }
  0x38   :  { %260 = vmatprep.subr.bf16.mxu0 %v456_v31 }
  0x3b   :  { %261 = vmatpush1.bf16.msra.mxu0 %v458_v32 }
  0x3c   :  { %262 = vmatprep.subr.bf16.mxu0 %v459_v33 }
  0x3f   :  { %263 = vmatpush1.bf16.msra.mxu0 %v461_v34 }
  0x42   :  { %265 = vmatmul.mubr.bf16.vlgmr.msra.gmra.mrb[0].mxu0 %v37_v35 }
 0x115   :  { %v266_v42 = vpop.f32.mrb[0].mxu0 }
 0x116   :  { %v268_v44 = vpop.f32.mrb[1].mxu0 }
 0x117   :  { %v275_v45 = vcombine.low %v266_v42, %v268_v44  ;;  %v270_v46 = vpop.f32.mrb[2].mxu0 }
 0x118   :  { %v271_v48 = vpop.f32.mrb[3].mxu0 }
 0x119   :  { %v282_v49 = vrot.slane %v275_v45, %v281_v43 }
 0x11b   :  { %v284_v50 = vadd.f32 %v282_v49, %v39_v47 }
 0x11d   :  { %285 = vst [vmem:[%s620_s4] sm:$0xf] %v284_v50 }
 0x124   :  { %v289_v51 = vld [vmem:[%s620_s4] sm:$0xf] }
 0x125   :  { %v290_v52 = vmul.f32 %v289_v51, %v289_v51 }
 0x127   :  { %v298_v53 = vrot.slane %v290_v52, %v281_v43 }
 0x129   :  { %v299_v54 = vcombine.high %v298_v53, %v298_v53  ;;  %v303_v55 = vsel %vm302_vm0, %v298_v53, 0.0 }
 0x12b   :  { %v304_v56 = vsel %vm302_vm0, %v299_v54, 0.0 }
 0x12c   :  { %v305_v57 = vadd.f32 %v304_v56, %v303_v55 }
 0x12e   :  { %306 = vadd.xlane.f32.xlu0 %v305_v57 }
 0x1bb   :  { %v307_v58 = vpop.xlane.xlu0 %306 }
 0x1bc   :  { %v309_v59 = vmul.f32 0.00390625, %v307_v58 }
 0x1be   :  { %v311_v60 = vadd.f32 1e-05, %v309_v59 }
 0x1c0   :  { %462 = vrsqrt.f32 %v311_v60 }
 0x1ca   :  { %v463_v1 = vpop.eup %462 }
 0x1cb   :  { %v320_v2 = vrot.slane %v463_v1, %v319_v0 }
 0x1cd   :  { %v322_v8 = vmul.f32 %v320_v2, %v289_v51 }
 0x1cf   :  { %v341_v11 = vrot.slane %v322_v8, %v281_v43 }
 0x1d1   :  { %v342_v13 = vcombine.high %v341_v11, %v341_v11  ;;  %v345_v14 = vmul.f32 %v341_v11, %v327_v9 }
 0x1d3   :  { %v346_v15 = vmul.f32 %v342_v13, %v331_v10 }
 0x1d5   :  { %v409_v17 = vpack.c.bf16 %v346_v15, %v345_v14 }
 0x1d7   :  { %v358_v18 = vrot.slane %v409_v17, %v357_v16 }
 0x1d9   :  { %410 = vst.sshfl [vmem:[%s622_s5] sm:$0x5 pattern:$0x73625140] %v358_v18 }

// kernel: transformer_forward.14
= control target key start
LH: loop header
LB: loop body
LE: loop exit
PB: predicated region body
PF: predicated region fallthrough
CT: control target
= control target key end

     0   :  { %8 = vsyncpa [#allocation6], 0  ;;  %s1160_s0 = inlined_call_operand.vmem [shape: f32[2,2,2,64], index: 0, kind: input, shape index: {}]   ;;  %s1161_s1 = inlined_call_operand.hbm [shape: bf16[2,2,16,64], index: 1, kind: input, shape index: {}]   ;;  %s1162_s2 = inlined_call_operand.hbm [shape: bf16[2,2,16,64], index: 2, kind: input, shape index: {}]   ;;  %s1163_s3 = inlined_call_operand.vmem [shape: f32[2,2,2,64], index: 3, kind: output, shape index: {}]  }
   0x1   :  { %10 = vsyncpa [#allocation6 + $0x1], 0 }
   0x2   :  { %11 = vsyncpa [#allocation8], 0 }
   0x3   :  { %13 = vsyncpa [#allocation8 + $0x1], 0  ;;  %s922_s12 = smov 0   ;;  %s924_s13 = smov 0  }
   0x4   :  { %s926_s14 = smov 0   ;;  %s928_s15 = smov 0  }
   0x5   :  { %s930_s16 = smov 0   ;;  %s932_s17 = smov 0  }
   0x6   :  { %s934_s18 = smov 0   ;;  %s936_s19 = smov 0  }
   0x7 LB: > { %s629_s20 = sadd.s32 4294967295, %s892_s19   ;;  %s34_s21 = sadd.s32 1, %s884_s17  ;;  %s892_s19 = sphi %s936_s19, %s19_s19   ;;  %s888_s18 = sphi %s934_s18, %s1177_s18   ;;  %s884_s17 = sphi %s932_s17, %s1176_s17   ;;  %s880_s16 = sphi %s930_s16, %s1175_s16   ;;  %s876_s15 = sphi %s928_s15, %s1174_s15   ;;  %s872_s14 = sphi %s926_s14, %s1173_s14   ;;  %s868_s13 = sphi %s924_s13, %s1172_s13   ;;  %s864_s12 = sphi %s922_s12, %s1171_s12  }
   0x8   : > { %p36_p0 = scmp.ge.s32.totalorder %s34_s21, 2  ;;  %s38_s22 = sadd.s32 1, %s888_s18 }
   0x9   : > { %s77_s23 = sadd.s32 1, %s872_s14  ;;  %p84_p1 = scmp.ne.s32.totalorder %s872_s14, %s868_s13 }
   0xa   : > { %s1179_s21 = smov (%p36_p0, %s34_s21), 0  ;;  %s1181_s22 = smov (!%p36_p0, %s38_s22), %s888_s18 }
   0xb   : > { %s71_s24 = ssub.s32 %s884_s17, %s1179_s21  ;;  %p85_p2 = scmp.eq.s32.totalorder %s892_s19, 0 }
   0xc   : > { %p40_p3 = scmp.ge.s32.totalorder %s1181_s22, 2  ;;  %p90_p4 = scmp.ne.s32.totalorder %s868_s13, %s864_s12 }
   0xd   : > { %p973_p5 = por %p85_p2, %p84_p1  ;;  %p91_p6 = scmp.eq.s32.totalorder %s629_s20, 0 }
   0xe   : > { %s1183_s22 = smov (%p40_p3, %s1181_s22), 0  ;;  %p681_p8 = scmp.lt.s32.totalorder %s892_s19, 4 }
   0xf   : > { %p979_p7 = por %p91_p6, %p90_p4  ;;  %s70_s27 = ssub.s32 %s888_s18, %s1183_s22 }
  0x10   : > { %s72_s28 = sor.u32 %s71_s24, %s70_s27  ;;  %s987_s29 = sand.u32 1, %s872_s14  }
  0x11   : > { %s1166_s26 = scalar_select %p979_p7, 1, 0 }
  0x12   : > { %p75_p9 = scmp.eq.s32.totalorder %s72_s28, 0  ;;  %s633_s30 = sshll.u32 %s987_s29, 3 }
  0x13   : > { %s634_s4 = sshll.u32 %s884_s17, 1  ;;  %s635_s6 = sshll.u32 %s888_s18, 2 }
  0x14   : > { %s992_s5 = scalar_select %p75_p9, %s872_s14, %s77_s23  }
  0x15   : > { %s995_s7 = sadd.s32 %s635_s6, %s634_s4  ;;  %s187_s8 = scalar_lea.vmem [#allocation5], %s633_s30 }
  0x16   : > { %s198_s9 = sshll.u32 %s187_s8, 4  ;;  %s636_s10 = sshll.u32 %s995_s7, 6  ;;  %s1000_s9 = int_to_ptr.vmem [resolvable:$true] %s198_s9 }
  0x17   : > { %s1007_s20 = scalar_lea.hbm %s1161_s1, %s636_s10  ;;  %p1013_p10 = pnand %p681_p8, %p973_p5 }
  0x18   : > { %s184_s24 = scalar_lea.sflag [#allocation6], %s987_s29  ;;  %s762_s27 = scalar_lea.hbm %s1007_s20, 128 }
  0x19   : > { %p763_p12 = scmp.ne.s32.totalorder %s1007_s20, %s762_s27  ;;  %p764_p13 = pneg %p1013_p10 }
  0x1a   : > { %s767_s4 = scalar_lea.hbm %s1161_s1, 512  ;;  %p768_p2 = scmp.lt.u32.totalorder %s1007_s20, %s1161_s1 }
  0x1b   : > { %p765_p0 = pnand %p764_p13, %p763_p12  ;;  %p769_p3 = scmp.lt.u32.totalorder %s767_s4, %s762_s27 }
  0x1c   : > { %p771_p5 = scmp.lt.u32.totalorder %s762_s27, %s1007_s20 }
  0x1d   : > { %p766_p1 = pneg %p765_p0  ;;  %p770_p4 = por %p769_p3, %p768_p2 }
  0x1f   : > { %p772_p6 = por %p771_p5, %p770_p4 }
  0x21   : > { %p773_p8 = pnand %p772_p6, %p766_p1 }
  0x23   : > { %776 = shalt.err (!%p773_p8)
}
  0x24   : > { %s777_s11 = scalar_lea.vmem %s1000_s9, 128  ;;  %s894_s12 = smov [#allocation5]  }
  0x25   : > { %p778_p9 = scmp.ne.s32.totalorder %s1000_s9, %s777_s11  ;;  %s782_s25 = sshll.u32 %s894_s12, 4  ;;  %s783_s25 = int_to_ptr.vmem [resolvable:$false] %s782_s25 }
  0x26   : > { %s784_s28 = scalar_lea.vmem %s783_s25, 256  ;;  %p785_p11 = scmp.lt.s32.totalorder %s1000_s9, %s783_s25 }
  0x27   : > { %p780_p12 = pnand %p778_p9, %p764_p13  ;;  %p786_p2 = scmp.lt.s32.totalorder %s784_s28, %s777_s11 }
  0x29   : > { %p781_p0 = pneg %p780_p12  ;;  %p787_p3 = por %p786_p2, %p785_p11 }
  0x2b   : > { %p788_p4 = pnand %p787_p3, %p781_p0 }
  0x2d   : > { %791 = shalt.err (!%p788_p4)
}
  0x2e   : > { %s895_s27 = smov 64   ;;  %s896_s4 = smov 4  }
  0x2f   : > { %677 = dma.hbm_to_vmem [thread:$0]  (!%p1013_p10), %s1007_s20, 128, %s1000_s9, %s184_s24, %s895_s27, %s895_s27, %s896_s4  }
  0x30   : > { %p231_p11 = scmp.lt.s32.totalorder %s892_s19, 5  ;;  %s1055_s11 = scalar_lea.hbm %s1162_s2, %s636_s10 }
  0x31   : > { %p1168_p1 = scmp.ge.s32.totalorder %s892_s19, 1  ;;  %s212_s25 = scalar_lea.vmem [#allocation7], %s633_s30 }
  0x32   : > { %s223_s28 = sshll.u32 %s212_s25, 4  ;;  %s209_s7 = scalar_lea.sflag [#allocation8], %s987_s29  ;;  %s1065_s28 = int_to_ptr.vmem [resolvable:$true] %s223_s28 }
  0x33   : > { %p1059_p5 = pnand %p1168_p1, %p231_p11  ;;  %s792_s9 = scalar_lea.hbm %s1055_s11, 128 }
  0x34   : > { %p793_p6 = scmp.ne.s32.totalorder %s1055_s11, %s792_s9  ;;  %s797_s24 = scalar_lea.hbm %s1162_s2, 512 }
  0x35   : > { %p798_p12 = scmp.lt.u32.totalorder %s1055_s11, %s1162_s2  ;;  %p799_p0 = scmp.lt.u32.totalorder %s797_s24, %s792_s9 }
  0x36   : > { %p795_p8 = pnand %p793_p6, %p764_p13  ;;  %p801_p3 = scmp.lt.u32.totalorder %s792_s9, %s1055_s11 }
  0x37   : > { %p800_p2 = por %p799_p0, %p798_p12 }
  0x38   : > { %p796_p9 = pneg %p795_p8 }
  0x39   : > { %p802_p4 = por %p801_p3, %p800_p2 }
  0x3b   : > { %p803_p11 = pnand %p802_p4, %p796_p9 }
  0x3d   : > { %806 = shalt.err (!%p803_p11)
}
  0x3e   : > { %s807_s30 = scalar_lea.vmem %s1065_s28, 128  ;;  %s897_s25 = smov [#allocation7]  }
  0x3f   : > { %p808_p1 = scmp.ne.s32.totalorder %s1065_s28, %s807_s30  ;;  %s812_s10 = sshll.u32 %s897_s25, 4  ;;  %s813_s10 = int_to_ptr.vmem [resolvable:$false] %s812_s10 }
  0x40   : > { %s814_s20 = scalar_lea.vmem %s813_s10, 256  ;;  %p815_p7 = scmp.lt.s32.totalorder %s1065_s28, %s813_s10 }
  0x41   : > { %p810_p6 = pnand %p808_p1, %p764_p13  ;;  %p816_p12 = scmp.lt.s32.totalorder %s814_s20, %s807_s30 }
  0x43   : > { %p811_p8 = pneg %p810_p6  ;;  %p817_p0 = por %p816_p12, %p815_p7 }
  0x45   : > { %p818_p2 = pnand %p817_p0, %p811_p8 }
  0x47   : > { %821 = shalt.err (!%p818_p2)
}
  0x48   : > { %680 = dma.hbm_to_vmem [thread:$0]  (!%p1013_p10), %s1055_s11, 128, %s1065_s28, %s209_s7, %s895_s27, %s895_s27, %s896_s4  }
  0x49   : > { %235 = sbr.rel (%p1059_p5) target bundleno = 891 (0x37b), region = 32  ;;  %s237_s9 = sand.u32 (!%p1059_p5), 1, %s868_s13  }
  0x4a   : > { %s642_s24 = sshll.u32 (!%p1059_p5), %s237_s9, 3  ;;  %s238_s6 = scalar_lea.sflag (!%p1059_p5), [#allocation6], %s237_s9 }
  0x4b   : > { %s241_s8 = scalar_lea.vmem (!%p1059_p5), [#allocation5], %s642_s24  ;;  %p1170_p7 = scmp.ne.s32.totalorder (!%p1059_p5), %s1166_s26, 0 }
  0x50   : > { %855 = dma.done.wait (%p1170_p7), %s238_s6, 128  }
  0x51   : > { %857 = vsyncadd (%p1170_p7), %s238_s6, 4294967168  ;;  %s247_s23 = scalar_lea.sflag [#allocation8], %s237_s9  ;;  %s1103_s29 = scalar_lea.vmem [#allocation7], %s642_s24 }
  0x52   : > { %859 = dma.done.wait (%p1170_p7), %s247_s23, 128  }
  0x53   : > { %861 = vsyncadd (%p1170_p7), %s247_s23, 4294967168  ;;  %vm315_vm0 = vcmask 517120   ;;  %p289_p10 = scmp.lt.s32.totalorder %s880_s16, 1  ;;  %v898_v0 = vmov 0.0   ;;  %vm899_vm1 = vmmov 0   ;;  %p291_p13 = scmp.lt.s32.totalorder %s876_s15, 1  ;;  %v375_v7 = vlaneseq }
  0x54   : > { %316 = vst.msk [vmem:[#allocation4] sm:$0x3] %vm315_vm0, %v898_v0  ;;  %658 = vmatprep.subr.bf16.mxu0 %v898_v0  ;;  %660 = vmatprep.mubr.msk.bf16.mxu0 %vm899_vm1, %v898_v0  ;;  %vm327_vm2 = vcmask 523264   ;;  %v754_v1 = vld [vmem:[%s241_s8] sm:$0xff]   ;;  %vm312_vm3 = vcmask 1024   ;;  %vm382_vm5 = vcmask 123904  }
  0x55   : > { %s1185_s16 = smov (!%p289_p10, %s880_s16), 1  ;;  %664 = vmatprep.subr.bf16.mxu1 %v898_v0  ;;  %666 = vmatprep.mubr.msk.bf16.mxu1 %vm899_vm1, %v898_v0  ;;  %s1187_s15 = smov (!%p291_p13, %s876_s15), 1  ;;  %v332_v3 = vsel %vm327_vm2, %v754_v1, 0  ;;  %v900_v6 = vmov -1e+30   ;;  %v376_v8 = vand.u32 127, %v375_v7 }
  0x56   : > { %s644_s27 = sshll.u32 %s1185_s16, 1  ;;  %659 = vmatpush3.bf16.xpose.msra.mxu0 %v332_v3  ;;  %313 = vst.msk [vmem:[#allocation2] sm:$0x3] %vm312_vm3, %v900_v6  ;;  %314 = vst.msk [vmem:[#allocation3] sm:$0x3] %vm312_vm3, %v898_v0  ;;  %v901_v15 = vmov 0  }
  0x57   : > { %s1114_s26 = sadd.s32 %s644_s27, %s1187_s15  ;;  %vm379_vm4 = vcmp.lt.s32.totalorder %v376_v8, 10  ;;  %752 = vset.pattern.permute.xlu0 %v901_v15  ;;  %753 = vset.pattern.permute.xlu1 %v901_v15  ;;  %v755_v20 = vld [vmem:[%s1103_s29] sm:$0xff]   ;;  %vm422_vm6 = vcmask 130048  }
  0x58   : > { %s645_s4 = sshll.u32 %s1114_s26, 1  ;;  %665 = vmatpush3.bf16.msra.mxu1 %v755_v20 }
  0x59   : > { %s296_s28 = scalar_lea.vmem %s1160_s0, %s645_s4  ;;  %s306_s7 = scalar_lea.vmem %s1163_s3, %s645_s4 }
  0x5a   : > { %v317_v2 = vld [vmem:[%s296_s28] sm:$0x3] }
  0x5b   : > { %v318_v4 = vmul.f32 0.125, %v317_v2  ;;  %v406_v35 = vld [vmem:[#allocation4] sm:$0x3] }
  0x5d   : > { %v319_v5 = vpack.c.bf16 %v318_v4, %v318_v4  ;;  %v381_v16 = vld [vmem:[#allocation2] sm:$0x3]  ;;  %v398_v29 = vld [vmem:[#allocation3] sm:$0x3] }
  0x5f   : > { %661 = vmatmul.mubr.msk.bf16.vlgmr.msra.gmra.mrb[0].mxu0 %vm327_vm2, %v319_v5 }
 0x132   : > { %v368_v9 = vpop.f32.mrb[0].mxu0 }
 0x133   : > { %v380_v10 = vsel %vm379_vm4, %v368_v9, -1e+30  ;;  %v662_v11 = vpop.f32.mrb[1].mxu0 }
 0x134   : > { %v371_v12 = vpop.f32.mrb[2].mxu0  ;;  %v383_v13 = vsel %vm382_vm5, %v380_v10, -inf }
 0x135   : > { %384 = vmax.xlane.f32.xlu0 %v383_v13  ;;  %v663_v14 = vpop.f32.mrb[3].mxu0 }
 0x1c2   : > { %v385_v17 = vpop.xlane.xlu0 %384 }
 0x1c3   : > { %v386_v18 = vmax.f32 %v381_v16, %v385_v17 }
 0x1c5   : > { %v387_v19 = vsub.f32 %v381_v16, %v386_v18  ;;  %469 = vst.msk [vmem:[#allocation2] sm:$0x3] %vm312_vm3, %v386_v18  ;;  %392 = vperm.xlu0 %752, %v386_v18  }
 0x1c7   : > { %v388_v27 = vmul.f32 1.442695, %v387_v19 }
 0x244   : > { %v393_v21 = vpop.permute.xlu0 %392 }
 0x245   : > { %v395_v22 = vsub.f32 %v380_v10, %v393_v21 }
 0x247   : > { %v396_v23 = vmul.f32 1.442695, %v395_v22 }
 0x249   : > { %756 = vpow2.f32 %v396_v23 }
 0x24a   : > { %758 = vpow2.f32 %v388_v27 }
 0x253   : > { %v757_v24 = vpop.eup %756 }
 0x254   : > { %v400_v25 = vsel %vm382_vm5, %v757_v24, 0.0  ;;  %v413_v26 = vpack.c.bf16 %v757_v24, %v757_v24  ;;  %v759_v28 = vpop.eup %758 }
 0x255   : > { %401 = vadd.xlane.f32.xlu1 %v400_v25  ;;  %v399_v30 = vmul.f32 %v759_v28, %v398_v29 }
 0x256   : > { %667 = vmatmul.mubr.msk.bf16.vlgmr.msra.gmra.mrb[0].mxu1 %vm422_vm6, %v413_v26 }
 0x266   : > { %409 = vperm.xlu1 %753, %v759_v28  }
 0x2e2   : > { %v402_v31 = vpop.xlane.xlu1 %401 }
 0x2e3   : > { %v403_v32 = vadd.f32 %v402_v31, %v399_v30 }
 0x2e5   : > { %405 = vst.msk [vmem:[#allocation3] sm:$0x3] %vm312_vm3, %v403_v32 }
 0x2e6   : > { %v410_v36 = vpop.permute.xlu1 %409 }
 0x2e7   : > { %v412_v37 = vmul.f32 %v410_v36, %v406_v35 }
 0x2ec   : > { %v474_v33 = vld [vmem:[#allocation3] sm:$0x3] }
 0x2ed   : > { %760 = vrcp.f32 %v474_v33 }
 0x2f7   : > { %v761_v34 = vpop.eup %760 }
 0x2f8   : > { %478 = vperm.xlu1 %753, %v761_v34  }
 0x329   : > { %v460_v38 = vpop.f32.mrb[0].mxu1 }
 0x32a   : > { %v466_v39 = vadd.f32 %v460_v38, %v412_v37  ;;  %v668_v40 = vpop.f32.mrb[1].mxu1 }
 0x32b   : > { %v463_v41 = vpop.f32.mrb[2].mxu1 }
 0x32c   : > { %468 = vst.msk [vmem:[#allocation4] sm:$0x3] %vm315_vm0, %v466_v39  ;;  %v669_v42 = vpop.f32.mrb[3].mxu1 }
 0x333   : > { %v473_v43 = vld [vmem:[#allocation4] sm:$0x3] }
 0x377   : > { %v479_v44 = vpop.permute.xlu1 %478 }
 0x378   : > { %v481_v45 = vmul.f32 %v479_v44, %v473_v43 }
 0x37a   : > { %482 = vst.msk [vmem:[%s306_s7] sm:$0x3] %vm315_vm0, %v481_v45 }
 0x37b PF: > { %s19_s19 = sadd.s32 1, %s892_s19   ;;  %s1171_s12 = smov %s868_s13 }
 0x37c   : > { %p16_p5 = scmp.ge.s32.totalorder %s19_s19, 6   ;;  %s1172_s13 = smov %s872_s14 }
 0x37d   : > { %s1173_s14 = smov %s992_s5  ;;  %s1174_s15 = smov %s884_s17 }
 0x37e   : > { %s1175_s16 = smov %s888_s18  ;;  %s1176_s17 = smov %s1179_s21 }
 0x37f   : > { %s1177_s18 = smov %s1183_s22  ;;  %18 = sbr.rel (!%p16_p5) target bundleno = 7 (0x7), region = 96 }
 0x386   :  { %510 = vsyncpa [#allocation6], 1 }
 0x387   :  { %512 = vsyncpa [#allocation6 + $0x1], 1 }
 0x388   :  { %513 = vsyncpa [#allocation8], 1 }
 0x389   :  { %515 = vsyncpa [#allocation8 + $0x1], 1 }

// kernel: transformer_forward.12
= control target key start
LH: loop header
LB: loop body
LE: loop exit
PB: predicated region body
PF: predicated region fallthrough
CT: control target
= control target key end

     0   :  { %10 = vsyncpa [#allocation3], 0  ;;  %s1120_s0 = inlined_call_operand.vmem [shape: f32[2,256], index: 0, kind: input, shape index: {}]   ;;  %s1121_s1 = inlined_call_operand.hbm [shape: f32[1,256], index: 1, kind: input, shape index: {}]   ;;  %s1122_s2 = inlined_call_operand.hbm [shape: bf16[256,512], index: 2, kind: input, shape index: {}]   ;;  %s1123_s3 = inlined_call_operand.vmem [shape: f32[1,512], index: 3, kind: input, shape index: {}]   ;;  %s1124_s4 = inlined_call_operand.vmem [shape: f32[1,512], index: 4, kind: input, shape index: {}]   ;;  %s1125_s5 = inlined_call_operand.vmem [shape: f32[2,512], index: 5, kind: output, shape index: {}]  }
   0x1   :  { %11 = vsyncpa [#allocation5], 0  ;;  %s966_s18 = smov [#allocation2]   ;;  %s967_s20 = smov [#allocation4]  }
   0x2   :  { %s20_s19 = sshll.u32 %s966_s18, 4  ;;  %s29_s21 = sshll.u32 %s967_s20, 4  ;;  %s21_s19 = int_to_ptr.vmem [resolvable:$true] %s20_s19  ;;  %s1004_s21 = int_to_ptr.vmem [resolvable:$true] %s29_s21 }
   0x3   :  { %s918_s24 = scalar_lea.hbm %s1121_s1, 32 }
   0x4   :  { %p919_p0 = scmp.ne.s32.totalorder %s1121_s1, %s918_s24  ;;  %p922_p1 = scmp.lt.u32.totalorder %s918_s24, %s1121_s1 }
   0x6   :  { %p924_p2 = pnand %p922_p1, %p919_p0 }
   0x8   :  { %927 = shalt.err (!%p924_p2)
}
   0x9   :  { %s928_s29 = scalar_lea.vmem %s21_s19, 32  ;;  %p933_p4 = scmp.lt.s32.totalorder %s21_s19, %s21_s19 }
   0xa   :  { %p929_p3 = scmp.ne.s32.totalorder %s21_s19, %s928_s29  ;;  %p934_p5 = scmp.lt.s32.totalorder %s928_s29, %s928_s29 }
   0xc   :  { %p935_p6 = por %p934_p5, %p933_p4 }
   0xe   :  { %p936_p7 = pnand %p935_p6, %p929_p3 }
  0x10   :  { %939 = shalt.err (!%p936_p7)
}
  0x11   :  { %23 = dma.hbm_to_vmem [thread:$0]  %s1121_s1, 32, %s21_s19, [#allocation3]  }
  0x12   :  { %s940_s9 = scalar_lea.hbm %s1122_s2, 8192 }
  0x13   :  { %p941_p8 = scmp.ne.s32.totalorder %s1122_s2, %s940_s9  ;;  %p944_p9 = scmp.lt.u32.totalorder %s940_s9, %s1122_s2 }
  0x15   :  { %p946_p10 = pnand %p944_p9, %p941_p8 }
  0x17   :  { %949 = shalt.err (!%p946_p10)
}
  0x18   :  { %s950_s14 = scalar_lea.vmem %s1004_s21, 8192  ;;  %p955_p12 = scmp.lt.s32.totalorder %s1004_s21, %s1004_s21 }
  0x19   :  { %p951_p11 = scmp.ne.s32.totalorder %s1004_s21, %s950_s14  ;;  %p956_p13 = scmp.lt.s32.totalorder %s950_s14, %s950_s14 }
  0x1b   :  { %p957_p0 = por %p956_p13, %p955_p12 }
  0x1d   :  { %p958_p1 = pnand %p957_p0, %p951_p11 }
  0x1f   :  { %961 = shalt.err (!%p958_p1)
}
  0x20   :  { %s968_s1 = smov 256   ;;  %s969_s15 = smov 16  }
  0x21   :  { %35 = dma.hbm_to_vmem [thread:$0]  %s1122_s2, 8192, %s1004_s21, [#allocation5], %s968_s1, %s968_s1, %s969_s15  }
  0x22   :  { %962 = dma.done.wait [#allocation3], 32  }
  0x23   :  { %963 = vsyncadd [#allocation3], 4294967264 }
  0x24   :  { %964 = dma.done.wait [#allocation5], 8192  }
  0x25   :  { %965 = vsyncadd [#allocation5], 4294959104  ;;  %v52_v0 = vlaneseq  ;;  %v970_v1 = vmov 1983009808   ;;  %v1044_v6 = vld [vmem:[%s1120_s0] sm:$0xf] }
  0x26   :  { %v50_v2 = vunpack.c.l.s4 %v970_v1  ;;  %v47_v7 = vmul.f32 %v1044_v6, %v1044_v6  ;;  %vm59_vm0 = vcmask 1041408   ;;  %v820_v8 = vld [vmem:[#allocation4 + $0x4] ss:$16 sps:$4 sm:$0xff]   ;;  %v822_v9 = vld [vmem:[#allocation4 + $0xc] ss:$16 sps:$4 sm:$0xff]   ;;  %s972_s0 = smov 127  }
  0x27   :  { %v1036_v3 = vshrl.u32 %v52_v0, 7  ;;  %v824_v10 = vld [vmem:[#allocation4] ss:$16 sps:$4 sm:$0xff]   ;;  %v825_v11 = vld [vmem:[#allocation4 + $0x8] ss:$16 sps:$4 sm:$0xff]   ;;  %490 = vmatprep.subr.bf16.mxu0 %v820_v8  ;;  %531 = vmatprep.subr.bf16.mxu1 %v822_v9  ;;  %s973_s2 = smov 1  }
  0x28   :  { %v51_v4 = vunpack.c.0.s8 %v50_v2  ;;  %v826_v13 = vld [vmem:[#allocation4 + $0x24] ss:$16 sps:$4 sm:$0xff]   ;;  %491 = vmatpush1.bf16.msra.mxu0 %v824_v10  ;;  %v828_v14 = vld [vmem:[#allocation4 + $0x2c] ss:$16 sps:$4 sm:$0xff]   ;;  %532 = vmatpush1.bf16.msra.mxu1 %v825_v11  ;;  %v830_v17 = vld [vmem:[#allocation4 + $0x20] ss:$16 sps:$4 sm:$0xff]  }
  0x29   :  { %492 = vmatprep.subr.bf16.mxu0 %v826_v13  ;;  %v831_v18 = vld [vmem:[#allocation4 + $0x28] ss:$16 sps:$4 sm:$0xff]   ;;  %533 = vmatprep.subr.bf16.mxu1 %v828_v14  ;;  %v832_v19 = vld [vmem:[#allocation4 + $0x44] ss:$16 sps:$4 sm:$0xff]   ;;  %v834_v21 = vld [vmem:[#allocation4 + $0x4c] ss:$16 sps:$4 sm:$0xff]  }
  0x2a   :  { %v1039_v5 = vsub.s32 %v51_v4, %v1036_v3  ;;  %v836_v22 = vld [vmem:[#allocation4 + $0x40] ss:$16 sps:$4 sm:$0xff]   ;;  %v837_v24 = vld [vmem:[#allocation4 + $0x48] ss:$16 sps:$4 sm:$0xff]   ;;  %v838_v25 = vld [vmem:[#allocation4 + $0x64] ss:$16 sps:$4 sm:$0xff]  }
  0x2b   :  { %v840_v26 = vld [vmem:[#allocation4 + $0x6c] ss:$16 sps:$4 sm:$0xff]   ;;  %v842_v27 = vld [vmem:[#allocation4 + $0x60] ss:$16 sps:$4 sm:$0xff]   ;;  %v843_v28 = vld [vmem:[#allocation4 + $0x68] ss:$16 sps:$4 sm:$0xff]  }
  0x2c   :  { %v55_v12 = vrot.slane %v47_v7, %v1039_v5  ;;  %493 = vmatpush1.bf16.msra.mxu0 %v830_v17  ;;  %534 = vmatpush1.bf16.msra.mxu1 %v831_v18  ;;  %v844_v29 = vld [vmem:[#allocation4 + $0x84] ss:$16 sps:$4 sm:$0xff]   ;;  %v846_v30 = vld [vmem:[#allocation4 + $0x8c] ss:$16 sps:$4 sm:$0xff]   ;;  %v848_v31 = vld [vmem:[#allocation4 + $0x80] ss:$16 sps:$4 sm:$0xff]  }
  0x2d   :  { %494 = vmatprep.subr.bf16.mxu0 %v832_v19  ;;  %535 = vmatprep.subr.bf16.mxu1 %v834_v21  ;;  %v849_v32 = vld [vmem:[#allocation4 + $0x88] ss:$16 sps:$4 sm:$0xff]   ;;  %v850_v33 = vld [vmem:[#allocation4 + $0xa4] ss:$16 sps:$4 sm:$0xff]   ;;  %v852_v34 = vld [vmem:[#allocation4 + $0xac] ss:$16 sps:$4 sm:$0xff]  }
  0x2e   :  { %v56_v15 = vcombine.high %v55_v12, %v55_v12  ;;  %v60_v16 = vsel %vm59_vm0, %v55_v12, 0.0  ;;  %v854_v35 = vld [vmem:[#allocation4 + $0xa0] ss:$16 sps:$4 sm:$0xff]   ;;  %v855_v36 = vld [vmem:[#allocation4 + $0xa8] ss:$16 sps:$4 sm:$0xff]  }
  0x2f   :  { %v856_v37 = vld [vmem:[#allocation4 + $0xc4] ss:$16 sps:$4 sm:$0xff]   ;;  %v858_v38 = vld [vmem:[#allocation4 + $0xcc] ss:$16 sps:$4 sm:$0xff]   ;;  %v860_v39 = vld [vmem:[#allocation4 + $0xc0] ss:$16 sps:$4 sm:$0xff]  }
  0x30   :  { %v61_v20 = vsel %vm59_vm0, %v56_v15, 0.0  ;;  %495 = vmatpush1.bf16.msra.mxu0 %v836_v22  ;;  %536 = vmatpush1.bf16.msra.mxu1 %v837_v24  ;;  %v861_v40 = vld [vmem:[#allocation4 + $0xc8] ss:$16 sps:$4 sm:$0xff]   ;;  %v862_v41 = vld [vmem:[#allocation4 + $0xe4] ss:$16 sps:$4 sm:$0xff]  }
  0x31   :  { %v62_v23 = vadd.f32 %v61_v20, %v60_v16  ;;  %496 = vmatprep.subr.bf16.mxu0 %v838_v25  ;;  %537 = vmatprep.subr.bf16.mxu1 %v840_v26  ;;  %v864_v42 = vld [vmem:[#allocation4 + $0xec] ss:$16 sps:$4 sm:$0xff]   ;;  %v866_v43 = vld [vmem:[#allocation4 + $0xe0] ss:$16 sps:$4 sm:$0xff]   ;;  %v867_v44 = vld [vmem:[#allocation4 + $0xe8] ss:$16 sps:$4 sm:$0xff]  }
  0x32   :  { %v868_v45 = vld [vmem:[#allocation4 + $0x104] ss:$16 sps:$4 sm:$0xff]   ;;  %v870_v46 = vld [vmem:[#allocation4 + $0x10c] ss:$16 sps:$4 sm:$0xff]   ;;  %v872_v47 = vld [vmem:[#allocation4 + $0x100] ss:$16 sps:$4 sm:$0xff]  }
  0x33   :  { %63 = vadd.xlane.f32.xlu0 %v62_v23  ;;  %v873_v48 = vld [vmem:[#allocation4 + $0x108] ss:$16 sps:$4 sm:$0xff]   ;;  %v874_v49 = vld [vmem:[#allocation4 + $0x124] ss:$16 sps:$4 sm:$0xff]   ;;  %v876_v50 = vld [vmem:[#allocation4 + $0x12c] ss:$16 sps:$4 sm:$0xff]  }
  0x34   :  { %497 = vmatpush1.bf16.msra.mxu0 %v842_v27  ;;  %538 = vmatpush1.bf16.msra.mxu1 %v843_v28  ;;  %v878_v51 = vld [vmem:[#allocation4 + $0x120] ss:$16 sps:$4 sm:$0xff]   ;;  %v879_v52 = vld [vmem:[#allocation4 + $0x128] ss:$16 sps:$4 sm:$0xff]   ;;  %v880_v53 = vld [vmem:[#allocation4 + $0x144] ss:$16 sps:$4 sm:$0xff]  }
  0x35   :  { %498 = vmatprep.subr.bf16.mxu0 %v844_v29  ;;  %539 = vmatprep.subr.bf16.mxu1 %v846_v30  ;;  %v882_v54 = vld [vmem:[#allocation4 + $0x14c] ss:$16 sps:$4 sm:$0xff]   ;;  %v884_v55 = vld [vmem:[#allocation4 + $0x140] ss:$16 sps:$4 sm:$0xff]   ;;  %v885_v56 = vld [vmem:[#allocation4 + $0x148] ss:$16 sps:$4 sm:$0xff]  }
  0x36   :  { %v886_v57 = vld [vmem:[#allocation4 + $0x164] ss:$16 sps:$4 sm:$0xff]   ;;  %v888_v58 = vld [vmem:[#allocation4 + $0x16c] ss:$16 sps:$4 sm:$0xff]   ;;  %v890_v59 = vld [vmem:[#allocation4 + $0x160] ss:$16 sps:$4 sm:$0xff]  }
  0x37   :  { %v891_v60 = vld [vmem:[#allocation4 + $0x168] ss:$16 sps:$4 sm:$0xff]   ;;  %v892_v61 = vld [vmem:[#allocation4 + $0x184] ss:$16 sps:$4 sm:$0xff]   ;;  %v894_v62 = vld [vmem:[#allocation4 + $0x18c] ss:$16 sps:$4 sm:$0xff]  }
  0x38   :  { %499 = vmatpush1.bf16.msra.mxu0 %v848_v31  ;;  %540 = vmatpush1.bf16.msra.mxu1 %v849_v32  ;;  %v896_v63 = vld [vmem:[#allocation4 + $0x180] ss:$16 sps:$4 sm:$0xff]   ;;  %v897_v1 = vld [vmem:[#allocation4 + $0x188] ss:$16 sps:$4 sm:$0xff]   ;;  %v898_v2 = vld [vmem:[#allocation4 + $0x1a4] ss:$16 sps:$4 sm:$0xff]  }
  0x39   :  { %500 = vmatprep.subr.bf16.mxu0 %v850_v33  ;;  %541 = vmatprep.subr.bf16.mxu1 %v852_v34  ;;  %v900_v4 = vld [vmem:[#allocation4 + $0x1ac] ss:$16 sps:$4 sm:$0xff]   ;;  %v902_v7 = vld [vmem:[#allocation4 + $0x1a0] ss:$16 sps:$4 sm:$0xff]   ;;  %v903_v8 = vld [vmem:[#allocation4 + $0x1a8] ss:$16 sps:$4 sm:$0xff]  }
  0x3a   :  { %v904_v9 = vld [vmem:[#allocation4 + $0x1c4] ss:$16 sps:$4 sm:$0xff]   ;;  %v906_v10 = vld [vmem:[#allocation4 + $0x1cc] ss:$16 sps:$4 sm:$0xff]   ;;  %v908_v11 = vld [vmem:[#allocation4 + $0x1c0] ss:$16 sps:$4 sm:$0xff]  }
  0x3b   :  { %v909_v12 = vld [vmem:[#allocation4 + $0x1c8] ss:$16 sps:$4 sm:$0xff]   ;;  %v910_v13 = vld [vmem:[#allocation4 + $0x1e4] ss:$16 sps:$4 sm:$0xff]   ;;  %v912_v14 = vld [vmem:[#allocation4 + $0x1ec] ss:$16 sps:$4 sm:$0xff]  }
  0x3c   :  { %501 = vmatpush1.bf16.msra.mxu0 %v854_v35  ;;  %542 = vmatpush1.bf16.msra.mxu1 %v855_v36  ;;  %v914_v15 = vld [vmem:[#allocation4 + $0x1e0] ss:$16 sps:$4 sm:$0xff]   ;;  %v915_v16 = vld [vmem:[#allocation4 + $0x1e8] ss:$16 sps:$4 sm:$0xff]   ;;  %v971_v20 = vmov 269488144  }
  0x3d   :  { %502 = vmatprep.subr.bf16.mxu0 %v856_v37  ;;  %543 = vmatprep.subr.bf16.mxu1 %v858_v38  ;;  %v72_v21 = vunpack.c.l.s4 %v971_v20  ;;  %v1053_v25 = vsub.s32 0, %v1036_v3  ;;  %v67_v26 = vld [vmem:[#allocation2] sm:$0x3]  ;;  %v1056_v28 = vsub.s32 1, %v1036_v3 }
  0x3f   :  { %v73_v22 = vunpack.c.0.s8 %v72_v21  ;;  %v84_v30 = vrot.slane %v67_v26, %v1053_v25  ;;  %v88_v31 = vrot.slane %v67_v26, %v1056_v28 }
  0x40   :  { %503 = vmatpush1.bf16.msra.mxu0 %v860_v39  ;;  %544 = vmatpush1.bf16.msra.mxu1 %v861_v40 }
  0x41   :  { %504 = vmatprep.subr.bf16.mxu0 %v862_v41  ;;  %545 = vmatprep.subr.bf16.mxu1 %v864_v42  ;;  %v76_v23 = vsub.s32 %v73_v22, %v1036_v3 }
  0x44   :  { %505 = vmatpush1.bf16.msra.mxu0 %v866_v43  ;;  %546 = vmatpush1.bf16.msra.mxu1 %v867_v44 }
  0x45   :  { %506 = vmatprep.subr.bf16.mxu0 %v868_v45  ;;  %547 = vmatprep.subr.bf16.mxu1 %v870_v46 }
  0x48   :  { %507 = vmatpush1.bf16.msra.mxu0 %v872_v47  ;;  %548 = vmatpush1.bf16.msra.mxu1 %v873_v48  ;;  %v575_v48 = vand.u32 127, %v52_v0  ;;  %v573_v0 = vld [vmem:[%s1124_s4] sm:$0xf] }
  0x49   :  { %508 = vmatprep.subr.bf16.mxu0 %v874_v49  ;;  %549 = vmatprep.subr.bf16.mxu1 %v876_v50  ;;  %v694_v20 = vrot.slane %v573_v0, %v1053_v25 }
  0x4a   :  { %v576_v49 = vadd.s32 128, %v575_v48  ;;  %v577_v50 = vadd.s32 256, %v575_v48  ;;  %vm639_vm1 = vcmp.lt.s32.totalorder %v575_v48, 127  ;;  %vm652_vm2 = vcmp.lt.s32.totalorder %v575_v48, 1 }
  0x4c   :  { %509 = vmatpush1.bf16.msra.mxu0 %v878_v51  ;;  %550 = vmatpush1.bf16.msra.mxu1 %v879_v52  ;;  %v676_v52 = vsub.s32 2, %v1036_v3 }
  0x4d   :  { %510 = vmatprep.subr.bf16.mxu0 %v880_v53  ;;  %551 = vmatprep.subr.bf16.mxu1 %v882_v54  ;;  %v572_v53 = vld [vmem:[%s1123_s3] sm:$0xf]  ;;  %v590_v54 = vand.u32 1, %v576_v49 }
  0x4f   :  { %vm1090_vm3 = vcmp.eq.s32.totalorder %v590_v54, 0 }
  0x50   :  { %511 = vmatpush1.bf16.msra.mxu0 %v884_v55  ;;  %552 = vmatpush1.bf16.msra.mxu1 %v885_v56  ;;  %v597_v55 = vand.u32 1, %v577_v50  ;;  %v578_v56 = vadd.s32 384, %v575_v48 }
  0x51   :  { %512 = vmatprep.subr.bf16.mxu0 %v886_v57  ;;  %553 = vmatprep.subr.bf16.mxu1 %v888_v58 }
  0x52   :  { %vm1094_vm4 = vcmp.eq.s32.totalorder %v597_v55, 0 }
  0x54   :  { %513 = vmatpush1.bf16.msra.mxu0 %v890_v59  ;;  %554 = vmatpush1.bf16.msra.mxu1 %v891_v60  ;;  %v669_v60 = vrot.slane %v572_v53, %v1053_v25 }
  0x55   :  { %514 = vmatprep.subr.bf16.mxu0 %v892_v61  ;;  %555 = vmatprep.subr.bf16.mxu1 %v894_v62  ;;  %v677_v61 = vrot.slane %v572_v53, %v676_v52  ;;  %v680_v62 = vsub.s32 3, %v1036_v3 }
  0x57   :  { %v706_v21 = vrot.slane %v573_v0, %v680_v62 }
  0x58   :  { %515 = vmatpush1.bf16.msra.mxu0 %v896_v63  ;;  %556 = vmatpush1.bf16.msra.mxu1 %v897_v1 }
  0x59   :  { %516 = vmatprep.subr.bf16.mxu0 %v898_v2  ;;  %557 = vmatprep.subr.bf16.mxu1 %v900_v4  ;;  %v583_v2 = vand.u32 1, %v575_v48  ;;  %v604_v4 = vand.u32 1, %v578_v56 }
  0x5b   :  { %vm627_vm5 = vcmp.eq.s32.totalorder %v583_v2, 0  ;;  %vm630_vm6 = vcmp.eq.s32.totalorder %v604_v4, 0 }
  0x5c   :  { %517 = vmatpush1.bf16.msra.mxu0 %v902_v7  ;;  %558 = vmatpush1.bf16.msra.mxu1 %v903_v8 }
  0x5d   :  { %518 = vmatprep.subr.bf16.mxu0 %v904_v9  ;;  %559 = vmatprep.subr.bf16.mxu1 %v906_v10  ;;  %v698_v10 = vrot.slane %v573_v0, %v1056_v28 }
  0x60   :  { %519 = vmatpush1.bf16.msra.mxu0 %v908_v11  ;;  %560 = vmatpush1.bf16.msra.mxu1 %v909_v12  ;;  %v702_v11 = vrot.slane %v573_v0, %v676_v52 }
  0x61   :  { %520 = vmatprep.subr.bf16.mxu0 %v910_v13  ;;  %561 = vmatprep.subr.bf16.mxu1 %v912_v14 }
  0x64   :  { %521 = vmatpush1.bf16.msra.mxu0 %v914_v15  ;;  %562 = vmatpush1.bf16.msra.mxu1 %v915_v16  ;;  %v681_v16 = vrot.slane %v572_v53, %v680_v62 }
  0xc0   :  { %v64_v17 = vpop.xlane.xlu0 %63 }
  0xc1   :  { %v66_v18 = vmul.f32 0.00390625, %v64_v17  ;;  %v673_v17 = vrot.slane %v572_v53, %v1056_v28 }
  0xc3   :  { %v68_v19 = vadd.f32 1e-05, %v66_v18 }
  0xc5   :  { %916 = vrsqrt.f32 %v68_v19 }
  0xcf   :  { %v917_v24 = vpop.eup %916 }
  0xd0   :  { %v77_v27 = vrot.slane %v917_v24, %v76_v23 }
  0xd2   :  { %v79_v29 = vmul.f32 %v77_v27, %v1044_v6 }
  0xd4   :  { %v98_v32 = vrot.slane %v79_v29, %v1039_v5 }
  0xd6   :  { %v99_v33 = vcombine.high %v98_v32, %v98_v32  ;;  %v102_v34 = vmul.f32 %v98_v32, %v84_v30 }
  0xd8   :  { %v103_v35 = vmul.f32 %v99_v33, %v88_v31  ;;  %v104_v37 = vpack.c.bf16 %v102_v34, %v102_v34 }
  0xda   :  { %v105_v36 = vpack.c.bf16 %v103_v35, %v103_v35 }
  0xdc   :  { %522 = vmatprep.mubr.bf16.mxu0 %v105_v36  ;;  %563 = vmatprep.mubr.bf16.mxu1 %v105_v36 }
  0xdd   :  { %523 = vmatmul.mubr.bf16.vlgmr.msra.gmra.mrb[0].mxu0 %v104_v37  ;;  %564 = vmatmul.mubr.bf16.vlgmr.msra.gmra.mrb[0].mxu1 %v104_v37 }
 0x1b0   :  { %v1062_v38 = vpop.f32.mrb[0].mxu0  ;;  %v1064_v39 = vpop.f32.mrb[0].mxu1 }
 0x1b1   :  { %635 = vrot.lane.b32.xlu1 %v1064_v39, %s972_s0  ;;  %v1067_v6 = vpop.f32.mrb[1].mxu1  ;;  %631 = vrot.lane.b32.xlu0 %v1062_v38, %s972_s0  ;;  %v1070_v40 = vpop.f32.mrb[1].mxu0  ;;  %v686_v30 = vmul.f32 %v669_v60, %v1062_v38  ;;  %v688_v31 = vmul.f32 %v677_v61, %v1064_v39 }
 0x1b2   :  { %v528_v41 = vpop.f32.mrb[2].mxu0  ;;  %v569_v42 = vpop.f32.mrb[2].mxu1  ;;  %v689_v34 = vmul.f32 %v681_v16, %v1067_v6  ;;  %v687_v25 = vmul.f32 %v673_v17, %v1070_v40 }
 0x1b3   :  { %v529_v43 = vpop.f32.mrb[3].mxu0  ;;  %v570_v44 = vpop.f32.mrb[3].mxu1 }
 0x1b5   :  { %644 = vrot.lane.b32.xlu1 %v1062_v38, %s973_s2 }
 0x1b9   :  { %648 = vrot.lane.b32.xlu1 %v1064_v39, %s973_s2 }
 0x1bd   :  { %633 = vrot.lane.b32.xlu1 %v1070_v40, %s972_s0 }
 0x1c1   :  { %637 = vrot.lane.b32.xlu1 %v1067_v6, %s972_s0 }
 0x1c5   :  { %646 = vrot.lane.b32.xlu1 %v1070_v40, %s973_s2 }
 0x1c9   :  { %650 = vrot.lane.b32.xlu1 %v1067_v6, %s973_s2 }
 0x223   :  { %v636_v45 = vpop.permute.xlu1 %635  ;;  %v632_v7 = vpop.permute.xlu0 %631 }
 0x227   :  { %v645_v46 = vpop.permute.xlu1 %644 }
 0x22b   :  { %v649_v47 = vpop.permute.xlu1 %648 }
 0x22f   :  { %v634_v51 = vpop.permute.xlu1 %633 }
 0x230   :  { %v641_v58 = vsel %vm639_vm1, %v634_v51, %v636_v45  ;;  %v642_v3 = vsel %vm639_vm1, %v632_v7, %v634_v51 }
 0x231   :  { %v658_v8 = vsub.f32 0.0, %v641_v58  ;;  %v657_v22 = vsub.f32 0.0, %v642_v3 }
 0x233   :  { %v638_v57 = vpop.permute.xlu1 %637 }
 0x234   :  { %v640_v59 = vsel %vm639_vm1, %v636_v45, %v638_v57  ;;  %v643_v13 = vsel %vm639_vm1, %v638_v57, %v632_v7 }
 0x235   :  { %v659_v9 = vsub.f32 0.0, %v640_v59  ;;  %v660_v23 = vsub.f32 0.0, %v643_v13 }
 0x237   :  { %v647_v12 = vpop.permute.xlu1 %646 }
 0x238   :  { %v654_v14 = vsel %vm652_vm2, %v647_v12, %v649_v47  ;;  %v655_v15 = vsel %vm652_vm2, %v645_v46, %v647_v12 }
 0x239   :  { %v662_v18 = vsel %vm1090_vm3, %v658_v8, %v655_v15  ;;  %v663_v19 = vsel %vm1094_vm4, %v659_v9, %v654_v14 }
 0x23a   :  { %v712_v26 = vmul.f32 %v698_v10, %v662_v18  ;;  %v713_v27 = vmul.f32 %v702_v11, %v663_v19 }
 0x23b   :  { %v651_v24 = vpop.permute.xlu1 %650 }
 0x23c   :  { %v653_v29 = vsel %vm652_vm2, %v649_v47, %v651_v24  ;;  %v656_v28 = vsel %vm652_vm2, %v651_v24, %v645_v46  ;;  %v716_v37 = vadd.f32 %v712_v26, %v687_v25  ;;  %v717_v41 = vadd.f32 %v713_v27, %v688_v31 }
 0x23d   :  { %v661_v32 = vsel %vm627_vm5, %v657_v22, %v656_v28  ;;  %v664_v33 = vsel %vm630_vm6, %v660_v23, %v653_v29 }
 0x23e   :  { %v711_v35 = vmul.f32 %v694_v20, %v661_v32  ;;  %v714_v36 = vmul.f32 %v706_v21, %v664_v33 }
 0x240   :  { %v715_v42 = vadd.f32 %v711_v35, %v686_v30  ;;  %v718_v43 = vadd.f32 %v714_v36, %v689_v34 }
 0x242   :  { %v723_v44 = vcombine.low %v715_v42, %v716_v37  ;;  %v724_v45 = vcombine.low %v717_v41, %v718_v43 }
 0x244   :  { %v731_v46 = vrot.slane %v723_v44, %v1039_v5  ;;  %v738_v38 = vrot.slane %v724_v45, %v1039_v5 }
 0x246   :  { %v739_v47 = vcombine.low %v731_v46, %v738_v38 }
 0x248   :  { %741 = vst [vmem:[%s1125_s5] sm:$0xff] %v739_v47 }
 0x249   :  { %746 = vsyncpa [#allocation3], 1 }
 0x24a   :  { %747 = vsyncpa [#allocation5], 1 }

// kernel: transformer_forward.18
= control target key start
LH: loop header
LB: loop body
LE: loop exit
PB: predicated region body
PF: predicated region fallthrough
CT: control target
= control target key end

     0   :  { %v135_v3 = vlaneseq  ;;  %v477_v12 = vmov 1966171168   ;;  %vm229_vm1 = vcmask 519168   ;;  %s598_s0 = inlined_call_operand.vmem [shape: f32[2,2,64], index: 0, kind: input, shape index: {}]   ;;  %s599_s1 = inlined_call_operand.vmem [shape: f32[2,2,64], index: 1, kind: input, shape index: {}]   ;;  %s600_s2 = inlined_call_operand.vmem [shape: bf16[2,2,16,64], index: 2, kind: input, shape index: {}, may-alias: {2,4}]   ;;  %s601_s3 = inlined_call_operand.vmem [shape: bf16[2,2,16,64], index: 3, kind: input, shape index: {}, may-alias: {3,5}]   ;;  %s602_s4 = inlined_call_operand.vmem [shape: bf16[2,2,16,64], index: 4, kind: output, shape index: {0}, may-alias: {2,4}]   ;;  %s603_s5 = inlined_call_operand.vmem [shape: bf16[2,2,16,64], index: 5, kind: output, shape index: {1}, may-alias: {3,5}]  }
   0x1   :  { %v456_v0 = vld [vmem:[%s600_s2 + $0x4] sm:$0xf]  ;;  %v457_v1 = vld [vmem:[%s600_s2 + $0xc] sm:$0xf]  ;;  %v458_v2 = vld [vmem:[%s600_s2 + $0x14] sm:$0xf]  ;;  %v145_v13 = vunpack.c.l.s4 %v477_v12 }
   0x2   :  { %34 = vst [vmem:[#allocation2] sm:$0xf] %v456_v0  ;;  %36 = vst [vmem:[#allocation2 + $0x4] sm:$0xf] %v457_v1  ;;  %v459_v4 = vld [vmem:[%s600_s2 + $0x1c] sm:$0xf] }
   0x3   :  { %38 = vst [vmem:[#allocation2 + $0x8] sm:$0xf] %v458_v2  ;;  %v460_v5 = vld [vmem:[%s601_s3 + $0x4] sm:$0xf]  ;;  %v461_v6 = vld [vmem:[%s601_s3 + $0xc] sm:$0xf]  ;;  %v146_v17 = vunpack.c.0.s8 %v145_v13 }
   0x4   :  { %40 = vst [vmem:[#allocation2 + $0xc] sm:$0xf] %v459_v4  ;;  %88 = vst [vmem:[#allocation3] sm:$0xf] %v460_v5  ;;  %v462_v7 = vld [vmem:[%s601_s3 + $0x14] sm:$0xf] }
   0x5   :  { %90 = vst [vmem:[#allocation3 + $0x4] sm:$0xf] %v461_v6  ;;  %v463_v8 = vld [vmem:[%s601_s3 + $0x1c] sm:$0xf]  ;;  %92 = vst [vmem:[#allocation3 + $0x8] sm:$0xf] %v462_v7 }
   0x6   :  { %94 = vst [vmem:[#allocation3 + $0xc] sm:$0xf] %v463_v8  ;;  %v138_v9 = vld [vmem:[%s598_s0] sm:$0x3]  ;;  %v139_v10 = vld [vmem:[%s598_s0 + $0x2] sm:$0x3] }
   0x7   :  { %v136_v11 = vshrl.u32 %v135_v3, 7  ;;  %v234_v14 = vld [vmem:[%s599_s1] sm:$0x3]  ;;  %v235_v15 = vld [vmem:[%s599_s1 + $0x2] sm:$0x3]  ;;  %v140_v16 = vpack.c.bf16 %v138_v9, %v138_v9  ;;  %v141_v18 = vpack.c.bf16 %v139_v10, %v139_v10 }
   0x8   :  { %v236_v19 = vpack.c.bf16 %v234_v14, %v234_v14  ;;  %v237_v20 = vpack.c.bf16 %v235_v15, %v235_v15 }
   0x9   :  { %v149_v21 = vsub.s32 %v146_v17, %v136_v11  ;;  %v182_v26 = vsub.s32 0, %v136_v11  ;;  %vm137_vm0 = vcmp.eq.s32.totalorder %v136_v11, 1  ;;  %v127_v51 = vld [vmem:[#allocation2] sm:$0xf]  ;;  %v128_v0 = vld [vmem:[#allocation2 + $0x4] sm:$0xf] }
   0xa   :  { %vm546_vm2 = vmpackc.low %vm137_vm0, %vm137_vm0  ;;  %v129_v53 = vld [vmem:[#allocation2 + $0x8] sm:$0xf] }
   0xb   :  { %v150_v22 = vrot.slane %v140_v16, %v149_v21  ;;  %v164_v23 = vrot.slane %v141_v18, %v149_v21  ;;  %v246_v24 = vrot.slane %v236_v19, %v149_v21  ;;  %v260_v25 = vrot.slane %v237_v20, %v149_v21  ;;  %v131_v62 = vld [vmem:[#allocation3] sm:$0xf]  ;;  %v130_v1 = vld [vmem:[#allocation2 + $0xc] sm:$0xf] }
   0xc   :  { %v133_v63 = vld [vmem:[#allocation3 + $0x8] sm:$0xf]  ;;  %v132_v10 = vld [vmem:[#allocation3 + $0x4] sm:$0xf] }
   0xd   :  { %v157_v27 = vrot.slane %v150_v22, %v149_v21  ;;  %v171_v28 = vrot.slane %v164_v23, %v149_v21  ;;  %v253_v29 = vrot.slane %v246_v24, %v149_v21  ;;  %v267_v30 = vrot.slane %v260_v25, %v149_v21  ;;  %v134_v11 = vld [vmem:[#allocation3 + $0xc] sm:$0xf] }
   0xf   :  { %v464_v31 = vpack.i.b16 %v157_v27, %v157_v27  ;;  %v173_v32 = vunpack.i.h.s16 %v157_v27  ;;  %v465_v33 = vpack.i.b16 %v171_v28, %v171_v28  ;;  %v175_v34 = vunpack.i.h.s16 %v171_v28 }
  0x10   :  { %v466_v35 = vpack.i.b16 %v253_v29, %v253_v29  ;;  %v269_v36 = vunpack.i.h.s16 %v253_v29  ;;  %v467_v37 = vpack.i.b16 %v267_v30, %v267_v30  ;;  %v271_v38 = vunpack.i.h.s16 %v267_v30 }
  0x11   :  { %v183_v39 = vrot.slane %v464_v31, %v182_v26  ;;  %v177_v40 = vpack.i.b16 %v173_v32, %v173_v32  ;;  %v191_v41 = vrot.slane %v465_v33, %v182_v26  ;;  %v179_v42 = vpack.i.b16 %v175_v34, %v175_v34 }
  0x12   :  { %v279_v43 = vrot.slane %v466_v35, %v182_v26  ;;  %v273_v44 = vpack.i.b16 %v269_v36, %v269_v36  ;;  %v287_v45 = vrot.slane %v467_v37, %v182_v26  ;;  %v275_v46 = vpack.i.b16 %v271_v38, %v271_v38 }
  0x13   :  { %v197_v47 = vpack.i.b16 %v183_v39, %v183_v39  ;;  %v187_v48 = vrot.slane %v177_v40, %v182_v26  ;;  %v211_v49 = vpack.i.b16 %v191_v41, %v191_v41  ;;  %v195_v50 = vrot.slane %v179_v42, %v182_v26 }
  0x14   :  { %v293_v54 = vpack.i.b16 %v279_v43, %v279_v43  ;;  %v283_v55 = vrot.slane %v273_v44, %v182_v26  ;;  %v307_v56 = vpack.i.b16 %v287_v45, %v287_v45  ;;  %v291_v57 = vrot.slane %v275_v46, %v182_v26 }
  0x15   :  { %v202_v58 = vrot.slane %v197_v47, %v182_v26  ;;  %v204_v59 = vpack.i.b16 %v187_v48, %v187_v48  ;;  %v216_v60 = vrot.slane %v211_v49, %v182_v26  ;;  %v218_v61 = vpack.i.b16 %v195_v50, %v195_v50 }
  0x16   :  { %v298_v2 = vrot.slane %v293_v54, %v182_v26  ;;  %v300_v3 = vpack.i.b16 %v283_v55, %v283_v55  ;;  %v312_v4 = vrot.slane %v307_v56, %v182_v26  ;;  %v314_v5 = vpack.i.b16 %v291_v57, %v291_v57 }
  0x17   :  { %v225_v6 = vsel %vm546_vm2, %v202_v58, %v127_v51  ;;  %v209_v7 = vrot.slane %v204_v59, %v182_v26  ;;  %v227_v8 = vsel %vm546_vm2, %v216_v60, %v129_v53  ;;  %v223_v9 = vrot.slane %v218_v61, %v182_v26 }
  0x18   :  { %230 = vst.msk [vmem:[#allocation4] sm:$0xf] %vm229_vm1, %v225_v6  ;;  %232 = vst.msk [vmem:[#allocation4 + $0x8] sm:$0xf] %vm229_vm1, %v227_v8  ;;  %v320_v12 = vsel %vm546_vm2, %v298_v2, %v131_v62  ;;  %v305_v13 = vrot.slane %v300_v3, %v182_v26  ;;  %v322_v14 = vsel %vm546_vm2, %v312_v4, %v133_v63 }
  0x19   :  { %v319_v15 = vrot.slane %v314_v5, %v182_v26  ;;  %v226_v16 = vsel %vm546_vm2, %v209_v7, %v128_v0  ;;  %v228_v17 = vsel %vm546_vm2, %v223_v9, %v130_v1  ;;  %324 = vst.msk [vmem:[#allocation5] sm:$0xf] %vm229_vm1, %v320_v12  ;;  %326 = vst.msk [vmem:[#allocation5 + $0x8] sm:$0xf] %vm229_vm1, %v322_v14 }
  0x1a   :  { %231 = vst.msk [vmem:[#allocation4 + $0x4] sm:$0xf] %vm229_vm1, %v226_v16  ;;  %233 = vst.msk [vmem:[#allocation4 + $0xc] sm:$0xf] %vm229_vm1, %v228_v17  ;;  %v321_v18 = vsel %vm546_vm2, %v305_v13, %v132_v10 }
  0x1b   :  { %v323_v19 = vsel %vm546_vm2, %v319_v15, %v134_v11  ;;  %325 = vst.msk [vmem:[#allocation5 + $0x4] sm:$0xf] %vm229_vm1, %v321_v18 }
  0x1c   :  { %327 = vst.msk [vmem:[#allocation5 + $0xc] sm:$0xf] %vm229_vm1, %v323_v19 }
  0x1f   :  { %v346_v20 = vld [vmem:[#allocation4] sm:$0xf]  ;;  %v350_v21 = vld [vmem:[#allocation4 + $0x8] sm:$0xf] }
  0x20   :  { %468 = vst [vmem:[%s602_s4 + $0x4] sm:$0xf] %v346_v20  ;;  %470 = vst [vmem:[%s602_s4 + $0x14] sm:$0xf] %v350_v21  ;;  %v400_v22 = vld [vmem:[#allocation5] sm:$0xf] }
  0x21   :  { %v404_v23 = vld [vmem:[#allocation5 + $0x8] sm:$0xf]  ;;  %v348_v24 = vld [vmem:[#allocation4 + $0x4] sm:$0xf]  ;;  %v352_v25 = vld [vmem:[#allocation4 + $0xc] sm:$0xf] }
  0x22   :  { %472 = vst [vmem:[%s603_s5 + $0x4] sm:$0xf] %v400_v22  ;;  %474 = vst [vmem:[%s603_s5 + $0x14] sm:$0xf] %v404_v23  ;;  %v402_v26 = vld [vmem:[#allocation5 + $0x4] sm:$0xf] }
  0x23   :  { %469 = vst [vmem:[%s602_s4 + $0xc] sm:$0xf] %v348_v24  ;;  %471 = vst [vmem:[%s602_s4 + $0x1c] sm:$0xf] %v352_v25  ;;  %v406_v27 = vld [vmem:[#allocation5 + $0xc] sm:$0xf] }
  0x24   :  { %473 = vst [vmem:[%s603_s5 + $0xc] sm:$0xf] %v402_v26  ;;  %475 = vst [vmem:[%s603_s5 + $0x1c] sm:$0xf] %v406_v27 }

// kernel: transformer_forward.19
= control target key start
LH: loop header
LB: loop body
LE: loop exit
PB: predicated region body
PF: predicated region fallthrough
CT: control target
= control target key end

     0   :  { %s777_s12 = smov 0   ;;  %s779_s13 = smov 0   ;;  %s857_s0 = inlined_call_operand.vmem [shape: f32[2,2,2,64], index: 0, kind: input, shape index: {}]   ;;  %s858_s1 = inlined_call_operand.vmem [shape: bf16[2,2,16,64], index: 1, kind: input, shape index: {}]   ;;  %s859_s2 = inlined_call_operand.vmem [shape: bf16[2,2,16,64], index: 2, kind: input, shape index: {}]   ;;  %s860_s3 = inlined_call_operand.vmem [shape: f32[2,2,2,64], index: 3, kind: output, shape index: {}]  }
   0x1   :  { %s781_s14 = smov 0   ;;  %s783_s15 = smov 0  }
   0x2   :  { %s785_s16 = smov 0  }
   0x3 LB: > { %s28_s17 = sadd.s32 1, %s743_s14  ;;  %s32_s18 = sadd.s32 1, %s747_s15  ;;  %s751_s16 = sphi %s785_s16, %s13_s16   ;;  %s747_s15 = sphi %s783_s15, %s864_s15   ;;  %s743_s14 = sphi %s781_s14, %s863_s14   ;;  %s739_s13 = sphi %s779_s13, %s862_s13   ;;  %s735_s12 = sphi %s777_s12, %s861_s12  }
   0x4   : > { %p30_p0 = scmp.ge.s32.totalorder %s28_s17, 2  ;;  %p626_p1 = scmp.ge.s32.totalorder %s751_s16, 1 }
   0x5   : > { %p209_p2 = scmp.lt.s32.totalorder %s751_s16, 5 }
   0x6   : > { %s866_s17 = smov (%p30_p0, %s28_s17), 0  ;;  %s868_s18 = smov (!%p30_p0, %s32_s18), %s747_s15 }
   0x7   : > { %p210_p3 = pnand %p626_p1, %p209_p2  ;;  %p34_p4 = scmp.ge.s32.totalorder %s868_s18, 2 }
   0x8   : > { %vm317_vm0 = vcmask (!%p210_p3), 517120   ;;  %p265_p5 = scmp.lt.s32.totalorder (!%p210_p3), %s739_s13, 1  ;;  %p267_p6 = scmp.lt.s32.totalorder (!%p210_p3), %s735_s12, 1  ;;  %v753_v0 = vmov (!%p210_p3), 0.0   ;;  %vm754_vm1 = vmmov (!%p210_p3), 0   ;;  %vm329_vm2 = vcmask (!%p210_p3), 523264  }
   0x9   : > { %s870_s18 = smov (%p34_p4, %s868_s18), 0  ;;  %213 = sbr.rel (%p210_p3) target bundleno = 827 (0x33b), region = 32 }
   0xa   : > { %318 = vst.msk [vmem:[#allocation4] sm:$0x3] (!%p210_p3), %vm317_vm0, %v753_v0  ;;  %647 = vmatprep.subr.bf16.mxu0 (!%p210_p3), %v753_v0  ;;  %649 = vmatprep.mubr.msk.bf16.mxu0 (!%p210_p3), %vm754_vm1, %v753_v0  ;;  %vm314_vm3 = vcmask (!%p210_p3), 1024   ;;  %v755_v6 = vmov (!%p210_p3), -1e+30   ;;  %v377_v7 = vlaneseq (!%p210_p3)  ;;  %vm384_vm5 = vcmask (!%p210_p3), 123904  }
   0xb   : > { %653 = vmatprep.subr.bf16.mxu1 (!%p210_p3), %v753_v0  ;;  %655 = vmatprep.mubr.msk.bf16.mxu1 (!%p210_p3), %vm754_vm1, %v753_v0  ;;  %315 = vst.msk [vmem:[#allocation2] sm:$0x3] (!%p210_p3), %vm314_vm3, %v755_v6  ;;  %316 = vst.msk [vmem:[#allocation3] sm:$0x3] (!%p210_p3), %vm314_vm3, %v753_v0  ;;  %v756_v15 = vmov (!%p210_p3), 0   ;;  %vm424_vm6 = vcmask (!%p210_p3), 130048  }
   0xc   : > { %v378_v8 = vand.u32 (!%p210_p3), 127, %v377_v7  ;;  %703 = vset.pattern.permute.xlu0 (!%p210_p3), %v756_v15  ;;  %704 = vset.pattern.permute.xlu1 (!%p210_p3), %v756_v15 }
   0xe   : > { %vm381_vm4 = vcmp.lt.s32.totalorder (!%p210_p3), %v378_v8, 10 }
  0x10   : > { %s872_s13 = smov (!%p265_p5, %s739_s13), 1  ;;  %s874_s12 = smov (!%p267_p6, %s735_s12), 1 }
  0x11   : > { %s630_s19 = sshll.u32 %s872_s13, 2  ;;  %s627_s20 = sshll.u32 %s872_s13, 1  ;;  %v408_v35 = vld [vmem:[#allocation4] sm:$0x3] }
  0x12   : > { %s629_s21 = sshll.u32 %s874_s12, 1  ;;  %s808_s22 = sadd.s32 %s627_s20, %s874_s12  ;;  %v383_v16 = vld [vmem:[#allocation2] sm:$0x3]  ;;  %v400_v29 = vld [vmem:[#allocation3] sm:$0x3] }
  0x13   : > { %s810_s23 = sadd.s32 %s630_s19, %s629_s21  ;;  %s628_s24 = sshll.u32 %s808_s22, 1 }
  0x14   : > { %s631_s25 = sshll.u32 %s810_s23, 2  ;;  %s272_s28 = scalar_lea.vmem %s857_s0, %s628_s24 }
  0x15   : > { %s285_s4 = scalar_lea.vmem %s858_s1, %s631_s25  ;;  %v319_v1 = vld [vmem:[%s272_s28] sm:$0x3]  ;;  %s299_s7 = scalar_lea.vmem %s859_s2, %s631_s25 }
  0x16   : > { %v705_v2 = vld [vmem:[%s285_s4] sm:$0xff]   ;;  %v320_v4 = vmul.f32 0.125, %v319_v1  ;;  %s308_s10 = scalar_lea.vmem %s860_s3, %s628_s24 }
  0x17   : > { %v334_v3 = vsel %vm329_vm2, %v705_v2, 0  ;;  %v706_v20 = vld [vmem:[%s299_s7] sm:$0xff]  }
  0x18   : > { %648 = vmatpush3.bf16.xpose.msra.mxu0 %v334_v3  ;;  %v321_v5 = vpack.c.bf16 %v320_v4, %v320_v4  ;;  %654 = vmatpush3.bf16.msra.mxu1 %v706_v20 }
  0x1f   : > { %650 = vmatmul.mubr.msk.bf16.vlgmr.msra.gmra.mrb[0].mxu0 %vm329_vm2, %v321_v5 }
  0xf2   : > { %v370_v9 = vpop.f32.mrb[0].mxu0 }
  0xf3   : > { %v382_v10 = vsel %vm381_vm4, %v370_v9, -1e+30  ;;  %v651_v11 = vpop.f32.mrb[1].mxu0 }
  0xf4   : > { %v373_v12 = vpop.f32.mrb[2].mxu0  ;;  %v385_v13 = vsel %vm384_vm5, %v382_v10, -inf }
  0xf5   : > { %386 = vmax.xlane.f32.xlu0 %v385_v13  ;;  %v652_v14 = vpop.f32.mrb[3].mxu0 }
 0x182   : > { %v387_v17 = vpop.xlane.xlu0 %386 }
 0x183   : > { %v388_v18 = vmax.f32 %v383_v16, %v387_v17 }
 0x185   : > { %v389_v19 = vsub.f32 %v383_v16, %v388_v18  ;;  %471 = vst.msk [vmem:[#allocation2] sm:$0x3] %vm314_vm3, %v388_v18  ;;  %394 = vperm.xlu0 %703, %v388_v18  }
 0x187   : > { %v390_v27 = vmul.f32 1.442695, %v389_v19 }
 0x204   : > { %v395_v21 = vpop.permute.xlu0 %394 }
 0x205   : > { %v397_v22 = vsub.f32 %v382_v10, %v395_v21 }
 0x207   : > { %v398_v23 = vmul.f32 1.442695, %v397_v22 }
 0x209   : > { %707 = vpow2.f32 %v398_v23 }
 0x20a   : > { %709 = vpow2.f32 %v390_v27 }
 0x213   : > { %v708_v24 = vpop.eup %707 }
 0x214   : > { %v402_v25 = vsel %vm384_vm5, %v708_v24, 0.0  ;;  %v415_v26 = vpack.c.bf16 %v708_v24, %v708_v24  ;;  %v710_v28 = vpop.eup %709 }
 0x215   : > { %403 = vadd.xlane.f32.xlu1 %v402_v25  ;;  %v401_v30 = vmul.f32 %v710_v28, %v400_v29 }
 0x216   : > { %656 = vmatmul.mubr.msk.bf16.vlgmr.msra.gmra.mrb[0].mxu1 %vm424_vm6, %v415_v26 }
 0x226   : > { %411 = vperm.xlu1 %704, %v710_v28  }
 0x2a2   : > { %v404_v31 = vpop.xlane.xlu1 %403 }
 0x2a3   : > { %v405_v32 = vadd.f32 %v404_v31, %v401_v30 }
 0x2a5   : > { %407 = vst.msk [vmem:[#allocation3] sm:$0x3] %vm314_vm3, %v405_v32 }
 0x2a6   : > { %v412_v36 = vpop.permute.xlu1 %411 }
 0x2a7   : > { %v414_v37 = vmul.f32 %v412_v36, %v408_v35 }
 0x2ac   : > { %v476_v33 = vld [vmem:[#allocation3] sm:$0x3] }
 0x2ad   : > { %711 = vrcp.f32 %v476_v33 }
 0x2b7   : > { %v712_v34 = vpop.eup %711 }
 0x2b8   : > { %480 = vperm.xlu1 %704, %v712_v34  }
 0x2e9   : > { %v462_v38 = vpop.f32.mrb[0].mxu1 }
 0x2ea   : > { %v468_v39 = vadd.f32 %v462_v38, %v414_v37  ;;  %v657_v40 = vpop.f32.mrb[1].mxu1 }
 0x2eb   : > { %v465_v41 = vpop.f32.mrb[2].mxu1 }
 0x2ec   : > { %470 = vst.msk [vmem:[#allocation4] sm:$0x3] %vm317_vm0, %v468_v39  ;;  %v658_v42 = vpop.f32.mrb[3].mxu1 }
 0x2f3   : > { %v475_v43 = vld [vmem:[#allocation4] sm:$0x3] }
 0x337   : > { %v481_v44 = vpop.permute.xlu1 %480 }
 0x338   : > { %v483_v45 = vmul.f32 %v481_v44, %v475_v43 }
 0x33a   : > { %484 = vst.msk [vmem:[%s308_s10] sm:$0x3] %vm317_vm0, %v483_v45 }
 0x33b PF: > { %s13_s16 = sadd.s32 1, %s751_s16   ;;  %s861_s12 = smov %s743_s14 }
 0x33c   : > { %p10_p7 = scmp.ge.s32.totalorder %s13_s16, 6   ;;  %s862_s13 = smov %s747_s15 }
 0x33d   : > { %s863_s14 = smov %s866_s17  ;;  %s864_s15 = smov %s870_s18 }
 0x33e   :  { %12 = sbr.rel (!%p10_p7) target bundleno = 3 (0x3), region = 76 }

// kernel: transformer_forward.17
= control target key start
LH: loop header
LB: loop body
LE: loop exit
PB: predicated region body
PF: predicated region fallthrough
CT: control target
= control target key end

     0   :  { %v26_v0 = vlaneseq  ;;  %v886_v2 = vmov 1983009808   ;;  %vm33_vm0 = vcmask 1041408   ;;  %s1200_s0 = inlined_call_operand.vmem [shape: f32[2,256], index: 0, kind: input, shape index: {}]   ;;  %s1201_s2 = inlined_call_operand.vmem [shape: bf16[256,512], index: 2, kind: input, shape index: {}]   ;;  %s1202_s1 = inlined_call_operand.vmem [shape: f32[1,256], index: 1, kind: input, shape index: {}]   ;;  %s1203_s3 = inlined_call_operand.vmem [shape: f32[1,512], index: 3, kind: input, shape index: {}]   ;;  %s1204_s4 = inlined_call_operand.vmem [shape: f32[1,512], index: 4, kind: input, shape index: {}]   ;;  %s1205_s5 = inlined_call_operand.vmem [shape: f32[2,512], index: 5, kind: output, shape index: {}]  }
   0x1   :  { %v923_v1 = vld [vmem:[%s1200_s0] sm:$0xf]  ;;  %v24_v3 = vunpack.c.l.s4 %v886_v2  ;;  %v788_v5 = vld [vmem:[%s1201_s2 + $0x4] ss:$16 sps:$4 sm:$0xff]   ;;  %v790_v8 = vld [vmem:[%s1201_s2 + $0xc] ss:$16 sps:$4 sm:$0xff]  }
   0x2   :  { %v926_v4 = vshrl.u32 %v26_v0, 7  ;;  %v21_v6 = vmul.f32 %v923_v1, %v923_v1  ;;  %v792_v9 = vld [vmem:[%s1201_s2] ss:$16 sps:$4 sm:$0xff]   ;;  %v793_v10 = vld [vmem:[%s1201_s2 + $0x8] ss:$16 sps:$4 sm:$0xff]   ;;  %464 = vmatprep.subr.bf16.mxu0 %v788_v5  ;;  %505 = vmatprep.subr.bf16.mxu1 %v790_v8 }
   0x3   :  { %v25_v7 = vunpack.c.0.s8 %v24_v3  ;;  %v794_v11 = vld [vmem:[%s1201_s2 + $0x24] ss:$16 sps:$4 sm:$0xff]   ;;  %465 = vmatpush1.bf16.msra.mxu0 %v792_v9  ;;  %v796_v13 = vld [vmem:[%s1201_s2 + $0x2c] ss:$16 sps:$4 sm:$0xff]   ;;  %506 = vmatpush1.bf16.msra.mxu1 %v793_v10  ;;  %v798_v14 = vld [vmem:[%s1201_s2 + $0x20] ss:$16 sps:$4 sm:$0xff]  }
   0x4   :  { %466 = vmatprep.subr.bf16.mxu0 %v794_v11  ;;  %v799_v15 = vld [vmem:[%s1201_s2 + $0x28] ss:$16 sps:$4 sm:$0xff]   ;;  %507 = vmatprep.subr.bf16.mxu1 %v796_v13  ;;  %v800_v17 = vld [vmem:[%s1201_s2 + $0x44] ss:$16 sps:$4 sm:$0xff]   ;;  %v802_v18 = vld [vmem:[%s1201_s2 + $0x4c] ss:$16 sps:$4 sm:$0xff]  }
   0x5   :  { %v946_v12 = vsub.s32 %v25_v7, %v926_v4  ;;  %v804_v21 = vld [vmem:[%s1201_s2 + $0x40] ss:$16 sps:$4 sm:$0xff]   ;;  %v805_v22 = vld [vmem:[%s1201_s2 + $0x48] ss:$16 sps:$4 sm:$0xff]   ;;  %v806_v24 = vld [vmem:[%s1201_s2 + $0x64] ss:$16 sps:$4 sm:$0xff]  }
   0x6   :  { %v808_v25 = vld [vmem:[%s1201_s2 + $0x6c] ss:$16 sps:$4 sm:$0xff]   ;;  %v810_v27 = vld [vmem:[%s1201_s2 + $0x60] ss:$16 sps:$4 sm:$0xff]   ;;  %v811_v28 = vld [vmem:[%s1201_s2 + $0x68] ss:$16 sps:$4 sm:$0xff]  }
   0x7   :  { %v29_v16 = vrot.slane %v21_v6, %v946_v12  ;;  %467 = vmatpush1.bf16.msra.mxu0 %v798_v14  ;;  %508 = vmatpush1.bf16.msra.mxu1 %v799_v15  ;;  %v812_v29 = vld [vmem:[%s1201_s2 + $0x84] ss:$16 sps:$4 sm:$0xff]   ;;  %v814_v30 = vld [vmem:[%s1201_s2 + $0x8c] ss:$16 sps:$4 sm:$0xff]   ;;  %v816_v31 = vld [vmem:[%s1201_s2 + $0x80] ss:$16 sps:$4 sm:$0xff]  }
   0x8   :  { %468 = vmatprep.subr.bf16.mxu0 %v800_v17  ;;  %509 = vmatprep.subr.bf16.mxu1 %v802_v18  ;;  %v817_v32 = vld [vmem:[%s1201_s2 + $0x88] ss:$16 sps:$4 sm:$0xff]   ;;  %v818_v33 = vld [vmem:[%s1201_s2 + $0xa4] ss:$16 sps:$4 sm:$0xff]   ;;  %v820_v34 = vld [vmem:[%s1201_s2 + $0xac] ss:$16 sps:$4 sm:$0xff]  }
   0x9   :  { %v30_v19 = vcombine.high %v29_v16, %v29_v16  ;;  %v34_v20 = vsel %vm33_vm0, %v29_v16, 0.0  ;;  %v822_v35 = vld [vmem:[%s1201_s2 + $0xa0] ss:$16 sps:$4 sm:$0xff]   ;;  %v823_v36 = vld [vmem:[%s1201_s2 + $0xa8] ss:$16 sps:$4 sm:$0xff]  }
   0xa   :  { %v824_v37 = vld [vmem:[%s1201_s2 + $0xc4] ss:$16 sps:$4 sm:$0xff]   ;;  %v826_v38 = vld [vmem:[%s1201_s2 + $0xcc] ss:$16 sps:$4 sm:$0xff]   ;;  %v828_v39 = vld [vmem:[%s1201_s2 + $0xc0] ss:$16 sps:$4 sm:$0xff]  }
   0xb   :  { %v35_v23 = vsel %vm33_vm0, %v30_v19, 0.0  ;;  %469 = vmatpush1.bf16.msra.mxu0 %v804_v21  ;;  %510 = vmatpush1.bf16.msra.mxu1 %v805_v22  ;;  %v829_v40 = vld [vmem:[%s1201_s2 + $0xc8] ss:$16 sps:$4 sm:$0xff]   ;;  %v830_v41 = vld [vmem:[%s1201_s2 + $0xe4] ss:$16 sps:$4 sm:$0xff]  }
   0xc   :  { %v36_v26 = vadd.f32 %v35_v23, %v34_v20  ;;  %470 = vmatprep.subr.bf16.mxu0 %v806_v24  ;;  %511 = vmatprep.subr.bf16.mxu1 %v808_v25  ;;  %v832_v42 = vld [vmem:[%s1201_s2 + $0xec] ss:$16 sps:$4 sm:$0xff]   ;;  %v834_v43 = vld [vmem:[%s1201_s2 + $0xe0] ss:$16 sps:$4 sm:$0xff]   ;;  %v835_v44 = vld [vmem:[%s1201_s2 + $0xe8] ss:$16 sps:$4 sm:$0xff]  }
   0xd   :  { %v836_v45 = vld [vmem:[%s1201_s2 + $0x104] ss:$16 sps:$4 sm:$0xff]   ;;  %v838_v46 = vld [vmem:[%s1201_s2 + $0x10c] ss:$16 sps:$4 sm:$0xff]   ;;  %v840_v47 = vld [vmem:[%s1201_s2 + $0x100] ss:$16 sps:$4 sm:$0xff]  }
   0xe   :  { %37 = vadd.xlane.f32.xlu0 %v36_v26  ;;  %v841_v48 = vld [vmem:[%s1201_s2 + $0x108] ss:$16 sps:$4 sm:$0xff]   ;;  %v842_v49 = vld [vmem:[%s1201_s2 + $0x124] ss:$16 sps:$4 sm:$0xff]   ;;  %v844_v50 = vld [vmem:[%s1201_s2 + $0x12c] ss:$16 sps:$4 sm:$0xff]  }
   0xf   :  { %471 = vmatpush1.bf16.msra.mxu0 %v810_v27  ;;  %512 = vmatpush1.bf16.msra.mxu1 %v811_v28  ;;  %v846_v51 = vld [vmem:[%s1201_s2 + $0x120] ss:$16 sps:$4 sm:$0xff]   ;;  %v847_v52 = vld [vmem:[%s1201_s2 + $0x128] ss:$16 sps:$4 sm:$0xff]   ;;  %v848_v53 = vld [vmem:[%s1201_s2 + $0x144] ss:$16 sps:$4 sm:$0xff]  }
  0x10   :  { %472 = vmatprep.subr.bf16.mxu0 %v812_v29  ;;  %513 = vmatprep.subr.bf16.mxu1 %v814_v30  ;;  %v850_v54 = vld [vmem:[%s1201_s2 + $0x14c] ss:$16 sps:$4 sm:$0xff]   ;;  %v852_v55 = vld [vmem:[%s1201_s2 + $0x140] ss:$16 sps:$4 sm:$0xff]   ;;  %v853_v56 = vld [vmem:[%s1201_s2 + $0x148] ss:$16 sps:$4 sm:$0xff]  }
  0x11   :  { %v854_v57 = vld [vmem:[%s1201_s2 + $0x164] ss:$16 sps:$4 sm:$0xff]   ;;  %v856_v58 = vld [vmem:[%s1201_s2 + $0x16c] ss:$16 sps:$4 sm:$0xff]   ;;  %v858_v59 = vld [vmem:[%s1201_s2 + $0x160] ss:$16 sps:$4 sm:$0xff]  }
  0x12   :  { %v859_v60 = vld [vmem:[%s1201_s2 + $0x168] ss:$16 sps:$4 sm:$0xff]   ;;  %v860_v61 = vld [vmem:[%s1201_s2 + $0x184] ss:$16 sps:$4 sm:$0xff]   ;;  %v862_v62 = vld [vmem:[%s1201_s2 + $0x18c] ss:$16 sps:$4 sm:$0xff]  }
  0x13   :  { %473 = vmatpush1.bf16.msra.mxu0 %v816_v31  ;;  %514 = vmatpush1.bf16.msra.mxu1 %v817_v32  ;;  %v864_v63 = vld [vmem:[%s1201_s2 + $0x180] ss:$16 sps:$4 sm:$0xff]   ;;  %v865_v2 = vld [vmem:[%s1201_s2 + $0x188] ss:$16 sps:$4 sm:$0xff]   ;;  %v866_v3 = vld [vmem:[%s1201_s2 + $0x1a4] ss:$16 sps:$4 sm:$0xff]  }
  0x14   :  { %474 = vmatprep.subr.bf16.mxu0 %v818_v33  ;;  %515 = vmatprep.subr.bf16.mxu1 %v820_v34  ;;  %v868_v5 = vld [vmem:[%s1201_s2 + $0x1ac] ss:$16 sps:$4 sm:$0xff]   ;;  %v870_v6 = vld [vmem:[%s1201_s2 + $0x1a0] ss:$16 sps:$4 sm:$0xff]   ;;  %v871_v7 = vld [vmem:[%s1201_s2 + $0x1a8] ss:$16 sps:$4 sm:$0xff]  }
  0x15   :  { %v872_v8 = vld [vmem:[%s1201_s2 + $0x1c4] ss:$16 sps:$4 sm:$0xff]   ;;  %v874_v9 = vld [vmem:[%s1201_s2 + $0x1cc] ss:$16 sps:$4 sm:$0xff]   ;;  %v876_v10 = vld [vmem:[%s1201_s2 + $0x1c0] ss:$16 sps:$4 sm:$0xff]  }
  0x16   :  { %v877_v11 = vld [vmem:[%s1201_s2 + $0x1c8] ss:$16 sps:$4 sm:$0xff]   ;;  %v878_v13 = vld [vmem:[%s1201_s2 + $0x1e4] ss:$16 sps:$4 sm:$0xff]   ;;  %v880_v14 = vld [vmem:[%s1201_s2 + $0x1ec] ss:$16 sps:$4 sm:$0xff]  }
  0x17   :  { %475 = vmatpush1.bf16.msra.mxu0 %v822_v35  ;;  %516 = vmatpush1.bf16.msra.mxu1 %v823_v36  ;;  %v882_v15 = vld [vmem:[%s1201_s2 + $0x1e0] ss:$16 sps:$4 sm:$0xff]   ;;  %v883_v16 = vld [vmem:[%s1201_s2 + $0x1e8] ss:$16 sps:$4 sm:$0xff]   ;;  %v887_v20 = vmov 269488144  }
  0x18   :  { %476 = vmatprep.subr.bf16.mxu0 %v824_v37  ;;  %517 = vmatprep.subr.bf16.mxu1 %v826_v38  ;;  %v46_v21 = vunpack.c.l.s4 %v887_v20  ;;  %v1130_v25 = vsub.s32 0, %v926_v4  ;;  %v41_v26 = vld [vmem:[%s1202_s1] sm:$0x3]  ;;  %v1136_v28 = vsub.s32 1, %v926_v4  ;;  %s888_s1 = smov 127   ;;  %s889_s2 = smov 1  }
  0x1a   :  { %v47_v22 = vunpack.c.0.s8 %v46_v21  ;;  %v58_v30 = vrot.slane %v41_v26, %v1130_v25  ;;  %v62_v31 = vrot.slane %v41_v26, %v1136_v28 }
  0x1b   :  { %477 = vmatpush1.bf16.msra.mxu0 %v828_v39  ;;  %518 = vmatpush1.bf16.msra.mxu1 %v829_v40 }
  0x1c   :  { %478 = vmatprep.subr.bf16.mxu0 %v830_v41  ;;  %519 = vmatprep.subr.bf16.mxu1 %v832_v42  ;;  %v50_v23 = vsub.s32 %v47_v22, %v926_v4 }
  0x1f   :  { %479 = vmatpush1.bf16.msra.mxu0 %v834_v43  ;;  %520 = vmatpush1.bf16.msra.mxu1 %v835_v44 }
  0x20   :  { %480 = vmatprep.subr.bf16.mxu0 %v836_v45  ;;  %521 = vmatprep.subr.bf16.mxu1 %v838_v46 }
  0x23   :  { %481 = vmatpush1.bf16.msra.mxu0 %v840_v47  ;;  %522 = vmatpush1.bf16.msra.mxu1 %v841_v48  ;;  %v549_v48 = vand.u32 127, %v26_v0  ;;  %v547_v0 = vld [vmem:[%s1204_s4] sm:$0xf] }
  0x24   :  { %482 = vmatprep.subr.bf16.mxu0 %v842_v49  ;;  %523 = vmatprep.subr.bf16.mxu1 %v844_v50  ;;  %v668_v20 = vrot.slane %v547_v0, %v1130_v25 }
  0x25   :  { %v550_v49 = vadd.s32 128, %v549_v48  ;;  %v551_v50 = vadd.s32 256, %v549_v48  ;;  %vm613_vm1 = vcmp.lt.s32.totalorder %v549_v48, 127  ;;  %vm626_vm2 = vcmp.lt.s32.totalorder %v549_v48, 1 }
  0x27   :  { %483 = vmatpush1.bf16.msra.mxu0 %v846_v51  ;;  %524 = vmatpush1.bf16.msra.mxu1 %v847_v52  ;;  %v650_v52 = vsub.s32 2, %v926_v4 }
  0x28   :  { %484 = vmatprep.subr.bf16.mxu0 %v848_v53  ;;  %525 = vmatprep.subr.bf16.mxu1 %v850_v54  ;;  %v546_v53 = vld [vmem:[%s1203_s3] sm:$0xf]  ;;  %v564_v54 = vand.u32 1, %v550_v49 }
  0x2a   :  { %vm1170_vm3 = vcmp.eq.s32.totalorder %v564_v54, 0 }
  0x2b   :  { %485 = vmatpush1.bf16.msra.mxu0 %v852_v55  ;;  %526 = vmatpush1.bf16.msra.mxu1 %v853_v56  ;;  %v571_v55 = vand.u32 1, %v551_v50  ;;  %v552_v56 = vadd.s32 384, %v549_v48 }
  0x2c   :  { %486 = vmatprep.subr.bf16.mxu0 %v854_v57  ;;  %527 = vmatprep.subr.bf16.mxu1 %v856_v58 }
  0x2d   :  { %vm1174_vm4 = vcmp.eq.s32.totalorder %v571_v55, 0 }
  0x2f   :  { %487 = vmatpush1.bf16.msra.mxu0 %v858_v59  ;;  %528 = vmatpush1.bf16.msra.mxu1 %v859_v60  ;;  %v643_v60 = vrot.slane %v546_v53, %v1130_v25 }
  0x30   :  { %488 = vmatprep.subr.bf16.mxu0 %v860_v61  ;;  %529 = vmatprep.subr.bf16.mxu1 %v862_v62  ;;  %v651_v61 = vrot.slane %v546_v53, %v650_v52  ;;  %v654_v62 = vsub.s32 3, %v926_v4 }
  0x32   :  { %v680_v21 = vrot.slane %v547_v0, %v654_v62 }
  0x33   :  { %489 = vmatpush1.bf16.msra.mxu0 %v864_v63  ;;  %530 = vmatpush1.bf16.msra.mxu1 %v865_v2 }
  0x34   :  { %490 = vmatprep.subr.bf16.mxu0 %v866_v3  ;;  %531 = vmatprep.subr.bf16.mxu1 %v868_v5  ;;  %v557_v3 = vand.u32 1, %v549_v48  ;;  %v578_v5 = vand.u32 1, %v552_v56 }
  0x36   :  { %vm601_vm5 = vcmp.eq.s32.totalorder %v557_v3, 0  ;;  %vm604_vm6 = vcmp.eq.s32.totalorder %v578_v5, 0 }
  0x37   :  { %491 = vmatpush1.bf16.msra.mxu0 %v870_v6  ;;  %532 = vmatpush1.bf16.msra.mxu1 %v871_v7 }
  0x38   :  { %492 = vmatprep.subr.bf16.mxu0 %v872_v8  ;;  %533 = vmatprep.subr.bf16.mxu1 %v874_v9  ;;  %v672_v9 = vrot.slane %v547_v0, %v1136_v28 }
  0x3b   :  { %493 = vmatpush1.bf16.msra.mxu0 %v876_v10  ;;  %534 = vmatpush1.bf16.msra.mxu1 %v877_v11  ;;  %v676_v10 = vrot.slane %v547_v0, %v650_v52 }
  0x3c   :  { %494 = vmatprep.subr.bf16.mxu0 %v878_v13  ;;  %535 = vmatprep.subr.bf16.mxu1 %v880_v14 }
  0x3f   :  { %495 = vmatpush1.bf16.msra.mxu0 %v882_v15  ;;  %536 = vmatpush1.bf16.msra.mxu1 %v883_v16  ;;  %v655_v16 = vrot.slane %v546_v53, %v654_v62 }
  0x9b   :  { %v38_v17 = vpop.xlane.xlu0 %37 }
  0x9c   :  { %v40_v18 = vmul.f32 0.00390625, %v38_v17  ;;  %v647_v17 = vrot.slane %v546_v53, %v1136_v28 }
  0x9e   :  { %v42_v19 = vadd.f32 1e-05, %v40_v18 }
  0xa0   :  { %884 = vrsqrt.f32 %v42_v19 }
  0xaa   :  { %v885_v24 = vpop.eup %884 }
  0xab   :  { %v51_v27 = vrot.slane %v885_v24, %v50_v23 }
  0xad   :  { %v53_v29 = vmul.f32 %v51_v27, %v923_v1 }
  0xaf   :  { %v72_v32 = vrot.slane %v53_v29, %v946_v12 }
  0xb1   :  { %v73_v33 = vcombine.high %v72_v32, %v72_v32  ;;  %v76_v34 = vmul.f32 %v72_v32, %v58_v30 }
  0xb3   :  { %v77_v35 = vmul.f32 %v73_v33, %v62_v31  ;;  %v78_v37 = vpack.c.bf16 %v76_v34, %v76_v34 }
  0xb5   :  { %v79_v36 = vpack.c.bf16 %v77_v35, %v77_v35 }
  0xb7   :  { %496 = vmatprep.mubr.bf16.mxu0 %v79_v36  ;;  %537 = vmatprep.mubr.bf16.mxu1 %v79_v36 }
  0xb8   :  { %497 = vmatmul.mubr.bf16.vlgmr.msra.gmra.mrb[0].mxu0 %v78_v37  ;;  %538 = vmatmul.mubr.bf16.vlgmr.msra.gmra.mrb[0].mxu1 %v78_v37 }
 0x18b   :  { %v1142_v38 = vpop.f32.mrb[0].mxu0  ;;  %v1144_v39 = vpop.f32.mrb[0].mxu1 }
 0x18c   :  { %609 = vrot.lane.b32.xlu1 %v1144_v39, %s888_s1  ;;  %v1147_v1 = vpop.f32.mrb[1].mxu1  ;;  %605 = vrot.lane.b32.xlu0 %v1142_v38, %s888_s1  ;;  %v1150_v40 = vpop.f32.mrb[1].mxu0  ;;  %v660_v30 = vmul.f32 %v643_v60, %v1142_v38  ;;  %v662_v31 = vmul.f32 %v651_v61, %v1144_v39 }
 0x18d   :  { %v502_v41 = vpop.f32.mrb[2].mxu0  ;;  %v543_v42 = vpop.f32.mrb[2].mxu1  ;;  %v663_v34 = vmul.f32 %v655_v16, %v1147_v1  ;;  %v661_v25 = vmul.f32 %v647_v17, %v1150_v40 }
 0x18e   :  { %v503_v43 = vpop.f32.mrb[3].mxu0  ;;  %v544_v44 = vpop.f32.mrb[3].mxu1 }
 0x190   :  { %618 = vrot.lane.b32.xlu1 %v1142_v38, %s889_s2 }
 0x194   :  { %622 = vrot.lane.b32.xlu1 %v1144_v39, %s889_s2 }
 0x198   :  { %607 = vrot.lane.b32.xlu1 %v1150_v40, %s888_s1 }
 0x19c   :  { %611 = vrot.lane.b32.xlu1 %v1147_v1, %s888_s1 }
 0x1a0   :  { %620 = vrot.lane.b32.xlu1 %v1150_v40, %s889_s2 }
 0x1a4   :  { %624 = vrot.lane.b32.xlu1 %v1147_v1, %s889_s2 }
 0x1fe   :  { %v610_v45 = vpop.permute.xlu1 %609  ;;  %v606_v6 = vpop.permute.xlu0 %605 }
 0x202   :  { %v619_v46 = vpop.permute.xlu1 %618 }
 0x206   :  { %v623_v47 = vpop.permute.xlu1 %622 }
 0x20a   :  { %v608_v51 = vpop.permute.xlu1 %607 }
 0x20b   :  { %v615_v58 = vsel %vm613_vm1, %v608_v51, %v610_v45  ;;  %v616_v4 = vsel %vm613_vm1, %v606_v6, %v608_v51 }
 0x20c   :  { %v632_v7 = vsub.f32 0.0, %v615_v58  ;;  %v631_v22 = vsub.f32 0.0, %v616_v4 }
 0x20e   :  { %v612_v57 = vpop.permute.xlu1 %611 }
 0x20f   :  { %v614_v59 = vsel %vm613_vm1, %v610_v45, %v612_v57  ;;  %v617_v13 = vsel %vm613_vm1, %v612_v57, %v606_v6 }
 0x210   :  { %v633_v8 = vsub.f32 0.0, %v614_v59  ;;  %v634_v23 = vsub.f32 0.0, %v617_v13 }
 0x212   :  { %v621_v11 = vpop.permute.xlu1 %620 }
 0x213   :  { %v628_v14 = vsel %vm626_vm2, %v621_v11, %v623_v47  ;;  %v629_v15 = vsel %vm626_vm2, %v619_v46, %v621_v11 }
 0x214   :  { %v636_v18 = vsel %vm1170_vm3, %v632_v7, %v629_v15  ;;  %v637_v19 = vsel %vm1174_vm4, %v633_v8, %v628_v14 }
 0x215   :  { %v686_v26 = vmul.f32 %v672_v9, %v636_v18  ;;  %v687_v27 = vmul.f32 %v676_v10, %v637_v19 }
 0x216   :  { %v625_v24 = vpop.permute.xlu1 %624 }
 0x217   :  { %v627_v29 = vsel %vm626_vm2, %v623_v47, %v625_v24  ;;  %v630_v28 = vsel %vm626_vm2, %v625_v24, %v619_v46  ;;  %v690_v37 = vadd.f32 %v686_v26, %v661_v25  ;;  %v691_v41 = vadd.f32 %v687_v27, %v662_v31 }
 0x218   :  { %v635_v32 = vsel %vm601_vm5, %v631_v22, %v630_v28  ;;  %v638_v33 = vsel %vm604_vm6, %v634_v23, %v627_v29 }
 0x219   :  { %v685_v35 = vmul.f32 %v668_v20, %v635_v32  ;;  %v688_v36 = vmul.f32 %v680_v21, %v638_v33 }
 0x21b   :  { %v689_v42 = vadd.f32 %v685_v35, %v660_v30  ;;  %v692_v43 = vadd.f32 %v688_v36, %v663_v34 }
 0x21d   :  { %v697_v44 = vcombine.low %v689_v42, %v690_v37  ;;  %v698_v45 = vcombine.low %v691_v41, %v692_v43 }
 0x21f   :  { %v705_v46 = vrot.slane %v697_v44, %v946_v12  ;;  %v712_v38 = vrot.slane %v698_v45, %v946_v12 }
 0x221   :  { %v713_v47 = vcombine.low %v705_v46, %v712_v38 }
 0x223   :  { %715 = vst [vmem:[%s1205_s5] sm:$0xff] %v713_v47 }

// kernel: transformer_forward.16
= control target key start
LH: loop header
LB: loop body
LE: loop exit
PB: predicated region body
PF: predicated region fallthrough
CT: control target
= control target key end

     0   :  { %10 = vsyncpa [#allocation4], 0  ;;  %s2921_s0 = inlined_call_operand.vmem [shape: bf16[2,256], index: 0, kind: input, shape index: {}]   ;;  %s2922_s1 = inlined_call_operand.vmem [shape: f32[2,256], index: 1, kind: input, shape index: {}]   ;;  %s2923_s2 = inlined_call_operand.vmem [shape: bf16[256,768], index: 2, kind: input, shape index: {}]   ;;  %s2924_s3 = inlined_call_operand.hbm [shape: bf16[256,768], index: 3, kind: input, shape index: {}]   ;;  %s2925_s4 = inlined_call_operand.hbm [shape: bf16[768,256], index: 4, kind: input, shape index: {}]   ;;  %s2926_s5 = inlined_call_operand.vmem [shape: f32[2,256], index: 5, kind: output, shape index: {}]  }
   0x1   :  { %12 = vsyncpa [#allocation4 + $0x1], 0 }
   0x2   :  { %13 = vsyncpa [#allocation6], 0 }
   0x3   :  { %15 = vsyncpa [#allocation6 + $0x1], 0  ;;  %s2451_s18 = smov 0   ;;  %s2453_s19 = smov 0  }
   0x4   :  { %s2455_s20 = smov 0   ;;  %s2457_s21 = smov 0  }
   0x5 LB: > { %s1779_s22 = sadd.s32 4294967295, %s2409_s21   ;;  %s2471_s23 = sadd.s32 1, %s2409_s21   ;;  %s2409_s21 = sphi %s2457_s21, %s2932_s21   ;;  %s2405_s20 = sphi %s2455_s20, %s2931_s20   ;;  %s2401_s19 = sphi %s2453_s19, %s2930_s19   ;;  %s2397_s18 = sphi %s2451_s18, %s2929_s18  }
   0x6   : > { %s67_s24 = ssub.s32 %s2409_s21, %s2471_s23  ;;  %s70_s25 = sadd.s32 1, %s2405_s20 }
   0x7   : > { %p68_p0 = scmp.eq.s32.totalorder %s67_s24, 0  ;;  %p77_p1 = scmp.ne.s32.totalorder %s2405_s20, %s2401_s19 }
   0x8   : > { %p78_p2 = scmp.eq.s32.totalorder %s2409_s21, 0  ;;  %p109_p3 = scmp.ne.s32.totalorder %s2401_s19, %s2397_s18 }
   0x9   : > { %s2481_s26 = scalar_select %p68_p0, %s2405_s20, %s70_s25  }
   0xa   : > { %p2483_p4 = por %p78_p2, %p77_p1  ;;  %p110_p5 = scmp.eq.s32.totalorder %s1779_s22, 0 }
   0xb   : > { %p1781_p7 = scmp.ge.s32.totalorder %s2409_s21, 2 }
   0xc   : > { %p2489_p6 = por %p110_p5, %p109_p3 }
   0xd   : > { %182 = sbr.rel (%p1781_p7) target bundleno = 114 (0x72), region = 24 }
  0x14   : > { %185 = sbr.rel (!%p2483_p4) target bundleno = 62 (0x3e), region = 28  ;;  %s187_s29 = sand.u32 (%p2483_p4), 1, %s2405_s20  }
  0x15   : > { %s2002_s30 = smul.u32 (%p2483_p4), 12, %s2409_s21 }
  0x16   : > { %s2055_s6 = smul.u32 (%p2483_p4), 384, %s187_s29 }
  0x17   : > { %s2501_s9 = scalar_lea.vmem (%p2483_p4), %s2923_s2, %s2002_s30 }
  0x18   : > { %v207_v0 = vld [vmem:[%s2501_s9] sm:$0xff] (%p2483_p4)  ;;  %v209_v1 = vld [vmem:[%s2501_s9 + $0x18] sm:$0xff] (%p2483_p4)  ;;  %v211_v2 = vld [vmem:[%s2501_s9 + $0x30] sm:$0xff] (%p2483_p4)  ;;  %s2506_s10 = scalar_lea.vmem (%p2483_p4), [#allocation2], %s2055_s6 }
  0x19   : > { %208 = vst [vmem:[%s2506_s10] sm:$0xff] (%p2483_p4), %v207_v0  ;;  %210 = vst [vmem:[%s2506_s10 + $0xc] sm:$0xff] (%p2483_p4), %v209_v1  ;;  %v213_v3 = vld [vmem:[%s2501_s9 + $0x48] sm:$0xff] (%p2483_p4)  ;;  %v215_v4 = vld [vmem:[%s2501_s9 + $0x60] sm:$0xff] (%p2483_p4) }
  0x1a   : > { %212 = vst [vmem:[%s2506_s10 + $0x18] sm:$0xff] (%p2483_p4), %v211_v2  ;;  %v217_v5 = vld [vmem:[%s2501_s9 + $0x78] sm:$0xff] (%p2483_p4)  ;;  %214 = vst [vmem:[%s2506_s10 + $0x24] sm:$0xff] (%p2483_p4), %v213_v3  ;;  %v219_v6 = vld [vmem:[%s2501_s9 + $0x90] sm:$0xff] (%p2483_p4) }
  0x1b   : > { %216 = vst [vmem:[%s2506_s10 + $0x30] sm:$0xff] %v215_v4  ;;  %218 = vst [vmem:[%s2506_s10 + $0x3c] sm:$0xff] %v217_v5  ;;  %v221_v7 = vld [vmem:[%s2501_s9 + $0xa8] sm:$0xff]  ;;  %v223_v8 = vld [vmem:[%s2501_s9 + $0xc0] sm:$0xff] }
  0x1c   : > { %220 = vst [vmem:[%s2506_s10 + $0x48] sm:$0xff] %v219_v6  ;;  %222 = vst [vmem:[%s2506_s10 + $0x54] sm:$0xff] %v221_v7  ;;  %v225_v9 = vld [vmem:[%s2501_s9 + $0xd8] sm:$0xff]  ;;  %v227_v10 = vld [vmem:[%s2501_s9 + $0xf0] sm:$0xff] }
  0x1d   : > { %224 = vst [vmem:[%s2506_s10 + $0x60] sm:$0xff] %v223_v8  ;;  %v229_v11 = vld [vmem:[%s2501_s9 + $0x108] sm:$0xff]  ;;  %226 = vst [vmem:[%s2506_s10 + $0x6c] sm:$0xff] %v225_v9  ;;  %v231_v12 = vld [vmem:[%s2501_s9 + $0x120] sm:$0xff] }
  0x1e   : > { %228 = vst [vmem:[%s2506_s10 + $0x78] sm:$0xff] %v227_v10  ;;  %230 = vst [vmem:[%s2506_s10 + $0x84] sm:$0xff] %v229_v11  ;;  %v233_v13 = vld [vmem:[%s2501_s9 + $0x138] sm:$0xff]  ;;  %v235_v14 = vld [vmem:[%s2501_s9 + $0x150] sm:$0xff] }
  0x1f   : > { %232 = vst [vmem:[%s2506_s10 + $0x90] sm:$0xff] %v231_v12  ;;  %234 = vst [vmem:[%s2506_s10 + $0x9c] sm:$0xff] %v233_v13  ;;  %v237_v15 = vld [vmem:[%s2501_s9 + $0x168] sm:$0xff]  ;;  %v239_v16 = vld [vmem:[%s2501_s9 + $0x180] sm:$0xff] }
  0x20   : > { %236 = vst [vmem:[%s2506_s10 + $0xa8] sm:$0xff] %v235_v14  ;;  %v241_v17 = vld [vmem:[%s2501_s9 + $0x198] sm:$0xff]  ;;  %238 = vst [vmem:[%s2506_s10 + $0xb4] sm:$0xff] %v237_v15  ;;  %v243_v18 = vld [vmem:[%s2501_s9 + $0x1b0] sm:$0xff] }
  0x21   : > { %240 = vst [vmem:[%s2506_s10 + $0xc0] sm:$0xff] %v239_v16  ;;  %242 = vst [vmem:[%s2506_s10 + $0xcc] sm:$0xff] %v241_v17  ;;  %v245_v19 = vld [vmem:[%s2501_s9 + $0x1c8] sm:$0xff]  ;;  %v247_v20 = vld [vmem:[%s2501_s9 + $0x1e0] sm:$0xff] }
  0x22   : > { %244 = vst [vmem:[%s2506_s10 + $0xd8] sm:$0xff] %v243_v18  ;;  %246 = vst [vmem:[%s2506_s10 + $0xe4] sm:$0xff] %v245_v19  ;;  %v249_v21 = vld [vmem:[%s2501_s9 + $0x1f8] sm:$0xff]  ;;  %v251_v22 = vld [vmem:[%s2501_s9 + $0x210] sm:$0xff] }
  0x23   : > { %248 = vst [vmem:[%s2506_s10 + $0xf0] sm:$0xff] %v247_v20  ;;  %v253_v23 = vld [vmem:[%s2501_s9 + $0x228] sm:$0xff]  ;;  %250 = vst [vmem:[%s2506_s10 + $0xfc] sm:$0xff] %v249_v21  ;;  %v255_v24 = vld [vmem:[%s2501_s9 + $0x240] sm:$0xff] }
  0x24   : > { %252 = vst [vmem:[%s2506_s10 + $0x108] sm:$0xff] %v251_v22  ;;  %254 = vst [vmem:[%s2506_s10 + $0x114] sm:$0xff] %v253_v23  ;;  %v257_v25 = vld [vmem:[%s2501_s9 + $0x258] sm:$0xff]  ;;  %v259_v26 = vld [vmem:[%s2501_s9 + $0x270] sm:$0xff] }
  0x25   : > { %256 = vst [vmem:[%s2506_s10 + $0x120] sm:$0xff] %v255_v24  ;;  %258 = vst [vmem:[%s2506_s10 + $0x12c] sm:$0xff] %v257_v25  ;;  %v261_v27 = vld [vmem:[%s2501_s9 + $0x288] sm:$0xff]  ;;  %v263_v28 = vld [vmem:[%s2501_s9 + $0x2a0] sm:$0xff] }
  0x26   : > { %260 = vst [vmem:[%s2506_s10 + $0x138] sm:$0xff] %v259_v26  ;;  %v265_v29 = vld [vmem:[%s2501_s9 + $0x2b8] sm:$0xff]  ;;  %262 = vst [vmem:[%s2506_s10 + $0x144] sm:$0xff] %v261_v27  ;;  %v267_v30 = vld [vmem:[%s2501_s9 + $0x2d0] sm:$0xff] }
  0x27   : > { %264 = vst [vmem:[%s2506_s10 + $0x150] sm:$0xff] %v263_v28  ;;  %266 = vst [vmem:[%s2506_s10 + $0x15c] sm:$0xff] %v265_v29  ;;  %v269_v31 = vld [vmem:[%s2501_s9 + $0x2e8] sm:$0xff]  ;;  %v1785_v33 = vld [vmem:[%s2501_s9 + $0x20] sm:$0xf] }
  0x28   : > { %v1783_v32 = vld [vmem:[%s2501_s9 + $0x8] sm:$0xf]  ;;  %268 = vst [vmem:[%s2506_s10 + $0x168] sm:$0xff] %v267_v30  ;;  %270 = vst [vmem:[%s2506_s10 + $0x174] sm:$0xff] %v269_v31  ;;  %v1787_v34 = vld [vmem:[%s2501_s9 + $0x38] sm:$0xf] }
  0x29   : > { %1784 = vst [vmem:[%s2506_s10 + $0x8] sm:$0xf] %v1783_v32  ;;  %v1789_v35 = vld [vmem:[%s2501_s9 + $0x50] sm:$0xf]  ;;  %1786 = vst [vmem:[%s2506_s10 + $0x14] sm:$0xf] %v1785_v33 }
  0x2a   : > { %1788 = vst [vmem:[%s2506_s10 + $0x20] sm:$0xf] %v1787_v34  ;;  %1790 = vst [vmem:[%s2506_s10 + $0x2c] sm:$0xf] %v1789_v35  ;;  %v1791_v36 = vld [vmem:[%s2501_s9 + $0x68] sm:$0xf] }
  0x2b   : > { %v1793_v37 = vld [vmem:[%s2501_s9 + $0x80] sm:$0xf]  ;;  %v1795_v38 = vld [vmem:[%s2501_s9 + $0x98] sm:$0xf]  ;;  %1792 = vst [vmem:[%s2506_s10 + $0x38] sm:$0xf] %v1791_v36 }
  0x2c   : > { %1794 = vst [vmem:[%s2506_s10 + $0x44] sm:$0xf] %v1793_v37  ;;  %1796 = vst [vmem:[%s2506_s10 + $0x50] sm:$0xf] %v1795_v38  ;;  %v1797_v39 = vld [vmem:[%s2501_s9 + $0xb0] sm:$0xf] }
  0x2d   : > { %v1799_v40 = vld [vmem:[%s2501_s9 + $0xc8] sm:$0xf]  ;;  %v1801_v41 = vld [vmem:[%s2501_s9 + $0xe0] sm:$0xf]  ;;  %1798 = vst [vmem:[%s2506_s10 + $0x5c] sm:$0xf] %v1797_v39 }
  0x2e   : > { %1800 = vst [vmem:[%s2506_s10 + $0x68] sm:$0xf] %v1799_v40  ;;  %1802 = vst [vmem:[%s2506_s10 + $0x74] sm:$0xf] %v1801_v41  ;;  %v1803_v42 = vld [vmem:[%s2501_s9 + $0xf8] sm:$0xf] }
  0x2f   : > { %v1805_v43 = vld [vmem:[%s2501_s9 + $0x110] sm:$0xf]  ;;  %v1807_v44 = vld [vmem:[%s2501_s9 + $0x128] sm:$0xf]  ;;  %1804 = vst [vmem:[%s2506_s10 + $0x80] sm:$0xf] %v1803_v42 }
  0x30   : > { %1806 = vst [vmem:[%s2506_s10 + $0x8c] sm:$0xf] %v1805_v43  ;;  %1808 = vst [vmem:[%s2506_s10 + $0x98] sm:$0xf] %v1807_v44  ;;  %v1809_v45 = vld [vmem:[%s2501_s9 + $0x140] sm:$0xf] }
  0x31   : > { %v1811_v46 = vld [vmem:[%s2501_s9 + $0x158] sm:$0xf]  ;;  %v1813_v47 = vld [vmem:[%s2501_s9 + $0x170] sm:$0xf]  ;;  %1810 = vst [vmem:[%s2506_s10 + $0xa4] sm:$0xf] %v1809_v45 }
  0x32   : > { %1812 = vst [vmem:[%s2506_s10 + $0xb0] sm:$0xf] %v1811_v46  ;;  %1814 = vst [vmem:[%s2506_s10 + $0xbc] sm:$0xf] %v1813_v47  ;;  %v1815_v48 = vld [vmem:[%s2501_s9 + $0x188] sm:$0xf] }
  0x33   : > { %v1817_v49 = vld [vmem:[%s2501_s9 + $0x1a0] sm:$0xf]  ;;  %v1819_v50 = vld [vmem:[%s2501_s9 + $0x1b8] sm:$0xf]  ;;  %1816 = vst [vmem:[%s2506_s10 + $0xc8] sm:$0xf] %v1815_v48 }
  0x34   : > { %1818 = vst [vmem:[%s2506_s10 + $0xd4] sm:$0xf] %v1817_v49  ;;  %1820 = vst [vmem:[%s2506_s10 + $0xe0] sm:$0xf] %v1819_v50  ;;  %v1821_v51 = vld [vmem:[%s2501_s9 + $0x1d0] sm:$0xf] }
  0x35   : > { %v1823_v52 = vld [vmem:[%s2501_s9 + $0x1e8] sm:$0xf]  ;;  %v1825_v53 = vld [vmem:[%s2501_s9 + $0x200] sm:$0xf]  ;;  %1822 = vst [vmem:[%s2506_s10 + $0xec] sm:$0xf] %v1821_v51 }
  0x36   : > { %1824 = vst [vmem:[%s2506_s10 + $0xf8] sm:$0xf] %v1823_v52  ;;  %1826 = vst [vmem:[%s2506_s10 + $0x104] sm:$0xf] %v1825_v53  ;;  %v1827_v54 = vld [vmem:[%s2501_s9 + $0x218] sm:$0xf] }
  0x37   : > { %v1829_v55 = vld [vmem:[%s2501_s9 + $0x230] sm:$0xf]  ;;  %v1831_v56 = vld [vmem:[%s2501_s9 + $0x248] sm:$0xf]  ;;  %1828 = vst [vmem:[%s2506_s10 + $0x110] sm:$0xf] %v1827_v54 }
  0x38   : > { %1830 = vst [vmem:[%s2506_s10 + $0x11c] sm:$0xf] %v1829_v55  ;;  %1832 = vst [vmem:[%s2506_s10 + $0x128] sm:$0xf] %v1831_v56  ;;  %v1833_v57 = vld [vmem:[%s2501_s9 + $0x260] sm:$0xf] }
  0x39   : > { %v1835_v58 = vld [vmem:[%s2501_s9 + $0x278] sm:$0xf]  ;;  %v1837_v59 = vld [vmem:[%s2501_s9 + $0x290] sm:$0xf]  ;;  %1834 = vst [vmem:[%s2506_s10 + $0x134] sm:$0xf] %v1833_v57 }
  0x3a   : > { %1836 = vst [vmem:[%s2506_s10 + $0x140] sm:$0xf] %v1835_v58  ;;  %1838 = vst [vmem:[%s2506_s10 + $0x14c] sm:$0xf] %v1837_v59  ;;  %v1839_v60 = vld [vmem:[%s2501_s9 + $0x2a8] sm:$0xf] }
  0x3b   : > { %v1841_v61 = vld [vmem:[%s2501_s9 + $0x2c0] sm:$0xf]  ;;  %v1843_v62 = vld [vmem:[%s2501_s9 + $0x2d8] sm:$0xf]  ;;  %1840 = vst [vmem:[%s2506_s10 + $0x158] sm:$0xf] %v1839_v60 }
  0x3c   : > { %1842 = vst [vmem:[%s2506_s10 + $0x164] sm:$0xf] %v1841_v61  ;;  %1844 = vst [vmem:[%s2506_s10 + $0x170] sm:$0xf] %v1843_v62  ;;  %v1845_v63 = vld [vmem:[%s2501_s9 + $0x2f0] sm:$0xf] }
  0x3d   : > { %1846 = vst [vmem:[%s2506_s10 + $0x17c] sm:$0xf] %v1845_v63 }
  0x3e PF: > { %s2634_s11 = sand.u32 1, %s2405_s20   ;;  %s2003_s12 = smul.u32 192, %s2409_s21 }
  0x3f   : > { %s2056_s13 = smul.u32 384, %s2634_s11  ;;  %s349_s24 = scalar_lea.sflag [#allocation4], %s2634_s11 }
  0x40   : > { %s2641_s16 = scalar_lea.hbm %s2924_s3, %s2003_s12  ;;  %s2319_s6 = scalar_lea.hbm %s2924_s3, 12288 }
  0x41   : > { %s352_s17 = scalar_lea.vmem [#allocation3], %s2056_s13  ;;  %s2315_s25 = scalar_lea.hbm %s2641_s16, 6144 }
  0x42   : > { %s359_s18 = sshll.u32 %s352_s17, 4  ;;  %p2316_p8 = scmp.ne.s32.totalorder %s2641_s16, %s2315_s25  ;;  %s2645_s18 = int_to_ptr.vmem [resolvable:$true] %s359_s18 }
  0x43   : > { %p2320_p11 = scmp.lt.u32.totalorder %s2641_s16, %s2924_s3  ;;  %p2321_p12 = scmp.lt.u32.totalorder %s2319_s6, %s2315_s25 }
  0x44   : > { %p2317_p9 = pnand %p2316_p8, %p2483_p4  ;;  %p2323_p0 = scmp.lt.u32.totalorder %s2315_s25, %s2641_s16 }
  0x45   : > { %p2322_p13 = por %p2321_p12, %p2320_p11 }
  0x46   : > { %p2318_p10 = pneg %p2317_p9 }
  0x47   : > { %p2324_p1 = por %p2323_p0, %p2322_p13 }
  0x49   : > { %p2325_p2 = pnand %p2324_p1, %p2318_p10 }
  0x4b   : > { %2328 = shalt.err (!%p2325_p2)
}
  0x4c   : > { %s2329_s9 = scalar_lea.vmem %s2645_s18, 6144  ;;  %s2411_s10 = smov [#allocation3]  }
  0x4d   : > { %p2330_p3 = scmp.ne.s32.totalorder %s2645_s18, %s2329_s9  ;;  %s2333_s12 = sshll.u32 %s2411_s10, 4  ;;  %s2334_s12 = int_to_ptr.vmem [resolvable:$false] %s2333_s12 }
  0x4e   : > { %s2335_s14 = scalar_lea.vmem %s2334_s12, 12288  ;;  %p2336_p8 = scmp.lt.s32.totalorder %s2645_s18, %s2334_s12 }
  0x4f   : > { %p2331_p5 = pnand %p2330_p3, %p2483_p4  ;;  %p2337_p9 = scmp.lt.s32.totalorder %s2335_s14, %s2329_s9 }
  0x51   : > { %p2332_p7 = pneg %p2331_p5  ;;  %p2338_p11 = por %p2337_p9, %p2336_p8 }
  0x53   : > { %p2339_p12 = pnand %p2338_p11, %p2332_p7 }
  0x55   : > { %2342 = shalt.err (!%p2339_p12)
}
  0x56   : > { %s2412_s15 = smov 384   ;;  %s2413_s17 = smov 192  }
  0x57   : > { %s2414_s25 = smov 12   ;;  %s2006_s29 = smul.u32 6144, %s2409_s21 }
  0x58   : > { %2059 = dma.hbm_to_vmem [thread:$0]  (%p2483_p4), %s2641_s16, 6144, %s2645_s18, %s349_s24, %s2412_s15, %s2413_s17, %s2414_s25  }
  0x59   : > { %s373_s30 = scalar_lea.vmem [#allocation5], %s2056_s13  ;;  %s2677_s9 = scalar_lea.hbm %s2925_s4, %s2006_s29 }
  0x5a   : > { %s381_s6 = sshll.u32 %s373_s30, 4  ;;  %s370_s10 = scalar_lea.sflag [#allocation6], %s2634_s11  ;;  %s2679_s6 = int_to_ptr.vmem [resolvable:$true] %s381_s6 }
  0x5b   : > { %s2343_s12 = scalar_lea.hbm %s2677_s9, 6144  ;;  %s2347_s18 = scalar_lea.hbm %s2925_s4, 12288 }
  0x5c   : > { %p2344_p10 = scmp.ne.s32.totalorder %s2677_s9, %s2343_s12  ;;  %p2348_p1 = scmp.lt.u32.totalorder %s2677_s9, %s2925_s4 }
  0x5d   : > { %p2349_p2 = scmp.lt.u32.totalorder %s2347_s18, %s2343_s12  ;;  %p2351_p5 = scmp.lt.u32.totalorder %s2343_s12, %s2677_s9 }
  0x5e   : > { %p2345_p13 = pnand %p2344_p10, %p2483_p4 }
  0x5f   : > { %p2350_p3 = por %p2349_p2, %p2348_p1 }
  0x60   : > { %p2346_p0 = pneg %p2345_p13 }
  0x61   : > { %p2352_p7 = por %p2351_p5, %p2350_p3 }
  0x63   : > { %p2353_p8 = pnand %p2352_p7, %p2346_p0 }
  0x65   : > { %2356 = shalt.err (!%p2353_p8)
}
  0x66   : > { %s2357_s15 = scalar_lea.vmem %s2679_s6, 6144  ;;  %s2415_s17 = smov [#allocation5]  }
  0x67   : > { %p2358_p9 = scmp.ne.s32.totalorder %s2679_s6, %s2357_s15  ;;  %s2361_s25 = sshll.u32 %s2415_s17, 4  ;;  %s2362_s25 = int_to_ptr.vmem [resolvable:$false] %s2361_s25 }
  0x68   : > { %s2363_s29 = scalar_lea.vmem %s2362_s25, 12288  ;;  %p2364_p10 = scmp.lt.s32.totalorder %s2679_s6, %s2362_s25 }
  0x69   : > { %p2359_p11 = pnand %p2358_p9, %p2483_p4  ;;  %p2365_p13 = scmp.lt.s32.totalorder %s2363_s29, %s2357_s15 }
  0x6b   : > { %p2360_p12 = pneg %p2359_p11  ;;  %p2366_p1 = por %p2365_p13, %p2364_p10 }
  0x6d   : > { %p2367_p2 = pnand %p2366_p1, %p2360_p12 }
  0x6f   : > { %2370 = shalt.err (!%p2367_p2)
}
  0x70   : > { %s2416_s30 = smov 128   ;;  %s2417_s7 = smov 8  }
  0x71   : > { %2060 = dma.hbm_to_vmem [thread:$0]  (%p2483_p4), %s2677_s9, 6144, %s2679_s6, %s370_s10, %s2416_s30, %s2416_s30, %s2417_s7  }
  0x72 PF: > { %p1850_p0 = scmp.ge.s32.totalorder %s2409_s21, 1  ;;  %p389_p3 = scmp.lt.s32.totalorder %s2409_s21, 3 }
  0x74   : > { %p390_p5 = pnand %p1850_p0, %p389_p3 }
  0x75   : > { %s396_s8 = sand.u32 (!%p390_p5), 1, %s2401_s19  }
  0x76   : > { %393 = sbr.rel (%p390_p5) target bundleno = 768 (0x300), region = 62  ;;  %s403_s13 = scalar_lea.sflag (!%p390_p5), [#allocation4], %s396_s8 }
  0x77   : > { %s2058_s12 = smul.u32 (!%p390_p5), 384, %s396_s8 }
  0x79   : > { %s2708_s16 = scalar_lea.vmem (!%p390_p5), [#allocation2], %s2058_s12  ;;  %s2710_s18 = scalar_lea.vmem (!%p390_p5), [#allocation3], %s2058_s12 }
  0x7d   : > { %2388 = dma.done.wait (%p2489_p6), %s403_s13, 6144  }
  0x7e   : > { %2390 = vsyncadd (%p2489_p6), %s403_s13, 4294961152  ;;  %s412_s27 = scalar_lea.sflag [#allocation6], %s396_s8  ;;  %s2716_s11 = scalar_lea.vmem [#allocation5], %s2058_s12 }
  0x7f   : > { %2392 = dma.done.wait (%p2489_p6), %s412_s27, 6144  }
  0x80   : > { %2394 = vsyncadd (%p2489_p6), %s412_s27, 4294961152  ;;  %p1851_p4 = scmp.ne.s32.totalorder %s1779_s22, 0 }
  0x81   : > { %v454_v0 = vld [vmem:[%s2922_s1] sm:$0xf] (!%p1851_p4) }
  0x82   : > { %453 = sbr.rel (%p1851_p4) target bundleno = 137 (0x89), region = 78  ;;  %455 = vst [vmem:[%s2926_s5] sm:$0xf] (!%p1851_p4), %v454_v0 }
  0x89 PF: > { %v2103_v1 = vld [vmem:[%s2708_s16 + $0x4] ss:$12 sps:$4 sm:$0xff]   ;;  %v2105_v2 = vld [vmem:[%s2708_s16] ss:$12 sps:$4 sm:$0xff]   ;;  %v2106_v3 = vld [vmem:[%s2708_s16 + $0x1c] ss:$12 sps:$4 sm:$0xff]   ;;  %v533_v12 = vlaneseq }
  0x8a   : > { %802 = vmatprep.subr.bf16.mxu1 %v2103_v1  ;;  %v2108_v4 = vld [vmem:[%s2708_s16 + $0x18] ss:$12 sps:$4 sm:$0xff]   ;;  %v2109_v5 = vld [vmem:[%s2708_s16 + $0x34] ss:$12 sps:$4 sm:$0xff]   ;;  %v2111_v6 = vld [vmem:[%s2708_s16 + $0x30] ss:$12 sps:$4 sm:$0xff]  }
  0x8b   : > { %803 = vmatpush1.bf16.msra.mxu1 %v2105_v2  ;;  %v2112_v7 = vld [vmem:[%s2708_s16 + $0x4c] ss:$12 sps:$4 sm:$0xff]   ;;  %v2114_v8 = vld [vmem:[%s2708_s16 + $0x48] ss:$12 sps:$4 sm:$0xff]   ;;  %v2115_v9 = vld [vmem:[%s2708_s16 + $0x64] ss:$12 sps:$4 sm:$0xff]  }
  0x8c   : > { %804 = vmatprep.subr.bf16.mxu1 %v2106_v3  ;;  %v2418_v10 = vmov 1966171168   ;;  %v2117_v13 = vld [vmem:[%s2708_s16 + $0x60] ss:$12 sps:$4 sm:$0xff]   ;;  %v2118_v14 = vld [vmem:[%s2708_s16 + $0x7c] ss:$12 sps:$4 sm:$0xff]  }
  0x8d   : > { %v531_v11 = vunpack.c.l.s4 %v2418_v10  ;;  %v2741_v16 = vshrl.u32 %v533_v12, 7  ;;  %v2120_v17 = vld [vmem:[%s2708_s16 + $0x78] ss:$12 sps:$4 sm:$0xff]   ;;  %v2121_v18 = vld [vmem:[%s2708_s16 + $0x94] ss:$12 sps:$4 sm:$0xff]  }
  0x8e   : > { %v2751_v20 = vld.sshfl [vmem:[%s2921_s0] sm:$0x11 pattern:$0x75316420]  ;;  %v2123_v22 = vld [vmem:[%s2708_s16 + $0x90] ss:$12 sps:$4 sm:$0xff]  }
  0x8f   : > { %805 = vmatpush1.bf16.msra.mxu1 %v2108_v4  ;;  %v532_v15 = vunpack.c.0.s8 %v531_v11  ;;  %v529_v21 = vcombine.high %v2751_v20, %v2751_v20  ;;  %v2124_v23 = vld [vmem:[%s2708_s16 + $0xac] ss:$12 sps:$4 sm:$0xff]   ;;  %v2126_v25 = vld [vmem:[%s2708_s16 + $0xa8] ss:$12 sps:$4 sm:$0xff]   ;;  %v2127_v26 = vld [vmem:[%s2708_s16 + $0xc4] ss:$12 sps:$4 sm:$0xff]  }
  0x90   : > { %806 = vmatprep.subr.bf16.mxu1 %v2109_v5  ;;  %v2129_v27 = vld [vmem:[%s2708_s16 + $0xc0] ss:$12 sps:$4 sm:$0xff]   ;;  %v2130_v28 = vld [vmem:[%s2708_s16 + $0xdc] ss:$12 sps:$4 sm:$0xff]   ;;  %v2132_v29 = vld [vmem:[%s2708_s16 + $0xd8] ss:$12 sps:$4 sm:$0xff]  }
  0x91   : > { %v2746_v19 = vsub.s32 %v532_v15, %v2741_v16  ;;  %v2133_v30 = vld [vmem:[%s2708_s16 + $0xf4] ss:$12 sps:$4 sm:$0xff]   ;;  %v2135_v32 = vld [vmem:[%s2708_s16 + $0xf0] ss:$12 sps:$4 sm:$0xff]   ;;  %v2136_v34 = vld [vmem:[%s2708_s16 + $0x10c] ss:$12 sps:$4 sm:$0xff]  }
  0x92   : > { %v2166_v31 = vld [vmem:[%s2710_s18 + $0xc8] ss:$12 sps:$4 sm:$0xff]   ;;  %v2172_v36 = vld [vmem:[%s2710_s18 + $0xe0] ss:$12 sps:$4 sm:$0xff]   ;;  %v2139_v38 = vld [vmem:[%s2708_s16 + $0x124] ss:$12 sps:$4 sm:$0xff]  }
  0x93   : > { %807 = vmatpush1.bf16.msra.mxu1 %v2111_v6  ;;  %v2758_v24 = vrot.slane %v529_v21, %v2746_v19  ;;  %2029 = vmatprep.subr.bf16.mxu0 %v2166_v31  ;;  %v2168_v33 = vld [vmem:[%s2710_s18 + $0x8] ss:$12 sps:$4 sm:$0xff]   ;;  %v2173_v37 = vld [vmem:[%s2710_s18 + $0x20] ss:$12 sps:$4 sm:$0xff]   ;;  %v2177_v39 = vld [vmem:[%s2710_s18 + $0xf8] ss:$12 sps:$4 sm:$0xff]   ;;  %v2796_v57 = vrot.slane %v2751_v20, %v2746_v19 }
  0x94   : > { %808 = vmatprep.subr.bf16.mxu1 %v2112_v7  ;;  %v2138_v35 = vld [vmem:[%s2708_s16 + $0x108] ss:$12 sps:$4 sm:$0xff]   ;;  %2030 = vmatpush3.bf16.msra.mxu0 %v2168_v33  ;;  %v2178_v40 = vld [vmem:[%s2710_s18 + $0x38] ss:$12 sps:$4 sm:$0xff]   ;;  %v2141_v41 = vld [vmem:[%s2708_s16 + $0x120] ss:$12 sps:$4 sm:$0xff]  }
  0x95   : > { %834 = vmatprep.mubr.bf16.mxu1 %v2758_v24  ;;  %1276 = vmatprep.mubr.bf16.mxu0 %v2758_v24  ;;  %v2142_v42 = vld [vmem:[%s2708_s16 + $0x13c] ss:$12 sps:$4 sm:$0xff]   ;;  %v2144_v45 = vld [vmem:[%s2708_s16 + $0x138] ss:$12 sps:$4 sm:$0xff]   ;;  %v2145_v46 = vld [vmem:[%s2708_s16 + $0x154] ss:$12 sps:$4 sm:$0xff]  }
  0x96   : > { %2031 = vmatprep.subr.bf16.mxu0 %v2172_v36  ;;  %v2182_v43 = vld [vmem:[%s2710_s18 + $0x110] ss:$12 sps:$4 sm:$0xff]   ;;  %v2187_v47 = vld [vmem:[%s2710_s18 + $0x128] ss:$12 sps:$4 sm:$0xff]   ;;  %v2192_v50 = vld [vmem:[%s2710_s18 + $0x140] ss:$12 sps:$4 sm:$0xff]  }
  0x97   : > { %809 = vmatpush1.bf16.msra.mxu1 %v2114_v8  ;;  %v2183_v44 = vld [vmem:[%s2710_s18 + $0x50] ss:$12 sps:$4 sm:$0xff]   ;;  %v2188_v48 = vld [vmem:[%s2710_s18 + $0x68] ss:$12 sps:$4 sm:$0xff]   ;;  %v2148_v51 = vld [vmem:[%s2708_s16 + $0x16c] ss:$12 sps:$4 sm:$0xff]  }
  0x98   : > { %810 = vmatprep.subr.bf16.mxu1 %v2115_v9  ;;  %2032 = vmatpush3.bf16.msra.mxu0 %v2173_v37  ;;  %v2147_v49 = vld [vmem:[%s2708_s16 + $0x150] ss:$12 sps:$4 sm:$0xff]   ;;  %v2193_v52 = vld [vmem:[%s2710_s18 + $0x80] ss:$12 sps:$4 sm:$0xff]   ;;  %v2197_v53 = vld [vmem:[%s2710_s18 + $0x158] ss:$12 sps:$4 sm:$0xff]  }
  0x99   : > { %2033 = vmatprep.subr.bf16.mxu0 %v2177_v39  ;;  %v2150_v54 = vld [vmem:[%s2708_s16 + $0x168] ss:$12 sps:$4 sm:$0xff]   ;;  %v2198_v56 = vld [vmem:[%s2710_s18 + $0x98] ss:$12 sps:$4 sm:$0xff]   ;;  %v2202_v58 = vld [vmem:[%s2710_s18 + $0x170] ss:$12 sps:$4 sm:$0xff]  }
  0x9a   : > { %v2151_v55 = vld [vmem:[%s2708_s16 + $0xc8] ss:$12 sps:$4 sm:$0xff]   ;;  %v2153_v60 = vld [vmem:[%s2708_s16 + $0xe0] ss:$12 sps:$4 sm:$0xff]   ;;  %v2203_v61 = vld [vmem:[%s2710_s18 + $0xb0] ss:$12 sps:$4 sm:$0xff]  }
  0x9b   : > { %811 = vmatpush1.bf16.msra.mxu1 %v2117_v13  ;;  %v2152_v59 = vld [vmem:[%s2708_s16 + $0x8] ss:$12 sps:$4 sm:$0xff]   ;;  %v2154_v62 = vld [vmem:[%s2708_s16 + $0x20] ss:$12 sps:$4 sm:$0xff]   ;;  %v2155_v63 = vld [vmem:[%s2708_s16 + $0xf8] ss:$12 sps:$4 sm:$0xff]  }
  0x9c   : > { %812 = vmatprep.subr.bf16.mxu1 %v2118_v14  ;;  %2034 = vmatpush3.bf16.msra.mxu0 %v2178_v40  ;;  %v2156_v0 = vld [vmem:[%s2708_s16 + $0x38] ss:$12 sps:$4 sm:$0xff]   ;;  %v2157_v1 = vld [vmem:[%s2708_s16 + $0x110] ss:$12 sps:$4 sm:$0xff]   ;;  %v2159_v3 = vld [vmem:[%s2708_s16 + $0x128] ss:$12 sps:$4 sm:$0xff]  }
  0x9d   : > { %2035 = vmatprep.subr.bf16.mxu0 %v2182_v43  ;;  %v2158_v2 = vld [vmem:[%s2708_s16 + $0x50] ss:$12 sps:$4 sm:$0xff]   ;;  %v2160_v4 = vld [vmem:[%s2708_s16 + $0x68] ss:$12 sps:$4 sm:$0xff]   ;;  %v2161_v5 = vld [vmem:[%s2708_s16 + $0x140] ss:$12 sps:$4 sm:$0xff]  }
  0x9e   : > { %v2162_v6 = vld [vmem:[%s2708_s16 + $0x80] ss:$12 sps:$4 sm:$0xff]   ;;  %v2163_v7 = vld [vmem:[%s2708_s16 + $0x158] ss:$12 sps:$4 sm:$0xff]   ;;  %v2165_v9 = vld [vmem:[%s2708_s16 + $0x170] ss:$12 sps:$4 sm:$0xff]  }
  0x9f   : > { %813 = vmatpush1.bf16.msra.mxu1 %v2120_v17  ;;  %v2164_v8 = vld [vmem:[%s2708_s16 + $0x98] ss:$12 sps:$4 sm:$0xff]   ;;  %v2167_v10 = vld [vmem:[%s2708_s16 + $0xb0] ss:$12 sps:$4 sm:$0xff]   ;;  %v2169_v12 = vld [vmem:[%s2710_s18] ss:$12 sps:$4 sm:$0xff]  }
  0xa0   : > { %814 = vmatprep.subr.bf16.mxu1 %v2121_v18  ;;  %2036 = vmatpush3.bf16.msra.mxu0 %v2183_v44  ;;  %v2171_v11 = vld [vmem:[%s2710_s18 + $0x4] ss:$12 sps:$4 sm:$0xff]   ;;  %v2176_v13 = vld [vmem:[%s2710_s18 + $0x1c] ss:$12 sps:$4 sm:$0xff]   ;;  %v2181_v15 = vld [vmem:[%s2710_s18 + $0x34] ss:$12 sps:$4 sm:$0xff]  }
  0xa1   : > { %2037 = vmatprep.subr.bf16.mxu0 %v2187_v47  ;;  %v2174_v14 = vld [vmem:[%s2710_s18 + $0x18] ss:$12 sps:$4 sm:$0xff]   ;;  %v2179_v17 = vld [vmem:[%s2710_s18 + $0x30] ss:$12 sps:$4 sm:$0xff]   ;;  %v2184_v19 = vld [vmem:[%s2710_s18 + $0x48] ss:$12 sps:$4 sm:$0xff]  }
  0xa2   : > { %v2186_v18 = vld [vmem:[%s2710_s18 + $0x4c] ss:$12 sps:$4 sm:$0xff]   ;;  %v2191_v20 = vld [vmem:[%s2710_s18 + $0x64] ss:$12 sps:$4 sm:$0xff]   ;;  %v2227_v40 = vld [vmem:[%s2710_s18 + $0x154] ss:$12 sps:$4 sm:$0xff]  }
  0xa3   : > { %815 = vmatpush1.bf16.msra.mxu1 %v2123_v22  ;;  %v2189_v21 = vld [vmem:[%s2710_s18 + $0x60] ss:$12 sps:$4 sm:$0xff]   ;;  %v2196_v22 = vld [vmem:[%s2710_s18 + $0x7c] ss:$12 sps:$4 sm:$0xff]   ;;  %v2210_v31 = vld [vmem:[%s2710_s18 + $0xd8] ss:$12 sps:$4 sm:$0xff]  }
  0xa4   : > { %816 = vmatprep.subr.bf16.mxu1 %v2124_v23  ;;  %2038 = vmatpush3.bf16.msra.mxu0 %v2188_v48  ;;  %v2194_v23 = vld [vmem:[%s2710_s18 + $0x78] ss:$12 sps:$4 sm:$0xff]   ;;  %v2213_v33 = vld [vmem:[%s2710_s18 + $0xf0] ss:$12 sps:$4 sm:$0xff]   ;;  %v2219_v37 = vld [vmem:[%s2710_s18 + $0x120] ss:$12 sps:$4 sm:$0xff]  }
  0xa5   : > { %2039 = vmatprep.subr.bf16.mxu0 %v2192_v50  ;;  %v2221_v36 = vld [vmem:[%s2710_s18 + $0x124] ss:$12 sps:$4 sm:$0xff]   ;;  %v2228_v43 = vld [vmem:[%s2710_s18 + $0x168] ss:$12 sps:$4 sm:$0xff]  }
  0xa6   : > { %v2222_v39 = vld [vmem:[%s2710_s18 + $0x138] ss:$12 sps:$4 sm:$0xff]   ;;  %v2242_v50 = vld [vmem:[%s2716_s11 + $0x34] ss:$8 sps:$4 sm:$0xff]  }
  0xa7   : > { %817 = vmatpush1.bf16.msra.mxu1 %v2126_v25  ;;  %v2199_v25 = vld [vmem:[%s2710_s18 + $0x90] ss:$12 sps:$4 sm:$0xff]   ;;  %v2233_v44 = vld [vmem:[%s2716_s11 + $0x4] ss:$8 sps:$4 sm:$0xff]  }
  0xa8   : > { %818 = vmatprep.subr.bf16.mxu1 %v2127_v26  ;;  %2040 = vmatpush3.bf16.msra.mxu0 %v2193_v52  ;;  %v2206_v26 = vld [vmem:[%s2710_s18 + $0xac] ss:$12 sps:$4 sm:$0xff]  }
  0xa9   : > { %2041 = vmatprep.subr.bf16.mxu0 %v2197_v53  ;;  %v2234_v47 = vld [vmem:[%s2716_s11 + $0x10] ss:$8 sps:$4 sm:$0xff]   ;;  %v2239_v48 = vld [vmem:[%s2716_s11 + $0x24] ss:$8 sps:$4 sm:$0xff]   ;;  %v2243_v53 = vld [vmem:[%s2716_s11 + $0x40] ss:$8 sps:$4 sm:$0xff]  }
  0xaa   : > { %v2245_v52 = vld [vmem:[%s2716_s11 + $0x44] ss:$8 sps:$4 sm:$0xff]  }
  0xab   : > { %819 = vmatpush1.bf16.msra.mxu1 %v2129_v27  ;;  %v2204_v27 = vld [vmem:[%s2710_s18 + $0xa8] ss:$12 sps:$4 sm:$0xff]  }
  0xac   : > { %820 = vmatprep.subr.bf16.mxu1 %v2130_v28  ;;  %2042 = vmatpush3.bf16.msra.mxu0 %v2198_v56  ;;  %v2209_v28 = vld [vmem:[%s2710_s18 + $0xc4] ss:$12 sps:$4 sm:$0xff]  }
  0xad   : > { %2043 = vmatprep.subr.bf16.mxu0 %v2202_v58  ;;  %v2251_v56 = vld [vmem:[%s2716_s11 + $0x64] ss:$8 sps:$4 sm:$0xff]   ;;  %v2254_v58 = vld [vmem:[%s2716_s11 + $0x74] ss:$8 sps:$4 sm:$0xff]  }
  0xaf   : > { %821 = vmatpush1.bf16.msra.mxu1 %v2132_v29  ;;  %v2207_v29 = vld [vmem:[%s2710_s18 + $0xc0] ss:$12 sps:$4 sm:$0xff]  }
  0xb0   : > { %822 = vmatprep.subr.bf16.mxu1 %v2133_v30  ;;  %2044 = vmatpush3.bf16.msra.mxu0 %v2203_v61  ;;  %v2212_v30 = vld [vmem:[%s2710_s18 + $0xdc] ss:$12 sps:$4 sm:$0xff]  }
  0xb1   : > { %1600 = vmatprep.subr.bf16.mxu0 %v2233_v44  ;;  %v2255_v61 = vld [vmem:[%s2716_s11 + $0x80] ss:$8 sps:$4 sm:$0xff]  }
  0xb3   : > { %823 = vmatpush1.bf16.msra.mxu1 %v2135_v32  ;;  %1277 = vmatmul.mubr.bf16.vlgmr.msra.gmra.mrb[0].mxu0 %v2796_v57  ;;  %v2215_v32 = vld [vmem:[%s2710_s18 + $0xf4] ss:$12 sps:$4 sm:$0xff]  }
  0xb4   : > { %824 = vmatprep.subr.bf16.mxu1 %v2136_v34  ;;  %v2218_v34 = vld [vmem:[%s2710_s18 + $0x10c] ss:$12 sps:$4 sm:$0xff]  }
  0xb7   : > { %825 = vmatpush1.bf16.msra.mxu1 %v2138_v35  ;;  %v2216_v35 = vld [vmem:[%s2710_s18 + $0x108] ss:$12 sps:$4 sm:$0xff]  }
  0xb8   : > { %826 = vmatprep.subr.bf16.mxu1 %v2139_v38  ;;  %v2224_v38 = vld [vmem:[%s2710_s18 + $0x13c] ss:$12 sps:$4 sm:$0xff]  }
  0xbb   : > { %827 = vmatpush1.bf16.msra.mxu1 %v2141_v41  ;;  %v2225_v41 = vld [vmem:[%s2710_s18 + $0x150] ss:$12 sps:$4 sm:$0xff]  }
  0xbc   : > { %828 = vmatprep.subr.bf16.mxu1 %v2142_v42  ;;  %v2230_v42 = vld [vmem:[%s2710_s18 + $0x16c] ss:$12 sps:$4 sm:$0xff]  }
  0xbf   : > { %829 = vmatpush1.bf16.msra.mxu1 %v2144_v45  ;;  %v2231_v45 = vld [vmem:[%s2716_s11] ss:$8 sps:$4 sm:$0xff]  }
  0xc0   : > { %830 = vmatprep.subr.bf16.mxu1 %v2145_v46  ;;  %1601 = vmatpush1.bf16.msra.mxu0 %v2231_v45  ;;  %v2236_v46 = vld [vmem:[%s2716_s11 + $0x14] ss:$8 sps:$4 sm:$0xff]  }
  0xc1   : > { %1602 = vmatprep.subr.bf16.mxu0 %v2236_v46 }
  0xc3   : > { %831 = vmatpush1.bf16.msra.mxu1 %v2147_v49  ;;  %v2237_v49 = vld [vmem:[%s2716_s11 + $0x20] ss:$8 sps:$4 sm:$0xff]  }
  0xc4   : > { %832 = vmatprep.subr.bf16.mxu1 %v2148_v51  ;;  %1603 = vmatpush1.bf16.msra.mxu0 %v2234_v47  ;;  %v2240_v51 = vld [vmem:[%s2716_s11 + $0x30] ss:$8 sps:$4 sm:$0xff]  }
  0xc5   : > { %1604 = vmatprep.subr.bf16.mxu0 %v2239_v48 }
  0xc7   : > { %833 = vmatpush1.bf16.msra.mxu1 %v2150_v54  ;;  %v2248_v54 = vld [vmem:[%s2716_s11 + $0x54] ss:$8 sps:$4 sm:$0xff]  }
  0xc8   : > { %2007 = vmatprep.subr.bf16.mxu1 %v2151_v55  ;;  %1605 = vmatpush1.bf16.msra.mxu0 %v2237_v49  ;;  %v2246_v55 = vld [vmem:[%s2716_s11 + $0x50] ss:$8 sps:$4 sm:$0xff]  }
  0xc9   : > { %1606 = vmatprep.subr.bf16.mxu0 %v2242_v50 }
  0xca   : > { %835 = vmatmul.mubr.bf16.vlgmr.msra.gmra.mrb[0].mxu1 %v2796_v57 }
  0xcb   : > { %2008 = vmatpush3.bf16.msra.mxu1 %v2152_v59  ;;  %875 = vmatprep.mubr.bf16.mxu1 %v2758_v24  ;;  %v2252_v59 = vld [vmem:[%s2716_s11 + $0x70] ss:$8 sps:$4 sm:$0xff]  }
  0xcc   : > { %2009 = vmatprep.subr.bf16.mxu1 %v2153_v60  ;;  %1607 = vmatpush1.bf16.msra.mxu0 %v2240_v51  ;;  %v2257_v60 = vld [vmem:[%s2716_s11 + $0x84] ss:$8 sps:$4 sm:$0xff]   ;;  %v2279_v51 = vld [vmem:[%s2716_s11 + $0x100] ss:$8 sps:$4 sm:$0xff]  }
  0xcd   : > { %1608 = vmatprep.subr.bf16.mxu0 %v2245_v52 }
  0xcf   : > { %2010 = vmatpush3.bf16.msra.mxu1 %v2154_v62  ;;  %v2260_v62 = vld [vmem:[%s2716_s11 + $0x94] ss:$8 sps:$4 sm:$0xff]  }
  0xd0   : > { %2011 = vmatprep.subr.bf16.mxu1 %v2155_v63  ;;  %1609 = vmatpush1.bf16.msra.mxu0 %v2243_v53  ;;  %v2258_v63 = vld [vmem:[%s2716_s11 + $0x90] ss:$8 sps:$4 sm:$0xff]   ;;  %v2284_v53 = vld [vmem:[%s2716_s11 + $0x114] ss:$8 sps:$4 sm:$0xff]  }
  0xd1   : > { %1610 = vmatprep.subr.bf16.mxu0 %v2248_v54  ;;  %v2282_v54 = vld [vmem:[%s2716_s11 + $0x110] ss:$8 sps:$4 sm:$0xff]  }
  0xd3   : > { %2012 = vmatpush3.bf16.msra.mxu1 %v2156_v0  ;;  %v2263_v0 = vld [vmem:[%s2716_s11 + $0xa4] ss:$8 sps:$4 sm:$0xff]  }
  0xd4   : > { %2013 = vmatprep.subr.bf16.mxu1 %v2157_v1  ;;  %1611 = vmatpush1.bf16.msra.mxu0 %v2246_v55  ;;  %v2261_v1 = vld [vmem:[%s2716_s11 + $0xa0] ss:$8 sps:$4 sm:$0xff]   ;;  %v2419_v55 = vmov 0  }
  0xd5   : > { %1612 = vmatprep.subr.bf16.mxu0 %v2251_v56  ;;  %v2287_v56 = vld [vmem:[%s2716_s11 + $0x124] ss:$8 sps:$4 sm:$0xff]  }
  0xd7   : > { %2014 = vmatpush3.bf16.msra.mxu1 %v2158_v2  ;;  %v2266_v2 = vld [vmem:[%s2716_s11 + $0xb4] ss:$8 sps:$4 sm:$0xff]  }
  0xd8   : > { %2015 = vmatprep.subr.bf16.mxu1 %v2159_v3  ;;  %v2264_v3 = vld [vmem:[%s2716_s11 + $0xb0] ss:$8 sps:$4 sm:$0xff]  }
  0xdb   : > { %2016 = vmatpush3.bf16.msra.mxu1 %v2160_v4  ;;  %v2269_v4 = vld [vmem:[%s2716_s11 + $0xc4] ss:$8 sps:$4 sm:$0xff]  }
  0xdc   : > { %2017 = vmatprep.subr.bf16.mxu1 %v2161_v5  ;;  %v2267_v5 = vld [vmem:[%s2716_s11 + $0xc0] ss:$8 sps:$4 sm:$0xff]  }
  0xdf   : > { %2018 = vmatpush3.bf16.msra.mxu1 %v2162_v6  ;;  %v2272_v6 = vld [vmem:[%s2716_s11 + $0xd4] ss:$8 sps:$4 sm:$0xff]  }
  0xe0   : > { %2019 = vmatprep.subr.bf16.mxu1 %v2163_v7  ;;  %v2270_v7 = vld [vmem:[%s2716_s11 + $0xd0] ss:$8 sps:$4 sm:$0xff]  }
  0xe3   : > { %2020 = vmatpush3.bf16.msra.mxu1 %v2164_v8  ;;  %v2275_v8 = vld [vmem:[%s2716_s11 + $0xe4] ss:$8 sps:$4 sm:$0xff]  }
  0xe4   : > { %2021 = vmatprep.subr.bf16.mxu1 %v2165_v9  ;;  %v2273_v9 = vld [vmem:[%s2716_s11 + $0xe0] ss:$8 sps:$4 sm:$0xff]  }
  0xe7   : > { %2022 = vmatpush3.bf16.msra.mxu1 %v2167_v10  ;;  %v2278_v10 = vld [vmem:[%s2716_s11 + $0xf4] ss:$8 sps:$4 sm:$0xff]  }
  0xe8   : > { %1203 = vmatprep.subr.bf16.mxu1 %v2171_v11  ;;  %v2276_v11 = vld [vmem:[%s2716_s11 + $0xf0] ss:$8 sps:$4 sm:$0xff]  }
  0xea   : > { %876 = vmatmul.mubr.bf16.vlgmr.msra.gmra.mrb[4].mxu1 %v2796_v57 }
  0xeb   : > { %1204 = vmatpush1.bf16.msra.mxu1 %v2169_v12  ;;  %1235 = vmatprep.mubr.bf16.mxu1 %v2758_v24  ;;  %v2201_v24 = vld [vmem:[%s2710_s18 + $0x94] ss:$12 sps:$4 sm:$0xff]   ;;  %v2281_v12 = vld [vmem:[%s2716_s11 + $0x104] ss:$8 sps:$4 sm:$0xff]  }
  0xec   : > { %1205 = vmatprep.subr.bf16.mxu1 %v2176_v13 }
  0xef   : > { %1206 = vmatpush1.bf16.msra.mxu1 %v2174_v14 }
  0xf0   : > { %1207 = vmatprep.subr.bf16.mxu1 %v2181_v15 }
  0xf3   : > { %1208 = vmatpush1.bf16.msra.mxu1 %v2179_v17 }
  0xf4   : > { %1209 = vmatprep.subr.bf16.mxu1 %v2186_v18 }
  0xf7   : > { %1210 = vmatpush1.bf16.msra.mxu1 %v2184_v19 }
  0xf8   : > { %1211 = vmatprep.subr.bf16.mxu1 %v2191_v20 }
  0xfb   : > { %1212 = vmatpush1.bf16.msra.mxu1 %v2189_v21 }
  0xfc   : > { %1213 = vmatprep.subr.bf16.mxu1 %v2196_v22 }
  0xff   : > { %1214 = vmatpush1.bf16.msra.mxu1 %v2194_v23 }
 0x100   : > { %1215 = vmatprep.subr.bf16.mxu1 %v2201_v24 }
 0x103   : > { %1216 = vmatpush1.bf16.msra.mxu1 %v2199_v25 }
 0x104   : > { %1217 = vmatprep.subr.bf16.mxu1 %v2206_v26 }
 0x107   : > { %1218 = vmatpush1.bf16.msra.mxu1 %v2204_v27 }
 0x108   : > { %1219 = vmatprep.subr.bf16.mxu1 %v2209_v28 }
 0x10b   : > { %1220 = vmatpush1.bf16.msra.mxu1 %v2207_v29 }
 0x10c   : > { %1221 = vmatprep.subr.bf16.mxu1 %v2212_v30 }
 0x10f   : > { %1222 = vmatpush1.bf16.msra.mxu1 %v2210_v31 }
 0x110   : > { %1223 = vmatprep.subr.bf16.mxu1 %v2215_v32 }
 0x113   : > { %1224 = vmatpush1.bf16.msra.mxu1 %v2213_v33 }
 0x114   : > { %1225 = vmatprep.subr.bf16.mxu1 %v2218_v34 }
 0x117   : > { %1226 = vmatpush1.bf16.msra.mxu1 %v2216_v35 }
 0x118   : > { %1227 = vmatprep.subr.bf16.mxu1 %v2221_v36 }
 0x11b   : > { %1228 = vmatpush1.bf16.msra.mxu1 %v2219_v37 }
 0x11c   : > { %1229 = vmatprep.subr.bf16.mxu1 %v2224_v38 }
 0x11f   : > { %1230 = vmatpush1.bf16.msra.mxu1 %v2222_v39 }
 0x120   : > { %1231 = vmatprep.subr.bf16.mxu1 %v2227_v40 }
 0x123   : > { %1232 = vmatpush1.bf16.msra.mxu1 %v2225_v41 }
 0x124   : > { %1233 = vmatprep.subr.bf16.mxu1 %v2230_v42 }
 0x127   : > { %1234 = vmatpush1.bf16.msra.mxu1 %v2228_v43 }
 0x12a   : > { %1236 = vmatmul.mubr.bf16.vlgmr.msra.gmra.mrb[8].mxu1 %v2796_v57  ;;  %v2249_v57 = vld [vmem:[%s2716_s11 + $0x60] ss:$8 sps:$4 sm:$0xff]  }
 0x12b   : > { %1613 = vmatpush1.bf16.msra.mxu0 %v2249_v57  ;;  %v2285_v57 = vld [vmem:[%s2716_s11 + $0x120] ss:$8 sps:$4 sm:$0xff]  }
 0x12c   : > { %1614 = vmatprep.subr.bf16.mxu0 %v2254_v58  ;;  %v2290_v58 = vld [vmem:[%s2716_s11 + $0x134] ss:$8 sps:$4 sm:$0xff]  }
 0x12f   : > { %1615 = vmatpush1.bf16.msra.mxu0 %v2252_v59  ;;  %v2288_v59 = vld [vmem:[%s2716_s11 + $0x130] ss:$8 sps:$4 sm:$0xff]  }
 0x130   : > { %1616 = vmatprep.subr.bf16.mxu0 %v2257_v60  ;;  %v2293_v60 = vld [vmem:[%s2716_s11 + $0x144] ss:$8 sps:$4 sm:$0xff]  }
 0x133   : > { %1617 = vmatpush1.bf16.msra.mxu0 %v2255_v61  ;;  %v2291_v61 = vld [vmem:[%s2716_s11 + $0x140] ss:$8 sps:$4 sm:$0xff]  }
 0x134   : > { %1618 = vmatprep.subr.bf16.mxu0 %v2260_v62  ;;  %v2296_v62 = vld [vmem:[%s2716_s11 + $0x154] ss:$8 sps:$4 sm:$0xff]  }
 0x137   : > { %1619 = vmatpush1.bf16.msra.mxu0 %v2258_v63  ;;  %v2294_v63 = vld [vmem:[%s2716_s11 + $0x150] ss:$8 sps:$4 sm:$0xff]  }
 0x138   : > { %1620 = vmatprep.subr.bf16.mxu0 %v2263_v0  ;;  %v2299_v0 = vld [vmem:[%s2716_s11 + $0x164] ss:$8 sps:$4 sm:$0xff]  }
 0x13b   : > { %1621 = vmatpush1.bf16.msra.mxu0 %v2261_v1  ;;  %v2297_v1 = vld [vmem:[%s2716_s11 + $0x160] ss:$8 sps:$4 sm:$0xff]  }
 0x13c   : > { %1622 = vmatprep.subr.bf16.mxu0 %v2266_v2  ;;  %v2302_v2 = vld [vmem:[%s2716_s11 + $0x174] ss:$8 sps:$4 sm:$0xff]  }
 0x13f   : > { %1623 = vmatpush1.bf16.msra.mxu0 %v2264_v3  ;;  %v2300_v3 = vld [vmem:[%s2716_s11 + $0x170] ss:$8 sps:$4 sm:$0xff]  }
 0x140   : > { %1624 = vmatprep.subr.bf16.mxu0 %v2269_v4 }
 0x143   : > { %1625 = vmatpush1.bf16.msra.mxu0 %v2267_v5  ;;  %v2420_v5 = vmov 1983009808  }
 0x144   : > { %1626 = vmatprep.subr.bf16.mxu0 %v2272_v6  ;;  %v1686_v6 = vunpack.c.l.s4 %v2420_v5 }
 0x147   : > { %1627 = vmatpush1.bf16.msra.mxu0 %v2270_v7  ;;  %v1687_v7 = vunpack.c.0.s8 %v1686_v6 }
 0x148   : > { %1628 = vmatprep.subr.bf16.mxu0 %v2275_v8 }
 0x14b   : > { %1629 = vmatpush1.bf16.msra.mxu0 %v2273_v9  ;;  %v1690_v9 = vsub.s32 %v1687_v7, %v2741_v16 }
 0x14c   : > { %1630 = vmatprep.subr.bf16.mxu0 %v2278_v10 }
 0x14f   : > { %1631 = vmatpush1.bf16.msra.mxu0 %v2276_v11 }
 0x150   : > { %1641 = vmatprep.subr.bf16.mxu0 %v2281_v12 }
 0x186   : > { %v2045_v18 = vpop.f32.mrb[0].mxu0 }
 0x187   : > { %v2046_v19 = vpop.f32.mrb[1].mxu0 }
 0x188   : > { %v2047_v20 = vadd.f32 %v2046_v19, %v2045_v18  ;;  %v2048_v21 = vpop.f32.mrb[2].mxu0 }
 0x189   : > { %v2049_v22 = vpop.f32.mrb[3].mxu0 }
 0x19d   : > { %v836_v13 = vpop.f32.mrb[0].mxu1 }
 0x19e   : > { %v838_v14 = vpop.f32.mrb[1].mxu1  ;;  %v1949_v32 = vmul.f32 -1.442695, %v836_v13 }
 0x19f   : > { %v840_v15 = vpop.f32.mrb[2].mxu1  ;;  %v1950_v33 = vmul.f32 -1.442695, %v838_v14 }
 0x1a0   : > { %v841_v17 = vpop.f32.mrb[3].mxu1 }
 0x1bd   : > { %v2023_v23 = vpop.f32.mrb[4].mxu1 }
 0x1be   : > { %v2024_v24 = vpop.f32.mrb[5].mxu1 }
 0x1bf   : > { %v2025_v25 = vadd.f32 %v2024_v24, %v2023_v23  ;;  %v2026_v26 = vpop.f32.mrb[6].mxu1 }
 0x1c0   : > { %v2027_v27 = vpop.f32.mrb[7].mxu1 }
 0x1c1   : > { %v1951_v28 = vmul.f32 -1.442695, %v2025_v25 }
 0x1c3   : > { %2303 = vpow2.f32 %v1951_v28 }
 0x1cd   : > { %v2304_v29 = vpop.eup %2303 }
 0x1ce   : > { %v1295_v30 = vadd.f32 1.0, %v2304_v29 }
 0x1d0   : > { %2305 = vrcp.f32 %v1295_v30 }
 0x1d1   : > { %2307 = vpow2.f32 %v1949_v32 }
 0x1d2   : > { %2309 = vpow2.f32 %v1950_v33 }
 0x1da   : > { %v2306_v31 = vpop.eup %2305 }
 0x1db   : > { %v1304_v34 = vmul.f32 %v2306_v31, %v2025_v25  ;;  %v2308_v36 = vpop.eup %2307 }
 0x1dc   : > { %v2310_v37 = vpop.eup %2309  ;;  %v1293_v38 = vadd.f32 1.0, %v2308_v36 }
 0x1dd   : > { %v1307_v35 = vmul.f32 %v2047_v20, %v1304_v34  ;;  %v1294_v39 = vadd.f32 1.0, %v2310_v37 }
 0x1de   : > { %2311 = vrcp.f32 %v1293_v38 }
 0x1df   : > { %2313 = vrcp.f32 %v1294_v39  ;;  %v1310_v4 = vpack.c.bf16 %v1307_v35, %v1307_v35 }
 0x1e8   : > { %v2312_v40 = vpop.eup %2311 }
 0x1e9   : > { %v2314_v41 = vpop.eup %2313  ;;  %v1302_v42 = vmul.f32 %v2312_v40, %v836_v13  ;;  %v1311_v13 = vld [vmem:[%s2926_s5] sm:$0xf] }
 0x1ea   : > { %v1303_v43 = vmul.f32 %v2314_v41, %v838_v14 }
 0x1fd   : > { %v1237_v44 = vpop.f32.mrb[8].mxu1 }
 0x1fe   : > { %v1305_v45 = vmul.f32 %v1302_v42, %v1237_v44  ;;  %v1239_v46 = vpop.f32.mrb[9].mxu1 }
 0x1ff   : > { %v1306_v47 = vmul.f32 %v1303_v43, %v1239_v46  ;;  %v1241_v48 = vpop.f32.mrb[10].mxu1 }
 0x200   : > { %v1242_v49 = vpop.f32.mrb[11].mxu1  ;;  %v1308_v52 = vpack.c.bf16 %v1305_v45, %v1305_v45 }
 0x201   : > { %v1309_v50 = vpack.c.bf16 %v1306_v47, %v1306_v47 }
 0x203   : > { %1632 = vmatprep.mubr.bf16.mxu0 %v1309_v50 }
 0x204   : > { %1633 = vmatmul.mubr.bf16.vlgmr.msra.gmra.mrb[4].mxu0 %v1308_v52 }
 0x205   : > { %1642 = vmatpush1.bf16.msra.mxu0 %v2279_v51  ;;  %1673 = vmatprep.mubr.bf16.mxu0 %v2419_v55 }
 0x206   : > { %1643 = vmatprep.subr.bf16.mxu0 %v2284_v53 }
 0x209   : > { %1644 = vmatpush1.bf16.msra.mxu0 %v2282_v54 }
 0x20a   : > { %1645 = vmatprep.subr.bf16.mxu0 %v2287_v56 }
 0x20d   : > { %1646 = vmatpush1.bf16.msra.mxu0 %v2285_v57 }
 0x20e   : > { %1647 = vmatprep.subr.bf16.mxu0 %v2290_v58 }
 0x211   : > { %1648 = vmatpush1.bf16.msra.mxu0 %v2288_v59 }
 0x212   : > { %1649 = vmatprep.subr.bf16.mxu0 %v2293_v60 }
 0x215   : > { %1650 = vmatpush1.bf16.msra.mxu0 %v2291_v61 }
 0x216   : > { %1651 = vmatprep.subr.bf16.mxu0 %v2296_v62 }
 0x219   : > { %1652 = vmatpush1.bf16.msra.mxu0 %v2294_v63 }
 0x21a   : > { %1653 = vmatprep.subr.bf16.mxu0 %v2299_v0 }
 0x21d   : > { %1654 = vmatpush1.bf16.msra.mxu0 %v2297_v1 }
 0x21e   : > { %1655 = vmatprep.subr.bf16.mxu0 %v2302_v2 }
 0x221   : > { %1656 = vmatpush1.bf16.msra.mxu0 %v2300_v3 }
 0x224   : > { %1674 = vmatmul.mubr.bf16.vlgmr.msra.gmra.mrb[4].mxu0 %v1310_v4 }
 0x2f7   : > { %v1675_v8 = vpop.f32.mrb[4].mxu0 }
 0x2f8   : > { %v1677_v10 = vpop.f32.mrb[5].mxu0 }
 0x2f9   : > { %v1684_v11 = vcombine.low %v1675_v8, %v1677_v10  ;;  %v1679_v12 = vpop.f32.mrb[6].mxu0 }
 0x2fa   : > { %v1680_v14 = vpop.f32.mrb[7].mxu0 }
 0x2fb   : > { %v1691_v15 = vrot.slane %v1684_v11, %v1690_v9 }
 0x2fd   : > { %v1693_v17 = vadd.f32 %v1691_v15, %v1311_v13 }
 0x2ff   : > { %1694 = vst [vmem:[%s2926_s5] sm:$0xf] %v1693_v17 }
 0x300 PF: > { %p18_p6 = scmp.ge.s32.totalorder %s2471_s23, 4   ;;  %s2929_s18 = smov %s2401_s19 }
 0x301   : > { %s2930_s19 = smov %s2405_s20  ;;  %s2931_s20 = smov %s2481_s26 }
 0x302   : > { %s2932_s21 = smov %s2471_s23  ;;  %20 = sbr.rel (!%p18_p6) target bundleno = 5 (0x5), region = 133 }
 0x309   :  { %1706 = vsyncpa [#allocation4], 1 }
 0x30a   :  { %1708 = vsyncpa [#allocation4 + $0x1], 1 }
 0x30b   :  { %1709 = vsyncpa [#allocation6], 1 }
 0x30c   :  { %1711 = vsyncpa [#allocation6 + $0x1], 1 }

// kernel: transformer_forward.22
= control target key start
LH: loop header
LB: loop body
LE: loop exit
PB: predicated region body
PF: predicated region fallthrough
CT: control target
= control target key end

     0   :  { %v17_v0 = vlaneseq  ;;  %v101_v2 = vmov 1983009808   ;;  %vm24_vm0 = vcmask 1041408   ;;  %v102_v16 = vmov 269488144   ;;  %s128_s0 = inlined_call_operand.vmem [shape: f32[2,256], index: 0, kind: input, shape index: {}]   ;;  %s129_s1 = inlined_call_operand.vmem [shape: f32[1,256], index: 1, kind: input, shape index: {}]   ;;  %s130_s2 = inlined_call_operand.vmem [shape: bf16[2,256], index: 2, kind: output, shape index: {}]  }
   0x1   :  { %v11_v1 = vld [vmem:[%s128_s0] sm:$0xf]  ;;  %v15_v3 = vunpack.c.l.s4 %v101_v2  ;;  %v37_v17 = vunpack.c.l.s4 %v102_v16  ;;  %v103_v24 = vmov 1966171168  }
   0x2   :  { %v18_v4 = vshrl.u32 %v17_v0, 7  ;;  %v12_v5 = vmul.f32 %v11_v1, %v11_v1  ;;  %v75_v25 = vunpack.c.l.s4 %v103_v24  ;;  %v32_v26 = vld [vmem:[%s129_s1] sm:$0x3] }
   0x3   :  { %v16_v6 = vunpack.c.0.s8 %v15_v3  ;;  %v38_v18 = vunpack.c.0.s8 %v37_v17 }
   0x4   :  { %v48_v22 = vsub.s32 0, %v18_v4  ;;  %v52_v23 = vsub.s32 1, %v18_v4  ;;  %v76_v31 = vunpack.c.0.s8 %v75_v25 }
   0x5   :  { %v19_v7 = vsub.s32 %v16_v6, %v18_v4  ;;  %v41_v19 = vsub.s32 %v38_v18, %v18_v4 }
   0x6   :  { %v49_v28 = vrot.slane %v32_v26, %v48_v22  ;;  %v53_v29 = vrot.slane %v32_v26, %v52_v23  ;;  %v79_v35 = vsub.s32 %v76_v31, %v18_v4 }
   0x7   :  { %v20_v8 = vrot.slane %v12_v5, %v19_v7 }
   0x9   :  { %v21_v9 = vcombine.high %v20_v8, %v20_v8  ;;  %v25_v10 = vsel %vm24_vm0, %v20_v8, 0.0 }
   0xb   :  { %v26_v11 = vsel %vm24_vm0, %v21_v9, 0.0 }
   0xc   :  { %v27_v12 = vadd.f32 %v26_v11, %v25_v10 }
   0xe   :  { %28 = vadd.xlane.f32.xlu0 %v27_v12 }
  0x9b   :  { %v29_v13 = vpop.xlane.xlu0 %28 }
  0x9c   :  { %v31_v14 = vmul.f32 0.00390625, %v29_v13 }
  0x9e   :  { %v33_v15 = vadd.f32 1e-05, %v31_v14 }
  0xa0   :  { %99 = vrsqrt.f32 %v33_v15 }
  0xaa   :  { %v100_v20 = vpop.eup %99 }
  0xab   :  { %v42_v21 = vrot.slane %v100_v20, %v41_v19 }
  0xad   :  { %v44_v27 = vmul.f32 %v42_v21, %v11_v1 }
  0xaf   :  { %v63_v30 = vrot.slane %v44_v27, %v19_v7 }
  0xb1   :  { %v64_v32 = vcombine.high %v63_v30, %v63_v30  ;;  %v67_v33 = vmul.f32 %v63_v30, %v49_v28 }
  0xb3   :  { %v68_v34 = vmul.f32 %v64_v32, %v53_v29 }
  0xb5   :  { %v94_v36 = vpack.c.bf16 %v68_v34, %v67_v33 }
  0xb7   :  { %v80_v37 = vrot.slane %v94_v36, %v79_v35 }
  0xb9   :  { %95 = vst.sshfl [vmem:[%s130_s2] sm:$0x5 pattern:$0x73625140] %v80_v37 }

// kernel: transformer_forward.23
= control target key start
LH: loop header
LB: loop body
LE: loop exit
PB: predicated region body
PF: predicated region fallthrough
CT: control target
= control target key end

     0   :  { %7 = vsyncpa [#allocation4], 0  ;;  %s1509_s0 = inlined_call_operand.vmem [shape: bf16[2,256], index: 0, kind: input, shape index: {}]   ;;  %s1510_s1 = inlined_call_operand.vmem [shape: bf16[256,1024], index: 1, kind: input, shape index: {}]   ;;  %s1511_s2 = inlined_call_operand.hbm [shape: f32[2,1024], index: 2, kind: output, shape index: {}]  }
   0x1   :  { %9 = vsyncpa [#allocation4 + $0x1], 0  ;;  %s1185_s9 = smov 0   ;;  %s1187_s10 = smov 0  }
   0x2   :  { %s1189_s11 = smov 0   ;;  %s1191_s12 = smov 0  }
   0x3 LB: > { %s884_s13 = sadd.s32 4294967295, %s1165_s12   ;;  %s885_s14 = sadd.s32 4294967294, %s1165_s12   ;;  %s1165_s12 = sphi %s1191_s12, %s1517_s12   ;;  %s1161_s11 = sphi %s1189_s11, %s1516_s11   ;;  %s1157_s10 = sphi %s1187_s10, %s1515_s10   ;;  %s1153_s9 = sphi %s1185_s9, %s1514_s9  }
   0x4   : > { %s1208_s15 = sadd.s32 1, %s1165_s12   ;;  %s43_s16 = sadd.s32 1, %s1161_s11 }
   0x5   : > { %s40_s17 = ssub.s32 %s1165_s12, %s1208_s15  ;;  %p50_p0 = scmp.ne.s32.totalorder %s1161_s11, %s1157_s10 }
   0x6   : > { %p41_p1 = scmp.eq.s32.totalorder %s40_s17, 0  ;;  %p51_p2 = scmp.eq.s32.totalorder %s1165_s12, 0 }
   0x7   : > { %p80_p3 = scmp.eq.s32.totalorder %s884_s13, 1  ;;  %p85_p4 = scmp.ne.s32.totalorder %s1157_s10, %s1153_s9 }
   0x8   : > { %s1221_s18 = scalar_select %p41_p1, %s1161_s11, %s43_s16  }
   0x9   : > { %p52_p5 = por %p51_p2, %p50_p0  ;;  %p1223_p6 = por %p80_p3, %p50_p0 }
   0xa   : > { %p86_p7 = scmp.eq.s32.totalorder %s885_s14, 1  ;;  %p887_p9 = scmp.ge.s32.totalorder %s1165_s12, 2 }
   0xc   : > { %p1227_p8 = por %p86_p7, %p85_p4  ;;  %105 = sbr.rel (%p887_p9) target bundleno = 55 (0x37), region = 20 }
  0x13   : > { %108 = sbr.rel (!%p52_p5) target bundleno = 55 (0x37), region = 24  ;;  %s110_s21 = sand.u32 (%p52_p5), 1, %s1161_s11  }
  0x14   : > { %s964_s22 = sshll.u32 (%p52_p5), %s1165_s12, 4  ;;  %s888_s23 = sshll.u32 (%p52_p5), %s110_s21, 9 }
  0x15   : > { %s1239_s26 = scalar_lea.vmem (%p52_p5), %s1510_s1, %s964_s22  ;;  %s1244_s27 = scalar_lea.vmem (%p52_p5), [#allocation2], %s888_s23 }
  0x16   : > { %v128_v0 = vld [vmem:[%s1239_s26] sm:$0xff] (%p52_p5)  ;;  %v130_v1 = vld [vmem:[%s1239_s26 + $0x8] sm:$0xff] (%p52_p5) }
  0x17   : > { %v132_v2 = vld [vmem:[%s1239_s26 + $0x20] sm:$0xff] (%p52_p5)  ;;  %129 = vst [vmem:[%s1244_s27] sm:$0xff] (%p52_p5), %v128_v0  ;;  %131 = vst [vmem:[%s1244_s27 + $0x8] sm:$0xff] (%p52_p5), %v130_v1  ;;  %v134_v3 = vld [vmem:[%s1239_s26 + $0x28] sm:$0xff] (%p52_p5) }
  0x18   : > { %133 = vst [vmem:[%s1244_s27 + $0x10] sm:$0xff] (%p52_p5), %v132_v2  ;;  %v136_v4 = vld [vmem:[%s1239_s26 + $0x40] sm:$0xff] (%p52_p5)  ;;  %v138_v5 = vld [vmem:[%s1239_s26 + $0x48] sm:$0xff] (%p52_p5)  ;;  %135 = vst [vmem:[%s1244_s27 + $0x18] sm:$0xff] (%p52_p5), %v134_v3 }
  0x19   : > { %137 = vst [vmem:[%s1244_s27 + $0x20] sm:$0xff] (%p52_p5), %v136_v4  ;;  %139 = vst [vmem:[%s1244_s27 + $0x28] sm:$0xff] (%p52_p5), %v138_v5  ;;  %v140_v6 = vld [vmem:[%s1239_s26 + $0x60] sm:$0xff] (%p52_p5)  ;;  %v142_v7 = vld [vmem:[%s1239_s26 + $0x68] sm:$0xff] (%p52_p5) }
  0x1a   : > { %v144_v8 = vld [vmem:[%s1239_s26 + $0x80] sm:$0xff]  ;;  %141 = vst [vmem:[%s1244_s27 + $0x30] sm:$0xff] %v140_v6  ;;  %143 = vst [vmem:[%s1244_s27 + $0x38] sm:$0xff] %v142_v7  ;;  %v146_v9 = vld [vmem:[%s1239_s26 + $0x88] sm:$0xff] }
  0x1b   : > { %145 = vst [vmem:[%s1244_s27 + $0x40] sm:$0xff] %v144_v8  ;;  %v148_v10 = vld [vmem:[%s1239_s26 + $0xa0] sm:$0xff]  ;;  %v150_v11 = vld [vmem:[%s1239_s26 + $0xa8] sm:$0xff]  ;;  %147 = vst [vmem:[%s1244_s27 + $0x48] sm:$0xff] %v146_v9 }
  0x1c   : > { %149 = vst [vmem:[%s1244_s27 + $0x50] sm:$0xff] %v148_v10  ;;  %151 = vst [vmem:[%s1244_s27 + $0x58] sm:$0xff] %v150_v11  ;;  %v152_v12 = vld [vmem:[%s1239_s26 + $0xc0] sm:$0xff]  ;;  %v154_v13 = vld [vmem:[%s1239_s26 + $0xc8] sm:$0xff] }
  0x1d   : > { %v156_v14 = vld [vmem:[%s1239_s26 + $0xe0] sm:$0xff]  ;;  %153 = vst [vmem:[%s1244_s27 + $0x60] sm:$0xff] %v152_v12  ;;  %155 = vst [vmem:[%s1244_s27 + $0x68] sm:$0xff] %v154_v13  ;;  %v158_v15 = vld [vmem:[%s1239_s26 + $0xe8] sm:$0xff] }
  0x1e   : > { %157 = vst [vmem:[%s1244_s27 + $0x70] sm:$0xff] %v156_v14  ;;  %v160_v16 = vld [vmem:[%s1239_s26 + $0x100] sm:$0xff]  ;;  %v162_v17 = vld [vmem:[%s1239_s26 + $0x108] sm:$0xff]  ;;  %159 = vst [vmem:[%s1244_s27 + $0x78] sm:$0xff] %v158_v15 }
  0x1f   : > { %161 = vst [vmem:[%s1244_s27 + $0x80] sm:$0xff] %v160_v16  ;;  %163 = vst [vmem:[%s1244_s27 + $0x88] sm:$0xff] %v162_v17  ;;  %v164_v18 = vld [vmem:[%s1239_s26 + $0x120] sm:$0xff]  ;;  %v166_v19 = vld [vmem:[%s1239_s26 + $0x128] sm:$0xff] }
  0x20   : > { %v168_v20 = vld [vmem:[%s1239_s26 + $0x140] sm:$0xff]  ;;  %165 = vst [vmem:[%s1244_s27 + $0x90] sm:$0xff] %v164_v18  ;;  %167 = vst [vmem:[%s1244_s27 + $0x98] sm:$0xff] %v166_v19  ;;  %v170_v21 = vld [vmem:[%s1239_s26 + $0x148] sm:$0xff] }
  0x21   : > { %169 = vst [vmem:[%s1244_s27 + $0xa0] sm:$0xff] %v168_v20  ;;  %v172_v22 = vld [vmem:[%s1239_s26 + $0x160] sm:$0xff]  ;;  %v174_v23 = vld [vmem:[%s1239_s26 + $0x168] sm:$0xff]  ;;  %171 = vst [vmem:[%s1244_s27 + $0xa8] sm:$0xff] %v170_v21 }
  0x22   : > { %173 = vst [vmem:[%s1244_s27 + $0xb0] sm:$0xff] %v172_v22  ;;  %175 = vst [vmem:[%s1244_s27 + $0xb8] sm:$0xff] %v174_v23  ;;  %v176_v24 = vld [vmem:[%s1239_s26 + $0x180] sm:$0xff]  ;;  %v178_v25 = vld [vmem:[%s1239_s26 + $0x188] sm:$0xff] }
  0x23   : > { %v180_v26 = vld [vmem:[%s1239_s26 + $0x1a0] sm:$0xff]  ;;  %177 = vst [vmem:[%s1244_s27 + $0xc0] sm:$0xff] %v176_v24  ;;  %179 = vst [vmem:[%s1244_s27 + $0xc8] sm:$0xff] %v178_v25  ;;  %v182_v27 = vld [vmem:[%s1239_s26 + $0x1a8] sm:$0xff] }
  0x24   : > { %181 = vst [vmem:[%s1244_s27 + $0xd0] sm:$0xff] %v180_v26  ;;  %v184_v28 = vld [vmem:[%s1239_s26 + $0x1c0] sm:$0xff]  ;;  %v186_v29 = vld [vmem:[%s1239_s26 + $0x1c8] sm:$0xff]  ;;  %183 = vst [vmem:[%s1244_s27 + $0xd8] sm:$0xff] %v182_v27 }
  0x25   : > { %185 = vst [vmem:[%s1244_s27 + $0xe0] sm:$0xff] %v184_v28  ;;  %187 = vst [vmem:[%s1244_s27 + $0xe8] sm:$0xff] %v186_v29  ;;  %v188_v30 = vld [vmem:[%s1239_s26 + $0x1e0] sm:$0xff]  ;;  %v190_v31 = vld [vmem:[%s1239_s26 + $0x1e8] sm:$0xff] }
  0x26   : > { %v192_v32 = vld [vmem:[%s1239_s26 + $0x200] sm:$0xff]  ;;  %189 = vst [vmem:[%s1244_s27 + $0xf0] sm:$0xff] %v188_v30  ;;  %191 = vst [vmem:[%s1244_s27 + $0xf8] sm:$0xff] %v190_v31  ;;  %v194_v33 = vld [vmem:[%s1239_s26 + $0x208] sm:$0xff] }
  0x27   : > { %193 = vst [vmem:[%s1244_s27 + $0x100] sm:$0xff] %v192_v32  ;;  %v196_v34 = vld [vmem:[%s1239_s26 + $0x220] sm:$0xff]  ;;  %v198_v35 = vld [vmem:[%s1239_s26 + $0x228] sm:$0xff]  ;;  %195 = vst [vmem:[%s1244_s27 + $0x108] sm:$0xff] %v194_v33 }
  0x28   : > { %197 = vst [vmem:[%s1244_s27 + $0x110] sm:$0xff] %v196_v34  ;;  %199 = vst [vmem:[%s1244_s27 + $0x118] sm:$0xff] %v198_v35  ;;  %v200_v36 = vld [vmem:[%s1239_s26 + $0x240] sm:$0xff]  ;;  %v202_v37 = vld [vmem:[%s1239_s26 + $0x248] sm:$0xff] }
  0x29   : > { %v204_v38 = vld [vmem:[%s1239_s26 + $0x260] sm:$0xff]  ;;  %201 = vst [vmem:[%s1244_s27 + $0x120] sm:$0xff] %v200_v36  ;;  %203 = vst [vmem:[%s1244_s27 + $0x128] sm:$0xff] %v202_v37  ;;  %v206_v39 = vld [vmem:[%s1239_s26 + $0x268] sm:$0xff] }
  0x2a   : > { %205 = vst [vmem:[%s1244_s27 + $0x130] sm:$0xff] %v204_v38  ;;  %v208_v40 = vld [vmem:[%s1239_s26 + $0x280] sm:$0xff]  ;;  %v210_v41 = vld [vmem:[%s1239_s26 + $0x288] sm:$0xff]  ;;  %207 = vst [vmem:[%s1244_s27 + $0x138] sm:$0xff] %v206_v39 }
  0x2b   : > { %209 = vst [vmem:[%s1244_s27 + $0x140] sm:$0xff] %v208_v40  ;;  %211 = vst [vmem:[%s1244_s27 + $0x148] sm:$0xff] %v210_v41  ;;  %v212_v42 = vld [vmem:[%s1239_s26 + $0x2a0] sm:$0xff]  ;;  %v214_v43 = vld [vmem:[%s1239_s26 + $0x2a8] sm:$0xff] }
  0x2c   : > { %v216_v44 = vld [vmem:[%s1239_s26 + $0x2c0] sm:$0xff]  ;;  %213 = vst [vmem:[%s1244_s27 + $0x150] sm:$0xff] %v212_v42  ;;  %215 = vst [vmem:[%s1244_s27 + $0x158] sm:$0xff] %v214_v43  ;;  %v218_v45 = vld [vmem:[%s1239_s26 + $0x2c8] sm:$0xff] }
  0x2d   : > { %217 = vst [vmem:[%s1244_s27 + $0x160] sm:$0xff] %v216_v44  ;;  %v220_v46 = vld [vmem:[%s1239_s26 + $0x2e0] sm:$0xff]  ;;  %v222_v47 = vld [vmem:[%s1239_s26 + $0x2e8] sm:$0xff]  ;;  %219 = vst [vmem:[%s1244_s27 + $0x168] sm:$0xff] %v218_v45 }
  0x2e   : > { %221 = vst [vmem:[%s1244_s27 + $0x170] sm:$0xff] %v220_v46  ;;  %223 = vst [vmem:[%s1244_s27 + $0x178] sm:$0xff] %v222_v47  ;;  %v224_v48 = vld [vmem:[%s1239_s26 + $0x300] sm:$0xff]  ;;  %v226_v49 = vld [vmem:[%s1239_s26 + $0x308] sm:$0xff] }
  0x2f   : > { %v228_v50 = vld [vmem:[%s1239_s26 + $0x320] sm:$0xff]  ;;  %225 = vst [vmem:[%s1244_s27 + $0x180] sm:$0xff] %v224_v48  ;;  %227 = vst [vmem:[%s1244_s27 + $0x188] sm:$0xff] %v226_v49  ;;  %v230_v51 = vld [vmem:[%s1239_s26 + $0x328] sm:$0xff] }
  0x30   : > { %229 = vst [vmem:[%s1244_s27 + $0x190] sm:$0xff] %v228_v50  ;;  %v232_v52 = vld [vmem:[%s1239_s26 + $0x340] sm:$0xff]  ;;  %v234_v53 = vld [vmem:[%s1239_s26 + $0x348] sm:$0xff]  ;;  %231 = vst [vmem:[%s1244_s27 + $0x198] sm:$0xff] %v230_v51 }
  0x31   : > { %233 = vst [vmem:[%s1244_s27 + $0x1a0] sm:$0xff] %v232_v52  ;;  %235 = vst [vmem:[%s1244_s27 + $0x1a8] sm:$0xff] %v234_v53  ;;  %v236_v54 = vld [vmem:[%s1239_s26 + $0x360] sm:$0xff]  ;;  %v238_v55 = vld [vmem:[%s1239_s26 + $0x368] sm:$0xff] }
  0x32   : > { %v240_v56 = vld [vmem:[%s1239_s26 + $0x380] sm:$0xff]  ;;  %237 = vst [vmem:[%s1244_s27 + $0x1b0] sm:$0xff] %v236_v54  ;;  %239 = vst [vmem:[%s1244_s27 + $0x1b8] sm:$0xff] %v238_v55  ;;  %v242_v57 = vld [vmem:[%s1239_s26 + $0x388] sm:$0xff] }
  0x33   : > { %241 = vst [vmem:[%s1244_s27 + $0x1c0] sm:$0xff] %v240_v56  ;;  %v244_v58 = vld [vmem:[%s1239_s26 + $0x3a0] sm:$0xff]  ;;  %v246_v59 = vld [vmem:[%s1239_s26 + $0x3a8] sm:$0xff]  ;;  %243 = vst [vmem:[%s1244_s27 + $0x1c8] sm:$0xff] %v242_v57 }
  0x34   : > { %245 = vst [vmem:[%s1244_s27 + $0x1d0] sm:$0xff] %v244_v58  ;;  %247 = vst [vmem:[%s1244_s27 + $0x1d8] sm:$0xff] %v246_v59  ;;  %v248_v60 = vld [vmem:[%s1239_s26 + $0x3c0] sm:$0xff]  ;;  %v250_v61 = vld [vmem:[%s1239_s26 + $0x3c8] sm:$0xff] }
  0x35   : > { %v252_v62 = vld [vmem:[%s1239_s26 + $0x3e0] sm:$0xff]  ;;  %249 = vst [vmem:[%s1244_s27 + $0x1e0] sm:$0xff] %v248_v60  ;;  %251 = vst [vmem:[%s1244_s27 + $0x1e8] sm:$0xff] %v250_v61  ;;  %v254_v63 = vld [vmem:[%s1239_s26 + $0x3e8] sm:$0xff] }
  0x36   : > { %253 = vst [vmem:[%s1244_s27 + $0x1f0] sm:$0xff] %v252_v62  ;;  %255 = vst [vmem:[%s1244_s27 + $0x1f8] sm:$0xff] %v254_v63 }
  0x37 PF: > { %p891_p10 = scmp.ge.s32.totalorder %s1165_s12, 1  ;;  %p260_p11 = scmp.lt.s32.totalorder %s1165_s12, 3 }
  0x39   : > { %p261_p12 = pnand %p891_p10, %p260_p11 }
  0x3a   : > { %s1374_s28 = sand.u32 (!%p261_p12), 1, %s1157_s10   ;;  %v1379_v0 = vld.sshfl [vmem:[%s1509_s0] sm:$0x11 pattern:$0x75316420] (!%p261_p12)  ;;  %v367_v1 = vlaneseq (!%p261_p12)  ;;  %s965_s6 = sshll.u32 (!%p261_p12), %s884_s13, 7 }
  0x3b   : > { %264 = sbr.rel (%p261_p12) target bundleno = 359 (0x167), region = 47  ;;  %s892_s3 = sshll.u32 (!%p261_p12), %s1374_s28, 9  ;;  %v1167_v2 = vmov (!%p261_p12), 1966171168   ;;  %v363_v7 = vcombine.high (!%p261_p12), %v1379_v0, %v1379_v0 }
  0x3c   : > { %v365_v3 = vunpack.c.l.s4 (!%p261_p12), %v1167_v2  ;;  %v1382_v4 = vshrl.u32 (!%p261_p12), %v367_v1, 7  ;;  %s1384_s4 = scalar_lea.vmem (!%p261_p12), [#allocation2], %s892_s3  ;;  %s893_s5 = sshll.u32 (!%p261_p12), %s1374_s28, 3 }
  0x3d   : > { %v1007_v5 = vld [vmem:[%s1384_s4 + $0x4] ss:$16 sps:$4 sm:$0xff] (!%p261_p12)   ;;  %v1009_v6 = vld [vmem:[%s1384_s4 + $0xc] ss:$16 sps:$4 sm:$0xff] (!%p261_p12)   ;;  %v1011_v9 = vld [vmem:[%s1384_s4] ss:$16 sps:$4 sm:$0xff] (!%p261_p12)   ;;  %s1465_s17 = scalar_lea.hbm (!%p261_p12), %s1511_s2, %s965_s6 }
  0x3e   : > { %v366_v8 = vunpack.c.0.s8 (!%p261_p12), %v365_v3  ;;  %700 = vmatprep.subr.bf16.mxu0 (!%p261_p12), %v1007_v5  ;;  %v1012_v10 = vld [vmem:[%s1384_s4 + $0x8] ss:$16 sps:$4 sm:$0xff] (!%p261_p12)   ;;  %741 = vmatprep.subr.bf16.mxu1 (!%p261_p12), %v1009_v6  ;;  %v1013_v11 = vld [vmem:[%s1384_s4 + $0x24] ss:$16 sps:$4 sm:$0xff] (!%p261_p12)   ;;  %v1015_v13 = vld [vmem:[%s1384_s4 + $0x2c] ss:$16 sps:$4 sm:$0xff] (!%p261_p12)  }
  0x3f   : > { %701 = vmatpush1.bf16.msra.mxu0 (!%p261_p12), %v1011_v9  ;;  %742 = vmatpush1.bf16.msra.mxu1 (!%p261_p12), %v1012_v10  ;;  %v1017_v14 = vld [vmem:[%s1384_s4 + $0x20] ss:$16 sps:$4 sm:$0xff] (!%p261_p12)   ;;  %v1018_v15 = vld [vmem:[%s1384_s4 + $0x28] ss:$16 sps:$4 sm:$0xff] (!%p261_p12)   ;;  %v1019_v17 = vld [vmem:[%s1384_s4 + $0x44] ss:$16 sps:$4 sm:$0xff] (!%p261_p12)  }
  0x40   : > { %v1394_v12 = vsub.s32 (!%p261_p12), %v366_v8, %v1382_v4  ;;  %702 = vmatprep.subr.bf16.mxu0 (!%p261_p12), %v1013_v11  ;;  %743 = vmatprep.subr.bf16.mxu1 (!%p261_p12), %v1015_v13  ;;  %v1021_v18 = vld [vmem:[%s1384_s4 + $0x4c] ss:$16 sps:$4 sm:$0xff] (!%p261_p12)   ;;  %v1023_v19 = vld [vmem:[%s1384_s4 + $0x40] ss:$16 sps:$4 sm:$0xff] (!%p261_p12)   ;;  %v1024_v20 = vld [vmem:[%s1384_s4 + $0x48] ss:$16 sps:$4 sm:$0xff] (!%p261_p12)  }
  0x41   : > { %v1025_v21 = vld [vmem:[%s1384_s4 + $0x64] ss:$16 sps:$4 sm:$0xff] (!%p261_p12)   ;;  %v1027_v22 = vld [vmem:[%s1384_s4 + $0x6c] ss:$16 sps:$4 sm:$0xff] (!%p261_p12)   ;;  %v1029_v23 = vld [vmem:[%s1384_s4 + $0x60] ss:$16 sps:$4 sm:$0xff] (!%p261_p12)  }
  0x42   : > { %v377_v16 = vrot.slane %v363_v7, %v1394_v12  ;;  %v1030_v24 = vld [vmem:[%s1384_s4 + $0x68] ss:$16 sps:$4 sm:$0xff]   ;;  %v1031_v25 = vld [vmem:[%s1384_s4 + $0x84] ss:$16 sps:$4 sm:$0xff]   ;;  %v1033_v26 = vld [vmem:[%s1384_s4 + $0x8c] ss:$16 sps:$4 sm:$0xff]   ;;  %v370_v11 = vrot.slane %v1379_v0, %v1394_v12 }
  0x43   : > { %703 = vmatpush1.bf16.msra.mxu0 %v1017_v14  ;;  %744 = vmatpush1.bf16.msra.mxu1 %v1018_v15  ;;  %v1035_v27 = vld [vmem:[%s1384_s4 + $0x80] ss:$16 sps:$4 sm:$0xff]   ;;  %v1036_v28 = vld [vmem:[%s1384_s4 + $0x88] ss:$16 sps:$4 sm:$0xff]   ;;  %v1037_v29 = vld [vmem:[%s1384_s4 + $0xa4] ss:$16 sps:$4 sm:$0xff]  }
  0x44   : > { %732 = vmatprep.mubr.bf16.mxu0 %v377_v16  ;;  %773 = vmatprep.mubr.bf16.mxu1 %v377_v16  ;;  %v1039_v30 = vld [vmem:[%s1384_s4 + $0xac] ss:$16 sps:$4 sm:$0xff]   ;;  %v1041_v31 = vld [vmem:[%s1384_s4 + $0xa0] ss:$16 sps:$4 sm:$0xff]   ;;  %v1042_v32 = vld [vmem:[%s1384_s4 + $0xa8] ss:$16 sps:$4 sm:$0xff]  }
  0x45   : > { %704 = vmatprep.subr.bf16.mxu0 %v1019_v17  ;;  %745 = vmatprep.subr.bf16.mxu1 %v1021_v18  ;;  %v1043_v33 = vld [vmem:[%s1384_s4 + $0xc4] ss:$16 sps:$4 sm:$0xff]   ;;  %v1045_v34 = vld [vmem:[%s1384_s4 + $0xcc] ss:$16 sps:$4 sm:$0xff]   ;;  %v1047_v35 = vld [vmem:[%s1384_s4 + $0xc0] ss:$16 sps:$4 sm:$0xff]  }
  0x46   : > { %v1048_v36 = vld [vmem:[%s1384_s4 + $0xc8] ss:$16 sps:$4 sm:$0xff]   ;;  %v1049_v37 = vld [vmem:[%s1384_s4 + $0xe4] ss:$16 sps:$4 sm:$0xff]   ;;  %v1051_v38 = vld [vmem:[%s1384_s4 + $0xec] ss:$16 sps:$4 sm:$0xff]  }
  0x47   : > { %705 = vmatpush1.bf16.msra.mxu0 %v1023_v19  ;;  %746 = vmatpush1.bf16.msra.mxu1 %v1024_v20  ;;  %v1053_v39 = vld [vmem:[%s1384_s4 + $0xe0] ss:$16 sps:$4 sm:$0xff]   ;;  %v1054_v40 = vld [vmem:[%s1384_s4 + $0xe8] ss:$16 sps:$4 sm:$0xff]   ;;  %v1055_v41 = vld [vmem:[%s1384_s4 + $0x104] ss:$16 sps:$4 sm:$0xff]  }
  0x48   : > { %706 = vmatprep.subr.bf16.mxu0 %v1025_v21  ;;  %747 = vmatprep.subr.bf16.mxu1 %v1027_v22  ;;  %v1057_v42 = vld [vmem:[%s1384_s4 + $0x10c] ss:$16 sps:$4 sm:$0xff]   ;;  %v1059_v43 = vld [vmem:[%s1384_s4 + $0x100] ss:$16 sps:$4 sm:$0xff]   ;;  %v1060_v44 = vld [vmem:[%s1384_s4 + $0x108] ss:$16 sps:$4 sm:$0xff]  }
  0x49   : > { %v1061_v45 = vld [vmem:[%s1384_s4 + $0x124] ss:$16 sps:$4 sm:$0xff]   ;;  %v1063_v46 = vld [vmem:[%s1384_s4 + $0x12c] ss:$16 sps:$4 sm:$0xff]   ;;  %v1065_v47 = vld [vmem:[%s1384_s4 + $0x120] ss:$16 sps:$4 sm:$0xff]  }
  0x4a   : > { %v1066_v48 = vld [vmem:[%s1384_s4 + $0x128] ss:$16 sps:$4 sm:$0xff]   ;;  %v1067_v49 = vld [vmem:[%s1384_s4 + $0x144] ss:$16 sps:$4 sm:$0xff]   ;;  %v1069_v50 = vld [vmem:[%s1384_s4 + $0x14c] ss:$16 sps:$4 sm:$0xff]  }
  0x4b   : > { %707 = vmatpush1.bf16.msra.mxu0 %v1029_v23  ;;  %748 = vmatpush1.bf16.msra.mxu1 %v1030_v24  ;;  %v1071_v51 = vld [vmem:[%s1384_s4 + $0x140] ss:$16 sps:$4 sm:$0xff]   ;;  %v1072_v52 = vld [vmem:[%s1384_s4 + $0x148] ss:$16 sps:$4 sm:$0xff]   ;;  %v1073_v53 = vld [vmem:[%s1384_s4 + $0x164] ss:$16 sps:$4 sm:$0xff]  }
  0x4c   : > { %708 = vmatprep.subr.bf16.mxu0 %v1031_v25  ;;  %749 = vmatprep.subr.bf16.mxu1 %v1033_v26  ;;  %v1075_v54 = vld [vmem:[%s1384_s4 + $0x16c] ss:$16 sps:$4 sm:$0xff]   ;;  %v1077_v55 = vld [vmem:[%s1384_s4 + $0x160] ss:$16 sps:$4 sm:$0xff]   ;;  %v1078_v56 = vld [vmem:[%s1384_s4 + $0x168] ss:$16 sps:$4 sm:$0xff]  }
  0x4d   : > { %v1079_v57 = vld [vmem:[%s1384_s4 + $0x184] ss:$16 sps:$4 sm:$0xff]   ;;  %v1081_v58 = vld [vmem:[%s1384_s4 + $0x18c] ss:$16 sps:$4 sm:$0xff]   ;;  %v1083_v59 = vld [vmem:[%s1384_s4 + $0x180] ss:$16 sps:$4 sm:$0xff]  }
  0x4e   : > { %v1084_v60 = vld [vmem:[%s1384_s4 + $0x188] ss:$16 sps:$4 sm:$0xff]   ;;  %v1085_v61 = vld [vmem:[%s1384_s4 + $0x1a4] ss:$16 sps:$4 sm:$0xff]   ;;  %v1087_v62 = vld [vmem:[%s1384_s4 + $0x1ac] ss:$16 sps:$4 sm:$0xff]  }
  0x4f   : > { %709 = vmatpush1.bf16.msra.mxu0 %v1035_v27  ;;  %750 = vmatpush1.bf16.msra.mxu1 %v1036_v28  ;;  %v1089_v63 = vld [vmem:[%s1384_s4 + $0x1a0] ss:$16 sps:$4 sm:$0xff]   ;;  %v1090_v1 = vld [vmem:[%s1384_s4 + $0x1a8] ss:$16 sps:$4 sm:$0xff]   ;;  %v1091_v2 = vld [vmem:[%s1384_s4 + $0x1c4] ss:$16 sps:$4 sm:$0xff]  }
  0x50   : > { %710 = vmatprep.subr.bf16.mxu0 %v1037_v29  ;;  %751 = vmatprep.subr.bf16.mxu1 %v1039_v30  ;;  %v1093_v3 = vld [vmem:[%s1384_s4 + $0x1cc] ss:$16 sps:$4 sm:$0xff]   ;;  %v1095_v5 = vld [vmem:[%s1384_s4 + $0x1c0] ss:$16 sps:$4 sm:$0xff]   ;;  %v1096_v6 = vld [vmem:[%s1384_s4 + $0x1c8] ss:$16 sps:$4 sm:$0xff]  }
  0x51   : > { %v1097_v7 = vld [vmem:[%s1384_s4 + $0x1e4] ss:$16 sps:$4 sm:$0xff]   ;;  %v1099_v8 = vld [vmem:[%s1384_s4 + $0x1ec] ss:$16 sps:$4 sm:$0xff]   ;;  %v1101_v9 = vld [vmem:[%s1384_s4 + $0x1e0] ss:$16 sps:$4 sm:$0xff]  }
  0x52   : > { %v1102_v10 = vld [vmem:[%s1384_s4 + $0x1e8] ss:$16 sps:$4 sm:$0xff]   ;;  %v1168_v13 = vmov 1983009808   ;;  %s287_s7 = scalar_lea.vmem [#allocation3], %s893_s5  ;;  %s806_s21 = scalar_lea.sflag [#allocation4], %s1374_s28 }
  0x53   : > { %711 = vmatpush1.bf16.msra.mxu0 %v1041_v31  ;;  %752 = vmatpush1.bf16.msra.mxu1 %v1042_v32  ;;  %v789_v14 = vunpack.c.l.s4 %v1168_v13  ;;  %s820_s8 = sshll.u32 %s287_s7, 4  ;;  %s1169_s13 = smov [#allocation3]   ;;  %s1467_s8 = int_to_ptr.vmem [resolvable:$true] %s820_s8 }
  0x54   : > { %712 = vmatprep.subr.bf16.mxu0 %v1043_v33  ;;  %753 = vmatprep.subr.bf16.mxu1 %v1045_v34  ;;  %s1103_s22 = scalar_lea.vmem %s1467_s8, 128  ;;  %s1107_s23 = sshll.u32 %s1169_s13, 4  ;;  %s1108_s23 = int_to_ptr.vmem [resolvable:$false] %s1107_s23 }
  0x55   : > { %v790_v15 = vunpack.c.0.s8 %v789_v14  ;;  %p1104_p13 = scmp.ne.s32.totalorder %s1467_s8, %s1103_s22  ;;  %s1109_s24 = scalar_lea.vmem %s1108_s23, 256 }
  0x56   : > { %p1110_p2 = scmp.lt.s32.totalorder %s1467_s8, %s1108_s23  ;;  %p1111_p3 = scmp.lt.s32.totalorder %s1109_s24, %s1103_s22 }
  0x57   : > { %713 = vmatpush1.bf16.msra.mxu0 %v1047_v35  ;;  %754 = vmatpush1.bf16.msra.mxu1 %v1048_v36  ;;  %v793_v18 = vsub.s32 %v790_v15, %v1382_v4  ;;  %p1105_p0 = pnand %p1104_p13, %p1223_p6 }
  0x58   : > { %714 = vmatprep.subr.bf16.mxu0 %v1049_v37  ;;  %755 = vmatprep.subr.bf16.mxu1 %v1051_v38  ;;  %p1112_p4 = por %p1111_p3, %p1110_p2 }
  0x59   : > { %p1106_p1 = pneg %p1105_p0 }
  0x5b   : > { %715 = vmatpush1.bf16.msra.mxu0 %v1053_v39  ;;  %756 = vmatpush1.bf16.msra.mxu1 %v1054_v40  ;;  %p1113_p5 = pnand %p1112_p4, %p1106_p1 }
  0x5c   : > { %716 = vmatprep.subr.bf16.mxu0 %v1055_v41  ;;  %757 = vmatprep.subr.bf16.mxu1 %v1057_v42 }
  0x5f   : > { %717 = vmatpush1.bf16.msra.mxu0 %v1059_v43  ;;  %758 = vmatpush1.bf16.msra.mxu1 %v1060_v44 }
  0x60   : > { %718 = vmatprep.subr.bf16.mxu0 %v1061_v45  ;;  %759 = vmatprep.subr.bf16.mxu1 %v1063_v46 }
  0x63   : > { %719 = vmatpush1.bf16.msra.mxu0 %v1065_v47  ;;  %760 = vmatpush1.bf16.msra.mxu1 %v1066_v48 }
  0x64   : > { %720 = vmatprep.subr.bf16.mxu0 %v1067_v49  ;;  %761 = vmatprep.subr.bf16.mxu1 %v1069_v50 }
  0x67   : > { %721 = vmatpush1.bf16.msra.mxu0 %v1071_v51  ;;  %762 = vmatpush1.bf16.msra.mxu1 %v1072_v52 }
  0x68   : > { %722 = vmatprep.subr.bf16.mxu0 %v1073_v53  ;;  %763 = vmatprep.subr.bf16.mxu1 %v1075_v54 }
  0x6b   : > { %723 = vmatpush1.bf16.msra.mxu0 %v1077_v55  ;;  %764 = vmatpush1.bf16.msra.mxu1 %v1078_v56 }
  0x6c   : > { %724 = vmatprep.subr.bf16.mxu0 %v1079_v57  ;;  %765 = vmatprep.subr.bf16.mxu1 %v1081_v58 }
  0x6f   : > { %725 = vmatpush1.bf16.msra.mxu0 %v1083_v59  ;;  %766 = vmatpush1.bf16.msra.mxu1 %v1084_v60 }
  0x70   : > { %726 = vmatprep.subr.bf16.mxu0 %v1085_v61  ;;  %767 = vmatprep.subr.bf16.mxu1 %v1087_v62 }
  0x73   : > { %727 = vmatpush1.bf16.msra.mxu0 %v1089_v63  ;;  %768 = vmatpush1.bf16.msra.mxu1 %v1090_v1 }
  0x74   : > { %728 = vmatprep.subr.bf16.mxu0 %v1091_v2  ;;  %769 = vmatprep.subr.bf16.mxu1 %v1093_v3 }
  0x77   : > { %729 = vmatpush1.bf16.msra.mxu0 %v1095_v5  ;;  %770 = vmatpush1.bf16.msra.mxu1 %v1096_v6 }
  0x78   : > { %730 = vmatprep.subr.bf16.mxu0 %v1097_v7  ;;  %771 = vmatprep.subr.bf16.mxu1 %v1099_v8 }
  0x7b   : > { %731 = vmatpush1.bf16.msra.mxu0 %v1101_v9  ;;  %772 = vmatpush1.bf16.msra.mxu1 %v1102_v10 }
  0x7e   : > { %733 = vmatmul.mubr.bf16.vlgmr.msra.gmra.mrb[0].mxu0 %v370_v11  ;;  %774 = vmatmul.mubr.bf16.vlgmr.msra.gmra.mrb[0].mxu1 %v370_v11 }
 0x151   : > { %v734_v16 = vpop.f32.mrb[0].mxu0  ;;  %v775_v17 = vpop.f32.mrb[0].mxu1 }
 0x152   : > { %v736_v19 = vpop.f32.mrb[1].mxu0  ;;  %v777_v20 = vpop.f32.mrb[1].mxu1 }
 0x153   : > { %v786_v21 = vcombine.low %v734_v16, %v736_v19  ;;  %v787_v22 = vcombine.low %v775_v17, %v777_v20  ;;  %v738_v23 = vpop.f32.mrb[2].mxu0  ;;  %v779_v0 = vpop.f32.mrb[2].mxu1 }
 0x154   : > { %v739_v12 = vpop.f32.mrb[3].mxu0  ;;  %v780_v24 = vpop.f32.mrb[3].mxu1 }
 0x155   : > { %v794_v25 = vrot.slane %v786_v21, %v793_v18  ;;  %v801_v26 = vrot.slane %v787_v22, %v793_v18 }
 0x157   : > { %v802_v27 = vcombine.low %v794_v25, %v801_v26 }
 0x159   : > { %804 = vst [vmem:[%s287_s7] sm:$0xff] %v802_v27 }
 0x15a   : > { %1116 = shalt.err (!%p1113_p5)
}
 0x15b   : > { %s1117_s25 = scalar_lea.hbm %s1465_s17, 128  ;;  %s1121_s28 = scalar_lea.hbm %s1511_s2, 256 }
 0x15c   : > { %p1118_p7 = scmp.ne.s32.totalorder %s1465_s17, %s1117_s25  ;;  %p1122_p12 = scmp.lt.u32.totalorder %s1465_s17, %s1511_s2 }
 0x15d   : > { %p1123_p13 = scmp.lt.u32.totalorder %s1121_s28, %s1117_s25  ;;  %p1125_p1 = scmp.lt.u32.totalorder %s1117_s25, %s1465_s17 }
 0x15e   : > { %p1119_p10 = pnand %p1118_p7, %p1223_p6 }
 0x15f   : > { %p1124_p0 = por %p1123_p13, %p1122_p12 }
 0x160   : > { %p1120_p11 = pneg %p1119_p10 }
 0x161   : > { %p1126_p2 = por %p1125_p1, %p1124_p0 }
 0x163   : > { %p1127_p3 = pnand %p1126_p2, %p1120_p11 }
 0x165   : > { %1130 = shalt.err (!%p1127_p3)
}
 0x166   : > { %966 = dma.vmem_to_hbm [thread:$0]  (%p1223_p6), %s1467_s8, 128, %s1465_s17, %s806_s21  }
 0x167 PF: > { %s832_s3 = sand.u32 1, %s1153_s9   ;;  %p969_p4 = pnand %p887_p9, %p1227_p8 }
 0x168   : > { %s833_s4 = scalar_lea.sflag [#allocation4], %s832_s3 }
 0x169   : > { %1148 = dma.done.wait (!%p969_p4), %s833_s4, 128  }
 0x16a   : > { %1150 = vsyncadd (!%p969_p4), %s833_s4, 4294967168  ;;  %p12_p5 = scmp.ge.s32.totalorder %s1208_s15, 4   ;;  %s1514_s9 = smov %s1157_s10 }
 0x16b   : > { %s1515_s10 = smov %s1161_s11  ;;  %s1516_s11 = smov %s1221_s18 }
 0x16c   : > { %s1517_s12 = smov %s1208_s15  ;;  %14 = sbr.rel (!%p12_p5) target bundleno = 3 (0x3), region = 91 }
 0x173   :  { %838 = vsyncpa [#allocation4], 1 }
 0x174   :  { %840 = vsyncpa [#allocation4 + $0x1], 1 }

// kernel: transformer_forward.21
= control target key start
LH: loop header
LB: loop body
LE: loop exit
PB: predicated region body
PF: predicated region fallthrough
CT: control target
= control target key end

     0   :  { %s2522_s18 = smov 0   ;;  %s2524_s19 = smov 0   ;;  %s3043_s0 = inlined_call_operand.vmem [shape: bf16[2,256], index: 0, kind: input, shape index: {}]   ;;  %s3044_s1 = inlined_call_operand.vmem [shape: f32[2,256], index: 1, kind: input, shape index: {}]   ;;  %s3045_s2 = inlined_call_operand.vmem [shape: bf16[256,768], index: 2, kind: input, shape index: {}]   ;;  %s3046_s3 = inlined_call_operand.vmem [shape: bf16[256,768], index: 3, kind: input, shape index: {}]   ;;  %s3047_s4 = inlined_call_operand.vmem [shape: bf16[768,256], index: 4, kind: input, shape index: {}]   ;;  %s3048_s5 = inlined_call_operand.vmem [shape: f32[2,256], index: 5, kind: output, shape index: {}]  }
   0x1   :  { %s2526_s20 = smov 0  }
   0x2 LB: > { %s1885_s21 = sadd.s32 4294967295, %s2487_s20   ;;  %s2539_s22 = sadd.s32 1, %s2487_s20   ;;  %s2487_s20 = sphi %s2526_s20, %s3052_s20   ;;  %s2483_s19 = sphi %s2524_s19, %s3051_s19   ;;  %s2479_s18 = sphi %s2522_s18, %s3050_s18  }
   0x3   : > { %s61_s23 = ssub.s32 %s2487_s20, %s2539_s22  ;;  %s64_s24 = sadd.s32 1, %s2483_s19 }
   0x4   : > { %p62_p0 = scmp.eq.s32.totalorder %s61_s23, 0  ;;  %p71_p1 = scmp.ne.s32.totalorder %s2483_s19, %s2479_s18 }
   0x5   : > { %p72_p2 = scmp.eq.s32.totalorder %s2487_s20, 0  ;;  %p1887_p4 = scmp.ge.s32.totalorder %s2487_s20, 2 }
   0x6   : > { %s2548_s25 = scalar_select %p62_p0, %s2483_s19, %s64_s24  }
   0x7   : > { %p2550_p3 = por %p72_p2, %p71_p1  ;;  %176 = sbr.rel (%p1887_p4) target bundleno = 98 (0x62), region = 24 }
   0xe   : > { %179 = sbr.rel (!%p2550_p3) target bundleno = 56 (0x38), region = 28  ;;  %s181_s27 = sand.u32 (%p2550_p3), 1, %s2483_s19  }
   0xf   : > { %s2172_s28 = smul.u32 (%p2550_p3), 12, %s2487_s20 }
  0x10   : > { %s2223_s29 = smul.u32 (%p2550_p3), 384, %s181_s27 }
  0x11   : > { %s2562_s7 = scalar_lea.vmem (%p2550_p3), %s3045_s2, %s2172_s28 }
  0x12   : > { %v201_v0 = vld [vmem:[%s2562_s7] sm:$0xff] (%p2550_p3)  ;;  %v203_v1 = vld [vmem:[%s2562_s7 + $0x18] sm:$0xff] (%p2550_p3)  ;;  %v205_v2 = vld [vmem:[%s2562_s7 + $0x30] sm:$0xff] (%p2550_p3)  ;;  %s2567_s8 = scalar_lea.vmem (%p2550_p3), [#allocation2], %s2223_s29 }
  0x13   : > { %202 = vst [vmem:[%s2567_s8] sm:$0xff] (%p2550_p3), %v201_v0  ;;  %204 = vst [vmem:[%s2567_s8 + $0xc] sm:$0xff] (%p2550_p3), %v203_v1  ;;  %v207_v3 = vld [vmem:[%s2562_s7 + $0x48] sm:$0xff] (%p2550_p3)  ;;  %v209_v4 = vld [vmem:[%s2562_s7 + $0x60] sm:$0xff] (%p2550_p3) }
  0x14   : > { %206 = vst [vmem:[%s2567_s8 + $0x18] sm:$0xff] (%p2550_p3), %v205_v2  ;;  %v211_v5 = vld [vmem:[%s2562_s7 + $0x78] sm:$0xff] (%p2550_p3)  ;;  %208 = vst [vmem:[%s2567_s8 + $0x24] sm:$0xff] (%p2550_p3), %v207_v3  ;;  %v213_v6 = vld [vmem:[%s2562_s7 + $0x90] sm:$0xff] (%p2550_p3) }
  0x15   : > { %210 = vst [vmem:[%s2567_s8 + $0x30] sm:$0xff] %v209_v4  ;;  %212 = vst [vmem:[%s2567_s8 + $0x3c] sm:$0xff] %v211_v5  ;;  %v215_v7 = vld [vmem:[%s2562_s7 + $0xa8] sm:$0xff]  ;;  %v217_v8 = vld [vmem:[%s2562_s7 + $0xc0] sm:$0xff] }
  0x16   : > { %214 = vst [vmem:[%s2567_s8 + $0x48] sm:$0xff] %v213_v6  ;;  %216 = vst [vmem:[%s2567_s8 + $0x54] sm:$0xff] %v215_v7  ;;  %v219_v9 = vld [vmem:[%s2562_s7 + $0xd8] sm:$0xff]  ;;  %v221_v10 = vld [vmem:[%s2562_s7 + $0xf0] sm:$0xff] }
  0x17   : > { %218 = vst [vmem:[%s2567_s8 + $0x60] sm:$0xff] %v217_v8  ;;  %v223_v11 = vld [vmem:[%s2562_s7 + $0x108] sm:$0xff]  ;;  %220 = vst [vmem:[%s2567_s8 + $0x6c] sm:$0xff] %v219_v9  ;;  %v225_v12 = vld [vmem:[%s2562_s7 + $0x120] sm:$0xff] }
  0x18   : > { %222 = vst [vmem:[%s2567_s8 + $0x78] sm:$0xff] %v221_v10  ;;  %224 = vst [vmem:[%s2567_s8 + $0x84] sm:$0xff] %v223_v11  ;;  %v227_v13 = vld [vmem:[%s2562_s7 + $0x138] sm:$0xff]  ;;  %v229_v14 = vld [vmem:[%s2562_s7 + $0x150] sm:$0xff] }
  0x19   : > { %226 = vst [vmem:[%s2567_s8 + $0x90] sm:$0xff] %v225_v12  ;;  %228 = vst [vmem:[%s2567_s8 + $0x9c] sm:$0xff] %v227_v13  ;;  %v231_v15 = vld [vmem:[%s2562_s7 + $0x168] sm:$0xff]  ;;  %v233_v16 = vld [vmem:[%s2562_s7 + $0x180] sm:$0xff] }
  0x1a   : > { %230 = vst [vmem:[%s2567_s8 + $0xa8] sm:$0xff] %v229_v14  ;;  %v235_v17 = vld [vmem:[%s2562_s7 + $0x198] sm:$0xff]  ;;  %232 = vst [vmem:[%s2567_s8 + $0xb4] sm:$0xff] %v231_v15  ;;  %v237_v18 = vld [vmem:[%s2562_s7 + $0x1b0] sm:$0xff] }
  0x1b   : > { %234 = vst [vmem:[%s2567_s8 + $0xc0] sm:$0xff] %v233_v16  ;;  %236 = vst [vmem:[%s2567_s8 + $0xcc] sm:$0xff] %v235_v17  ;;  %v239_v19 = vld [vmem:[%s2562_s7 + $0x1c8] sm:$0xff]  ;;  %v241_v20 = vld [vmem:[%s2562_s7 + $0x1e0] sm:$0xff] }
  0x1c   : > { %238 = vst [vmem:[%s2567_s8 + $0xd8] sm:$0xff] %v237_v18  ;;  %240 = vst [vmem:[%s2567_s8 + $0xe4] sm:$0xff] %v239_v19  ;;  %v243_v21 = vld [vmem:[%s2562_s7 + $0x1f8] sm:$0xff]  ;;  %v245_v22 = vld [vmem:[%s2562_s7 + $0x210] sm:$0xff] }
  0x1d   : > { %242 = vst [vmem:[%s2567_s8 + $0xf0] sm:$0xff] %v241_v20  ;;  %v247_v23 = vld [vmem:[%s2562_s7 + $0x228] sm:$0xff]  ;;  %244 = vst [vmem:[%s2567_s8 + $0xfc] sm:$0xff] %v243_v21  ;;  %v249_v24 = vld [vmem:[%s2562_s7 + $0x240] sm:$0xff] }
  0x1e   : > { %246 = vst [vmem:[%s2567_s8 + $0x108] sm:$0xff] %v245_v22  ;;  %248 = vst [vmem:[%s2567_s8 + $0x114] sm:$0xff] %v247_v23  ;;  %v251_v25 = vld [vmem:[%s2562_s7 + $0x258] sm:$0xff]  ;;  %v253_v26 = vld [vmem:[%s2562_s7 + $0x270] sm:$0xff] }
  0x1f   : > { %250 = vst [vmem:[%s2567_s8 + $0x120] sm:$0xff] %v249_v24  ;;  %252 = vst [vmem:[%s2567_s8 + $0x12c] sm:$0xff] %v251_v25  ;;  %v255_v27 = vld [vmem:[%s2562_s7 + $0x288] sm:$0xff]  ;;  %v257_v28 = vld [vmem:[%s2562_s7 + $0x2a0] sm:$0xff] }
  0x20   : > { %254 = vst [vmem:[%s2567_s8 + $0x138] sm:$0xff] %v253_v26  ;;  %v259_v29 = vld [vmem:[%s2562_s7 + $0x2b8] sm:$0xff]  ;;  %256 = vst [vmem:[%s2567_s8 + $0x144] sm:$0xff] %v255_v27  ;;  %v261_v30 = vld [vmem:[%s2562_s7 + $0x2d0] sm:$0xff] }
  0x21   : > { %258 = vst [vmem:[%s2567_s8 + $0x150] sm:$0xff] %v257_v28  ;;  %260 = vst [vmem:[%s2567_s8 + $0x15c] sm:$0xff] %v259_v29  ;;  %v263_v31 = vld [vmem:[%s2562_s7 + $0x2e8] sm:$0xff]  ;;  %v1891_v33 = vld [vmem:[%s2562_s7 + $0x20] sm:$0xf] }
  0x22   : > { %v1889_v32 = vld [vmem:[%s2562_s7 + $0x8] sm:$0xf]  ;;  %262 = vst [vmem:[%s2567_s8 + $0x168] sm:$0xff] %v261_v30  ;;  %264 = vst [vmem:[%s2567_s8 + $0x174] sm:$0xff] %v263_v31  ;;  %v1893_v34 = vld [vmem:[%s2562_s7 + $0x38] sm:$0xf] }
  0x23   : > { %1890 = vst [vmem:[%s2567_s8 + $0x8] sm:$0xf] %v1889_v32  ;;  %v1895_v35 = vld [vmem:[%s2562_s7 + $0x50] sm:$0xf]  ;;  %1892 = vst [vmem:[%s2567_s8 + $0x14] sm:$0xf] %v1891_v33 }
  0x24   : > { %1894 = vst [vmem:[%s2567_s8 + $0x20] sm:$0xf] %v1893_v34  ;;  %1896 = vst [vmem:[%s2567_s8 + $0x2c] sm:$0xf] %v1895_v35  ;;  %v1897_v36 = vld [vmem:[%s2562_s7 + $0x68] sm:$0xf] }
  0x25   : > { %v1899_v37 = vld [vmem:[%s2562_s7 + $0x80] sm:$0xf]  ;;  %v1901_v38 = vld [vmem:[%s2562_s7 + $0x98] sm:$0xf]  ;;  %1898 = vst [vmem:[%s2567_s8 + $0x38] sm:$0xf] %v1897_v36 }
  0x26   : > { %1900 = vst [vmem:[%s2567_s8 + $0x44] sm:$0xf] %v1899_v37  ;;  %1902 = vst [vmem:[%s2567_s8 + $0x50] sm:$0xf] %v1901_v38  ;;  %v1903_v39 = vld [vmem:[%s2562_s7 + $0xb0] sm:$0xf] }
  0x27   : > { %v1905_v40 = vld [vmem:[%s2562_s7 + $0xc8] sm:$0xf]  ;;  %v1907_v41 = vld [vmem:[%s2562_s7 + $0xe0] sm:$0xf]  ;;  %1904 = vst [vmem:[%s2567_s8 + $0x5c] sm:$0xf] %v1903_v39 }
  0x28   : > { %1906 = vst [vmem:[%s2567_s8 + $0x68] sm:$0xf] %v1905_v40  ;;  %1908 = vst [vmem:[%s2567_s8 + $0x74] sm:$0xf] %v1907_v41  ;;  %v1909_v42 = vld [vmem:[%s2562_s7 + $0xf8] sm:$0xf] }
  0x29   : > { %v1911_v43 = vld [vmem:[%s2562_s7 + $0x110] sm:$0xf]  ;;  %v1913_v44 = vld [vmem:[%s2562_s7 + $0x128] sm:$0xf]  ;;  %1910 = vst [vmem:[%s2567_s8 + $0x80] sm:$0xf] %v1909_v42 }
  0x2a   : > { %1912 = vst [vmem:[%s2567_s8 + $0x8c] sm:$0xf] %v1911_v43  ;;  %1914 = vst [vmem:[%s2567_s8 + $0x98] sm:$0xf] %v1913_v44  ;;  %v1915_v45 = vld [vmem:[%s2562_s7 + $0x140] sm:$0xf] }
  0x2b   : > { %v1917_v46 = vld [vmem:[%s2562_s7 + $0x158] sm:$0xf]  ;;  %v1919_v47 = vld [vmem:[%s2562_s7 + $0x170] sm:$0xf]  ;;  %1916 = vst [vmem:[%s2567_s8 + $0xa4] sm:$0xf] %v1915_v45 }
  0x2c   : > { %1918 = vst [vmem:[%s2567_s8 + $0xb0] sm:$0xf] %v1917_v46  ;;  %1920 = vst [vmem:[%s2567_s8 + $0xbc] sm:$0xf] %v1919_v47  ;;  %v1921_v48 = vld [vmem:[%s2562_s7 + $0x188] sm:$0xf] }
  0x2d   : > { %v1923_v49 = vld [vmem:[%s2562_s7 + $0x1a0] sm:$0xf]  ;;  %v1925_v50 = vld [vmem:[%s2562_s7 + $0x1b8] sm:$0xf]  ;;  %1922 = vst [vmem:[%s2567_s8 + $0xc8] sm:$0xf] %v1921_v48 }
  0x2e   : > { %1924 = vst [vmem:[%s2567_s8 + $0xd4] sm:$0xf] %v1923_v49  ;;  %1926 = vst [vmem:[%s2567_s8 + $0xe0] sm:$0xf] %v1925_v50  ;;  %v1927_v51 = vld [vmem:[%s2562_s7 + $0x1d0] sm:$0xf] }
  0x2f   : > { %v1929_v52 = vld [vmem:[%s2562_s7 + $0x1e8] sm:$0xf]  ;;  %v1931_v53 = vld [vmem:[%s2562_s7 + $0x200] sm:$0xf]  ;;  %1928 = vst [vmem:[%s2567_s8 + $0xec] sm:$0xf] %v1927_v51 }
  0x30   : > { %1930 = vst [vmem:[%s2567_s8 + $0xf8] sm:$0xf] %v1929_v52  ;;  %1932 = vst [vmem:[%s2567_s8 + $0x104] sm:$0xf] %v1931_v53  ;;  %v1933_v54 = vld [vmem:[%s2562_s7 + $0x218] sm:$0xf] }
  0x31   : > { %v1935_v55 = vld [vmem:[%s2562_s7 + $0x230] sm:$0xf]  ;;  %v1937_v56 = vld [vmem:[%s2562_s7 + $0x248] sm:$0xf]  ;;  %1934 = vst [vmem:[%s2567_s8 + $0x110] sm:$0xf] %v1933_v54 }
  0x32   : > { %1936 = vst [vmem:[%s2567_s8 + $0x11c] sm:$0xf] %v1935_v55  ;;  %1938 = vst [vmem:[%s2567_s8 + $0x128] sm:$0xf] %v1937_v56  ;;  %v1939_v57 = vld [vmem:[%s2562_s7 + $0x260] sm:$0xf] }
  0x33   : > { %v1941_v58 = vld [vmem:[%s2562_s7 + $0x278] sm:$0xf]  ;;  %v1943_v59 = vld [vmem:[%s2562_s7 + $0x290] sm:$0xf]  ;;  %1940 = vst [vmem:[%s2567_s8 + $0x134] sm:$0xf] %v1939_v57 }
  0x34   : > { %1942 = vst [vmem:[%s2567_s8 + $0x140] sm:$0xf] %v1941_v58  ;;  %1944 = vst [vmem:[%s2567_s8 + $0x14c] sm:$0xf] %v1943_v59  ;;  %v1945_v60 = vld [vmem:[%s2562_s7 + $0x2a8] sm:$0xf] }
  0x35   : > { %v1947_v61 = vld [vmem:[%s2562_s7 + $0x2c0] sm:$0xf]  ;;  %v1949_v62 = vld [vmem:[%s2562_s7 + $0x2d8] sm:$0xf]  ;;  %1946 = vst [vmem:[%s2567_s8 + $0x158] sm:$0xf] %v1945_v60 }
  0x36   : > { %1948 = vst [vmem:[%s2567_s8 + $0x164] sm:$0xf] %v1947_v61  ;;  %1950 = vst [vmem:[%s2567_s8 + $0x170] sm:$0xf] %v1949_v62  ;;  %v1951_v63 = vld [vmem:[%s2562_s7 + $0x2f0] sm:$0xf] }
  0x37   : > { %1952 = vst [vmem:[%s2567_s8 + $0x17c] sm:$0xf] %v1951_v63 }
  0x38 PF: > { %341 = sbr.rel (!%p2550_p3) target bundleno = 98 (0x62), region = 54  ;;  %s343_s9 = sand.u32 (%p2550_p3), 1, %s2483_s19  }
  0x39   : > { %s2173_s10 = smul.u32 (%p2550_p3), 12, %s2487_s20 }
  0x3a   : > { %s2224_s11 = smul.u32 (%p2550_p3), 384, %s343_s9 }
  0x3b   : > { %s2701_s14 = scalar_lea.vmem (%p2550_p3), %s3046_s3, %s2173_s10 }
  0x3c   : > { %v363_v0 = vld [vmem:[%s2701_s14] sm:$0xff] (%p2550_p3)  ;;  %v365_v1 = vld [vmem:[%s2701_s14 + $0x18] sm:$0xff] (%p2550_p3)  ;;  %v367_v2 = vld [vmem:[%s2701_s14 + $0x30] sm:$0xff] (%p2550_p3)  ;;  %s2706_s15 = scalar_lea.vmem (%p2550_p3), [#allocation3], %s2224_s11 }
  0x3d   : > { %364 = vst [vmem:[%s2706_s15] sm:$0xff] (%p2550_p3), %v363_v0  ;;  %366 = vst [vmem:[%s2706_s15 + $0xc] sm:$0xff] (%p2550_p3), %v365_v1  ;;  %v369_v3 = vld [vmem:[%s2701_s14 + $0x48] sm:$0xff] (%p2550_p3)  ;;  %v371_v4 = vld [vmem:[%s2701_s14 + $0x60] sm:$0xff] (%p2550_p3) }
  0x3e   : > { %368 = vst [vmem:[%s2706_s15 + $0x18] sm:$0xff] (%p2550_p3), %v367_v2  ;;  %v373_v5 = vld [vmem:[%s2701_s14 + $0x78] sm:$0xff] (%p2550_p3)  ;;  %370 = vst [vmem:[%s2706_s15 + $0x24] sm:$0xff] (%p2550_p3), %v369_v3  ;;  %v375_v6 = vld [vmem:[%s2701_s14 + $0x90] sm:$0xff] (%p2550_p3) }
  0x3f   : > { %372 = vst [vmem:[%s2706_s15 + $0x30] sm:$0xff] %v371_v4  ;;  %374 = vst [vmem:[%s2706_s15 + $0x3c] sm:$0xff] %v373_v5  ;;  %v377_v7 = vld [vmem:[%s2701_s14 + $0xa8] sm:$0xff]  ;;  %v379_v8 = vld [vmem:[%s2701_s14 + $0xc0] sm:$0xff] }
  0x40   : > { %376 = vst [vmem:[%s2706_s15 + $0x48] sm:$0xff] %v375_v6  ;;  %378 = vst [vmem:[%s2706_s15 + $0x54] sm:$0xff] %v377_v7  ;;  %v381_v9 = vld [vmem:[%s2701_s14 + $0xd8] sm:$0xff]  ;;  %v383_v10 = vld [vmem:[%s2701_s14 + $0xf0] sm:$0xff] }
  0x41   : > { %380 = vst [vmem:[%s2706_s15 + $0x60] sm:$0xff] %v379_v8  ;;  %v385_v11 = vld [vmem:[%s2701_s14 + $0x108] sm:$0xff]  ;;  %382 = vst [vmem:[%s2706_s15 + $0x6c] sm:$0xff] %v381_v9  ;;  %v387_v12 = vld [vmem:[%s2701_s14 + $0x120] sm:$0xff] }
  0x42   : > { %384 = vst [vmem:[%s2706_s15 + $0x78] sm:$0xff] %v383_v10  ;;  %386 = vst [vmem:[%s2706_s15 + $0x84] sm:$0xff] %v385_v11  ;;  %v389_v13 = vld [vmem:[%s2701_s14 + $0x138] sm:$0xff]  ;;  %v391_v14 = vld [vmem:[%s2701_s14 + $0x150] sm:$0xff] }
  0x43   : > { %388 = vst [vmem:[%s2706_s15 + $0x90] sm:$0xff] %v387_v12  ;;  %390 = vst [vmem:[%s2706_s15 + $0x9c] sm:$0xff] %v389_v13  ;;  %v393_v15 = vld [vmem:[%s2701_s14 + $0x168] sm:$0xff]  ;;  %v395_v16 = vld [vmem:[%s2701_s14 + $0x180] sm:$0xff] }
  0x44   : > { %392 = vst [vmem:[%s2706_s15 + $0xa8] sm:$0xff] %v391_v14  ;;  %v397_v17 = vld [vmem:[%s2701_s14 + $0x198] sm:$0xff]  ;;  %394 = vst [vmem:[%s2706_s15 + $0xb4] sm:$0xff] %v393_v15  ;;  %v399_v18 = vld [vmem:[%s2701_s14 + $0x1b0] sm:$0xff] }
  0x45   : > { %396 = vst [vmem:[%s2706_s15 + $0xc0] sm:$0xff] %v395_v16  ;;  %398 = vst [vmem:[%s2706_s15 + $0xcc] sm:$0xff] %v397_v17  ;;  %v401_v19 = vld [vmem:[%s2701_s14 + $0x1c8] sm:$0xff]  ;;  %v403_v20 = vld [vmem:[%s2701_s14 + $0x1e0] sm:$0xff] }
  0x46   : > { %400 = vst [vmem:[%s2706_s15 + $0xd8] sm:$0xff] %v399_v18  ;;  %402 = vst [vmem:[%s2706_s15 + $0xe4] sm:$0xff] %v401_v19  ;;  %v405_v21 = vld [vmem:[%s2701_s14 + $0x1f8] sm:$0xff]  ;;  %v407_v22 = vld [vmem:[%s2701_s14 + $0x210] sm:$0xff] }
  0x47   : > { %404 = vst [vmem:[%s2706_s15 + $0xf0] sm:$0xff] %v403_v20  ;;  %v409_v23 = vld [vmem:[%s2701_s14 + $0x228] sm:$0xff]  ;;  %406 = vst [vmem:[%s2706_s15 + $0xfc] sm:$0xff] %v405_v21  ;;  %v411_v24 = vld [vmem:[%s2701_s14 + $0x240] sm:$0xff] }
  0x48   : > { %408 = vst [vmem:[%s2706_s15 + $0x108] sm:$0xff] %v407_v22  ;;  %410 = vst [vmem:[%s2706_s15 + $0x114] sm:$0xff] %v409_v23  ;;  %v413_v25 = vld [vmem:[%s2701_s14 + $0x258] sm:$0xff]  ;;  %v415_v26 = vld [vmem:[%s2701_s14 + $0x270] sm:$0xff] }
  0x49   : > { %412 = vst [vmem:[%s2706_s15 + $0x120] sm:$0xff] %v411_v24  ;;  %414 = vst [vmem:[%s2706_s15 + $0x12c] sm:$0xff] %v413_v25  ;;  %v417_v27 = vld [vmem:[%s2701_s14 + $0x288] sm:$0xff]  ;;  %v419_v28 = vld [vmem:[%s2701_s14 + $0x2a0] sm:$0xff] }
  0x4a   : > { %416 = vst [vmem:[%s2706_s15 + $0x138] sm:$0xff] %v415_v26  ;;  %v421_v29 = vld [vmem:[%s2701_s14 + $0x2b8] sm:$0xff]  ;;  %418 = vst [vmem:[%s2706_s15 + $0x144] sm:$0xff] %v417_v27  ;;  %v423_v30 = vld [vmem:[%s2701_s14 + $0x2d0] sm:$0xff] }
  0x4b   : > { %420 = vst [vmem:[%s2706_s15 + $0x150] sm:$0xff] %v419_v28  ;;  %422 = vst [vmem:[%s2706_s15 + $0x15c] sm:$0xff] %v421_v29  ;;  %v425_v31 = vld [vmem:[%s2701_s14 + $0x2e8] sm:$0xff]  ;;  %v1956_v33 = vld [vmem:[%s2701_s14 + $0x20] sm:$0xf] }
  0x4c   : > { %v1954_v32 = vld [vmem:[%s2701_s14 + $0x8] sm:$0xf]  ;;  %424 = vst [vmem:[%s2706_s15 + $0x168] sm:$0xff] %v423_v30  ;;  %426 = vst [vmem:[%s2706_s15 + $0x174] sm:$0xff] %v425_v31  ;;  %v1958_v34 = vld [vmem:[%s2701_s14 + $0x38] sm:$0xf] }
  0x4d   : > { %1955 = vst [vmem:[%s2706_s15 + $0x8] sm:$0xf] %v1954_v32  ;;  %v1960_v35 = vld [vmem:[%s2701_s14 + $0x50] sm:$0xf]  ;;  %1957 = vst [vmem:[%s2706_s15 + $0x14] sm:$0xf] %v1956_v33 }
  0x4e   : > { %1959 = vst [vmem:[%s2706_s15 + $0x20] sm:$0xf] %v1958_v34  ;;  %1961 = vst [vmem:[%s2706_s15 + $0x2c] sm:$0xf] %v1960_v35  ;;  %v1962_v36 = vld [vmem:[%s2701_s14 + $0x68] sm:$0xf] }
  0x4f   : > { %v1964_v37 = vld [vmem:[%s2701_s14 + $0x80] sm:$0xf]  ;;  %v1966_v38 = vld [vmem:[%s2701_s14 + $0x98] sm:$0xf]  ;;  %1963 = vst [vmem:[%s2706_s15 + $0x38] sm:$0xf] %v1962_v36 }
  0x50   : > { %1965 = vst [vmem:[%s2706_s15 + $0x44] sm:$0xf] %v1964_v37  ;;  %1967 = vst [vmem:[%s2706_s15 + $0x50] sm:$0xf] %v1966_v38  ;;  %v1968_v39 = vld [vmem:[%s2701_s14 + $0xb0] sm:$0xf] }
  0x51   : > { %v1970_v40 = vld [vmem:[%s2701_s14 + $0xc8] sm:$0xf]  ;;  %v1972_v41 = vld [vmem:[%s2701_s14 + $0xe0] sm:$0xf]  ;;  %1969 = vst [vmem:[%s2706_s15 + $0x5c] sm:$0xf] %v1968_v39 }
  0x52   : > { %1971 = vst [vmem:[%s2706_s15 + $0x68] sm:$0xf] %v1970_v40  ;;  %1973 = vst [vmem:[%s2706_s15 + $0x74] sm:$0xf] %v1972_v41  ;;  %v1974_v42 = vld [vmem:[%s2701_s14 + $0xf8] sm:$0xf] }
  0x53   : > { %v1976_v43 = vld [vmem:[%s2701_s14 + $0x110] sm:$0xf]  ;;  %v1978_v44 = vld [vmem:[%s2701_s14 + $0x128] sm:$0xf]  ;;  %1975 = vst [vmem:[%s2706_s15 + $0x80] sm:$0xf] %v1974_v42 }
  0x54   : > { %1977 = vst [vmem:[%s2706_s15 + $0x8c] sm:$0xf] %v1976_v43  ;;  %1979 = vst [vmem:[%s2706_s15 + $0x98] sm:$0xf] %v1978_v44  ;;  %v1980_v45 = vld [vmem:[%s2701_s14 + $0x140] sm:$0xf] }
  0x55   : > { %v1982_v46 = vld [vmem:[%s2701_s14 + $0x158] sm:$0xf]  ;;  %v1984_v47 = vld [vmem:[%s2701_s14 + $0x170] sm:$0xf]  ;;  %1981 = vst [vmem:[%s2706_s15 + $0xa4] sm:$0xf] %v1980_v45 }
  0x56   : > { %1983 = vst [vmem:[%s2706_s15 + $0xb0] sm:$0xf] %v1982_v46  ;;  %1985 = vst [vmem:[%s2706_s15 + $0xbc] sm:$0xf] %v1984_v47  ;;  %v1986_v48 = vld [vmem:[%s2701_s14 + $0x188] sm:$0xf] }
  0x57   : > { %v1988_v49 = vld [vmem:[%s2701_s14 + $0x1a0] sm:$0xf]  ;;  %v1990_v50 = vld [vmem:[%s2701_s14 + $0x1b8] sm:$0xf]  ;;  %1987 = vst [vmem:[%s2706_s15 + $0xc8] sm:$0xf] %v1986_v48 }
  0x58   : > { %1989 = vst [vmem:[%s2706_s15 + $0xd4] sm:$0xf] %v1988_v49  ;;  %1991 = vst [vmem:[%s2706_s15 + $0xe0] sm:$0xf] %v1990_v50  ;;  %v1992_v51 = vld [vmem:[%s2701_s14 + $0x1d0] sm:$0xf] }
  0x59   : > { %v1994_v52 = vld [vmem:[%s2701_s14 + $0x1e8] sm:$0xf]  ;;  %v1996_v53 = vld [vmem:[%s2701_s14 + $0x200] sm:$0xf]  ;;  %1993 = vst [vmem:[%s2706_s15 + $0xec] sm:$0xf] %v1992_v51 }
  0x5a   : > { %1995 = vst [vmem:[%s2706_s15 + $0xf8] sm:$0xf] %v1994_v52  ;;  %1997 = vst [vmem:[%s2706_s15 + $0x104] sm:$0xf] %v1996_v53  ;;  %v1998_v54 = vld [vmem:[%s2701_s14 + $0x218] sm:$0xf] }
  0x5b   : > { %v2000_v55 = vld [vmem:[%s2701_s14 + $0x230] sm:$0xf]  ;;  %v2002_v56 = vld [vmem:[%s2701_s14 + $0x248] sm:$0xf]  ;;  %1999 = vst [vmem:[%s2706_s15 + $0x110] sm:$0xf] %v1998_v54 }
  0x5c   : > { %2001 = vst [vmem:[%s2706_s15 + $0x11c] sm:$0xf] %v2000_v55  ;;  %2003 = vst [vmem:[%s2706_s15 + $0x128] sm:$0xf] %v2002_v56  ;;  %v2004_v57 = vld [vmem:[%s2701_s14 + $0x260] sm:$0xf] }
  0x5d   : > { %v2006_v58 = vld [vmem:[%s2701_s14 + $0x278] sm:$0xf]  ;;  %v2008_v59 = vld [vmem:[%s2701_s14 + $0x290] sm:$0xf]  ;;  %2005 = vst [vmem:[%s2706_s15 + $0x134] sm:$0xf] %v2004_v57 }
  0x5e   : > { %2007 = vst [vmem:[%s2706_s15 + $0x140] sm:$0xf] %v2006_v58  ;;  %2009 = vst [vmem:[%s2706_s15 + $0x14c] sm:$0xf] %v2008_v59  ;;  %v2010_v60 = vld [vmem:[%s2701_s14 + $0x2a8] sm:$0xf] }
  0x5f   : > { %v2012_v61 = vld [vmem:[%s2701_s14 + $0x2c0] sm:$0xf]  ;;  %v2014_v62 = vld [vmem:[%s2701_s14 + $0x2d8] sm:$0xf]  ;;  %2011 = vst [vmem:[%s2706_s15 + $0x158] sm:$0xf] %v2010_v60 }
  0x60   : > { %2013 = vst [vmem:[%s2706_s15 + $0x164] sm:$0xf] %v2012_v61  ;;  %2015 = vst [vmem:[%s2706_s15 + $0x170] sm:$0xf] %v2014_v62  ;;  %v2016_v63 = vld [vmem:[%s2701_s14 + $0x2f0] sm:$0xf] }
  0x61   : > { %2017 = vst [vmem:[%s2706_s15 + $0x17c] sm:$0xf] %v2016_v63 }
  0x62 PF: > { %p2018_p5 = scmp.ge.s32.totalorder %s2487_s20, 1  ;;  %p512_p6 = scmp.lt.s32.totalorder %s2487_s20, 3 }
  0x64   : > { %p513_p7 = pnand %p2018_p5, %p512_p6 }
  0x65   : > { %s519_s16 = sand.u32 (!%p513_p7), 1, %s2479_s18   ;;  %s560_s17 = smul.u32 (!%p513_p7), 48, %s1885_s21 }
  0x66   : > { %516 = sbr.rel (%p513_p7) target bundleno = 747 (0x2eb), region = 84  ;;  %p2021_p9 = scmp.ne.s32.totalorder (!%p513_p7), %s1885_s21, 0 }
  0x67   : > { %s2225_s23 = smul.u32 (!%p513_p7), 384, %s519_s16  ;;  %p561_p8 = scmp.lt.s32.totalorder (!%p513_p7), %s560_s17, 95 }
  0x69   : > { %s2843_s29 = scalar_lea.vmem (!%p513_p7), [#allocation2], %s2225_s23  ;;  %s2845_s30 = scalar_lea.vmem (!%p513_p7), [#allocation3], %s2225_s23 }
  0x6d   : > { %s3054_s17 = smov (!%p561_p8, %s560_s17), 95  ;;  %571 = sbr.rel (%p2021_p9) target bundleno = 116 (0x74), region = 96 }
  0x6e   : > { %s2174_s24 = sshll.u32 %s3054_s17, 3  ;;  %v572_v0 = vld [vmem:[%s3044_s1] sm:$0xf] (!%p2021_p9) }
  0x6f   : > { %s2841_s28 = scalar_lea.vmem %s3047_s4, %s2174_s24  ;;  %573 = vst [vmem:[%s3048_s5] sm:$0xf] (!%p2021_p9), %v572_v0 }
  0x74 PF: > { %v2253_v1 = vld [vmem:[%s2843_s29 + $0x4] ss:$12 sps:$4 sm:$0xff]   ;;  %v2255_v2 = vld [vmem:[%s2843_s29] ss:$12 sps:$4 sm:$0xff]   ;;  %v2256_v3 = vld [vmem:[%s2843_s29 + $0x1c] ss:$12 sps:$4 sm:$0xff]   ;;  %v651_v12 = vlaneseq }
  0x75   : > { %920 = vmatprep.subr.bf16.mxu1 %v2253_v1  ;;  %v2258_v4 = vld [vmem:[%s2843_s29 + $0x18] ss:$12 sps:$4 sm:$0xff]   ;;  %v2259_v5 = vld [vmem:[%s2843_s29 + $0x34] ss:$12 sps:$4 sm:$0xff]   ;;  %v2261_v6 = vld [vmem:[%s2843_s29 + $0x30] ss:$12 sps:$4 sm:$0xff]  }
  0x76   : > { %921 = vmatpush1.bf16.msra.mxu1 %v2255_v2  ;;  %v2262_v7 = vld [vmem:[%s2843_s29 + $0x4c] ss:$12 sps:$4 sm:$0xff]   ;;  %v2264_v8 = vld [vmem:[%s2843_s29 + $0x48] ss:$12 sps:$4 sm:$0xff]   ;;  %v2265_v9 = vld [vmem:[%s2843_s29 + $0x64] ss:$12 sps:$4 sm:$0xff]  }
  0x77   : > { %922 = vmatprep.subr.bf16.mxu1 %v2256_v3  ;;  %v2489_v10 = vmov 1966171168   ;;  %v2267_v13 = vld [vmem:[%s2843_s29 + $0x60] ss:$12 sps:$4 sm:$0xff]   ;;  %v2268_v14 = vld [vmem:[%s2843_s29 + $0x7c] ss:$12 sps:$4 sm:$0xff]  }
  0x78   : > { %v649_v11 = vunpack.c.l.s4 %v2489_v10  ;;  %v2866_v16 = vshrl.u32 %v651_v12, 7  ;;  %v2270_v17 = vld [vmem:[%s2843_s29 + $0x78] ss:$12 sps:$4 sm:$0xff]   ;;  %v2271_v18 = vld [vmem:[%s2843_s29 + $0x94] ss:$12 sps:$4 sm:$0xff]  }
  0x79   : > { %v2876_v20 = vld.sshfl [vmem:[%s3043_s0] sm:$0x11 pattern:$0x75316420]  ;;  %v2273_v22 = vld [vmem:[%s2843_s29 + $0x90] ss:$12 sps:$4 sm:$0xff]  }
  0x7a   : > { %923 = vmatpush1.bf16.msra.mxu1 %v2258_v4  ;;  %v650_v15 = vunpack.c.0.s8 %v649_v11  ;;  %v647_v21 = vcombine.high %v2876_v20, %v2876_v20  ;;  %v2274_v23 = vld [vmem:[%s2843_s29 + $0xac] ss:$12 sps:$4 sm:$0xff]   ;;  %v2276_v25 = vld [vmem:[%s2843_s29 + $0xa8] ss:$12 sps:$4 sm:$0xff]   ;;  %v2277_v26 = vld [vmem:[%s2843_s29 + $0xc4] ss:$12 sps:$4 sm:$0xff]  }
  0x7b   : > { %924 = vmatprep.subr.bf16.mxu1 %v2259_v5  ;;  %v2279_v27 = vld [vmem:[%s2843_s29 + $0xc0] ss:$12 sps:$4 sm:$0xff]   ;;  %v2280_v28 = vld [vmem:[%s2843_s29 + $0xdc] ss:$12 sps:$4 sm:$0xff]   ;;  %v2282_v29 = vld [vmem:[%s2843_s29 + $0xd8] ss:$12 sps:$4 sm:$0xff]  }
  0x7c   : > { %v2871_v19 = vsub.s32 %v650_v15, %v2866_v16  ;;  %v2283_v30 = vld [vmem:[%s2843_s29 + $0xf4] ss:$12 sps:$4 sm:$0xff]   ;;  %v2285_v32 = vld [vmem:[%s2843_s29 + $0xf0] ss:$12 sps:$4 sm:$0xff]   ;;  %v2286_v34 = vld [vmem:[%s2843_s29 + $0x10c] ss:$12 sps:$4 sm:$0xff]  }
  0x7d   : > { %v2316_v31 = vld [vmem:[%s2845_s30 + $0xc8] ss:$12 sps:$4 sm:$0xff]   ;;  %v2322_v36 = vld [vmem:[%s2845_s30 + $0xe0] ss:$12 sps:$4 sm:$0xff]   ;;  %v2289_v38 = vld [vmem:[%s2843_s29 + $0x124] ss:$12 sps:$4 sm:$0xff]  }
  0x7e   : > { %925 = vmatpush1.bf16.msra.mxu1 %v2261_v6  ;;  %v2883_v24 = vrot.slane %v647_v21, %v2871_v19  ;;  %2197 = vmatprep.subr.bf16.mxu0 %v2316_v31  ;;  %v2318_v33 = vld [vmem:[%s2845_s30 + $0x8] ss:$12 sps:$4 sm:$0xff]   ;;  %v2323_v37 = vld [vmem:[%s2845_s30 + $0x20] ss:$12 sps:$4 sm:$0xff]   ;;  %v2327_v39 = vld [vmem:[%s2845_s30 + $0xf8] ss:$12 sps:$4 sm:$0xff]   ;;  %v2921_v57 = vrot.slane %v2876_v20, %v2871_v19 }
  0x7f   : > { %926 = vmatprep.subr.bf16.mxu1 %v2262_v7  ;;  %v2288_v35 = vld [vmem:[%s2843_s29 + $0x108] ss:$12 sps:$4 sm:$0xff]   ;;  %2198 = vmatpush3.bf16.msra.mxu0 %v2318_v33  ;;  %v2328_v40 = vld [vmem:[%s2845_s30 + $0x38] ss:$12 sps:$4 sm:$0xff]   ;;  %v2291_v41 = vld [vmem:[%s2843_s29 + $0x120] ss:$12 sps:$4 sm:$0xff]  }
  0x80   : > { %952 = vmatprep.mubr.bf16.mxu1 %v2883_v24  ;;  %1394 = vmatprep.mubr.bf16.mxu0 %v2883_v24  ;;  %v2292_v42 = vld [vmem:[%s2843_s29 + $0x13c] ss:$12 sps:$4 sm:$0xff]   ;;  %v2294_v45 = vld [vmem:[%s2843_s29 + $0x138] ss:$12 sps:$4 sm:$0xff]   ;;  %v2295_v46 = vld [vmem:[%s2843_s29 + $0x154] ss:$12 sps:$4 sm:$0xff]  }
  0x81   : > { %2199 = vmatprep.subr.bf16.mxu0 %v2322_v36  ;;  %v2332_v43 = vld [vmem:[%s2845_s30 + $0x110] ss:$12 sps:$4 sm:$0xff]   ;;  %v2337_v47 = vld [vmem:[%s2845_s30 + $0x128] ss:$12 sps:$4 sm:$0xff]   ;;  %v2342_v50 = vld [vmem:[%s2845_s30 + $0x140] ss:$12 sps:$4 sm:$0xff]  }
  0x82   : > { %927 = vmatpush1.bf16.msra.mxu1 %v2264_v8  ;;  %v2333_v44 = vld [vmem:[%s2845_s30 + $0x50] ss:$12 sps:$4 sm:$0xff]   ;;  %v2338_v48 = vld [vmem:[%s2845_s30 + $0x68] ss:$12 sps:$4 sm:$0xff]   ;;  %v2298_v51 = vld [vmem:[%s2843_s29 + $0x16c] ss:$12 sps:$4 sm:$0xff]  }
  0x83   : > { %928 = vmatprep.subr.bf16.mxu1 %v2265_v9  ;;  %2200 = vmatpush3.bf16.msra.mxu0 %v2323_v37  ;;  %v2297_v49 = vld [vmem:[%s2843_s29 + $0x150] ss:$12 sps:$4 sm:$0xff]   ;;  %v2343_v52 = vld [vmem:[%s2845_s30 + $0x80] ss:$12 sps:$4 sm:$0xff]   ;;  %v2347_v53 = vld [vmem:[%s2845_s30 + $0x158] ss:$12 sps:$4 sm:$0xff]  }
  0x84   : > { %2201 = vmatprep.subr.bf16.mxu0 %v2327_v39  ;;  %v2300_v54 = vld [vmem:[%s2843_s29 + $0x168] ss:$12 sps:$4 sm:$0xff]   ;;  %v2348_v56 = vld [vmem:[%s2845_s30 + $0x98] ss:$12 sps:$4 sm:$0xff]   ;;  %v2352_v58 = vld [vmem:[%s2845_s30 + $0x170] ss:$12 sps:$4 sm:$0xff]  }
  0x85   : > { %v2301_v55 = vld [vmem:[%s2843_s29 + $0xc8] ss:$12 sps:$4 sm:$0xff]   ;;  %v2303_v60 = vld [vmem:[%s2843_s29 + $0xe0] ss:$12 sps:$4 sm:$0xff]   ;;  %v2353_v61 = vld [vmem:[%s2845_s30 + $0xb0] ss:$12 sps:$4 sm:$0xff]  }
  0x86   : > { %929 = vmatpush1.bf16.msra.mxu1 %v2267_v13  ;;  %v2302_v59 = vld [vmem:[%s2843_s29 + $0x8] ss:$12 sps:$4 sm:$0xff]   ;;  %v2304_v62 = vld [vmem:[%s2843_s29 + $0x20] ss:$12 sps:$4 sm:$0xff]   ;;  %v2305_v63 = vld [vmem:[%s2843_s29 + $0xf8] ss:$12 sps:$4 sm:$0xff]  }
  0x87   : > { %930 = vmatprep.subr.bf16.mxu1 %v2268_v14  ;;  %2202 = vmatpush3.bf16.msra.mxu0 %v2328_v40  ;;  %v2306_v0 = vld [vmem:[%s2843_s29 + $0x38] ss:$12 sps:$4 sm:$0xff]   ;;  %v2307_v1 = vld [vmem:[%s2843_s29 + $0x110] ss:$12 sps:$4 sm:$0xff]   ;;  %v2309_v3 = vld [vmem:[%s2843_s29 + $0x128] ss:$12 sps:$4 sm:$0xff]  }
  0x88   : > { %2203 = vmatprep.subr.bf16.mxu0 %v2332_v43  ;;  %v2308_v2 = vld [vmem:[%s2843_s29 + $0x50] ss:$12 sps:$4 sm:$0xff]   ;;  %v2310_v4 = vld [vmem:[%s2843_s29 + $0x68] ss:$12 sps:$4 sm:$0xff]   ;;  %v2311_v5 = vld [vmem:[%s2843_s29 + $0x140] ss:$12 sps:$4 sm:$0xff]  }
  0x89   : > { %v2312_v6 = vld [vmem:[%s2843_s29 + $0x80] ss:$12 sps:$4 sm:$0xff]   ;;  %v2313_v7 = vld [vmem:[%s2843_s29 + $0x158] ss:$12 sps:$4 sm:$0xff]   ;;  %v2315_v9 = vld [vmem:[%s2843_s29 + $0x170] ss:$12 sps:$4 sm:$0xff]  }
  0x8a   : > { %931 = vmatpush1.bf16.msra.mxu1 %v2270_v17  ;;  %v2314_v8 = vld [vmem:[%s2843_s29 + $0x98] ss:$12 sps:$4 sm:$0xff]   ;;  %v2317_v10 = vld [vmem:[%s2843_s29 + $0xb0] ss:$12 sps:$4 sm:$0xff]   ;;  %v2319_v12 = vld [vmem:[%s2845_s30] ss:$12 sps:$4 sm:$0xff]  }
  0x8b   : > { %932 = vmatprep.subr.bf16.mxu1 %v2271_v18  ;;  %2204 = vmatpush3.bf16.msra.mxu0 %v2333_v44  ;;  %v2321_v11 = vld [vmem:[%s2845_s30 + $0x4] ss:$12 sps:$4 sm:$0xff]   ;;  %v2326_v13 = vld [vmem:[%s2845_s30 + $0x1c] ss:$12 sps:$4 sm:$0xff]   ;;  %v2331_v15 = vld [vmem:[%s2845_s30 + $0x34] ss:$12 sps:$4 sm:$0xff]  }
  0x8c   : > { %2205 = vmatprep.subr.bf16.mxu0 %v2337_v47  ;;  %v2324_v14 = vld [vmem:[%s2845_s30 + $0x18] ss:$12 sps:$4 sm:$0xff]   ;;  %v2329_v17 = vld [vmem:[%s2845_s30 + $0x30] ss:$12 sps:$4 sm:$0xff]   ;;  %v2334_v19 = vld [vmem:[%s2845_s30 + $0x48] ss:$12 sps:$4 sm:$0xff]  }
  0x8d   : > { %v2336_v18 = vld [vmem:[%s2845_s30 + $0x4c] ss:$12 sps:$4 sm:$0xff]   ;;  %v2341_v20 = vld [vmem:[%s2845_s30 + $0x64] ss:$12 sps:$4 sm:$0xff]   ;;  %v2377_v40 = vld [vmem:[%s2845_s30 + $0x154] ss:$12 sps:$4 sm:$0xff]  }
  0x8e   : > { %933 = vmatpush1.bf16.msra.mxu1 %v2273_v22  ;;  %v2339_v21 = vld [vmem:[%s2845_s30 + $0x60] ss:$12 sps:$4 sm:$0xff]   ;;  %v2346_v22 = vld [vmem:[%s2845_s30 + $0x7c] ss:$12 sps:$4 sm:$0xff]   ;;  %v2360_v31 = vld [vmem:[%s2845_s30 + $0xd8] ss:$12 sps:$4 sm:$0xff]  }
  0x8f   : > { %934 = vmatprep.subr.bf16.mxu1 %v2274_v23  ;;  %2206 = vmatpush3.bf16.msra.mxu0 %v2338_v48  ;;  %v2344_v23 = vld [vmem:[%s2845_s30 + $0x78] ss:$12 sps:$4 sm:$0xff]   ;;  %v2363_v33 = vld [vmem:[%s2845_s30 + $0xf0] ss:$12 sps:$4 sm:$0xff]   ;;  %v2369_v37 = vld [vmem:[%s2845_s30 + $0x120] ss:$12 sps:$4 sm:$0xff]  }
  0x90   : > { %2207 = vmatprep.subr.bf16.mxu0 %v2342_v50  ;;  %v2371_v36 = vld [vmem:[%s2845_s30 + $0x124] ss:$12 sps:$4 sm:$0xff]   ;;  %v2378_v43 = vld [vmem:[%s2845_s30 + $0x168] ss:$12 sps:$4 sm:$0xff]  }
  0x91   : > { %v2372_v39 = vld [vmem:[%s2845_s30 + $0x138] ss:$12 sps:$4 sm:$0xff]   ;;  %v2392_v50 = vld [vmem:[%s2841_s28 + $0x34] ss:$8 sps:$4 sm:$0xff]  }
  0x92   : > { %935 = vmatpush1.bf16.msra.mxu1 %v2276_v25  ;;  %v2349_v25 = vld [vmem:[%s2845_s30 + $0x90] ss:$12 sps:$4 sm:$0xff]   ;;  %v2383_v44 = vld [vmem:[%s2841_s28 + $0x4] ss:$8 sps:$4 sm:$0xff]  }
  0x93   : > { %936 = vmatprep.subr.bf16.mxu1 %v2277_v26  ;;  %2208 = vmatpush3.bf16.msra.mxu0 %v2343_v52  ;;  %v2356_v26 = vld [vmem:[%s2845_s30 + $0xac] ss:$12 sps:$4 sm:$0xff]  }
  0x94   : > { %2209 = vmatprep.subr.bf16.mxu0 %v2347_v53  ;;  %v2384_v47 = vld [vmem:[%s2841_s28 + $0x10] ss:$8 sps:$4 sm:$0xff]   ;;  %v2389_v48 = vld [vmem:[%s2841_s28 + $0x24] ss:$8 sps:$4 sm:$0xff]   ;;  %v2393_v53 = vld [vmem:[%s2841_s28 + $0x40] ss:$8 sps:$4 sm:$0xff]  }
  0x95   : > { %v2395_v52 = vld [vmem:[%s2841_s28 + $0x44] ss:$8 sps:$4 sm:$0xff]  }
  0x96   : > { %937 = vmatpush1.bf16.msra.mxu1 %v2279_v27  ;;  %v2354_v27 = vld [vmem:[%s2845_s30 + $0xa8] ss:$12 sps:$4 sm:$0xff]  }
  0x97   : > { %938 = vmatprep.subr.bf16.mxu1 %v2280_v28  ;;  %2210 = vmatpush3.bf16.msra.mxu0 %v2348_v56  ;;  %v2359_v28 = vld [vmem:[%s2845_s30 + $0xc4] ss:$12 sps:$4 sm:$0xff]  }
  0x98   : > { %2211 = vmatprep.subr.bf16.mxu0 %v2352_v58  ;;  %v2401_v56 = vld [vmem:[%s2841_s28 + $0x64] ss:$8 sps:$4 sm:$0xff]   ;;  %v2404_v58 = vld [vmem:[%s2841_s28 + $0x74] ss:$8 sps:$4 sm:$0xff]  }
  0x9a   : > { %939 = vmatpush1.bf16.msra.mxu1 %v2282_v29  ;;  %v2357_v29 = vld [vmem:[%s2845_s30 + $0xc0] ss:$12 sps:$4 sm:$0xff]  }
  0x9b   : > { %940 = vmatprep.subr.bf16.mxu1 %v2283_v30  ;;  %2212 = vmatpush3.bf16.msra.mxu0 %v2353_v61  ;;  %v2362_v30 = vld [vmem:[%s2845_s30 + $0xdc] ss:$12 sps:$4 sm:$0xff]  }
  0x9c   : > { %1718 = vmatprep.subr.bf16.mxu0 %v2383_v44  ;;  %v2405_v61 = vld [vmem:[%s2841_s28 + $0x80] ss:$8 sps:$4 sm:$0xff]  }
  0x9e   : > { %941 = vmatpush1.bf16.msra.mxu1 %v2285_v32  ;;  %1395 = vmatmul.mubr.bf16.vlgmr.msra.gmra.mrb[0].mxu0 %v2921_v57  ;;  %v2365_v32 = vld [vmem:[%s2845_s30 + $0xf4] ss:$12 sps:$4 sm:$0xff]  }
  0x9f   : > { %942 = vmatprep.subr.bf16.mxu1 %v2286_v34  ;;  %v2368_v34 = vld [vmem:[%s2845_s30 + $0x10c] ss:$12 sps:$4 sm:$0xff]  }
  0xa2   : > { %943 = vmatpush1.bf16.msra.mxu1 %v2288_v35  ;;  %v2366_v35 = vld [vmem:[%s2845_s30 + $0x108] ss:$12 sps:$4 sm:$0xff]  }
  0xa3   : > { %944 = vmatprep.subr.bf16.mxu1 %v2289_v38  ;;  %v2374_v38 = vld [vmem:[%s2845_s30 + $0x13c] ss:$12 sps:$4 sm:$0xff]  }
  0xa6   : > { %945 = vmatpush1.bf16.msra.mxu1 %v2291_v41  ;;  %v2375_v41 = vld [vmem:[%s2845_s30 + $0x150] ss:$12 sps:$4 sm:$0xff]  }
  0xa7   : > { %946 = vmatprep.subr.bf16.mxu1 %v2292_v42  ;;  %v2380_v42 = vld [vmem:[%s2845_s30 + $0x16c] ss:$12 sps:$4 sm:$0xff]  }
  0xaa   : > { %947 = vmatpush1.bf16.msra.mxu1 %v2294_v45  ;;  %v2381_v45 = vld [vmem:[%s2841_s28] ss:$8 sps:$4 sm:$0xff]  }
  0xab   : > { %948 = vmatprep.subr.bf16.mxu1 %v2295_v46  ;;  %1719 = vmatpush1.bf16.msra.mxu0 %v2381_v45  ;;  %v2386_v46 = vld [vmem:[%s2841_s28 + $0x14] ss:$8 sps:$4 sm:$0xff]  }
  0xac   : > { %1720 = vmatprep.subr.bf16.mxu0 %v2386_v46 }
  0xae   : > { %949 = vmatpush1.bf16.msra.mxu1 %v2297_v49  ;;  %v2387_v49 = vld [vmem:[%s2841_s28 + $0x20] ss:$8 sps:$4 sm:$0xff]  }
  0xaf   : > { %950 = vmatprep.subr.bf16.mxu1 %v2298_v51  ;;  %1721 = vmatpush1.bf16.msra.mxu0 %v2384_v47  ;;  %v2390_v51 = vld [vmem:[%s2841_s28 + $0x30] ss:$8 sps:$4 sm:$0xff]  }
  0xb0   : > { %1722 = vmatprep.subr.bf16.mxu0 %v2389_v48 }
  0xb2   : > { %951 = vmatpush1.bf16.msra.mxu1 %v2300_v54  ;;  %v2398_v54 = vld [vmem:[%s2841_s28 + $0x54] ss:$8 sps:$4 sm:$0xff]  }
  0xb3   : > { %2175 = vmatprep.subr.bf16.mxu1 %v2301_v55  ;;  %1723 = vmatpush1.bf16.msra.mxu0 %v2387_v49  ;;  %v2396_v55 = vld [vmem:[%s2841_s28 + $0x50] ss:$8 sps:$4 sm:$0xff]  }
  0xb4   : > { %1724 = vmatprep.subr.bf16.mxu0 %v2392_v50 }
  0xb5   : > { %953 = vmatmul.mubr.bf16.vlgmr.msra.gmra.mrb[0].mxu1 %v2921_v57 }
  0xb6   : > { %2176 = vmatpush3.bf16.msra.mxu1 %v2302_v59  ;;  %993 = vmatprep.mubr.bf16.mxu1 %v2883_v24  ;;  %v2402_v59 = vld [vmem:[%s2841_s28 + $0x70] ss:$8 sps:$4 sm:$0xff]  }
  0xb7   : > { %2177 = vmatprep.subr.bf16.mxu1 %v2303_v60  ;;  %1725 = vmatpush1.bf16.msra.mxu0 %v2390_v51  ;;  %v2407_v60 = vld [vmem:[%s2841_s28 + $0x84] ss:$8 sps:$4 sm:$0xff]   ;;  %v2429_v51 = vld [vmem:[%s2841_s28 + $0x100] ss:$8 sps:$4 sm:$0xff]  }
  0xb8   : > { %1726 = vmatprep.subr.bf16.mxu0 %v2395_v52 }
  0xba   : > { %2178 = vmatpush3.bf16.msra.mxu1 %v2304_v62  ;;  %v2410_v62 = vld [vmem:[%s2841_s28 + $0x94] ss:$8 sps:$4 sm:$0xff]  }
  0xbb   : > { %2179 = vmatprep.subr.bf16.mxu1 %v2305_v63  ;;  %1727 = vmatpush1.bf16.msra.mxu0 %v2393_v53  ;;  %v2408_v63 = vld [vmem:[%s2841_s28 + $0x90] ss:$8 sps:$4 sm:$0xff]   ;;  %v2434_v53 = vld [vmem:[%s2841_s28 + $0x114] ss:$8 sps:$4 sm:$0xff]  }
  0xbc   : > { %1728 = vmatprep.subr.bf16.mxu0 %v2398_v54  ;;  %v2432_v54 = vld [vmem:[%s2841_s28 + $0x110] ss:$8 sps:$4 sm:$0xff]  }
  0xbe   : > { %2180 = vmatpush3.bf16.msra.mxu1 %v2306_v0  ;;  %v2413_v0 = vld [vmem:[%s2841_s28 + $0xa4] ss:$8 sps:$4 sm:$0xff]  }
  0xbf   : > { %2181 = vmatprep.subr.bf16.mxu1 %v2307_v1  ;;  %1729 = vmatpush1.bf16.msra.mxu0 %v2396_v55  ;;  %v2411_v1 = vld [vmem:[%s2841_s28 + $0xa0] ss:$8 sps:$4 sm:$0xff]   ;;  %v2490_v55 = vmov 0  }
  0xc0   : > { %1730 = vmatprep.subr.bf16.mxu0 %v2401_v56  ;;  %v2437_v56 = vld [vmem:[%s2841_s28 + $0x124] ss:$8 sps:$4 sm:$0xff]  }
  0xc2   : > { %2182 = vmatpush3.bf16.msra.mxu1 %v2308_v2  ;;  %v2416_v2 = vld [vmem:[%s2841_s28 + $0xb4] ss:$8 sps:$4 sm:$0xff]  }
  0xc3   : > { %2183 = vmatprep.subr.bf16.mxu1 %v2309_v3  ;;  %v2414_v3 = vld [vmem:[%s2841_s28 + $0xb0] ss:$8 sps:$4 sm:$0xff]  }
  0xc6   : > { %2184 = vmatpush3.bf16.msra.mxu1 %v2310_v4  ;;  %v2419_v4 = vld [vmem:[%s2841_s28 + $0xc4] ss:$8 sps:$4 sm:$0xff]  }
  0xc7   : > { %2185 = vmatprep.subr.bf16.mxu1 %v2311_v5  ;;  %v2417_v5 = vld [vmem:[%s2841_s28 + $0xc0] ss:$8 sps:$4 sm:$0xff]  }
  0xca   : > { %2186 = vmatpush3.bf16.msra.mxu1 %v2312_v6  ;;  %v2422_v6 = vld [vmem:[%s2841_s28 + $0xd4] ss:$8 sps:$4 sm:$0xff]  }
  0xcb   : > { %2187 = vmatprep.subr.bf16.mxu1 %v2313_v7  ;;  %v2420_v7 = vld [vmem:[%s2841_s28 + $0xd0] ss:$8 sps:$4 sm:$0xff]  }
  0xce   : > { %2188 = vmatpush3.bf16.msra.mxu1 %v2314_v8  ;;  %v2425_v8 = vld [vmem:[%s2841_s28 + $0xe4] ss:$8 sps:$4 sm:$0xff]  }
  0xcf   : > { %2189 = vmatprep.subr.bf16.mxu1 %v2315_v9  ;;  %v2423_v9 = vld [vmem:[%s2841_s28 + $0xe0] ss:$8 sps:$4 sm:$0xff]  }
  0xd2   : > { %2190 = vmatpush3.bf16.msra.mxu1 %v2317_v10  ;;  %v2428_v10 = vld [vmem:[%s2841_s28 + $0xf4] ss:$8 sps:$4 sm:$0xff]  }
  0xd3   : > { %1321 = vmatprep.subr.bf16.mxu1 %v2321_v11  ;;  %v2426_v11 = vld [vmem:[%s2841_s28 + $0xf0] ss:$8 sps:$4 sm:$0xff]  }
  0xd5   : > { %994 = vmatmul.mubr.bf16.vlgmr.msra.gmra.mrb[4].mxu1 %v2921_v57 }
  0xd6   : > { %1322 = vmatpush1.bf16.msra.mxu1 %v2319_v12  ;;  %1353 = vmatprep.mubr.bf16.mxu1 %v2883_v24  ;;  %v2351_v24 = vld [vmem:[%s2845_s30 + $0x94] ss:$12 sps:$4 sm:$0xff]   ;;  %v2431_v12 = vld [vmem:[%s2841_s28 + $0x104] ss:$8 sps:$4 sm:$0xff]  }
  0xd7   : > { %1323 = vmatprep.subr.bf16.mxu1 %v2326_v13 }
  0xda   : > { %1324 = vmatpush1.bf16.msra.mxu1 %v2324_v14 }
  0xdb   : > { %1325 = vmatprep.subr.bf16.mxu1 %v2331_v15 }
  0xde   : > { %1326 = vmatpush1.bf16.msra.mxu1 %v2329_v17 }
  0xdf   : > { %1327 = vmatprep.subr.bf16.mxu1 %v2336_v18 }
  0xe2   : > { %1328 = vmatpush1.bf16.msra.mxu1 %v2334_v19 }
  0xe3   : > { %1329 = vmatprep.subr.bf16.mxu1 %v2341_v20 }
  0xe6   : > { %1330 = vmatpush1.bf16.msra.mxu1 %v2339_v21 }
  0xe7   : > { %1331 = vmatprep.subr.bf16.mxu1 %v2346_v22 }
  0xea   : > { %1332 = vmatpush1.bf16.msra.mxu1 %v2344_v23 }
  0xeb   : > { %1333 = vmatprep.subr.bf16.mxu1 %v2351_v24 }
  0xee   : > { %1334 = vmatpush1.bf16.msra.mxu1 %v2349_v25 }
  0xef   : > { %1335 = vmatprep.subr.bf16.mxu1 %v2356_v26 }
  0xf2   : > { %1336 = vmatpush1.bf16.msra.mxu1 %v2354_v27 }
  0xf3   : > { %1337 = vmatprep.subr.bf16.mxu1 %v2359_v28 }
  0xf6   : > { %1338 = vmatpush1.bf16.msra.mxu1 %v2357_v29 }
  0xf7   : > { %1339 = vmatprep.subr.bf16.mxu1 %v2362_v30 }
  0xfa   : > { %1340 = vmatpush1.bf16.msra.mxu1 %v2360_v31 }
  0xfb   : > { %1341 = vmatprep.subr.bf16.mxu1 %v2365_v32 }
  0xfe   : > { %1342 = vmatpush1.bf16.msra.mxu1 %v2363_v33 }
  0xff   : > { %1343 = vmatprep.subr.bf16.mxu1 %v2368_v34 }
 0x102   : > { %1344 = vmatpush1.bf16.msra.mxu1 %v2366_v35 }
 0x103   : > { %1345 = vmatprep.subr.bf16.mxu1 %v2371_v36 }
 0x106   : > { %1346 = vmatpush1.bf16.msra.mxu1 %v2369_v37 }
 0x107   : > { %1347 = vmatprep.subr.bf16.mxu1 %v2374_v38 }
 0x10a   : > { %1348 = vmatpush1.bf16.msra.mxu1 %v2372_v39 }
 0x10b   : > { %1349 = vmatprep.subr.bf16.mxu1 %v2377_v40 }
 0x10e   : > { %1350 = vmatpush1.bf16.msra.mxu1 %v2375_v41 }
 0x10f   : > { %1351 = vmatprep.subr.bf16.mxu1 %v2380_v42 }
 0x112   : > { %1352 = vmatpush1.bf16.msra.mxu1 %v2378_v43 }
 0x115   : > { %1354 = vmatmul.mubr.bf16.vlgmr.msra.gmra.mrb[8].mxu1 %v2921_v57  ;;  %v2399_v57 = vld [vmem:[%s2841_s28 + $0x60] ss:$8 sps:$4 sm:$0xff]  }
 0x116   : > { %1731 = vmatpush1.bf16.msra.mxu0 %v2399_v57  ;;  %v2435_v57 = vld [vmem:[%s2841_s28 + $0x120] ss:$8 sps:$4 sm:$0xff]  }
 0x117   : > { %1732 = vmatprep.subr.bf16.mxu0 %v2404_v58  ;;  %v2440_v58 = vld [vmem:[%s2841_s28 + $0x134] ss:$8 sps:$4 sm:$0xff]  }
 0x11a   : > { %1733 = vmatpush1.bf16.msra.mxu0 %v2402_v59  ;;  %v2438_v59 = vld [vmem:[%s2841_s28 + $0x130] ss:$8 sps:$4 sm:$0xff]  }
 0x11b   : > { %1734 = vmatprep.subr.bf16.mxu0 %v2407_v60  ;;  %v2443_v60 = vld [vmem:[%s2841_s28 + $0x144] ss:$8 sps:$4 sm:$0xff]  }
 0x11e   : > { %1735 = vmatpush1.bf16.msra.mxu0 %v2405_v61  ;;  %v2441_v61 = vld [vmem:[%s2841_s28 + $0x140] ss:$8 sps:$4 sm:$0xff]  }
 0x11f   : > { %1736 = vmatprep.subr.bf16.mxu0 %v2410_v62  ;;  %v2446_v62 = vld [vmem:[%s2841_s28 + $0x154] ss:$8 sps:$4 sm:$0xff]  }
 0x122   : > { %1737 = vmatpush1.bf16.msra.mxu0 %v2408_v63  ;;  %v2444_v63 = vld [vmem:[%s2841_s28 + $0x150] ss:$8 sps:$4 sm:$0xff]  }
 0x123   : > { %1738 = vmatprep.subr.bf16.mxu0 %v2413_v0  ;;  %v2449_v0 = vld [vmem:[%s2841_s28 + $0x164] ss:$8 sps:$4 sm:$0xff]  }
 0x126   : > { %1739 = vmatpush1.bf16.msra.mxu0 %v2411_v1  ;;  %v2447_v1 = vld [vmem:[%s2841_s28 + $0x160] ss:$8 sps:$4 sm:$0xff]  }
 0x127   : > { %1740 = vmatprep.subr.bf16.mxu0 %v2416_v2  ;;  %v2452_v2 = vld [vmem:[%s2841_s28 + $0x174] ss:$8 sps:$4 sm:$0xff]  }
 0x12a   : > { %1741 = vmatpush1.bf16.msra.mxu0 %v2414_v3  ;;  %v2450_v3 = vld [vmem:[%s2841_s28 + $0x170] ss:$8 sps:$4 sm:$0xff]  }
 0x12b   : > { %1742 = vmatprep.subr.bf16.mxu0 %v2419_v4 }
 0x12e   : > { %1743 = vmatpush1.bf16.msra.mxu0 %v2417_v5  ;;  %v2491_v5 = vmov 1983009808  }
 0x12f   : > { %1744 = vmatprep.subr.bf16.mxu0 %v2422_v6  ;;  %v1804_v6 = vunpack.c.l.s4 %v2491_v5 }
 0x132   : > { %1745 = vmatpush1.bf16.msra.mxu0 %v2420_v7  ;;  %v1805_v7 = vunpack.c.0.s8 %v1804_v6 }
 0x133   : > { %1746 = vmatprep.subr.bf16.mxu0 %v2425_v8 }
 0x136   : > { %1747 = vmatpush1.bf16.msra.mxu0 %v2423_v9  ;;  %v1808_v9 = vsub.s32 %v1805_v7, %v2866_v16 }
 0x137   : > { %1748 = vmatprep.subr.bf16.mxu0 %v2428_v10 }
 0x13a   : > { %1749 = vmatpush1.bf16.msra.mxu0 %v2426_v11 }
 0x13b   : > { %1759 = vmatprep.subr.bf16.mxu0 %v2431_v12 }
 0x171   : > { %v2213_v18 = vpop.f32.mrb[0].mxu0 }
 0x172   : > { %v2214_v19 = vpop.f32.mrb[1].mxu0 }
 0x173   : > { %v2215_v20 = vadd.f32 %v2214_v19, %v2213_v18  ;;  %v2216_v21 = vpop.f32.mrb[2].mxu0 }
 0x174   : > { %v2217_v22 = vpop.f32.mrb[3].mxu0 }
 0x188   : > { %v954_v13 = vpop.f32.mrb[0].mxu1 }
 0x189   : > { %v956_v14 = vpop.f32.mrb[1].mxu1  ;;  %v2119_v32 = vmul.f32 -1.442695, %v954_v13 }
 0x18a   : > { %v958_v15 = vpop.f32.mrb[2].mxu1  ;;  %v2120_v33 = vmul.f32 -1.442695, %v956_v14 }
 0x18b   : > { %v959_v17 = vpop.f32.mrb[3].mxu1 }
 0x1a8   : > { %v2191_v23 = vpop.f32.mrb[4].mxu1 }
 0x1a9   : > { %v2192_v24 = vpop.f32.mrb[5].mxu1 }
 0x1aa   : > { %v2193_v25 = vadd.f32 %v2192_v24, %v2191_v23  ;;  %v2194_v26 = vpop.f32.mrb[6].mxu1 }
 0x1ab   : > { %v2195_v27 = vpop.f32.mrb[7].mxu1 }
 0x1ac   : > { %v2121_v28 = vmul.f32 -1.442695, %v2193_v25 }
 0x1ae   : > { %2453 = vpow2.f32 %v2121_v28 }
 0x1b8   : > { %v2454_v29 = vpop.eup %2453 }
 0x1b9   : > { %v1413_v30 = vadd.f32 1.0, %v2454_v29 }
 0x1bb   : > { %2455 = vrcp.f32 %v1413_v30 }
 0x1bc   : > { %2457 = vpow2.f32 %v2119_v32 }
 0x1bd   : > { %2459 = vpow2.f32 %v2120_v33 }
 0x1c5   : > { %v2456_v31 = vpop.eup %2455 }
 0x1c6   : > { %v1422_v34 = vmul.f32 %v2456_v31, %v2193_v25  ;;  %v2458_v36 = vpop.eup %2457 }
 0x1c7   : > { %v2460_v37 = vpop.eup %2459  ;;  %v1411_v38 = vadd.f32 1.0, %v2458_v36 }
 0x1c8   : > { %v1425_v35 = vmul.f32 %v2215_v20, %v1422_v34  ;;  %v1412_v39 = vadd.f32 1.0, %v2460_v37 }
 0x1c9   : > { %2461 = vrcp.f32 %v1411_v38 }
 0x1ca   : > { %2463 = vrcp.f32 %v1412_v39  ;;  %v1428_v4 = vpack.c.bf16 %v1425_v35, %v1425_v35 }
 0x1d3   : > { %v2462_v40 = vpop.eup %2461 }
 0x1d4   : > { %v2464_v41 = vpop.eup %2463  ;;  %v1420_v42 = vmul.f32 %v2462_v40, %v954_v13  ;;  %v1429_v13 = vld [vmem:[%s3048_s5] sm:$0xf] }
 0x1d5   : > { %v1421_v43 = vmul.f32 %v2464_v41, %v956_v14 }
 0x1e8   : > { %v1355_v44 = vpop.f32.mrb[8].mxu1 }
 0x1e9   : > { %v1423_v45 = vmul.f32 %v1420_v42, %v1355_v44  ;;  %v1357_v46 = vpop.f32.mrb[9].mxu1 }
 0x1ea   : > { %v1424_v47 = vmul.f32 %v1421_v43, %v1357_v46  ;;  %v1359_v48 = vpop.f32.mrb[10].mxu1 }
 0x1eb   : > { %v1360_v49 = vpop.f32.mrb[11].mxu1  ;;  %v1426_v52 = vpack.c.bf16 %v1423_v45, %v1423_v45 }
 0x1ec   : > { %v1427_v50 = vpack.c.bf16 %v1424_v47, %v1424_v47 }
 0x1ee   : > { %1750 = vmatprep.mubr.bf16.mxu0 %v1427_v50 }
 0x1ef   : > { %1751 = vmatmul.mubr.bf16.vlgmr.msra.gmra.mrb[4].mxu0 %v1426_v52 }
 0x1f0   : > { %1760 = vmatpush1.bf16.msra.mxu0 %v2429_v51  ;;  %1791 = vmatprep.mubr.bf16.mxu0 %v2490_v55 }
 0x1f1   : > { %1761 = vmatprep.subr.bf16.mxu0 %v2434_v53 }
 0x1f4   : > { %1762 = vmatpush1.bf16.msra.mxu0 %v2432_v54 }
 0x1f5   : > { %1763 = vmatprep.subr.bf16.mxu0 %v2437_v56 }
 0x1f8   : > { %1764 = vmatpush1.bf16.msra.mxu0 %v2435_v57 }
 0x1f9   : > { %1765 = vmatprep.subr.bf16.mxu0 %v2440_v58 }
 0x1fc   : > { %1766 = vmatpush1.bf16.msra.mxu0 %v2438_v59 }
 0x1fd   : > { %1767 = vmatprep.subr.bf16.mxu0 %v2443_v60 }
 0x200   : > { %1768 = vmatpush1.bf16.msra.mxu0 %v2441_v61 }
 0x201   : > { %1769 = vmatprep.subr.bf16.mxu0 %v2446_v62 }
 0x204   : > { %1770 = vmatpush1.bf16.msra.mxu0 %v2444_v63 }
 0x205   : > { %1771 = vmatprep.subr.bf16.mxu0 %v2449_v0 }
 0x208   : > { %1772 = vmatpush1.bf16.msra.mxu0 %v2447_v1 }
 0x209   : > { %1773 = vmatprep.subr.bf16.mxu0 %v2452_v2 }
 0x20c   : > { %1774 = vmatpush1.bf16.msra.mxu0 %v2450_v3 }
 0x20f   : > { %1792 = vmatmul.mubr.bf16.vlgmr.msra.gmra.mrb[4].mxu0 %v1428_v4 }
 0x2e2   : > { %v1793_v8 = vpop.f32.mrb[4].mxu0 }
 0x2e3   : > { %v1795_v10 = vpop.f32.mrb[5].mxu0 }
 0x2e4   : > { %v1802_v11 = vcombine.low %v1793_v8, %v1795_v10  ;;  %v1797_v12 = vpop.f32.mrb[6].mxu0 }
 0x2e5   : > { %v1798_v14 = vpop.f32.mrb[7].mxu0 }
 0x2e6   : > { %v1809_v15 = vrot.slane %v1802_v11, %v1808_v9 }
 0x2e8   : > { %v1811_v17 = vadd.f32 %v1809_v15, %v1429_v13 }
 0x2ea   : > { %1812 = vst [vmem:[%s3048_s5] sm:$0xf] %v1811_v17 }
 0x2eb PF: > { %p12_p10 = scmp.ge.s32.totalorder %s2539_s22, 4   ;;  %s3050_s18 = smov %s2483_s19 }
 0x2ec   : > { %s3051_s19 = smov %s2548_s25  ;;  %s3052_s20 = smov %s2539_s22 }
 0x2ed   :  { %14 = sbr.rel (!%p12_p10) target bundleno = 2 (0x2), region = 150 }

</bundles_post_ra>
